<compile_context>
chip_gen: v7x
topology: tpu7x:2x2x1
jax: 0.10.0
libtpu: 0.0.40
codegen_flags: <defaults>
</compile_context>

<pallas_src>
import functools

import numpy as np

import jax
import jax.numpy as jnp
from jax.experimental import pallas as pl
from jax.experimental.pallas import tpu as pltpu

FEATURE_COUNT = 5749
INPUT_SIZE = 28
DEPTH = 3            # input depth; collapses to 1 through the conv stack (fc expects 36*2*2)


def get_out_size(in_size: int, padding: int, kernel_size: int, stride: int) -> int:
    return int((in_size + 2 * padding - kernel_size) / stride + 1)


# ----------------------------- static geometry ------------------------------ #
O1 = get_out_size(INPUT_SIZE, 1, 5, 2)       # 13
O2 = get_out_size(O1, 1, 3, 2)               # 7
O3 = get_out_size(O2, 1, 3, 2)               # 4
O4 = get_out_size(O3, 1, 3, 2)               # 2
C1, C2, C3, C4 = 10, 20, 30, 36
FC_IN = C4 * O4 * O4                         # 144
FC_PAD = 5760                                # 45 * 128 (lane-dense padding of 5749)
FC_CHUNK = 640                               # 5 lane-tiles per FC chunk
N_CHUNKS = FC_PAD // FC_CHUNK                # 9
HP = INPUT_SIZE + 2                          # conv1 input padded H/W = 30
HP_HALF = HP // 2                            # 15 even (and odd) padded rows
VALID_DZ1 = (1, 2, 3)                        # conv1 depth taps that hit real data

# Zero-padded even/odd activation layouts (in nb-row blocks):
#   a1: [even h=0,2,..,12 : 7][Z][odd h=1,..,11 : 6][Z]  -> 15 blocks
#   a2: [even 0,2,4,6     : 4][Z][odd 1,3,5     : 3][Z]  -> 9 blocks
#   a3: [even 0,2         : 2][Z][odd 1,3       : 2]     -> 5 blocks
A1_BLOCKS, A2_BLOCKS, A3_BLOCKS = 15, 9, 5


# ------------------------------- fused kernel ------------------------------- #
def _fused_kernel(x_even_ref, x_odd_ref,
                  v1_ref, v2_ref, v3_ref, v4_ref,
                  b1_ref, b2_ref, b3_ref, b4_ref,
                  fcw_hbm_ref, fcb_ref,
                  out_ref,
                  a1_ref, a2_ref, a3_ref, logits_ref, fcw_vmem_ref, fc_sems,
                  *, nb):
    f32 = jnp.float32
    bf16 = jnp.bfloat16

    # Chunked FC-weight prefetch: issue all 9 per-chunk DMAs now; they overlap
    # the whole conv stack and each is waited on only right before its matmul.
    for j in range(N_CHUNKS):
        pltpu.make_async_copy(fcw_hbm_ref.at[j], fcw_vmem_ref.at[j],
                              fc_sems.at[j]).start()

    def dotf(a, b):
        return jnp.dot(a, b, preferred_element_type=f32)

    # ---- conv1 (k=5, s=2, p=1): 5 batched tap matmuls, depth folded into K.
    # Input rows are (h_parity, h_half, n); each tap is one contiguous slice of
    # 13 row-blocks; W-window and depth are folded into v1[dy] (90, 130).
    # Taps accumulate back-to-back (no interleaved VPU work -> MRB-friendly).
    acc = dotf(x_even_ref[0:O1 * nb, :].astype(bf16), v1_ref[0])
    acc = acc + dotf(x_odd_ref[0:O1 * nb, :].astype(bf16), v1_ref[1])
    acc = acc + dotf(x_even_ref[nb:(O1 + 1) * nb, :].astype(bf16), v1_ref[2])
    acc = acc + dotf(x_odd_ref[nb:(O1 + 1) * nb, :].astype(bf16), v1_ref[3])
    acc = acc + dotf(x_even_ref[2 * nb:(O1 + 2) * nb, :].astype(bf16), v1_ref[4])
    a1 = jnp.maximum(acc + b1_ref[...], 0.0)                      # (13*nb, 130)

    # Scatter conv1 rows into the zero-padded even/odd layout conv2 reads from.
    a1_ref[7 * nb:8 * nb, :] = jnp.zeros((nb, O1 * C1), f32)
    a1_ref[14 * nb:15 * nb, :] = jnp.zeros((nb, O1 * C1), f32)
    for oh in range(O1):
        dst = (oh // 2) if oh % 2 == 0 else (8 + (oh - 1) // 2)
        a1_ref[dst * nb:(dst + 1) * nb, :] = a1[oh * nb:(oh + 1) * nb, :]

    # ---- conv2 (k=3, s=2, p=1): 3 full-height tap matmuls (M = 7*nb).
    acc = dotf(a1_ref[0:7 * nb, :].astype(bf16), v2_ref[1])       # h even
    acc = acc + dotf(a1_ref[7 * nb:14 * nb, :].astype(bf16), v2_ref[0])   # [Z, odd]
    acc = acc + dotf(a1_ref[8 * nb:15 * nb, :].astype(bf16), v2_ref[2])   # [odd, Z]
    a2 = jnp.maximum(acc + b2_ref[...], 0.0)                      # (7*nb, 140)

    a2_ref[4 * nb:5 * nb, :] = jnp.zeros((nb, O2 * C2), f32)
    a2_ref[8 * nb:9 * nb, :] = jnp.zeros((nb, O2 * C2), f32)
    for oh in range(O2):
        dst = (oh // 2) if oh % 2 == 0 else (5 + (oh - 1) // 2)
        a2_ref[dst * nb:(dst + 1) * nb, :] = a2[oh * nb:(oh + 1) * nb, :]

    # ---- conv3: 3 tap matmuls (M = 4*nb).
    acc = dotf(a2_ref[0:4 * nb, :].astype(bf16), v3_ref[1])
    acc = acc + dotf(a2_ref[4 * nb:8 * nb, :].astype(bf16), v3_ref[0])
    acc = acc + dotf(a2_ref[5 * nb:9 * nb, :].astype(bf16), v3_ref[2])
    a3 = jnp.maximum(acc + b3_ref[...], 0.0)                      # (4*nb, 120)

    a3_ref[2 * nb:3 * nb, :] = jnp.zeros((nb, O3 * C3), f32)
    for oh in range(O3):
        dst = (oh // 2) if oh % 2 == 0 else (3 + (oh - 1) // 2)
        a3_ref[dst * nb:(dst + 1) * nb, :] = a3[oh * nb:(oh + 1) * nb, :]

    # ---- conv4 (no ReLU): 3 tap matmuls (M = 2*nb).
    acc = dotf(a3_ref[0:2 * nb, :].astype(bf16), v4_ref[1])
    acc = acc + dotf(a3_ref[2 * nb:4 * nb, :].astype(bf16), v4_ref[0])
    acc = acc + dotf(a3_ref[3 * nb:5 * nb, :].astype(bf16), v4_ref[2])
    a4 = acc + b4_ref[...]                                        # (2*nb, 72)

    # Fold the oh dimension into the FC contraction dim: (nb, 144) bf16.
    xfc = jnp.concatenate([a4[0:nb, :], a4[nb:2 * nb, :]], axis=1).astype(bf16)

    # ---- Linear(144 -> 5749) + ONLINE softmax over 640-col chunks ----------
    m = jnp.full((nb, 1), -jnp.inf, f32)
    s = jnp.zeros((nb, 1), f32)
    chunk_max = []
    for j in range(N_CHUNKS):
        # Wait only for this chunk's weights (later chunks keep streaming in).
        pltpu.make_async_copy(fcw_hbm_ref.at[j], fcw_vmem_ref.at[j],
                              fc_sems.at[j]).wait()
        c0 = j * FC_CHUNK
        lg = fcb_ref[:, c0:c0 + FC_CHUNK] + dotf(xfc, fcw_vmem_ref[j])
        m_new = jnp.maximum(m, jnp.max(lg, axis=-1, keepdims=True))
        e = jnp.exp(lg - m_new)
        s = s * jnp.exp(m - m_new) + jnp.sum(e, axis=-1, keepdims=True)
        logits_ref[:, c0:c0 + FC_CHUNK] = e
        chunk_max.append(m_new)
        m = m_new

    inv = 1.0 / s
    for j in range(N_CHUNKS):                    # single normalize pass
        c0 = j * FC_CHUNK
        scale = jnp.exp(chunk_max[j] - m) * inv
        out_ref[:, c0:c0 + FC_CHUNK] = logits_ref[:, c0:c0 + FC_CHUNK] * scale


# -------------------- host-side (one-time) weight repacking ------------------ #
def _conv1_tap_matrices(w):
    """conv1 per-dy GEMM matrices; depth and W-window folded into the rows.

    V[dy, d*HP + wi, ow*C1 + co] = w[co, 0, d+1, dy, wi - 2*ow], wi = 2*ow + dx
    (wi indexes the W-padded input row of length 30; d = original depth 0..2).
    """
    w = np.asarray(w, np.float32)                      # (C1, 1, 5, 5, 5)
    V = np.zeros((5, DEPTH * HP, O1 * C1), np.float32)
    for dy in range(5):
        for dz in VALID_DZ1:
            d = dz - 1
            for ow in range(O1):
                for dx in range(5):
                    wi = 2 * ow + dx                   # always < HP (28 max)
                    V[dy, d * HP + wi, ow * C1:(ow + 1) * C1] = w[:, 0, dz, dy, dx]
    return V


def _tap_matrices(w, w_in, w_out):
    """conv2..4 (k=3, s=2, p=1, depth tap dz=1) per-dy GEMM matrices.

    V[dy, wi*cin + ci, ow*cout + co] = w[co, ci, 1, dy, dx], wi = 2*ow + dx - 1;
    W-boundary padding encoded as zero rows.
    """
    w = np.asarray(w, np.float32)
    cout, cin = w.shape[0], w.shape[1]
    V = np.zeros((3, w_in * cin, w_out * cout), np.float32)
    for dy in range(3):
        for ow in range(w_out):
            for dx in range(3):
                wi = 2 * ow + dx - 1
                if 0 <= wi < w_in:
                    V[dy, wi * cin:(wi + 1) * cin,
                      ow * cout:(ow + 1) * cout] = w[:, :, 1, dy, dx].T
    return V


def prepare_params(params):
    """Repack torch-layout parameters into kernel-ready arrays (run once)."""
    (w1, b1), (w2, b2), (w3, b3), (w4, b4), (wf, bfc) = params

    v1 = _conv1_tap_matrices(w1)                       # (5, 90, 130)
    v2 = _tap_matrices(w2, O1, O2)                     # (3, 130, 140)
    v3 = _tap_matrices(w3, O2, O3)                     # (3, 140, 120)
    v4 = _tap_matrices(w4, O3, O4)                     # (3, 120, 72)

    # biases tiled over the output-width factor of the (ow, cout) column layout
    b1t = np.tile(np.asarray(b1, np.float32), O1)[None, :]
    b2t = np.tile(np.asarray(b2, np.float32), O2)[None, :]
    b3t = np.tile(np.asarray(b3, np.float32), O3)[None, :]
    b4t = np.tile(np.asarray(b4, np.float32), O4)[None, :]

    # FC weight: torch layout (F, 144), in-features flattened (c, d, oh, ow).
    # Reorder rows to (oh, ow, c) to match the kernel's xfc layout, pad the 5749
    # output columns to 5760, cast bf16, and chunk so each (144, 640) slab is
    # contiguous in HBM for the per-chunk DMAs.
    wf_np = np.asarray(wf, np.float32)                               # (5749, 144)
    wr = wf_np.reshape(FEATURE_COUNT, C4, 1, O4, O4)                 # (F, c, d, oh, ow)
    wr = np.transpose(wr, (2, 3, 4, 1, 0)).reshape(FC_IN, FEATURE_COUNT)  # (144, F)
    wf_pad = np.zeros((FC_IN, FC_PAD), np.float32)
    wf_pad[:, :FEATURE_COUNT] = wr
    wf_chunks = wf_pad.reshape(FC_IN, N_CHUNKS, FC_CHUNK).transpose(1, 0, 2)

    # padded logit columns get a huge negative bias so they vanish in the softmax
    # (kept in f32 so exp underflows cleanly to 0).
    bf_pad = np.full((1, FC_PAD), -1e30, np.float32)
    bf_pad[0, :FEATURE_COUNT] = np.asarray(bfc, np.float32)

    return dict(
        v1=jnp.asarray(v1, jnp.bfloat16), v2=jnp.asarray(v2, jnp.bfloat16),
        v3=jnp.asarray(v3, jnp.bfloat16), v4=jnp.asarray(v4, jnp.bfloat16),
        b1=jnp.asarray(b1t), b2=jnp.asarray(b2t),
        b3=jnp.asarray(b3t), b4=jnp.asarray(b4t),
        fcw=jnp.asarray(wf_chunks, jnp.bfloat16), fcb=jnp.asarray(bf_pad),
    )


# ------------------------------ parameter init ------------------------------ #
def init_conv3d(key, cout, cin, k):
    fan_in = cin * k * k * k
    bound = 1.0 / np.sqrt(fan_in)
    kw_, kb_ = jax.random.split(key)
    w = jax.random.uniform(kw_, (cout, cin, k, k, k), jnp.float32, -bound, bound)
    b = jax.random.uniform(kb_, (cout,), jnp.float32, -bound, bound)
    return w, b


def init_linear(key, in_f, out_f):
    bound = 1.0 / np.sqrt(in_f)
    kw_, kb_ = jax.random.split(key)
    w = jax.random.uniform(kw_, (out_f, in_f), jnp.float32, -bound, bound)  # torch layout
    b = jax.random.uniform(kb_, (out_f,), jnp.float32, -bound, bound)
    return w, b


def init_params(key):
    k1, k2, k3, k4, k5 = jax.random.split(key, 5)
    return (init_conv3d(k1, C1, 1, 5),
            init_conv3d(k2, C2, C1, 3),
            init_conv3d(k3, C3, C2, 3),
            init_conv3d(k4, C4, C3, 3),
            init_linear(k5, FC_IN, FEATURE_COUNT))


# --------------------------------- forward ---------------------------------- #
def _full_spec(shape):
    zeros = (0,) * len(shape)
    return pl.BlockSpec(tuple(shape), lambda i, _z=zeros: _z)


@jax.jit
def model_forward(x_ncdhw, prep):
    nb = x_ncdhw.shape[0]
    assert x_ncdhw.shape[1] == 1 and x_ncdhw.shape[2] == DEPTH

    # Tiny XLA glue (~21 KB): pad H/W by 1, fold depth into the row vector and
    # split H into even/odd rows so every in-kernel tap is one contiguous slice.
    x = x_ncdhw[:, 0].astype(jnp.float32)                        # (nb, D, 28, 28)
    xp = jnp.pad(x, ((0, 0), (0, 0), (1, 1), (1, 1)))            # (nb, D, 30, 30)
    xt = jnp.transpose(xp, (2, 0, 1, 3)).reshape(HP, nb, DEPTH * HP)  # (30, nb, 90)
    x_even = xt[0::2].reshape(HP_HALF * nb, DEPTH * HP)
    x_odd = xt[1::2].reshape(HP_HALF * nb, DEPTH * HP)

    kernel = functools.partial(_fused_kernel, nb=nb)
    out_pad = pl.pallas_call(
        kernel,
        out_shape=jax.ShapeDtypeStruct((nb, FC_PAD), jnp.float32),
        grid=(1,),
        in_specs=[
            _full_spec(x_even.shape), _full_spec(x_odd.shape),
            _full_spec(prep['v1'].shape), _full_spec(prep['v2'].shape),
            _full_spec(prep['v3'].shape), _full_spec(prep['v4'].shape),
            _full_spec(prep['b1'].shape), _full_spec(prep['b2'].shape),
            _full_spec(prep['b3'].shape), _full_spec(prep['b4'].shape),
            pl.BlockSpec(memory_space=pl.ANY),       # FC weight stays in HBM; chunked DMA
            _full_spec(prep['fcb'].shape),
        ],
        out_specs=_full_spec((nb, FC_PAD)),
        scratch_shapes=[
            pltpu.VMEM((A1_BLOCKS * nb, O1 * C1), jnp.float32),   # conv1 out (even/odd padded)
            pltpu.VMEM((A2_BLOCKS * nb, O2 * C2), jnp.float32),   # conv2 out
            pltpu.VMEM((A3_BLOCKS * nb, O3 * C3), jnp.float32),   # conv3 out
            pltpu.VMEM((nb, FC_PAD), jnp.float32),                # softmax numerator buffer
            pltpu.VMEM((N_CHUNKS, FC_IN, FC_CHUNK), jnp.bfloat16),  # prefetched FC weight
            pltpu.SemaphoreType.DMA((N_CHUNKS,)),
        ],
        compiler_params=pltpu.CompilerParams(dimension_semantics=("arbitrary",)),
        cost_estimate=pl.CostEstimate(flops=9_000_000,
                                      transcendentals=25_000,
                                      bytes_accessed=2_200_000),
    )(x_even, x_odd,
      prep['v1'], prep['v2'], prep['v3'], prep['v4'],
      prep['b1'], prep['b2'], prep['b3'], prep['b4'],
      prep['fcw'], prep['fcb'])

    return out_pad[:, :FEATURE_COUNT]


# ------------------------- pure-JAX f32 reference --------------------------- #
@jax.jit
def reference_forward(x, params):
    (w1, b1), (w2, b2), (w3, b3), (w4, b4), (wf, bfc) = params

    def conv(h, w, b):
        y = jax.lax.conv_general_dilated(
            h, w, window_strides=(2, 2, 2), padding=[(1, 1)] * 3,
            dimension_numbers=("NCDHW", "OIDHW", "NCDHW"))
        return y + b[None, :, None, None, None]

    h = jax.nn.relu(conv(x, w1, b1))
    h = jax.nn.relu(conv(h, w2, b2))
    h = jax.nn.relu(conv(h, w3, b3))
    h = conv(h, w4, b4)
    logits = h.reshape(h.shape[0], -1) @ wf.T + bfc
    return jax.nn.softmax(logits, axis=-1)


if __name__ == "__main__":
    key = jax.random.PRNGKey(0)
    kx, kp = jax.random.split(key)

    # Input depth = 3 so the depth dim collapses to 1 after the 4 convs,
    # matching fc.in_features = 36 * o_4 * o_4 = 144 exactly.
    batch = 2
    x = jax.random.normal(kx, (batch, 1, DEPTH, INPUT_SIZE, INPUT_SIZE), jnp.float32)

    params = init_params(kp)
    prep = prepare_params(params)            # one-time host-side weight repacking

    y = model_forward(x, prep)
    y = jax.block_until_ready(y)

    assert y.shape == (batch, FEATURE_COUNT), y.shape
    assert bool(jnp.all(jnp.isfinite(y)))
    row_sums = jnp.sum(y, axis=1)
    assert bool(jnp.all(jnp.abs(row_sums - 1.0) < 1e-3)), row_sums

    # Explicit tolerance check against the f32 reference (bf16 MXU operands).
    y_ref = jax.block_until_ready(reference_forward(x, params))
    max_err = float(jnp.max(jnp.abs(y - y_ref)))
    assert max_err < 1e-4, max_err

    print("KERNEL_OK")
</pallas_src>

<mosaic_0001>
module attributes {stable_mosaic.version = 11 : i64} {
  func.func @_fused_kernel(%arg0: i32, %arg1: memref<30x90xf32, #tpu.memory_space<vmem>>, %arg2: memref<30x90xf32, #tpu.memory_space<vmem>>, %arg3: memref<5x90x130xbf16, #tpu.memory_space<vmem>>, %arg4: memref<3x130x140xbf16, #tpu.memory_space<vmem>>, %arg5: memref<3x140x120xbf16, #tpu.memory_space<vmem>>, %arg6: memref<3x120x72xbf16, #tpu.memory_space<vmem>>, %arg7: memref<1x130xf32, #tpu.memory_space<vmem>>, %arg8: memref<1x140xf32, #tpu.memory_space<vmem>>, %arg9: memref<1x120xf32, #tpu.memory_space<vmem>>, %arg10: memref<1x72xf32, #tpu.memory_space<vmem>>, %arg11: memref<9x144x640xbf16, #tpu.memory_space<any>>, %arg12: memref<1x5760xf32, #tpu.memory_space<vmem>>, %arg13: memref<2x5760xf32, #tpu.memory_space<vmem>>, %arg14: memref<30x130xf32, #tpu.memory_space<vmem>>, %arg15: memref<18x140xf32, #tpu.memory_space<vmem>>, %arg16: memref<10x120xf32, #tpu.memory_space<vmem>>, %arg17: memref<2x5760xf32, #tpu.memory_space<vmem>>, %arg18: memref<9x144x640xbf16, #tpu.memory_space<vmem>>, %arg19: memref<9x!tpu.dma_semaphore, #tpu.memory_space<semaphore_mem>>) attributes {dimension_semantics = [#tpu.dimension_semantics<arbitrary>], iteration_bounds = array<i64: 1>, scalar_prefetch = 0 : i64, scratch_operands = 6 : i64, tpu.core_type = #tpu.core_type<tc>, window_params = [{pipeline_mode = #tpu.pipeline_mode<synchronous>, transform_indices = @transform_0, window_bounds = array<i64: 30, 90>}, {pipeline_mode = #tpu.pipeline_mode<synchronous>, transform_indices = @transform_1, window_bounds = array<i64: 30, 90>}, {pipeline_mode = #tpu.pipeline_mode<synchronous>, transform_indices = @transform_2, window_bounds = array<i64: 5, 90, 130>}, {pipeline_mode = #tpu.pipeline_mode<synchronous>, transform_indices = @transform_3, window_bounds = array<i64: 3, 130, 140>}, {pipeline_mode = #tpu.pipeline_mode<synchronous>, transform_indices = @transform_4, window_bounds = array<i64: 3, 140, 120>}, {pipeline_mode = #tpu.pipeline_mode<synchronous>, transform_indices = @transform_5, window_bounds = array<i64: 3, 120, 72>}, {pipeline_mode = #tpu.pipeline_mode<synchronous>, transform_indices = @transform_6, window_bounds = array<i64: 1, 130>}, {pipeline_mode = #tpu.pipeline_mode<synchronous>, transform_indices = @transform_7, window_bounds = array<i64: 1, 140>}, {pipeline_mode = #tpu.pipeline_mode<synchronous>, transform_indices = @transform_8, window_bounds = array<i64: 1, 120>}, {pipeline_mode = #tpu.pipeline_mode<synchronous>, transform_indices = @transform_9, window_bounds = array<i64: 1, 72>}, {}, {pipeline_mode = #tpu.pipeline_mode<synchronous>, transform_indices = @transform_11, window_bounds = array<i64: 1, 5760>}, {pipeline_mode = #tpu.pipeline_mode<synchronous>, transform_indices = @transform_12, window_bounds = array<i64: 2, 5760>}]} {
    %c0_i32 = arith.constant 0 : i32
    %c0_i32_0 = arith.constant 0 : i32
    %c0_i32_1 = arith.constant 0 : i32
    %c0_i32_2 = arith.constant 0 : i32
    %c0_i32_3 = arith.constant 0 : i32
    %0 = tpu.memref_slice %arg11[%c0_i32, %c0_i32_2, %c0_i32_3] : memref<9x144x640xbf16, #tpu.memory_space<any>> -> memref<1x144x640xbf16, #tpu.memory_space<any>>
    %1 = tpu.memref_squeeze %0 : memref<1x144x640xbf16, #tpu.memory_space<any>> -> memref<144x640xbf16, #tpu.memory_space<any>>
    %c0_i32_4 = arith.constant 0 : i32
    %c0_i32_5 = arith.constant 0 : i32
    %2 = tpu.memref_slice %arg18[%c0_i32_0, %c0_i32_4, %c0_i32_5] : memref<9x144x640xbf16, #tpu.memory_space<vmem>> -> memref<1x144x640xbf16, #tpu.memory_space<vmem>>
    %3 = tpu.memref_squeeze %2 : memref<1x144x640xbf16, #tpu.memory_space<vmem>> -> memref<144x640xbf16, #tpu.memory_space<vmem>>
    %4 = tpu.memref_slice %arg19[%c0_i32_1] : memref<9x!tpu.dma_semaphore, #tpu.memory_space<semaphore_mem>> -> memref<1x!tpu.dma_semaphore, #tpu.memory_space<semaphore_mem>>
    %5 = tpu.memref_squeeze %4 : memref<1x!tpu.dma_semaphore, #tpu.memory_space<semaphore_mem>> -> memref<!tpu.dma_semaphore, #tpu.memory_space<semaphore_mem>>
    tpu.enqueue_dma source(%1 : memref<144x640xbf16, #tpu.memory_space<any>>) target(%3 : memref<144x640xbf16, #tpu.memory_space<vmem>>) target_semaphore(%5 : memref<!tpu.dma_semaphore, #tpu.memory_space<semaphore_mem>>)
    %c1_i32 = arith.constant 1 : i32
    %c1_i32_6 = arith.constant 1 : i32
    %c1_i32_7 = arith.constant 1 : i32
    %c0_i32_8 = arith.constant 0 : i32
    %c0_i32_9 = arith.constant 0 : i32
    %6 = tpu.memref_slice %arg11[%c1_i32, %c0_i32_8, %c0_i32_9] : memref<9x144x640xbf16, #tpu.memory_space<any>> -> memref<1x144x640xbf16, #tpu.memory_space<any>>
    %7 = tpu.memref_squeeze %6 : memref<1x144x640xbf16, #tpu.memory_space<any>> -> memref<144x640xbf16, #tpu.memory_space<any>>
    %c0_i32_10 = arith.constant 0 : i32
    %c0_i32_11 = arith.constant 0 : i32
    %8 = tpu.memref_slice %arg18[%c1_i32_6, %c0_i32_10, %c0_i32_11] : memref<9x144x640xbf16, #tpu.memory_space<vmem>> -> memref<1x144x640xbf16, #tpu.memory_space<vmem>>
    %9 = tpu.memref_squeeze %8 : memref<1x144x640xbf16, #tpu.memory_space<vmem>> -> memref<144x640xbf16, #tpu.memory_space<vmem>>
    %10 = tpu.memref_slice %arg19[%c1_i32_7] : memref<9x!tpu.dma_semaphore, #tpu.memory_space<semaphore_mem>> -> memref<1x!tpu.dma_semaphore, #tpu.memory_space<semaphore_mem>>
    %11 = tpu.memref_squeeze %10 : memref<1x!tpu.dma_semaphore, #tpu.memory_space<semaphore_mem>> -> memref<!tpu.dma_semaphore, #tpu.memory_space<semaphore_mem>>
    tpu.enqueue_dma source(%7 : memref<144x640xbf16, #tpu.memory_space<any>>) target(%9 : memref<144x640xbf16, #tpu.memory_space<vmem>>) target_semaphore(%11 : memref<!tpu.dma_semaphore, #tpu.memory_space<semaphore_mem>>)
    %c2_i32 = arith.constant 2 : i32
    %c2_i32_12 = arith.constant 2 : i32
    %c2_i32_13 = arith.constant 2 : i32
    %c0_i32_14 = arith.constant 0 : i32
    %c0_i32_15 = arith.constant 0 : i32
    %12 = tpu.memref_slice %arg11[%c2_i32, %c0_i32_14, %c0_i32_15] : memref<9x144x640xbf16, #tpu.memory_space<any>> -> memref<1x144x640xbf16, #tpu.memory_space<any>>
    %13 = tpu.memref_squeeze %12 : memref<1x144x640xbf16, #tpu.memory_space<any>> -> memref<144x640xbf16, #tpu.memory_space<any>>
    %c0_i32_16 = arith.constant 0 : i32
    %c0_i32_17 = arith.constant 0 : i32
    %14 = tpu.memref_slice %arg18[%c2_i32_12, %c0_i32_16, %c0_i32_17] : memref<9x144x640xbf16, #tpu.memory_space<vmem>> -> memref<1x144x640xbf16, #tpu.memory_space<vmem>>
    %15 = tpu.memref_squeeze %14 : memref<1x144x640xbf16, #tpu.memory_space<vmem>> -> memref<144x640xbf16, #tpu.memory_space<vmem>>
    %16 = tpu.memref_slice %arg19[%c2_i32_13] : memref<9x!tpu.dma_semaphore, #tpu.memory_space<semaphore_mem>> -> memref<1x!tpu.dma_semaphore, #tpu.memory_space<semaphore_mem>>
    %17 = tpu.memref_squeeze %16 : memref<1x!tpu.dma_semaphore, #tpu.memory_space<semaphore_mem>> -> memref<!tpu.dma_semaphore, #tpu.memory_space<semaphore_mem>>
    tpu.enqueue_dma source(%13 : memref<144x640xbf16, #tpu.memory_space<any>>) target(%15 : memref<144x640xbf16, #tpu.memory_space<vmem>>) target_semaphore(%17 : memref<!tpu.dma_semaphore, #tpu.memory_space<semaphore_mem>>)
    %c3_i32 = arith.constant 3 : i32
    %c3_i32_18 = arith.constant 3 : i32
    %c3_i32_19 = arith.constant 3 : i32
    %c0_i32_20 = arith.constant 0 : i32
    %c0_i32_21 = arith.constant 0 : i32
    %18 = tpu.memref_slice %arg11[%c3_i32, %c0_i32_20, %c0_i32_21] : memref<9x144x640xbf16, #tpu.memory_space<any>> -> memref<1x144x640xbf16, #tpu.memory_space<any>>
    %19 = tpu.memref_squeeze %18 : memref<1x144x640xbf16, #tpu.memory_space<any>> -> memref<144x640xbf16, #tpu.memory_space<any>>
    %c0_i32_22 = arith.constant 0 : i32
    %c0_i32_23 = arith.constant 0 : i32
    %20 = tpu.memref_slice %arg18[%c3_i32_18, %c0_i32_22, %c0_i32_23] : memref<9x144x640xbf16, #tpu.memory_space<vmem>> -> memref<1x144x640xbf16, #tpu.memory_space<vmem>>
    %21 = tpu.memref_squeeze %20 : memref<1x144x640xbf16, #tpu.memory_space<vmem>> -> memref<144x640xbf16, #tpu.memory_space<vmem>>
    %22 = tpu.memref_slice %arg19[%c3_i32_19] : memref<9x!tpu.dma_semaphore, #tpu.memory_space<semaphore_mem>> -> memref<1x!tpu.dma_semaphore, #tpu.memory_space<semaphore_mem>>
    %23 = tpu.memref_squeeze %22 : memref<1x!tpu.dma_semaphore, #tpu.memory_space<semaphore_mem>> -> memref<!tpu.dma_semaphore, #tpu.memory_space<semaphore_mem>>
    tpu.enqueue_dma source(%19 : memref<144x640xbf16, #tpu.memory_space<any>>) target(%21 : memref<144x640xbf16, #tpu.memory_space<vmem>>) target_semaphore(%23 : memref<!tpu.dma_semaphore, #tpu.memory_space<semaphore_mem>>)
    %c4_i32 = arith.constant 4 : i32
    %c4_i32_24 = arith.constant 4 : i32
    %c4_i32_25 = arith.constant 4 : i32
    %c0_i32_26 = arith.constant 0 : i32
    %c0_i32_27 = arith.constant 0 : i32
    %24 = tpu.memref_slice %arg11[%c4_i32, %c0_i32_26, %c0_i32_27] : memref<9x144x640xbf16, #tpu.memory_space<any>> -> memref<1x144x640xbf16, #tpu.memory_space<any>>
    %25 = tpu.memref_squeeze %24 : memref<1x144x640xbf16, #tpu.memory_space<any>> -> memref<144x640xbf16, #tpu.memory_space<any>>
    %c0_i32_28 = arith.constant 0 : i32
    %c0_i32_29 = arith.constant 0 : i32
    %26 = tpu.memref_slice %arg18[%c4_i32_24, %c0_i32_28, %c0_i32_29] : memref<9x144x640xbf16, #tpu.memory_space<vmem>> -> memref<1x144x640xbf16, #tpu.memory_space<vmem>>
    %27 = tpu.memref_squeeze %26 : memref<1x144x640xbf16, #tpu.memory_space<vmem>> -> memref<144x640xbf16, #tpu.memory_space<vmem>>
    %28 = tpu.memref_slice %arg19[%c4_i32_25] : memref<9x!tpu.dma_semaphore, #tpu.memory_space<semaphore_mem>> -> memref<1x!tpu.dma_semaphore, #tpu.memory_space<semaphore_mem>>
    %29 = tpu.memref_squeeze %28 : memref<1x!tpu.dma_semaphore, #tpu.memory_space<semaphore_mem>> -> memref<!tpu.dma_semaphore, #tpu.memory_space<semaphore_mem>>
    tpu.enqueue_dma source(%25 : memref<144x640xbf16, #tpu.memory_space<any>>) target(%27 : memref<144x640xbf16, #tpu.memory_space<vmem>>) target_semaphore(%29 : memref<!tpu.dma_semaphore, #tpu.memory_space<semaphore_mem>>)
    %c5_i32 = arith.constant 5 : i32
    %c5_i32_30 = arith.constant 5 : i32
    %c5_i32_31 = arith.constant 5 : i32
    %c0_i32_32 = arith.constant 0 : i32
    %c0_i32_33 = arith.constant 0 : i32
    %30 = tpu.memref_slice %arg11[%c5_i32, %c0_i32_32, %c0_i32_33] : memref<9x144x640xbf16, #tpu.memory_space<any>> -> memref<1x144x640xbf16, #tpu.memory_space<any>>
    %31 = tpu.memref_squeeze %30 : memref<1x144x640xbf16, #tpu.memory_space<any>> -> memref<144x640xbf16, #tpu.memory_space<any>>
    %c0_i32_34 = arith.constant 0 : i32
    %c0_i32_35 = arith.constant 0 : i32
    %32 = tpu.memref_slice %arg18[%c5_i32_30, %c0_i32_34, %c0_i32_35] : memref<9x144x640xbf16, #tpu.memory_space<vmem>> -> memref<1x144x640xbf16, #tpu.memory_space<vmem>>
    %33 = tpu.memref_squeeze %32 : memref<1x144x640xbf16, #tpu.memory_space<vmem>> -> memref<144x640xbf16, #tpu.memory_space<vmem>>
    %34 = tpu.memref_slice %arg19[%c5_i32_31] : memref<9x!tpu.dma_semaphore, #tpu.memory_space<semaphore_mem>> -> memref<1x!tpu.dma_semaphore, #tpu.memory_space<semaphore_mem>>
    %35 = tpu.memref_squeeze %34 : memref<1x!tpu.dma_semaphore, #tpu.memory_space<semaphore_mem>> -> memref<!tpu.dma_semaphore, #tpu.memory_space<semaphore_mem>>
    tpu.enqueue_dma source(%31 : memref<144x640xbf16, #tpu.memory_space<any>>) target(%33 : memref<144x640xbf16, #tpu.memory_space<vmem>>) target_semaphore(%35 : memref<!tpu.dma_semaphore, #tpu.memory_space<semaphore_mem>>)
    %c6_i32 = arith.constant 6 : i32
    %c6_i32_36 = arith.constant 6 : i32
    %c6_i32_37 = arith.constant 6 : i32
    %c0_i32_38 = arith.constant 0 : i32
    %c0_i32_39 = arith.constant 0 : i32
    %36 = tpu.memref_slice %arg11[%c6_i32, %c0_i32_38, %c0_i32_39] : memref<9x144x640xbf16, #tpu.memory_space<any>> -> memref<1x144x640xbf16, #tpu.memory_space<any>>
    %37 = tpu.memref_squeeze %36 : memref<1x144x640xbf16, #tpu.memory_space<any>> -> memref<144x640xbf16, #tpu.memory_space<any>>
    %c0_i32_40 = arith.constant 0 : i32
    %c0_i32_41 = arith.constant 0 : i32
    %38 = tpu.memref_slice %arg18[%c6_i32_36, %c0_i32_40, %c0_i32_41] : memref<9x144x640xbf16, #tpu.memory_space<vmem>> -> memref<1x144x640xbf16, #tpu.memory_space<vmem>>
    %39 = tpu.memref_squeeze %38 : memref<1x144x640xbf16, #tpu.memory_space<vmem>> -> memref<144x640xbf16, #tpu.memory_space<vmem>>
    %40 = tpu.memref_slice %arg19[%c6_i32_37] : memref<9x!tpu.dma_semaphore, #tpu.memory_space<semaphore_mem>> -> memref<1x!tpu.dma_semaphore, #tpu.memory_space<semaphore_mem>>
    %41 = tpu.memref_squeeze %40 : memref<1x!tpu.dma_semaphore, #tpu.memory_space<semaphore_mem>> -> memref<!tpu.dma_semaphore, #tpu.memory_space<semaphore_mem>>
    tpu.enqueue_dma source(%37 : memref<144x640xbf16, #tpu.memory_space<any>>) target(%39 : memref<144x640xbf16, #tpu.memory_space<vmem>>) target_semaphore(%41 : memref<!tpu.dma_semaphore, #tpu.memory_space<semaphore_mem>>)
    %c7_i32 = arith.constant 7 : i32
    %c7_i32_42 = arith.constant 7 : i32
    %c7_i32_43 = arith.constant 7 : i32
    %c0_i32_44 = arith.constant 0 : i32
    %c0_i32_45 = arith.constant 0 : i32
    %42 = tpu.memref_slice %arg11[%c7_i32, %c0_i32_44, %c0_i32_45] : memref<9x144x640xbf16, #tpu.memory_space<any>> -> memref<1x144x640xbf16, #tpu.memory_space<any>>
    %43 = tpu.memref_squeeze %42 : memref<1x144x640xbf16, #tpu.memory_space<any>> -> memref<144x640xbf16, #tpu.memory_space<any>>
    %c0_i32_46 = arith.constant 0 : i32
    %c0_i32_47 = arith.constant 0 : i32
    %44 = tpu.memref_slice %arg18[%c7_i32_42, %c0_i32_46, %c0_i32_47] : memref<9x144x640xbf16, #tpu.memory_space<vmem>> -> memref<1x144x640xbf16, #tpu.memory_space<vmem>>
    %45 = tpu.memref_squeeze %44 : memref<1x144x640xbf16, #tpu.memory_space<vmem>> -> memref<144x640xbf16, #tpu.memory_space<vmem>>
    %46 = tpu.memref_slice %arg19[%c7_i32_43] : memref<9x!tpu.dma_semaphore, #tpu.memory_space<semaphore_mem>> -> memref<1x!tpu.dma_semaphore, #tpu.memory_space<semaphore_mem>>
    %47 = tpu.memref_squeeze %46 : memref<1x!tpu.dma_semaphore, #tpu.memory_space<semaphore_mem>> -> memref<!tpu.dma_semaphore, #tpu.memory_space<semaphore_mem>>
    tpu.enqueue_dma source(%43 : memref<144x640xbf16, #tpu.memory_space<any>>) target(%45 : memref<144x640xbf16, #tpu.memory_space<vmem>>) target_semaphore(%47 : memref<!tpu.dma_semaphore, #tpu.memory_space<semaphore_mem>>)
    %c8_i32 = arith.constant 8 : i32
    %c8_i32_48 = arith.constant 8 : i32
    %c8_i32_49 = arith.constant 8 : i32
    %c0_i32_50 = arith.constant 0 : i32
    %c0_i32_51 = arith.constant 0 : i32
    %48 = tpu.memref_slice %arg11[%c8_i32, %c0_i32_50, %c0_i32_51] : memref<9x144x640xbf16, #tpu.memory_space<any>> -> memref<1x144x640xbf16, #tpu.memory_space<any>>
    %49 = tpu.memref_squeeze %48 : memref<1x144x640xbf16, #tpu.memory_space<any>> -> memref<144x640xbf16, #tpu.memory_space<any>>
    %c0_i32_52 = arith.constant 0 : i32
    %c0_i32_53 = arith.constant 0 : i32
    %50 = tpu.memref_slice %arg18[%c8_i32_48, %c0_i32_52, %c0_i32_53] : memref<9x144x640xbf16, #tpu.memory_space<vmem>> -> memref<1x144x640xbf16, #tpu.memory_space<vmem>>
    %51 = tpu.memref_squeeze %50 : memref<1x144x640xbf16, #tpu.memory_space<vmem>> -> memref<144x640xbf16, #tpu.memory_space<vmem>>
    %52 = tpu.memref_slice %arg19[%c8_i32_49] : memref<9x!tpu.dma_semaphore, #tpu.memory_space<semaphore_mem>> -> memref<1x!tpu.dma_semaphore, #tpu.memory_space<semaphore_mem>>
    %53 = tpu.memref_squeeze %52 : memref<1x!tpu.dma_semaphore, #tpu.memory_space<semaphore_mem>> -> memref<!tpu.dma_semaphore, #tpu.memory_space<semaphore_mem>>
    tpu.enqueue_dma source(%49 : memref<144x640xbf16, #tpu.memory_space<any>>) target(%51 : memref<144x640xbf16, #tpu.memory_space<vmem>>) target_semaphore(%53 : memref<!tpu.dma_semaphore, #tpu.memory_space<semaphore_mem>>)
    %c0 = arith.constant 0 : index
    %c0_54 = arith.constant 0 : index
    %54 = vector.load %arg1[%c0, %c0_54] : memref<30x90xf32, #tpu.memory_space<vmem>>, vector<26x90xf32>
    %55 = arith.truncf %54 : vector<26x90xf32> to vector<26x90xbf16>
    %c0_55 = arith.constant 0 : index
    %c0_56 = arith.constant 0 : index
    %c0_57 = arith.constant 0 : index
    %56 = vector.load %arg3[%c0_55, %c0_56, %c0_57] : memref<5x90x130xbf16, #tpu.memory_space<vmem>>, vector<1x90x130xbf16>
    %57 = vector.shape_cast %56 : vector<1x90x130xbf16> to vector<90x130xbf16>
    %cst = arith.constant dense<0.000000e+00> : vector<26x130xf32>
    %58 = tpu.matmul %55, %57, %cst {dimension_numbers = #tpu.dot_dimension_numbers<[1], [0], [0], [1], [0, 0, 1, 1], [], []>} : vector<26x90xbf16>, vector<90x130xbf16>, vector<26x130xf32> -> vector<26x130xf32>
    %c0_58 = arith.constant 0 : index
    %c0_59 = arith.constant 0 : index
    %59 = vector.load %arg2[%c0_58, %c0_59] : memref<30x90xf32, #tpu.memory_space<vmem>>, vector<26x90xf32>
    %60 = arith.truncf %59 : vector<26x90xf32> to vector<26x90xbf16>
    %c1 = arith.constant 1 : index
    %c0_60 = arith.constant 0 : index
    %c0_61 = arith.constant 0 : index
    %61 = vector.load %arg3[%c1, %c0_60, %c0_61] : memref<5x90x130xbf16, #tpu.memory_space<vmem>>, vector<1x90x130xbf16>
    %62 = vector.shape_cast %61 : vector<1x90x130xbf16> to vector<90x130xbf16>
    %cst_62 = arith.constant dense<0.000000e+00> : vector<26x130xf32>
    %63 = tpu.matmul %60, %62, %cst_62 {dimension_numbers = #tpu.dot_dimension_numbers<[1], [0], [0], [1], [0, 0, 1, 1], [], []>} : vector<26x90xbf16>, vector<90x130xbf16>, vector<26x130xf32> -> vector<26x130xf32>
    %64 = arith.addf %58, %63 : vector<26x130xf32>
    %c2 = arith.constant 2 : index
    %c0_63 = arith.constant 0 : index
    %65 = vector.load %arg1[%c2, %c0_63] : memref<30x90xf32, #tpu.memory_space<vmem>>, vector<26x90xf32>
    %66 = arith.truncf %65 : vector<26x90xf32> to vector<26x90xbf16>
    %c2_64 = arith.constant 2 : index
    %c0_65 = arith.constant 0 : index
    %c0_66 = arith.constant 0 : index
    %67 = vector.load %arg3[%c2_64, %c0_65, %c0_66] : memref<5x90x130xbf16, #tpu.memory_space<vmem>>, vector<1x90x130xbf16>
    %68 = vector.shape_cast %67 : vector<1x90x130xbf16> to vector<90x130xbf16>
    %cst_67 = arith.constant dense<0.000000e+00> : vector<26x130xf32>
    %69 = tpu.matmul %66, %68, %cst_67 {dimension_numbers = #tpu.dot_dimension_numbers<[1], [0], [0], [1], [0, 0, 1, 1], [], []>} : vector<26x90xbf16>, vector<90x130xbf16>, vector<26x130xf32> -> vector<26x130xf32>
    %70 = arith.addf %64, %69 : vector<26x130xf32>
    %c2_68 = arith.constant 2 : index
    %c0_69 = arith.constant 0 : index
    %71 = vector.load %arg2[%c2_68, %c0_69] : memref<30x90xf32, #tpu.memory_space<vmem>>, vector<26x90xf32>
    %72 = arith.truncf %71 : vector<26x90xf32> to vector<26x90xbf16>
    %c3 = arith.constant 3 : index
    %c0_70 = arith.constant 0 : index
    %c0_71 = arith.constant 0 : index
    %73 = vector.load %arg3[%c3, %c0_70, %c0_71] : memref<5x90x130xbf16, #tpu.memory_space<vmem>>, vector<1x90x130xbf16>
    %74 = vector.shape_cast %73 : vector<1x90x130xbf16> to vector<90x130xbf16>
    %cst_72 = arith.constant dense<0.000000e+00> : vector<26x130xf32>
    %75 = tpu.matmul %72, %74, %cst_72 {dimension_numbers = #tpu.dot_dimension_numbers<[1], [0], [0], [1], [0, 0, 1, 1], [], []>} : vector<26x90xbf16>, vector<90x130xbf16>, vector<26x130xf32> -> vector<26x130xf32>
    %76 = arith.addf %70, %75 : vector<26x130xf32>
    %c4 = arith.constant 4 : index
    %c0_73 = arith.constant 0 : index
    %77 = vector.load %arg1[%c4, %c0_73] : memref<30x90xf32, #tpu.memory_space<vmem>>, vector<26x90xf32>
    %78 = arith.truncf %77 : vector<26x90xf32> to vector<26x90xbf16>
    %c4_74 = arith.constant 4 : index
    %c0_75 = arith.constant 0 : index
    %c0_76 = arith.constant 0 : index
    %79 = vector.load %arg3[%c4_74, %c0_75, %c0_76] : memref<5x90x130xbf16, #tpu.memory_space<vmem>>, vector<1x90x130xbf16>
    %80 = vector.shape_cast %79 : vector<1x90x130xbf16> to vector<90x130xbf16>
    %cst_77 = arith.constant dense<0.000000e+00> : vector<26x130xf32>
    %81 = tpu.matmul %78, %80, %cst_77 {dimension_numbers = #tpu.dot_dimension_numbers<[1], [0], [0], [1], [0, 0, 1, 1], [], []>} : vector<26x90xbf16>, vector<90x130xbf16>, vector<26x130xf32> -> vector<26x130xf32>
    %82 = arith.addf %76, %81 : vector<26x130xf32>
    %c0_78 = arith.constant 0 : index
    %c0_79 = arith.constant 0 : index
    %83 = vector.load %arg7[%c0_78, %c0_79] : memref<1x130xf32, #tpu.memory_space<vmem>>, vector<1x130xf32>
    %84 = vector.broadcast %83 : vector<1x130xf32> to vector<26x130xf32>
    %85 = arith.addf %82, %84 : vector<26x130xf32>
    %cst_80 = arith.constant 0.000000e+00 : f32
    %86 = vector.broadcast %cst_80 : f32 to vector<26x130xf32>
    %87 = arith.maximumf %85, %86 : vector<26x130xf32>
    %cst_81 = arith.constant 0.000000e+00 : f32
    %88 = vector.broadcast %cst_81 : f32 to vector<2x130xf32>
    %c14 = arith.constant 14 : index
    %c0_82 = arith.constant 0 : index
    %89 = vector.load %arg14[%c14, %c0_82] : memref<30x130xf32, #tpu.memory_space<vmem>>, vector<2x130xf32>
    tpu.vector_store %arg14[%c14, %c0_82], %88 {strides = array<i32>} : memref<30x130xf32, #tpu.memory_space<vmem>>, vector<2x130xf32>,
    %cst_83 = arith.constant 0.000000e+00 : f32
    %90 = vector.broadcast %cst_83 : f32 to vector<2x130xf32>
    %c28 = arith.constant 28 : index
    %c0_84 = arith.constant 0 : index
    %91 = vector.load %arg14[%c28, %c0_84] : memref<30x130xf32, #tpu.memory_space<vmem>>, vector<2x130xf32>
    tpu.vector_store %arg14[%c28, %c0_84], %90 {strides = array<i32>} : memref<30x130xf32, #tpu.memory_space<vmem>>, vector<2x130xf32>,
    %92 = vector.extract_strided_slice %87 {offsets = [0, 0], sizes = [2, 130], strides = [1, 1]} : vector<26x130xf32> to vector<2x130xf32>
    %c0_85 = arith.constant 0 : index
    %c0_86 = arith.constant 0 : index
    %93 = vector.load %arg14[%c0_85, %c0_86] : memref<30x130xf32, #tpu.memory_space<vmem>>, vector<2x130xf32>
    tpu.vector_store %arg14[%c0_85, %c0_86], %92 {strides = array<i32>} : memref<30x130xf32, #tpu.memory_space<vmem>>, vector<2x130xf32>,
    %94 = vector.extract_strided_slice %87 {offsets = [2, 0], sizes = [2, 130], strides = [1, 1]} : vector<26x130xf32> to vector<2x130xf32>
    %c16 = arith.constant 16 : index
    %c0_87 = arith.constant 0 : index
    %95 = vector.load %arg14[%c16, %c0_87] : memref<30x130xf32, #tpu.memory_space<vmem>>, vector<2x130xf32>
    tpu.vector_store %arg14[%c16, %c0_87], %94 {strides = array<i32>} : memref<30x130xf32, #tpu.memory_space<vmem>>, vector<2x130xf32>,
    %96 = vector.extract_strided_slice %87 {offsets = [4, 0], sizes = [2, 130], strides = [1, 1]} : vector<26x130xf32> to vector<2x130xf32>
    %c2_88 = arith.constant 2 : index
    %c0_89 = arith.constant 0 : index
    %97 = vector.load %arg14[%c2_88, %c0_89] : memref<30x130xf32, #tpu.memory_space<vmem>>, vector<2x130xf32>
    tpu.vector_store %arg14[%c2_88, %c0_89], %96 {strides = array<i32>} : memref<30x130xf32, #tpu.memory_space<vmem>>, vector<2x130xf32>,
    %98 = vector.extract_strided_slice %87 {offsets = [6, 0], sizes = [2, 130], strides = [1, 1]} : vector<26x130xf32> to vector<2x130xf32>
    %c18 = arith.constant 18 : index
    %c0_90 = arith.constant 0 : index
    %99 = vector.load %arg14[%c18, %c0_90] : memref<30x130xf32, #tpu.memory_space<vmem>>, vector<2x130xf32>
    tpu.vector_store %arg14[%c18, %c0_90], %98 {strides = array<i32>} : memref<30x130xf32, #tpu.memory_space<vmem>>, vector<2x130xf32>,
    %100 = vector.extract_strided_slice %87 {offsets = [8, 0], sizes = [2, 130], strides = [1, 1]} : vector<26x130xf32> to vector<2x130xf32>
    %c4_91 = arith.constant 4 : index
    %c0_92 = arith.constant 0 : index
    %101 = vector.load %arg14[%c4_91, %c0_92] : memref<30x130xf32, #tpu.memory_space<vmem>>, vector<2x130xf32>
    tpu.vector_store %arg14[%c4_91, %c0_92], %100 {strides = array<i32>} : memref<30x130xf32, #tpu.memory_space<vmem>>, vector<2x130xf32>,
    %102 = vector.extract_strided_slice %87 {offsets = [10, 0], sizes = [2, 130], strides = [1, 1]} : vector<26x130xf32> to vector<2x130xf32>
    %c20 = arith.constant 20 : index
    %c0_93 = arith.constant 0 : index
    %103 = vector.load %arg14[%c20, %c0_93] : memref<30x130xf32, #tpu.memory_space<vmem>>, vector<2x130xf32>
    tpu.vector_store %arg14[%c20, %c0_93], %102 {strides = array<i32>} : memref<30x130xf32, #tpu.memory_space<vmem>>, vector<2x130xf32>,
    %104 = vector.extract_strided_slice %87 {offsets = [12, 0], sizes = [2, 130], strides = [1, 1]} : vector<26x130xf32> to vector<2x130xf32>
    %c6 = arith.constant 6 : index
    %c0_94 = arith.constant 0 : index
    %105 = vector.load %arg14[%c6, %c0_94] : memref<30x130xf32, #tpu.memory_space<vmem>>, vector<2x130xf32>
    tpu.vector_store %arg14[%c6, %c0_94], %104 {strides = array<i32>} : memref<30x130xf32, #tpu.memory_space<vmem>>, vector<2x130xf32>,
    %106 = vector.extract_strided_slice %87 {offsets = [14, 0], sizes = [2, 130], strides = [1, 1]} : vector<26x130xf32> to vector<2x130xf32>
    %c22 = arith.constant 22 : index
    %c0_95 = arith.constant 0 : index
    %107 = vector.load %arg14[%c22, %c0_95] : memref<30x130xf32, #tpu.memory_space<vmem>>, vector<2x130xf32>
    tpu.vector_store %arg14[%c22, %c0_95], %106 {strides = array<i32>} : memref<30x130xf32, #tpu.memory_space<vmem>>, vector<2x130xf32>,
    %108 = vector.extract_strided_slice %87 {offsets = [16, 0], sizes = [2, 130], strides = [1, 1]} : vector<26x130xf32> to vector<2x130xf32>
    %c8 = arith.constant 8 : index
    %c0_96 = arith.constant 0 : index
    %109 = vector.load %arg14[%c8, %c0_96] : memref<30x130xf32, #tpu.memory_space<vmem>>, vector<2x130xf32>
    tpu.vector_store %arg14[%c8, %c0_96], %108 {strides = array<i32>} : memref<30x130xf32, #tpu.memory_space<vmem>>, vector<2x130xf32>,
    %110 = vector.extract_strided_slice %87 {offsets = [18, 0], sizes = [2, 130], strides = [1, 1]} : vector<26x130xf32> to vector<2x130xf32>
    %c24 = arith.constant 24 : index
    %c0_97 = arith.constant 0 : index
    %111 = vector.load %arg14[%c24, %c0_97] : memref<30x130xf32, #tpu.memory_space<vmem>>, vector<2x130xf32>
    tpu.vector_store %arg14[%c24, %c0_97], %110 {strides = array<i32>} : memref<30x130xf32, #tpu.memory_space<vmem>>, vector<2x130xf32>,
    %112 = vector.extract_strided_slice %87 {offsets = [20, 0], sizes = [2, 130], strides = [1, 1]} : vector<26x130xf32> to vector<2x130xf32>
    %c10 = arith.constant 10 : index
    %c0_98 = arith.constant 0 : index
    %113 = vector.load %arg14[%c10, %c0_98] : memref<30x130xf32, #tpu.memory_space<vmem>>, vector<2x130xf32>
    tpu.vector_store %arg14[%c10, %c0_98], %112 {strides = array<i32>} : memref<30x130xf32, #tpu.memory_space<vmem>>, vector<2x130xf32>,
    %114 = vector.extract_strided_slice %87 {offsets = [22, 0], sizes = [2, 130], strides = [1, 1]} : vector<26x130xf32> to vector<2x130xf32>
    %c26 = arith.constant 26 : index
    %c0_99 = arith.constant 0 : index
    %115 = vector.load %arg14[%c26, %c0_99] : memref<30x130xf32, #tpu.memory_space<vmem>>, vector<2x130xf32>
    tpu.vector_store %arg14[%c26, %c0_99], %114 {strides = array<i32>} : memref<30x130xf32, #tpu.memory_space<vmem>>, vector<2x130xf32>,
    %116 = vector.extract_strided_slice %87 {offsets = [24, 0], sizes = [2, 130], strides = [1, 1]} : vector<26x130xf32> to vector<2x130xf32>
    %c12 = arith.constant 12 : index
    %c0_100 = arith.constant 0 : index
    %117 = vector.load %arg14[%c12, %c0_100] : memref<30x130xf32, #tpu.memory_space<vmem>>, vector<2x130xf32>
    tpu.vector_store %arg14[%c12, %c0_100], %116 {strides = array<i32>} : memref<30x130xf32, #tpu.memory_space<vmem>>, vector<2x130xf32>,
    %c0_101 = arith.constant 0 : index
    %c0_102 = arith.constant 0 : index
    %118 = vector.load %arg14[%c0_101, %c0_102] : memref<30x130xf32, #tpu.memory_space<vmem>>, vector<14x130xf32>
    %119 = arith.truncf %118 : vector<14x130xf32> to vector<14x130xbf16>
    %c1_103 = arith.constant 1 : index
    %c0_104 = arith.constant 0 : index
    %c0_105 = arith.constant 0 : index
    %120 = vector.load %arg4[%c1_103, %c0_104, %c0_105] : memref<3x130x140xbf16, #tpu.memory_space<vmem>>, vector<1x130x140xbf16>
    %121 = vector.shape_cast %120 : vector<1x130x140xbf16> to vector<130x140xbf16>
    %cst_106 = arith.constant dense<0.000000e+00> : vector<14x140xf32>
    %122 = tpu.matmul %119, %121, %cst_106 {dimension_numbers = #tpu.dot_dimension_numbers<[1], [0], [0], [1], [0, 0, 1, 1], [], []>} : vector<14x130xbf16>, vector<130x140xbf16>, vector<14x140xf32> -> vector<14x140xf32>
    %c14_107 = arith.constant 14 : index
    %c0_108 = arith.constant 0 : index
    %123 = vector.load %arg14[%c14_107, %c0_108] : memref<30x130xf32, #tpu.memory_space<vmem>>, vector<14x130xf32>
    %124 = arith.truncf %123 : vector<14x130xf32> to vector<14x130xbf16>
    %c0_109 = arith.constant 0 : index
    %c0_110 = arith.constant 0 : index
    %c0_111 = arith.constant 0 : index
    %125 = vector.load %arg4[%c0_109, %c0_110, %c0_111] : memref<3x130x140xbf16, #tpu.memory_space<vmem>>, vector<1x130x140xbf16>
    %126 = vector.shape_cast %125 : vector<1x130x140xbf16> to vector<130x140xbf16>
    %cst_112 = arith.constant dense<0.000000e+00> : vector<14x140xf32>
    %127 = tpu.matmul %124, %126, %cst_112 {dimension_numbers = #tpu.dot_dimension_numbers<[1], [0], [0], [1], [0, 0, 1, 1], [], []>} : vector<14x130xbf16>, vector<130x140xbf16>, vector<14x140xf32> -> vector<14x140xf32>
    %128 = arith.addf %122, %127 : vector<14x140xf32>
    %c16_113 = arith.constant 16 : index
    %c0_114 = arith.constant 0 : index
    %129 = vector.load %arg14[%c16_113, %c0_114] : memref<30x130xf32, #tpu.memory_space<vmem>>, vector<14x130xf32>
    %130 = arith.truncf %129 : vector<14x130xf32> to vector<14x130xbf16>
    %c2_115 = arith.constant 2 : index
    %c0_116 = arith.constant 0 : index
    %c0_117 = arith.constant 0 : index
    %131 = vector.load %arg4[%c2_115, %c0_116, %c0_117] : memref<3x130x140xbf16, #tpu.memory_space<vmem>>, vector<1x130x140xbf16>
    %132 = vector.shape_cast %131 : vector<1x130x140xbf16> to vector<130x140xbf16>
    %cst_118 = arith.constant dense<0.000000e+00> : vector<14x140xf32>
    %133 = tpu.matmul %130, %132, %cst_118 {dimension_numbers = #tpu.dot_dimension_numbers<[1], [0], [0], [1], [0, 0, 1, 1], [], []>} : vector<14x130xbf16>, vector<130x140xbf16>, vector<14x140xf32> -> vector<14x140xf32>
    %134 = arith.addf %128, %133 : vector<14x140xf32>
    %c0_119 = arith.constant 0 : index
    %c0_120 = arith.constant 0 : index
    %135 = vector.load %arg8[%c0_119, %c0_120] : memref<1x140xf32, #tpu.memory_space<vmem>>, vector<1x140xf32>
    %136 = vector.broadcast %135 : vector<1x140xf32> to vector<14x140xf32>
    %137 = arith.addf %134, %136 : vector<14x140xf32>
    %cst_121 = arith.constant 0.000000e+00 : f32
    %138 = vector.broadcast %cst_121 : f32 to vector<14x140xf32>
    %139 = arith.maximumf %137, %138 : vector<14x140xf32>
    %cst_122 = arith.constant 0.000000e+00 : f32
    %140 = vector.broadcast %cst_122 : f32 to vector<2x140xf32>
    %c8_123 = arith.constant 8 : index
    %c0_124 = arith.constant 0 : index
    %141 = vector.load %arg15[%c8_123, %c0_124] : memref<18x140xf32, #tpu.memory_space<vmem>>, vector<2x140xf32>
    tpu.vector_store %arg15[%c8_123, %c0_124], %140 {strides = array<i32>} : memref<18x140xf32, #tpu.memory_space<vmem>>, vector<2x140xf32>,
    %cst_125 = arith.constant 0.000000e+00 : f32
    %142 = vector.broadcast %cst_125 : f32 to vector<2x140xf32>
    %c16_126 = arith.constant 16 : index
    %c0_127 = arith.constant 0 : index
    %143 = vector.load %arg15[%c16_126, %c0_127] : memref<18x140xf32, #tpu.memory_space<vmem>>, vector<2x140xf32>
    tpu.vector_store %arg15[%c16_126, %c0_127], %142 {strides = array<i32>} : memref<18x140xf32, #tpu.memory_space<vmem>>, vector<2x140xf32>,
    %144 = vector.extract_strided_slice %139 {offsets = [0, 0], sizes = [2, 140], strides = [1, 1]} : vector<14x140xf32> to vector<2x140xf32>
    %c0_128 = arith.constant 0 : index
    %c0_129 = arith.constant 0 : index
    %145 = vector.load %arg15[%c0_128, %c0_129] : memref<18x140xf32, #tpu.memory_space<vmem>>, vector<2x140xf32>
    tpu.vector_store %arg15[%c0_128, %c0_129], %144 {strides = array<i32>} : memref<18x140xf32, #tpu.memory_space<vmem>>, vector<2x140xf32>,
    %146 = vector.extract_strided_slice %139 {offsets = [2, 0], sizes = [2, 140], strides = [1, 1]} : vector<14x140xf32> to vector<2x140xf32>
    %c10_130 = arith.constant 10 : index
    %c0_131 = arith.constant 0 : index
    %147 = vector.load %arg15[%c10_130, %c0_131] : memref<18x140xf32, #tpu.memory_space<vmem>>, vector<2x140xf32>
    tpu.vector_store %arg15[%c10_130, %c0_131], %146 {strides = array<i32>} : memref<18x140xf32, #tpu.memory_space<vmem>>, vector<2x140xf32>,
    %148 = vector.extract_strided_slice %139 {offsets = [4, 0], sizes = [2, 140], strides = [1, 1]} : vector<14x140xf32> to vector<2x140xf32>
    %c2_132 = arith.constant 2 : index
    %c0_133 = arith.constant 0 : index
    %149 = vector.load %arg15[%c2_132, %c0_133] : memref<18x140xf32, #tpu.memory_space<vmem>>, vector<2x140xf32>
    tpu.vector_store %arg15[%c2_132, %c0_133], %148 {strides = array<i32>} : memref<18x140xf32, #tpu.memory_space<vmem>>, vector<2x140xf32>,
    %150 = vector.extract_strided_slice %139 {offsets = [6, 0], sizes = [2, 140], strides = [1, 1]} : vector<14x140xf32> to vector<2x140xf32>
    %c12_134 = arith.constant 12 : index
    %c0_135 = arith.constant 0 : index
    %151 = vector.load %arg15[%c12_134, %c0_135] : memref<18x140xf32, #tpu.memory_space<vmem>>, vector<2x140xf32>
    tpu.vector_store %arg15[%c12_134, %c0_135], %150 {strides = array<i32>} : memref<18x140xf32, #tpu.memory_space<vmem>>, vector<2x140xf32>,
    %152 = vector.extract_strided_slice %139 {offsets = [8, 0], sizes = [2, 140], strides = [1, 1]} : vector<14x140xf32> to vector<2x140xf32>
    %c4_136 = arith.constant 4 : index
    %c0_137 = arith.constant 0 : index
    %153 = vector.load %arg15[%c4_136, %c0_137] : memref<18x140xf32, #tpu.memory_space<vmem>>, vector<2x140xf32>
    tpu.vector_store %arg15[%c4_136, %c0_137], %152 {strides = array<i32>} : memref<18x140xf32, #tpu.memory_space<vmem>>, vector<2x140xf32>,
    %154 = vector.extract_strided_slice %139 {offsets = [10, 0], sizes = [2, 140], strides = [1, 1]} : vector<14x140xf32> to vector<2x140xf32>
    %c14_138 = arith.constant 14 : index
    %c0_139 = arith.constant 0 : index
    %155 = vector.load %arg15[%c14_138, %c0_139] : memref<18x140xf32, #tpu.memory_space<vmem>>, vector<2x140xf32>
    tpu.vector_store %arg15[%c14_138, %c0_139], %154 {strides = array<i32>} : memref<18x140xf32, #tpu.memory_space<vmem>>, vector<2x140xf32>,
    %156 = vector.extract_strided_slice %139 {offsets = [12, 0], sizes = [2, 140], strides = [1, 1]} : vector<14x140xf32> to vector<2x140xf32>
    %c6_140 = arith.constant 6 : index
    %c0_141 = arith.constant 0 : index
    %157 = vector.load %arg15[%c6_140, %c0_141] : memref<18x140xf32, #tpu.memory_space<vmem>>, vector<2x140xf32>
    tpu.vector_store %arg15[%c6_140, %c0_141], %156 {strides = array<i32>} : memref<18x140xf32, #tpu.memory_space<vmem>>, vector<2x140xf32>,
    %c0_142 = arith.constant 0 : index
    %c0_143 = arith.constant 0 : index
    %158 = vector.load %arg15[%c0_142, %c0_143] : memref<18x140xf32, #tpu.memory_space<vmem>>, vector<8x140xf32>
    %159 = arith.truncf %158 : vector<8x140xf32> to vector<8x140xbf16>
    %c1_144 = arith.constant 1 : index
    %c0_145 = arith.constant 0 : index
    %c0_146 = arith.constant 0 : index
    %160 = vector.load %arg5[%c1_144, %c0_145, %c0_146] : memref<3x140x120xbf16, #tpu.memory_space<vmem>>, vector<1x140x120xbf16>
    %161 = vector.shape_cast %160 : vector<1x140x120xbf16> to vector<140x120xbf16>
    %cst_147 = arith.constant dense<0.000000e+00> : vector<8x120xf32>
    %162 = tpu.matmul %159, %161, %cst_147 {dimension_numbers = #tpu.dot_dimension_numbers<[1], [0], [0], [1], [0, 0, 1, 1], [], []>} : vector<8x140xbf16>, vector<140x120xbf16>, vector<8x120xf32> -> vector<8x120xf32>
    %c8_148 = arith.constant 8 : index
    %c0_149 = arith.constant 0 : index
    %163 = vector.load %arg15[%c8_148, %c0_149] : memref<18x140xf32, #tpu.memory_space<vmem>>, vector<8x140xf32>
    %164 = arith.truncf %163 : vector<8x140xf32> to vector<8x140xbf16>
    %c0_150 = arith.constant 0 : index
    %c0_151 = arith.constant 0 : index
    %c0_152 = arith.constant 0 : index
    %165 = vector.load %arg5[%c0_150, %c0_151, %c0_152] : memref<3x140x120xbf16, #tpu.memory_space<vmem>>, vector<1x140x120xbf16>
    %166 = vector.shape_cast %165 : vector<1x140x120xbf16> to vector<140x120xbf16>
    %cst_153 = arith.constant dense<0.000000e+00> : vector<8x120xf32>
    %167 = tpu.matmul %164, %166, %cst_153 {dimension_numbers = #tpu.dot_dimension_numbers<[1], [0], [0], [1], [0, 0, 1, 1], [], []>} : vector<8x140xbf16>, vector<140x120xbf16>, vector<8x120xf32> -> vector<8x120xf32>
    %168 = arith.addf %162, %167 : vector<8x120xf32>
    %c10_154 = arith.constant 10 : index
    %c0_155 = arith.constant 0 : index
    %169 = vector.load %arg15[%c10_154, %c0_155] : memref<18x140xf32, #tpu.memory_space<vmem>>, vector<8x140xf32>
    %170 = arith.truncf %169 : vector<8x140xf32> to vector<8x140xbf16>
    %c2_156 = arith.constant 2 : index
    %c0_157 = arith.constant 0 : index
    %c0_158 = arith.constant 0 : index
    %171 = vector.load %arg5[%c2_156, %c0_157, %c0_158] : memref<3x140x120xbf16, #tpu.memory_space<vmem>>, vector<1x140x120xbf16>
    %172 = vector.shape_cast %171 : vector<1x140x120xbf16> to vector<140x120xbf16>
    %cst_159 = arith.constant dense<0.000000e+00> : vector<8x120xf32>
    %173 = tpu.matmul %170, %172, %cst_159 {dimension_numbers = #tpu.dot_dimension_numbers<[1], [0], [0], [1], [0, 0, 1, 1], [], []>} : vector<8x140xbf16>, vector<140x120xbf16>, vector<8x120xf32> -> vector<8x120xf32>
    %174 = arith.addf %168, %173 : vector<8x120xf32>
    %c0_160 = arith.constant 0 : index
    %c0_161 = arith.constant 0 : index
    %175 = vector.load %arg9[%c0_160, %c0_161] : memref<1x120xf32, #tpu.memory_space<vmem>>, vector<1x120xf32>
    %176 = vector.broadcast %175 : vector<1x120xf32> to vector<8x120xf32>
    %177 = arith.addf %174, %176 : vector<8x120xf32>
    %cst_162 = arith.constant 0.000000e+00 : f32
    %178 = vector.broadcast %cst_162 : f32 to vector<8x120xf32>
    %179 = arith.maximumf %177, %178 : vector<8x120xf32>
    %cst_163 = arith.constant 0.000000e+00 : f32
    %180 = vector.broadcast %cst_163 : f32 to vector<2x120xf32>
    %c4_164 = arith.constant 4 : index
    %c0_165 = arith.constant 0 : index
    %181 = vector.load %arg16[%c4_164, %c0_165] : memref<10x120xf32, #tpu.memory_space<vmem>>, vector<2x120xf32>
    tpu.vector_store %arg16[%c4_164, %c0_165], %180 {strides = array<i32>} : memref<10x120xf32, #tpu.memory_space<vmem>>, vector<2x120xf32>,
    %182 = vector.extract_strided_slice %179 {offsets = [0, 0], sizes = [2, 120], strides = [1, 1]} : vector<8x120xf32> to vector<2x120xf32>
    %c0_166 = arith.constant 0 : index
    %c0_167 = arith.constant 0 : index
    %183 = vector.load %arg16[%c0_166, %c0_167] : memref<10x120xf32, #tpu.memory_space<vmem>>, vector<2x120xf32>
    tpu.vector_store %arg16[%c0_166, %c0_167], %182 {strides = array<i32>} : memref<10x120xf32, #tpu.memory_space<vmem>>, vector<2x120xf32>,
    %184 = vector.extract_strided_slice %179 {offsets = [2, 0], sizes = [2, 120], strides = [1, 1]} : vector<8x120xf32> to vector<2x120xf32>
    %c6_168 = arith.constant 6 : index
    %c0_169 = arith.constant 0 : index
    %185 = vector.load %arg16[%c6_168, %c0_169] : memref<10x120xf32, #tpu.memory_space<vmem>>, vector<2x120xf32>
    tpu.vector_store %arg16[%c6_168, %c0_169], %184 {strides = array<i32>} : memref<10x120xf32, #tpu.memory_space<vmem>>, vector<2x120xf32>,
    %186 = vector.extract_strided_slice %179 {offsets = [4, 0], sizes = [2, 120], strides = [1, 1]} : vector<8x120xf32> to vector<2x120xf32>
    %c2_170 = arith.constant 2 : index
    %c0_171 = arith.constant 0 : index
    %187 = vector.load %arg16[%c2_170, %c0_171] : memref<10x120xf32, #tpu.memory_space<vmem>>, vector<2x120xf32>
    tpu.vector_store %arg16[%c2_170, %c0_171], %186 {strides = array<i32>} : memref<10x120xf32, #tpu.memory_space<vmem>>, vector<2x120xf32>,
    %188 = vector.extract_strided_slice %179 {offsets = [6, 0], sizes = [2, 120], strides = [1, 1]} : vector<8x120xf32> to vector<2x120xf32>
    %c8_172 = arith.constant 8 : index
    %c0_173 = arith.constant 0 : index
    %189 = vector.load %arg16[%c8_172, %c0_173] : memref<10x120xf32, #tpu.memory_space<vmem>>, vector<2x120xf32>
    tpu.vector_store %arg16[%c8_172, %c0_173], %188 {strides = array<i32>} : memref<10x120xf32, #tpu.memory_space<vmem>>, vector<2x120xf32>,
    %c0_174 = arith.constant 0 : index
    %c0_175 = arith.constant 0 : index
    %190 = vector.load %arg16[%c0_174, %c0_175] : memref<10x120xf32, #tpu.memory_space<vmem>>, vector<4x120xf32>
    %191 = arith.truncf %190 : vector<4x120xf32> to vector<4x120xbf16>
    %c1_176 = arith.constant 1 : index
    %c0_177 = arith.constant 0 : index
    %c0_178 = arith.constant 0 : index
    %192 = vector.load %arg6[%c1_176, %c0_177, %c0_178] : memref<3x120x72xbf16, #tpu.memory_space<vmem>>, vector<1x120x72xbf16>
    %193 = vector.shape_cast %192 : vector<1x120x72xbf16> to vector<120x72xbf16>
    %cst_179 = arith.constant dense<0.000000e+00> : vector<4x72xf32>
    %194 = tpu.matmul %191, %193, %cst_179 {dimension_numbers = #tpu.dot_dimension_numbers<[1], [0], [0], [1], [0, 0, 1, 1], [], []>} : vector<4x120xbf16>, vector<120x72xbf16>, vector<4x72xf32> -> vector<4x72xf32>
    %c4_180 = arith.constant 4 : index
    %c0_181 = arith.constant 0 : index
    %195 = vector.load %arg16[%c4_180, %c0_181] : memref<10x120xf32, #tpu.memory_space<vmem>>, vector<4x120xf32>
    %196 = arith.truncf %195 : vector<4x120xf32> to vector<4x120xbf16>
    %c0_182 = arith.constant 0 : index
    %c0_183 = arith.constant 0 : index
    %c0_184 = arith.constant 0 : index
    %197 = vector.load %arg6[%c0_182, %c0_183, %c0_184] : memref<3x120x72xbf16, #tpu.memory_space<vmem>>, vector<1x120x72xbf16>
    %198 = vector.shape_cast %197 : vector<1x120x72xbf16> to vector<120x72xbf16>
    %cst_185 = arith.constant dense<0.000000e+00> : vector<4x72xf32>
    %199 = tpu.matmul %196, %198, %cst_185 {dimension_numbers = #tpu.dot_dimension_numbers<[1], [0], [0], [1], [0, 0, 1, 1], [], []>} : vector<4x120xbf16>, vector<120x72xbf16>, vector<4x72xf32> -> vector<4x72xf32>
    %200 = arith.addf %194, %199 : vector<4x72xf32>
    %c6_186 = arith.constant 6 : index
    %c0_187 = arith.constant 0 : index
    %201 = vector.load %arg16[%c6_186, %c0_187] : memref<10x120xf32, #tpu.memory_space<vmem>>, vector<4x120xf32>
    %202 = arith.truncf %201 : vector<4x120xf32> to vector<4x120xbf16>
    %c2_188 = arith.constant 2 : index
    %c0_189 = arith.constant 0 : index
    %c0_190 = arith.constant 0 : index
    %203 = vector.load %arg6[%c2_188, %c0_189, %c0_190] : memref<3x120x72xbf16, #tpu.memory_space<vmem>>, vector<1x120x72xbf16>
    %204 = vector.shape_cast %203 : vector<1x120x72xbf16> to vector<120x72xbf16>
    %cst_191 = arith.constant dense<0.000000e+00> : vector<4x72xf32>
    %205 = tpu.matmul %202, %204, %cst_191 {dimension_numbers = #tpu.dot_dimension_numbers<[1], [0], [0], [1], [0, 0, 1, 1], [], []>} : vector<4x120xbf16>, vector<120x72xbf16>, vector<4x72xf32> -> vector<4x72xf32>
    %206 = arith.addf %200, %205 : vector<4x72xf32>
    %c0_192 = arith.constant 0 : index
    %c0_193 = arith.constant 0 : index
    %207 = vector.load %arg10[%c0_192, %c0_193] : memref<1x72xf32, #tpu.memory_space<vmem>>, vector<1x72xf32>
    %208 = vector.broadcast %207 : vector<1x72xf32> to vector<4x72xf32>
    %209 = arith.addf %206, %208 : vector<4x72xf32>
    %210 = vector.extract_strided_slice %209 {offsets = [0, 0], sizes = [2, 72], strides = [1, 1]} : vector<4x72xf32> to vector<2x72xf32>
    %211 = vector.extract_strided_slice %209 {offsets = [2, 0], sizes = [2, 72], strides = [1, 1]} : vector<4x72xf32> to vector<2x72xf32>
    %212 = tpu.concatenate %210, %211 in 1 : vector<2x72xf32>, vector<2x72xf32> -> vector<2x144xf32>
    %213 = arith.truncf %212 : vector<2x144xf32> to vector<2x144xbf16>
    %cst_194 = arith.constant 0xFF800000 : f32
    %214 = vector.broadcast %cst_194 : f32 to vector<2x1xf32>
    %cst_195 = arith.constant 0.000000e+00 : f32
    %215 = vector.broadcast %cst_195 : f32 to vector<2x1xf32>
    %c0_i32_196 = arith.constant 0 : i32
    %c0_i32_197 = arith.constant 0 : i32
    %c0_i32_198 = arith.constant 0 : i32
    %c0_i32_199 = arith.constant 0 : i32
    %c0_i32_200 = arith.constant 0 : i32
    %216 = tpu.memref_slice %arg11[%c0_i32_196, %c0_i32_199, %c0_i32_200] : memref<9x144x640xbf16, #tpu.memory_space<any>> -> memref<1x144x640xbf16, #tpu.memory_space<any>>
    %217 = tpu.memref_squeeze %216 : memref<1x144x640xbf16, #tpu.memory_space<any>> -> memref<144x640xbf16, #tpu.memory_space<any>>
    %c0_i32_201 = arith.constant 0 : i32
    %c0_i32_202 = arith.constant 0 : i32
    %218 = tpu.memref_slice %arg18[%c0_i32_197, %c0_i32_201, %c0_i32_202] : memref<9x144x640xbf16, #tpu.memory_space<vmem>> -> memref<1x144x640xbf16, #tpu.memory_space<vmem>>
    %219 = tpu.memref_squeeze %218 : memref<1x144x640xbf16, #tpu.memory_space<vmem>> -> memref<144x640xbf16, #tpu.memory_space<vmem>>
    %220 = tpu.memref_slice %arg19[%c0_i32_198] : memref<9x!tpu.dma_semaphore, #tpu.memory_space<semaphore_mem>> -> memref<1x!tpu.dma_semaphore, #tpu.memory_space<semaphore_mem>>
    %221 = tpu.memref_squeeze %220 : memref<1x!tpu.dma_semaphore, #tpu.memory_space<semaphore_mem>> -> memref<!tpu.dma_semaphore, #tpu.memory_space<semaphore_mem>>
    tpu.wait_dma2 semaphore(%221 : memref<!tpu.dma_semaphore, #tpu.memory_space<semaphore_mem>>) src(%217 : memref<144x640xbf16, #tpu.memory_space<any>>) dst(%219 : memref<144x640xbf16, #tpu.memory_space<vmem>>)
    %c0_203 = arith.constant 0 : index
    %c0_204 = arith.constant 0 : index
    %222 = vector.load %arg12[%c0_203, %c0_204] : memref<1x5760xf32, #tpu.memory_space<vmem>>, vector<1x640xf32>
    %c0_205 = arith.constant 0 : index
    %c0_206 = arith.constant 0 : index
    %c0_207 = arith.constant 0 : index
    %223 = vector.load %arg18[%c0_205, %c0_206, %c0_207] : memref<9x144x640xbf16, #tpu.memory_space<vmem>>, vector<1x144x640xbf16>
    %224 = vector.shape_cast %223 : vector<1x144x640xbf16> to vector<144x640xbf16>
    %cst_208 = arith.constant dense<0.000000e+00> : vector<2x640xf32>
    %225 = tpu.matmul %213, %224, %cst_208 {dimension_numbers = #tpu.dot_dimension_numbers<[1], [0], [0], [1], [0, 0, 1, 1], [], []>} : vector<2x144xbf16>, vector<144x640xbf16>, vector<2x640xf32> -> vector<2x640xf32>
    %226 = vector.broadcast %222 : vector<1x640xf32> to vector<2x640xf32>
    %227 = arith.addf %226, %225 : vector<2x640xf32>
    %cst_209 = arith.constant dense<0xFF800000> : vector<2xf32>
    %228 = vector.multi_reduction <maximumf>, %227, %cst_209 [1] : vector<2x640xf32> to vector<2xf32>
    %229 = vector.shape_cast %228 : vector<2xf32> to vector<2x1xf32>
    %230 = arith.maximumf %214, %229 : vector<2x1xf32>
    %231 = vector.broadcast %230 : vector<2x1xf32> to vector<2x640xf32>
    %232 = arith.subf %227, %231 : vector<2x640xf32>
    %233 = math.exp %232 : vector<2x640xf32>
    %234 = arith.subf %214, %230 : vector<2x1xf32>
    %235 = math.exp %234 : vector<2x1xf32>
    %236 = arith.mulf %215, %235 : vector<2x1xf32>
    %cst_210 = arith.constant dense<0.000000e+00> : vector<2xf32>
    %237 = vector.multi_reduction <add>, %233, %cst_210 [1] : vector<2x640xf32> to vector<2xf32>
    %238 = vector.shape_cast %237 : vector<2xf32> to vector<2x1xf32>
    %239 = arith.addf %236, %238 : vector<2x1xf32>
    %c0_211 = arith.constant 0 : index
    %c0_212 = arith.constant 0 : index
    %240 = vector.load %arg17[%c0_211, %c0_212] : memref<2x5760xf32, #tpu.memory_space<vmem>>, vector<2x640xf32>
    tpu.vector_store %arg17[%c0_211, %c0_212], %233 {strides = array<i32>} : memref<2x5760xf32, #tpu.memory_space<vmem>>, vector<2x640xf32>,
    %c1_i32_213 = arith.constant 1 : i32
    %c1_i32_214 = arith.constant 1 : i32
    %c1_i32_215 = arith.constant 1 : i32
    %c0_i32_216 = arith.constant 0 : i32
    %c0_i32_217 = arith.constant 0 : i32
    %241 = tpu.memref_slice %arg11[%c1_i32_213, %c0_i32_216, %c0_i32_217] : memref<9x144x640xbf16, #tpu.memory_space<any>> -> memref<1x144x640xbf16, #tpu.memory_space<any>>
    %242 = tpu.memref_squeeze %241 : memref<1x144x640xbf16, #tpu.memory_space<any>> -> memref<144x640xbf16, #tpu.memory_space<any>>
    %c0_i32_218 = arith.constant 0 : i32
    %c0_i32_219 = arith.constant 0 : i32
    %243 = tpu.memref_slice %arg18[%c1_i32_214, %c0_i32_218, %c0_i32_219] : memref<9x144x640xbf16, #tpu.memory_space<vmem>> -> memref<1x144x640xbf16, #tpu.memory_space<vmem>>
    %244 = tpu.memref_squeeze %243 : memref<1x144x640xbf16, #tpu.memory_space<vmem>> -> memref<144x640xbf16, #tpu.memory_space<vmem>>
    %245 = tpu.memref_slice %arg19[%c1_i32_215] : memref<9x!tpu.dma_semaphore, #tpu.memory_space<semaphore_mem>> -> memref<1x!tpu.dma_semaphore, #tpu.memory_space<semaphore_mem>>
    %246 = tpu.memref_squeeze %245 : memref<1x!tpu.dma_semaphore, #tpu.memory_space<semaphore_mem>> -> memref<!tpu.dma_semaphore, #tpu.memory_space<semaphore_mem>>
    tpu.wait_dma2 semaphore(%246 : memref<!tpu.dma_semaphore, #tpu.memory_space<semaphore_mem>>) src(%242 : memref<144x640xbf16, #tpu.memory_space<any>>) dst(%244 : memref<144x640xbf16, #tpu.memory_space<vmem>>)
    %c0_220 = arith.constant 0 : index
    %c640 = arith.constant 640 : index
    %247 = vector.load %arg12[%c0_220, %c640] : memref<1x5760xf32, #tpu.memory_space<vmem>>, vector<1x640xf32>
    %c1_221 = arith.constant 1 : index
    %c0_222 = arith.constant 0 : index
    %c0_223 = arith.constant 0 : index
    %248 = vector.load %arg18[%c1_221, %c0_222, %c0_223] : memref<9x144x640xbf16, #tpu.memory_space<vmem>>, vector<1x144x640xbf16>
    %249 = vector.shape_cast %248 : vector<1x144x640xbf16> to vector<144x640xbf16>
    %cst_224 = arith.constant dense<0.000000e+00> : vector<2x640xf32>
    %250 = tpu.matmul %213, %249, %cst_224 {dimension_numbers = #tpu.dot_dimension_numbers<[1], [0], [0], [1], [0, 0, 1, 1], [], []>} : vector<2x144xbf16>, vector<144x640xbf16>, vector<2x640xf32> -> vector<2x640xf32>
    %251 = vector.broadcast %247 : vector<1x640xf32> to vector<2x640xf32>
    %252 = arith.addf %251, %250 : vector<2x640xf32>
    %cst_225 = arith.constant dense<0xFF800000> : vector<2xf32>
    %253 = vector.multi_reduction <maximumf>, %252, %cst_225 [1] : vector<2x640xf32> to vector<2xf32>
    %254 = vector.shape_cast %253 : vector<2xf32> to vector<2x1xf32>
    %255 = arith.maximumf %230, %254 : vector<2x1xf32>
    %256 = vector.broadcast %255 : vector<2x1xf32> to vector<2x640xf32>
    %257 = arith.subf %252, %256 : vector<2x640xf32>
    %258 = math.exp %257 : vector<2x640xf32>
    %259 = arith.subf %230, %255 : vector<2x1xf32>
    %260 = math.exp %259 : vector<2x1xf32>
    %261 = arith.mulf %239, %260 : vector<2x1xf32>
    %cst_226 = arith.constant dense<0.000000e+00> : vector<2xf32>
    %262 = vector.multi_reduction <add>, %258, %cst_226 [1] : vector<2x640xf32> to vector<2xf32>
    %263 = vector.shape_cast %262 : vector<2xf32> to vector<2x1xf32>
    %264 = arith.addf %261, %263 : vector<2x1xf32>
    %c0_227 = arith.constant 0 : index
    %c640_228 = arith.constant 640 : index
    %265 = vector.load %arg17[%c0_227, %c640_228] : memref<2x5760xf32, #tpu.memory_space<vmem>>, vector<2x640xf32>
    tpu.vector_store %arg17[%c0_227, %c640_228], %258 {strides = array<i32>} : memref<2x5760xf32, #tpu.memory_space<vmem>>, vector<2x640xf32>,
    %c2_i32_229 = arith.constant 2 : i32
    %c2_i32_230 = arith.constant 2 : i32
    %c2_i32_231 = arith.constant 2 : i32
    %c0_i32_232 = arith.constant 0 : i32
    %c0_i32_233 = arith.constant 0 : i32
    %266 = tpu.memref_slice %arg11[%c2_i32_229, %c0_i32_232, %c0_i32_233] : memref<9x144x640xbf16, #tpu.memory_space<any>> -> memref<1x144x640xbf16, #tpu.memory_space<any>>
    %267 = tpu.memref_squeeze %266 : memref<1x144x640xbf16, #tpu.memory_space<any>> -> memref<144x640xbf16, #tpu.memory_space<any>>
    %c0_i32_234 = arith.constant 0 : i32
    %c0_i32_235 = arith.constant 0 : i32
    %268 = tpu.memref_slice %arg18[%c2_i32_230, %c0_i32_234, %c0_i32_235] : memref<9x144x640xbf16, #tpu.memory_space<vmem>> -> memref<1x144x640xbf16, #tpu.memory_space<vmem>>
    %269 = tpu.memref_squeeze %268 : memref<1x144x640xbf16, #tpu.memory_space<vmem>> -> memref<144x640xbf16, #tpu.memory_space<vmem>>
    %270 = tpu.memref_slice %arg19[%c2_i32_231] : memref<9x!tpu.dma_semaphore, #tpu.memory_space<semaphore_mem>> -> memref<1x!tpu.dma_semaphore, #tpu.memory_space<semaphore_mem>>
    %271 = tpu.memref_squeeze %270 : memref<1x!tpu.dma_semaphore, #tpu.memory_space<semaphore_mem>> -> memref<!tpu.dma_semaphore, #tpu.memory_space<semaphore_mem>>
    tpu.wait_dma2 semaphore(%271 : memref<!tpu.dma_semaphore, #tpu.memory_space<semaphore_mem>>) src(%267 : memref<144x640xbf16, #tpu.memory_space<any>>) dst(%269 : memref<144x640xbf16, #tpu.memory_space<vmem>>)
    %c0_236 = arith.constant 0 : index
    %c1280 = arith.constant 1280 : index
    %272 = vector.load %arg12[%c0_236, %c1280] : memref<1x5760xf32, #tpu.memory_space<vmem>>, vector<1x640xf32>
    %c2_237 = arith.constant 2 : index
    %c0_238 = arith.constant 0 : index
    %c0_239 = arith.constant 0 : index
    %273 = vector.load %arg18[%c2_237, %c0_238, %c0_239] : memref<9x144x640xbf16, #tpu.memory_space<vmem>>, vector<1x144x640xbf16>
    %274 = vector.shape_cast %273 : vector<1x144x640xbf16> to vector<144x640xbf16>
    %cst_240 = arith.constant dense<0.000000e+00> : vector<2x640xf32>
    %275 = tpu.matmul %213, %274, %cst_240 {dimension_numbers = #tpu.dot_dimension_numbers<[1], [0], [0], [1], [0, 0, 1, 1], [], []>} : vector<2x144xbf16>, vector<144x640xbf16>, vector<2x640xf32> -> vector<2x640xf32>
    %276 = vector.broadcast %272 : vector<1x640xf32> to vector<2x640xf32>
    %277 = arith.addf %276, %275 : vector<2x640xf32>
    %cst_241 = arith.constant dense<0xFF800000> : vector<2xf32>
    %278 = vector.multi_reduction <maximumf>, %277, %cst_241 [1] : vector<2x640xf32> to vector<2xf32>
    %279 = vector.shape_cast %278 : vector<2xf32> to vector<2x1xf32>
    %280 = arith.maximumf %255, %279 : vector<2x1xf32>
    %281 = vector.broadcast %280 : vector<2x1xf32> to vector<2x640xf32>
    %282 = arith.subf %277, %281 : vector<2x640xf32>
    %283 = math.exp %282 : vector<2x640xf32>
    %284 = arith.subf %255, %280 : vector<2x1xf32>
    %285 = math.exp %284 : vector<2x1xf32>
    %286 = arith.mulf %264, %285 : vector<2x1xf32>
    %cst_242 = arith.constant dense<0.000000e+00> : vector<2xf32>
    %287 = vector.multi_reduction <add>, %283, %cst_242 [1] : vector<2x640xf32> to vector<2xf32>
    %288 = vector.shape_cast %287 : vector<2xf32> to vector<2x1xf32>
    %289 = arith.addf %286, %288 : vector<2x1xf32>
    %c0_243 = arith.constant 0 : index
    %c1280_244 = arith.constant 1280 : index
    %290 = vector.load %arg17[%c0_243, %c1280_244] : memref<2x5760xf32, #tpu.memory_space<vmem>>, vector<2x640xf32>
    tpu.vector_store %arg17[%c0_243, %c1280_244], %283 {strides = array<i32>} : memref<2x5760xf32, #tpu.memory_space<vmem>>, vector<2x640xf32>,
    %c3_i32_245 = arith.constant 3 : i32
    %c3_i32_246 = arith.constant 3 : i32
    %c3_i32_247 = arith.constant 3 : i32
    %c0_i32_248 = arith.constant 0 : i32
    %c0_i32_249 = arith.constant 0 : i32
    %291 = tpu.memref_slice %arg11[%c3_i32_245, %c0_i32_248, %c0_i32_249] : memref<9x144x640xbf16, #tpu.memory_space<any>> -> memref<1x144x640xbf16, #tpu.memory_space<any>>
    %292 = tpu.memref_squeeze %291 : memref<1x144x640xbf16, #tpu.memory_space<any>> -> memref<144x640xbf16, #tpu.memory_space<any>>
    %c0_i32_250 = arith.constant 0 : i32
    %c0_i32_251 = arith.constant 0 : i32
    %293 = tpu.memref_slice %arg18[%c3_i32_246, %c0_i32_250, %c0_i32_251] : memref<9x144x640xbf16, #tpu.memory_space<vmem>> -> memref<1x144x640xbf16, #tpu.memory_space<vmem>>
    %294 = tpu.memref_squeeze %293 : memref<1x144x640xbf16, #tpu.memory_space<vmem>> -> memref<144x640xbf16, #tpu.memory_space<vmem>>
    %295 = tpu.memref_slice %arg19[%c3_i32_247] : memref<9x!tpu.dma_semaphore, #tpu.memory_space<semaphore_mem>> -> memref<1x!tpu.dma_semaphore, #tpu.memory_space<semaphore_mem>>
    %296 = tpu.memref_squeeze %295 : memref<1x!tpu.dma_semaphore, #tpu.memory_space<semaphore_mem>> -> memref<!tpu.dma_semaphore, #tpu.memory_space<semaphore_mem>>
    tpu.wait_dma2 semaphore(%296 : memref<!tpu.dma_semaphore, #tpu.memory_space<semaphore_mem>>) src(%292 : memref<144x640xbf16, #tpu.memory_space<any>>) dst(%294 : memref<144x640xbf16, #tpu.memory_space<vmem>>)
    %c0_252 = arith.constant 0 : index
    %c1920 = arith.constant 1920 : index
    %297 = vector.load %arg12[%c0_252, %c1920] : memref<1x5760xf32, #tpu.memory_space<vmem>>, vector<1x640xf32>
    %c3_253 = arith.constant 3 : index
    %c0_254 = arith.constant 0 : index
    %c0_255 = arith.constant 0 : index
    %298 = vector.load %arg18[%c3_253, %c0_254, %c0_255] : memref<9x144x640xbf16, #tpu.memory_space<vmem>>, vector<1x144x640xbf16>
    %299 = vector.shape_cast %298 : vector<1x144x640xbf16> to vector<144x640xbf16>
    %cst_256 = arith.constant dense<0.000000e+00> : vector<2x640xf32>
    %300 = tpu.matmul %213, %299, %cst_256 {dimension_numbers = #tpu.dot_dimension_numbers<[1], [0], [0], [1], [0, 0, 1, 1], [], []>} : vector<2x144xbf16>, vector<144x640xbf16>, vector<2x640xf32> -> vector<2x640xf32>
    %301 = vector.broadcast %297 : vector<1x640xf32> to vector<2x640xf32>
    %302 = arith.addf %301, %300 : vector<2x640xf32>
    %cst_257 = arith.constant dense<0xFF800000> : vector<2xf32>
    %303 = vector.multi_reduction <maximumf>, %302, %cst_257 [1] : vector<2x640xf32> to vector<2xf32>
    %304 = vector.shape_cast %303 : vector<2xf32> to vector<2x1xf32>
    %305 = arith.maximumf %280, %304 : vector<2x1xf32>
    %306 = vector.broadcast %305 : vector<2x1xf32> to vector<2x640xf32>
    %307 = arith.subf %302, %306 : vector<2x640xf32>
    %308 = math.exp %307 : vector<2x640xf32>
    %309 = arith.subf %280, %305 : vector<2x1xf32>
    %310 = math.exp %309 : vector<2x1xf32>
    %311 = arith.mulf %289, %310 : vector<2x1xf32>
    %cst_258 = arith.constant dense<0.000000e+00> : vector<2xf32>
    %312 = vector.multi_reduction <add>, %308, %cst_258 [1] : vector<2x640xf32> to vector<2xf32>
    %313 = vector.shape_cast %312 : vector<2xf32> to vector<2x1xf32>
    %314 = arith.addf %311, %313 : vector<2x1xf32>
    %c0_259 = arith.constant 0 : index
    %c1920_260 = arith.constant 1920 : index
    %315 = vector.load %arg17[%c0_259, %c1920_260] : memref<2x5760xf32, #tpu.memory_space<vmem>>, vector<2x640xf32>
    tpu.vector_store %arg17[%c0_259, %c1920_260], %308 {strides = array<i32>} : memref<2x5760xf32, #tpu.memory_space<vmem>>, vector<2x640xf32>,
    %c4_i32_261 = arith.constant 4 : i32
    %c4_i32_262 = arith.constant 4 : i32
    %c4_i32_263 = arith.constant 4 : i32
    %c0_i32_264 = arith.constant 0 : i32
    %c0_i32_265 = arith.constant 0 : i32
    %316 = tpu.memref_slice %arg11[%c4_i32_261, %c0_i32_264, %c0_i32_265] : memref<9x144x640xbf16, #tpu.memory_space<any>> -> memref<1x144x640xbf16, #tpu.memory_space<any>>
    %317 = tpu.memref_squeeze %316 : memref<1x144x640xbf16, #tpu.memory_space<any>> -> memref<144x640xbf16, #tpu.memory_space<any>>
    %c0_i32_266 = arith.constant 0 : i32
    %c0_i32_267 = arith.constant 0 : i32
    %318 = tpu.memref_slice %arg18[%c4_i32_262, %c0_i32_266, %c0_i32_267] : memref<9x144x640xbf16, #tpu.memory_space<vmem>> -> memref<1x144x640xbf16, #tpu.memory_space<vmem>>
    %319 = tpu.memref_squeeze %318 : memref<1x144x640xbf16, #tpu.memory_space<vmem>> -> memref<144x640xbf16, #tpu.memory_space<vmem>>
    %320 = tpu.memref_slice %arg19[%c4_i32_263] : memref<9x!tpu.dma_semaphore, #tpu.memory_space<semaphore_mem>> -> memref<1x!tpu.dma_semaphore, #tpu.memory_space<semaphore_mem>>
    %321 = tpu.memref_squeeze %320 : memref<1x!tpu.dma_semaphore, #tpu.memory_space<semaphore_mem>> -> memref<!tpu.dma_semaphore, #tpu.memory_space<semaphore_mem>>
    tpu.wait_dma2 semaphore(%321 : memref<!tpu.dma_semaphore, #tpu.memory_space<semaphore_mem>>) src(%317 : memref<144x640xbf16, #tpu.memory_space<any>>) dst(%319 : memref<144x640xbf16, #tpu.memory_space<vmem>>)
    %c0_268 = arith.constant 0 : index
    %c2560 = arith.constant 2560 : index
    %322 = vector.load %arg12[%c0_268, %c2560] : memref<1x5760xf32, #tpu.memory_space<vmem>>, vector<1x640xf32>
    %c4_269 = arith.constant 4 : index
    %c0_270 = arith.constant 0 : index
    %c0_271 = arith.constant 0 : index
    %323 = vector.load %arg18[%c4_269, %c0_270, %c0_271] : memref<9x144x640xbf16, #tpu.memory_space<vmem>>, vector<1x144x640xbf16>
    %324 = vector.shape_cast %323 : vector<1x144x640xbf16> to vector<144x640xbf16>
    %cst_272 = arith.constant dense<0.000000e+00> : vector<2x640xf32>
    %325 = tpu.matmul %213, %324, %cst_272 {dimension_numbers = #tpu.dot_dimension_numbers<[1], [0], [0], [1], [0, 0, 1, 1], [], []>} : vector<2x144xbf16>, vector<144x640xbf16>, vector<2x640xf32> -> vector<2x640xf32>
    %326 = vector.broadcast %322 : vector<1x640xf32> to vector<2x640xf32>
    %327 = arith.addf %326, %325 : vector<2x640xf32>
    %cst_273 = arith.constant dense<0xFF800000> : vector<2xf32>
    %328 = vector.multi_reduction <maximumf>, %327, %cst_273 [1] : vector<2x640xf32> to vector<2xf32>
    %329 = vector.shape_cast %328 : vector<2xf32> to vector<2x1xf32>
    %330 = arith.maximumf %305, %329 : vector<2x1xf32>
    %331 = vector.broadcast %330 : vector<2x1xf32> to vector<2x640xf32>
    %332 = arith.subf %327, %331 : vector<2x640xf32>
    %333 = math.exp %332 : vector<2x640xf32>
    %334 = arith.subf %305, %330 : vector<2x1xf32>
    %335 = math.exp %334 : vector<2x1xf32>
    %336 = arith.mulf %314, %335 : vector<2x1xf32>
    %cst_274 = arith.constant dense<0.000000e+00> : vector<2xf32>
    %337 = vector.multi_reduction <add>, %333, %cst_274 [1] : vector<2x640xf32> to vector<2xf32>
    %338 = vector.shape_cast %337 : vector<2xf32> to vector<2x1xf32>
    %339 = arith.addf %336, %338 : vector<2x1xf32>
    %c0_275 = arith.constant 0 : index
    %c2560_276 = arith.constant 2560 : index
    %340 = vector.load %arg17[%c0_275, %c2560_276] : memref<2x5760xf32, #tpu.memory_space<vmem>>, vector<2x640xf32>
    tpu.vector_store %arg17[%c0_275, %c2560_276], %333 {strides = array<i32>} : memref<2x5760xf32, #tpu.memory_space<vmem>>, vector<2x640xf32>,
    %c5_i32_277 = arith.constant 5 : i32
    %c5_i32_278 = arith.constant 5 : i32
    %c5_i32_279 = arith.constant 5 : i32
    %c0_i32_280 = arith.constant 0 : i32
    %c0_i32_281 = arith.constant 0 : i32
    %341 = tpu.memref_slice %arg11[%c5_i32_277, %c0_i32_280, %c0_i32_281] : memref<9x144x640xbf16, #tpu.memory_space<any>> -> memref<1x144x640xbf16, #tpu.memory_space<any>>
    %342 = tpu.memref_squeeze %341 : memref<1x144x640xbf16, #tpu.memory_space<any>> -> memref<144x640xbf16, #tpu.memory_space<any>>
    %c0_i32_282 = arith.constant 0 : i32
    %c0_i32_283 = arith.constant 0 : i32
    %343 = tpu.memref_slice %arg18[%c5_i32_278, %c0_i32_282, %c0_i32_283] : memref<9x144x640xbf16, #tpu.memory_space<vmem>> -> memref<1x144x640xbf16, #tpu.memory_space<vmem>>
    %344 = tpu.memref_squeeze %343 : memref<1x144x640xbf16, #tpu.memory_space<vmem>> -> memref<144x640xbf16, #tpu.memory_space<vmem>>
    %345 = tpu.memref_slice %arg19[%c5_i32_279] : memref<9x!tpu.dma_semaphore, #tpu.memory_space<semaphore_mem>> -> memref<1x!tpu.dma_semaphore, #tpu.memory_space<semaphore_mem>>
    %346 = tpu.memref_squeeze %345 : memref<1x!tpu.dma_semaphore, #tpu.memory_space<semaphore_mem>> -> memref<!tpu.dma_semaphore, #tpu.memory_space<semaphore_mem>>
    tpu.wait_dma2 semaphore(%346 : memref<!tpu.dma_semaphore, #tpu.memory_space<semaphore_mem>>) src(%342 : memref<144x640xbf16, #tpu.memory_space<any>>) dst(%344 : memref<144x640xbf16, #tpu.memory_space<vmem>>)
    %c0_284 = arith.constant 0 : index
    %c3200 = arith.constant 3200 : index
    %347 = vector.load %arg12[%c0_284, %c3200] : memref<1x5760xf32, #tpu.memory_space<vmem>>, vector<1x640xf32>
    %c5 = arith.constant 5 : index
    %c0_285 = arith.constant 0 : index
    %c0_286 = arith.constant 0 : index
    %348 = vector.load %arg18[%c5, %c0_285, %c0_286] : memref<9x144x640xbf16, #tpu.memory_space<vmem>>, vector<1x144x640xbf16>
    %349 = vector.shape_cast %348 : vector<1x144x640xbf16> to vector<144x640xbf16>
    %cst_287 = arith.constant dense<0.000000e+00> : vector<2x640xf32>
    %350 = tpu.matmul %213, %349, %cst_287 {dimension_numbers = #tpu.dot_dimension_numbers<[1], [0], [0], [1], [0, 0, 1, 1], [], []>} : vector<2x144xbf16>, vector<144x640xbf16>, vector<2x640xf32> -> vector<2x640xf32>
    %351 = vector.broadcast %347 : vector<1x640xf32> to vector<2x640xf32>
    %352 = arith.addf %351, %350 : vector<2x640xf32>
    %cst_288 = arith.constant dense<0xFF800000> : vector<2xf32>
    %353 = vector.multi_reduction <maximumf>, %352, %cst_288 [1] : vector<2x640xf32> to vector<2xf32>
    %354 = vector.shape_cast %353 : vector<2xf32> to vector<2x1xf32>
    %355 = arith.maximumf %330, %354 : vector<2x1xf32>
    %356 = vector.broadcast %355 : vector<2x1xf32> to vector<2x640xf32>
    %357 = arith.subf %352, %356 : vector<2x640xf32>
    %358 = math.exp %357 : vector<2x640xf32>
    %359 = arith.subf %330, %355 : vector<2x1xf32>
    %360 = math.exp %359 : vector<2x1xf32>
    %361 = arith.mulf %339, %360 : vector<2x1xf32>
    %cst_289 = arith.constant dense<0.000000e+00> : vector<2xf32>
    %362 = vector.multi_reduction <add>, %358, %cst_289 [1] : vector<2x640xf32> to vector<2xf32>
    %363 = vector.shape_cast %362 : vector<2xf32> to vector<2x1xf32>
    %364 = arith.addf %361, %363 : vector<2x1xf32>
    %c0_290 = arith.constant 0 : index
    %c3200_291 = arith.constant 3200 : index
    %365 = vector.load %arg17[%c0_290, %c3200_291] : memref<2x5760xf32, #tpu.memory_space<vmem>>, vector<2x640xf32>
    tpu.vector_store %arg17[%c0_290, %c3200_291], %358 {strides = array<i32>} : memref<2x5760xf32, #tpu.memory_space<vmem>>, vector<2x640xf32>,
    %c6_i32_292 = arith.constant 6 : i32
    %c6_i32_293 = arith.constant 6 : i32
    %c6_i32_294 = arith.constant 6 : i32
    %c0_i32_295 = arith.constant 0 : i32
    %c0_i32_296 = arith.constant 0 : i32
    %366 = tpu.memref_slice %arg11[%c6_i32_292, %c0_i32_295, %c0_i32_296] : memref<9x144x640xbf16, #tpu.memory_space<any>> -> memref<1x144x640xbf16, #tpu.memory_space<any>>
    %367 = tpu.memref_squeeze %366 : memref<1x144x640xbf16, #tpu.memory_space<any>> -> memref<144x640xbf16, #tpu.memory_space<any>>
    %c0_i32_297 = arith.constant 0 : i32
    %c0_i32_298 = arith.constant 0 : i32
    %368 = tpu.memref_slice %arg18[%c6_i32_293, %c0_i32_297, %c0_i32_298] : memref<9x144x640xbf16, #tpu.memory_space<vmem>> -> memref<1x144x640xbf16, #tpu.memory_space<vmem>>
    %369 = tpu.memref_squeeze %368 : memref<1x144x640xbf16, #tpu.memory_space<vmem>> -> memref<144x640xbf16, #tpu.memory_space<vmem>>
    %370 = tpu.memref_slice %arg19[%c6_i32_294] : memref<9x!tpu.dma_semaphore, #tpu.memory_space<semaphore_mem>> -> memref<1x!tpu.dma_semaphore, #tpu.memory_space<semaphore_mem>>
    %371 = tpu.memref_squeeze %370 : memref<1x!tpu.dma_semaphore, #tpu.memory_space<semaphore_mem>> -> memref<!tpu.dma_semaphore, #tpu.memory_space<semaphore_mem>>
    tpu.wait_dma2 semaphore(%371 : memref<!tpu.dma_semaphore, #tpu.memory_space<semaphore_mem>>) src(%367 : memref<144x640xbf16, #tpu.memory_space<any>>) dst(%369 : memref<144x640xbf16, #tpu.memory_space<vmem>>)
    %c0_299 = arith.constant 0 : index
    %c3840 = arith.constant 3840 : index
    %372 = vector.load %arg12[%c0_299, %c3840] : memref<1x5760xf32, #tpu.memory_space<vmem>>, vector<1x640xf32>
    %c6_300 = arith.constant 6 : index
    %c0_301 = arith.constant 0 : index
    %c0_302 = arith.constant 0 : index
    %373 = vector.load %arg18[%c6_300, %c0_301, %c0_302] : memref<9x144x640xbf16, #tpu.memory_space<vmem>>, vector<1x144x640xbf16>
    %374 = vector.shape_cast %373 : vector<1x144x640xbf16> to vector<144x640xbf16>
    %cst_303 = arith.constant dense<0.000000e+00> : vector<2x640xf32>
    %375 = tpu.matmul %213, %374, %cst_303 {dimension_numbers = #tpu.dot_dimension_numbers<[1], [0], [0], [1], [0, 0, 1, 1], [], []>} : vector<2x144xbf16>, vector<144x640xbf16>, vector<2x640xf32> -> vector<2x640xf32>
    %376 = vector.broadcast %372 : vector<1x640xf32> to vector<2x640xf32>
    %377 = arith.addf %376, %375 : vector<2x640xf32>
    %cst_304 = arith.constant dense<0xFF800000> : vector<2xf32>
    %378 = vector.multi_reduction <maximumf>, %377, %cst_304 [1] : vector<2x640xf32> to vector<2xf32>
    %379 = vector.shape_cast %378 : vector<2xf32> to vector<2x1xf32>
    %380 = arith.maximumf %355, %379 : vector<2x1xf32>
    %381 = vector.broadcast %380 : vector<2x1xf32> to vector<2x640xf32>
    %382 = arith.subf %377, %381 : vector<2x640xf32>
    %383 = math.exp %382 : vector<2x640xf32>
    %384 = arith.subf %355, %380 : vector<2x1xf32>
    %385 = math.exp %384 : vector<2x1xf32>
    %386 = arith.mulf %364, %385 : vector<2x1xf32>
    %cst_305 = arith.constant dense<0.000000e+00> : vector<2xf32>
    %387 = vector.multi_reduction <add>, %383, %cst_305 [1] : vector<2x640xf32> to vector<2xf32>
    %388 = vector.shape_cast %387 : vector<2xf32> to vector<2x1xf32>
    %389 = arith.addf %386, %388 : vector<2x1xf32>
    %c0_306 = arith.constant 0 : index
    %c3840_307 = arith.constant 3840 : index
    %390 = vector.load %arg17[%c0_306, %c3840_307] : memref<2x5760xf32, #tpu.memory_space<vmem>>, vector<2x640xf32>
    tpu.vector_store %arg17[%c0_306, %c3840_307], %383 {strides = array<i32>} : memref<2x5760xf32, #tpu.memory_space<vmem>>, vector<2x640xf32>,
    %c7_i32_308 = arith.constant 7 : i32
    %c7_i32_309 = arith.constant 7 : i32
    %c7_i32_310 = arith.constant 7 : i32
    %c0_i32_311 = arith.constant 0 : i32
    %c0_i32_312 = arith.constant 0 : i32
    %391 = tpu.memref_slice %arg11[%c7_i32_308, %c0_i32_311, %c0_i32_312] : memref<9x144x640xbf16, #tpu.memory_space<any>> -> memref<1x144x640xbf16, #tpu.memory_space<any>>
    %392 = tpu.memref_squeeze %391 : memref<1x144x640xbf16, #tpu.memory_space<any>> -> memref<144x640xbf16, #tpu.memory_space<any>>
    %c0_i32_313 = arith.constant 0 : i32
    %c0_i32_314 = arith.constant 0 : i32
    %393 = tpu.memref_slice %arg18[%c7_i32_309, %c0_i32_313, %c0_i32_314] : memref<9x144x640xbf16, #tpu.memory_space<vmem>> -> memref<1x144x640xbf16, #tpu.memory_space<vmem>>
    %394 = tpu.memref_squeeze %393 : memref<1x144x640xbf16, #tpu.memory_space<vmem>> -> memref<144x640xbf16, #tpu.memory_space<vmem>>
    %395 = tpu.memref_slice %arg19[%c7_i32_310] : memref<9x!tpu.dma_semaphore, #tpu.memory_space<semaphore_mem>> -> memref<1x!tpu.dma_semaphore, #tpu.memory_space<semaphore_mem>>
    %396 = tpu.memref_squeeze %395 : memref<1x!tpu.dma_semaphore, #tpu.memory_space<semaphore_mem>> -> memref<!tpu.dma_semaphore, #tpu.memory_space<semaphore_mem>>
    tpu.wait_dma2 semaphore(%396 : memref<!tpu.dma_semaphore, #tpu.memory_space<semaphore_mem>>) src(%392 : memref<144x640xbf16, #tpu.memory_space<any>>) dst(%394 : memref<144x640xbf16, #tpu.memory_space<vmem>>)
    %c0_315 = arith.constant 0 : index
    %c4480 = arith.constant 4480 : index
    %397 = vector.load %arg12[%c0_315, %c4480] : memref<1x5760xf32, #tpu.memory_space<vmem>>, vector<1x640xf32>
    %c7 = arith.constant 7 : index
    %c0_316 = arith.constant 0 : index
    %c0_317 = arith.constant 0 : index
    %398 = vector.load %arg18[%c7, %c0_316, %c0_317] : memref<9x144x640xbf16, #tpu.memory_space<vmem>>, vector<1x144x640xbf16>
    %399 = vector.shape_cast %398 : vector<1x144x640xbf16> to vector<144x640xbf16>
    %cst_318 = arith.constant dense<0.000000e+00> : vector<2x640xf32>
    %400 = tpu.matmul %213, %399, %cst_318 {dimension_numbers = #tpu.dot_dimension_numbers<[1], [0], [0], [1], [0, 0, 1, 1], [], []>} : vector<2x144xbf16>, vector<144x640xbf16>, vector<2x640xf32> -> vector<2x640xf32>
    %401 = vector.broadcast %397 : vector<1x640xf32> to vector<2x640xf32>
    %402 = arith.addf %401, %400 : vector<2x640xf32>
    %cst_319 = arith.constant dense<0xFF800000> : vector<2xf32>
    %403 = vector.multi_reduction <maximumf>, %402, %cst_319 [1] : vector<2x640xf32> to vector<2xf32>
    %404 = vector.shape_cast %403 : vector<2xf32> to vector<2x1xf32>
    %405 = arith.maximumf %380, %404 : vector<2x1xf32>
    %406 = vector.broadcast %405 : vector<2x1xf32> to vector<2x640xf32>
    %407 = arith.subf %402, %406 : vector<2x640xf32>
    %408 = math.exp %407 : vector<2x640xf32>
    %409 = arith.subf %380, %405 : vector<2x1xf32>
    %410 = math.exp %409 : vector<2x1xf32>
    %411 = arith.mulf %389, %410 : vector<2x1xf32>
    %cst_320 = arith.constant dense<0.000000e+00> : vector<2xf32>
    %412 = vector.multi_reduction <add>, %408, %cst_320 [1] : vector<2x640xf32> to vector<2xf32>
    %413 = vector.shape_cast %412 : vector<2xf32> to vector<2x1xf32>
    %414 = arith.addf %411, %413 : vector<2x1xf32>
    %c0_321 = arith.constant 0 : index
    %c4480_322 = arith.constant 4480 : index
    %415 = vector.load %arg17[%c0_321, %c4480_322] : memref<2x5760xf32, #tpu.memory_space<vmem>>, vector<2x640xf32>
    tpu.vector_store %arg17[%c0_321, %c4480_322], %408 {strides = array<i32>} : memref<2x5760xf32, #tpu.memory_space<vmem>>, vector<2x640xf32>,
    %c8_i32_323 = arith.constant 8 : i32
    %c8_i32_324 = arith.constant 8 : i32
    %c8_i32_325 = arith.constant 8 : i32
    %c0_i32_326 = arith.constant 0 : i32
    %c0_i32_327 = arith.constant 0 : i32
    %416 = tpu.memref_slice %arg11[%c8_i32_323, %c0_i32_326, %c0_i32_327] : memref<9x144x640xbf16, #tpu.memory_space<any>> -> memref<1x144x640xbf16, #tpu.memory_space<any>>
    %417 = tpu.memref_squeeze %416 : memref<1x144x640xbf16, #tpu.memory_space<any>> -> memref<144x640xbf16, #tpu.memory_space<any>>
    %c0_i32_328 = arith.constant 0 : i32
    %c0_i32_329 = arith.constant 0 : i32
    %418 = tpu.memref_slice %arg18[%c8_i32_324, %c0_i32_328, %c0_i32_329] : memref<9x144x640xbf16, #tpu.memory_space<vmem>> -> memref<1x144x640xbf16, #tpu.memory_space<vmem>>
    %419 = tpu.memref_squeeze %418 : memref<1x144x640xbf16, #tpu.memory_space<vmem>> -> memref<144x640xbf16, #tpu.memory_space<vmem>>
    %420 = tpu.memref_slice %arg19[%c8_i32_325] : memref<9x!tpu.dma_semaphore, #tpu.memory_space<semaphore_mem>> -> memref<1x!tpu.dma_semaphore, #tpu.memory_space<semaphore_mem>>
    %421 = tpu.memref_squeeze %420 : memref<1x!tpu.dma_semaphore, #tpu.memory_space<semaphore_mem>> -> memref<!tpu.dma_semaphore, #tpu.memory_space<semaphore_mem>>
    tpu.wait_dma2 semaphore(%421 : memref<!tpu.dma_semaphore, #tpu.memory_space<semaphore_mem>>) src(%417 : memref<144x640xbf16, #tpu.memory_space<any>>) dst(%419 : memref<144x640xbf16, #tpu.memory_space<vmem>>)
    %c0_330 = arith.constant 0 : index
    %c5120 = arith.constant 5120 : index
    %422 = vector.load %arg12[%c0_330, %c5120] : memref<1x5760xf32, #tpu.memory_space<vmem>>, vector<1x640xf32>
    %c8_331 = arith.constant 8 : index
    %c0_332 = arith.constant 0 : index
    %c0_333 = arith.constant 0 : index
    %423 = vector.load %arg18[%c8_331, %c0_332, %c0_333] : memref<9x144x640xbf16, #tpu.memory_space<vmem>>, vector<1x144x640xbf16>
    %424 = vector.shape_cast %423 : vector<1x144x640xbf16> to vector<144x640xbf16>
    %cst_334 = arith.constant dense<0.000000e+00> : vector<2x640xf32>
    %425 = tpu.matmul %213, %424, %cst_334 {dimension_numbers = #tpu.dot_dimension_numbers<[1], [0], [0], [1], [0, 0, 1, 1], [], []>} : vector<2x144xbf16>, vector<144x640xbf16>, vector<2x640xf32> -> vector<2x640xf32>
    %426 = vector.broadcast %422 : vector<1x640xf32> to vector<2x640xf32>
    %427 = arith.addf %426, %425 : vector<2x640xf32>
    %cst_335 = arith.constant dense<0xFF800000> : vector<2xf32>
    %428 = vector.multi_reduction <maximumf>, %427, %cst_335 [1] : vector<2x640xf32> to vector<2xf32>
    %429 = vector.shape_cast %428 : vector<2xf32> to vector<2x1xf32>
    %430 = arith.maximumf %405, %429 : vector<2x1xf32>
    %431 = vector.broadcast %430 : vector<2x1xf32> to vector<2x640xf32>
    %432 = arith.subf %427, %431 : vector<2x640xf32>
    %433 = math.exp %432 : vector<2x640xf32>
    %434 = arith.subf %405, %430 : vector<2x1xf32>
    %435 = math.exp %434 : vector<2x1xf32>
    %436 = arith.mulf %414, %435 : vector<2x1xf32>
    %cst_336 = arith.constant dense<0.000000e+00> : vector<2xf32>
    %437 = vector.multi_reduction <add>, %433, %cst_336 [1] : vector<2x640xf32> to vector<2xf32>
    %438 = vector.shape_cast %437 : vector<2xf32> to vector<2x1xf32>
    %439 = arith.addf %436, %438 : vector<2x1xf32>
    %c0_337 = arith.constant 0 : index
    %c5120_338 = arith.constant 5120 : index
    %440 = vector.load %arg17[%c0_337, %c5120_338] : memref<2x5760xf32, #tpu.memory_space<vmem>>, vector<2x640xf32>
    tpu.vector_store %arg17[%c0_337, %c5120_338], %433 {strides = array<i32>} : memref<2x5760xf32, #tpu.memory_space<vmem>>, vector<2x640xf32>,
    %cst_339 = arith.constant 1.000000e+00 : f32
    %441 = vector.broadcast %cst_339 : f32 to vector<2x1xf32>
    %442 = arith.divf %441, %439 : vector<2x1xf32>
    %443 = arith.subf %230, %430 : vector<2x1xf32>
    %444 = math.exp %443 : vector<2x1xf32>
    %445 = arith.mulf %444, %442 : vector<2x1xf32>
    %c0_340 = arith.constant 0 : index
    %c0_341 = arith.constant 0 : index
    %446 = vector.load %arg17[%c0_340, %c0_341] : memref<2x5760xf32, #tpu.memory_space<vmem>>, vector<2x640xf32>
    %447 = vector.broadcast %445 : vector<2x1xf32> to vector<2x640xf32>
    %448 = arith.mulf %446, %447 : vector<2x640xf32>
    %c0_342 = arith.constant 0 : index
    %c0_343 = arith.constant 0 : index
    %449 = vector.load %arg13[%c0_342, %c0_343] : memref<2x5760xf32, #tpu.memory_space<vmem>>, vector<2x640xf32>
    tpu.vector_store %arg13[%c0_342, %c0_343], %448 {strides = array<i32>} : memref<2x5760xf32, #tpu.memory_space<vmem>>, vector<2x640xf32>,
    %450 = arith.subf %255, %430 : vector<2x1xf32>
    %451 = math.exp %450 : vector<2x1xf32>
    %452 = arith.mulf %451, %442 : vector<2x1xf32>
    %c0_344 = arith.constant 0 : index
    %c640_345 = arith.constant 640 : index
    %453 = vector.load %arg17[%c0_344, %c640_345] : memref<2x5760xf32, #tpu.memory_space<vmem>>, vector<2x640xf32>
    %454 = vector.broadcast %452 : vector<2x1xf32> to vector<2x640xf32>
    %455 = arith.mulf %453, %454 : vector<2x640xf32>
    %c0_346 = arith.constant 0 : index
    %c640_347 = arith.constant 640 : index
    %456 = vector.load %arg13[%c0_346, %c640_347] : memref<2x5760xf32, #tpu.memory_space<vmem>>, vector<2x640xf32>
    tpu.vector_store %arg13[%c0_346, %c640_347], %455 {strides = array<i32>} : memref<2x5760xf32, #tpu.memory_space<vmem>>, vector<2x640xf32>,
    %457 = arith.subf %280, %430 : vector<2x1xf32>
    %458 = math.exp %457 : vector<2x1xf32>
    %459 = arith.mulf %458, %442 : vector<2x1xf32>
    %c0_348 = arith.constant 0 : index
    %c1280_349 = arith.constant 1280 : index
    %460 = vector.load %arg17[%c0_348, %c1280_349] : memref<2x5760xf32, #tpu.memory_space<vmem>>, vector<2x640xf32>
    %461 = vector.broadcast %459 : vector<2x1xf32> to vector<2x640xf32>
    %462 = arith.mulf %460, %461 : vector<2x640xf32>
    %c0_350 = arith.constant 0 : index
    %c1280_351 = arith.constant 1280 : index
    %463 = vector.load %arg13[%c0_350, %c1280_351] : memref<2x5760xf32, #tpu.memory_space<vmem>>, vector<2x640xf32>
    tpu.vector_store %arg13[%c0_350, %c1280_351], %462 {strides = array<i32>} : memref<2x5760xf32, #tpu.memory_space<vmem>>, vector<2x640xf32>,
    %464 = arith.subf %305, %430 : vector<2x1xf32>
    %465 = math.exp %464 : vector<2x1xf32>
    %466 = arith.mulf %465, %442 : vector<2x1xf32>
    %c0_352 = arith.constant 0 : index
    %c1920_353 = arith.constant 1920 : index
    %467 = vector.load %arg17[%c0_352, %c1920_353] : memref<2x5760xf32, #tpu.memory_space<vmem>>, vector<2x640xf32>
    %468 = vector.broadcast %466 : vector<2x1xf32> to vector<2x640xf32>
    %469 = arith.mulf %467, %468 : vector<2x640xf32>
    %c0_354 = arith.constant 0 : index
    %c1920_355 = arith.constant 1920 : index
    %470 = vector.load %arg13[%c0_354, %c1920_355] : memref<2x5760xf32, #tpu.memory_space<vmem>>, vector<2x640xf32>
    tpu.vector_store %arg13[%c0_354, %c1920_355], %469 {strides = array<i32>} : memref<2x5760xf32, #tpu.memory_space<vmem>>, vector<2x640xf32>,
    %471 = arith.subf %330, %430 : vector<2x1xf32>
    %472 = math.exp %471 : vector<2x1xf32>
    %473 = arith.mulf %472, %442 : vector<2x1xf32>
    %c0_356 = arith.constant 0 : index
    %c2560_357 = arith.constant 2560 : index
    %474 = vector.load %arg17[%c0_356, %c2560_357] : memref<2x5760xf32, #tpu.memory_space<vmem>>, vector<2x640xf32>
    %475 = vector.broadcast %473 : vector<2x1xf32> to vector<2x640xf32>
    %476 = arith.mulf %474, %475 : vector<2x640xf32>
    %c0_358 = arith.constant 0 : index
    %c2560_359 = arith.constant 2560 : index
    %477 = vector.load %arg13[%c0_358, %c2560_359] : memref<2x5760xf32, #tpu.memory_space<vmem>>, vector<2x640xf32>
    tpu.vector_store %arg13[%c0_358, %c2560_359], %476 {strides = array<i32>} : memref<2x5760xf32, #tpu.memory_space<vmem>>, vector<2x640xf32>,
    %478 = arith.subf %355, %430 : vector<2x1xf32>
    %479 = math.exp %478 : vector<2x1xf32>
    %480 = arith.mulf %479, %442 : vector<2x1xf32>
    %c0_360 = arith.constant 0 : index
    %c3200_361 = arith.constant 3200 : index
    %481 = vector.load %arg17[%c0_360, %c3200_361] : memref<2x5760xf32, #tpu.memory_space<vmem>>, vector<2x640xf32>
    %482 = vector.broadcast %480 : vector<2x1xf32> to vector<2x640xf32>
    %483 = arith.mulf %481, %482 : vector<2x640xf32>
    %c0_362 = arith.constant 0 : index
    %c3200_363 = arith.constant 3200 : index
    %484 = vector.load %arg13[%c0_362, %c3200_363] : memref<2x5760xf32, #tpu.memory_space<vmem>>, vector<2x640xf32>
    tpu.vector_store %arg13[%c0_362, %c3200_363], %483 {strides = array<i32>} : memref<2x5760xf32, #tpu.memory_space<vmem>>, vector<2x640xf32>,
    %485 = arith.subf %380, %430 : vector<2x1xf32>
    %486 = math.exp %485 : vector<2x1xf32>
    %487 = arith.mulf %486, %442 : vector<2x1xf32>
    %c0_364 = arith.constant 0 : index
    %c3840_365 = arith.constant 3840 : index
    %488 = vector.load %arg17[%c0_364, %c3840_365] : memref<2x5760xf32, #tpu.memory_space<vmem>>, vector<2x640xf32>
    %489 = vector.broadcast %487 : vector<2x1xf32> to vector<2x640xf32>
    %490 = arith.mulf %488, %489 : vector<2x640xf32>
    %c0_366 = arith.constant 0 : index
    %c3840_367 = arith.constant 3840 : index
    %491 = vector.load %arg13[%c0_366, %c3840_367] : memref<2x5760xf32, #tpu.memory_space<vmem>>, vector<2x640xf32>
    tpu.vector_store %arg13[%c0_366, %c3840_367], %490 {strides = array<i32>} : memref<2x5760xf32, #tpu.memory_space<vmem>>, vector<2x640xf32>,
    %492 = arith.subf %405, %430 : vector<2x1xf32>
    %493 = math.exp %492 : vector<2x1xf32>
    %494 = arith.mulf %493, %442 : vector<2x1xf32>
    %c0_368 = arith.constant 0 : index
    %c4480_369 = arith.constant 4480 : index
    %495 = vector.load %arg17[%c0_368, %c4480_369] : memref<2x5760xf32, #tpu.memory_space<vmem>>, vector<2x640xf32>
    %496 = vector.broadcast %494 : vector<2x1xf32> to vector<2x640xf32>
    %497 = arith.mulf %495, %496 : vector<2x640xf32>
    %c0_370 = arith.constant 0 : index
    %c4480_371 = arith.constant 4480 : index
    %498 = vector.load %arg13[%c0_370, %c4480_371] : memref<2x5760xf32, #tpu.memory_space<vmem>>, vector<2x640xf32>
    tpu.vector_store %arg13[%c0_370, %c4480_371], %497 {strides = array<i32>} : memref<2x5760xf32, #tpu.memory_space<vmem>>, vector<2x640xf32>,
    %499 = arith.subf %430, %430 : vector<2x1xf32>
    %500 = math.exp %499 : vector<2x1xf32>
    %501 = arith.mulf %500, %442 : vector<2x1xf32>
    %c0_372 = arith.constant 0 : index
    %c5120_373 = arith.constant 5120 : index
    %502 = vector.load %arg17[%c0_372, %c5120_373] : memref<2x5760xf32, #tpu.memory_space<vmem>>, vector<2x640xf32>
    %503 = vector.broadcast %501 : vector<2x1xf32> to vector<2x640xf32>
    %504 = arith.mulf %502, %503 : vector<2x640xf32>
    %c0_374 = arith.constant 0 : index
    %c5120_375 = arith.constant 5120 : index
    %505 = vector.load %arg13[%c0_374, %c5120_375] : memref<2x5760xf32, #tpu.memory_space<vmem>>, vector<2x640xf32>
    tpu.vector_store %arg13[%c0_374, %c5120_375], %504 {strides = array<i32>} : memref<2x5760xf32, #tpu.memory_space<vmem>>, vector<2x640xf32>,
    return
  }
  func.func @transform_0(%arg0: i32) -> (i32, i32) {
    %c0_i32 = arith.constant 0 : i32
    %c0_i32_0 = arith.constant 0 : i32
    %c0_i32_1 = arith.constant 0 : i32
    return %c0_i32, %c0_i32_0 : i32, i32
  }
  func.func @transform_1(%arg0: i32) -> (i32, i32) {
    %c0_i32 = arith.constant 0 : i32
    %c0_i32_0 = arith.constant 0 : i32
    %c0_i32_1 = arith.constant 0 : i32
    return %c0_i32, %c0_i32_0 : i32, i32
  }
  func.func @transform_2(%arg0: i32) -> (i32, i32, i32) {
    %c0_i32 = arith.constant 0 : i32
    %c0_i32_0 = arith.constant 0 : i32
    %c0_i32_1 = arith.constant 0 : i32
    %c0_i32_2 = arith.constant 0 : i32
    return %c0_i32, %c0_i32_0, %c0_i32_1 : i32, i32, i32
  }
  func.func @transform_3(%arg0: i32) -> (i32, i32, i32) {
    %c0_i32 = arith.constant 0 : i32
    %c0_i32_0 = arith.constant 0 : i32
    %c0_i32_1 = arith.constant 0 : i32
    %c0_i32_2 = arith.constant 0 : i32
    return %c0_i32, %c0_i32_0, %c0_i32_1 : i32, i32, i32
  }
  func.func @transform_4(%arg0: i32) -> (i32, i32, i32) {
    %c0_i32 = arith.constant 0 : i32
    %c0_i32_0 = arith.constant 0 : i32
    %c0_i32_1 = arith.constant 0 : i32
    %c0_i32_2 = arith.constant 0 : i32
    return %c0_i32, %c0_i32_0, %c0_i32_1 : i32, i32, i32
  }
  func.func @transform_5(%arg0: i32) -> (i32, i32, i32) {
    %c0_i32 = arith.constant 0 : i32
    %c0_i32_0 = arith.constant 0 : i32
    %c0_i32_1 = arith.constant 0 : i32
    %c0_i32_2 = arith.constant 0 : i32
    return %c0_i32, %c0_i32_0, %c0_i32_1 : i32, i32, i32
  }
  func.func @transform_6(%arg0: i32) -> (i32, i32) {
    %c0_i32 = arith.constant 0 : i32
    %c0_i32_0 = arith.constant 0 : i32
    %c0_i32_1 = arith.constant 0 : i32
    return %c0_i32, %c0_i32_0 : i32, i32
  }
  func.func @transform_7(%arg0: i32) -> (i32, i32) {
    %c0_i32 = arith.constant 0 : i32
    %c0_i32_0 = arith.constant 0 : i32
    %c0_i32_1 = arith.constant 0 : i32
    return %c0_i32, %c0_i32_0 : i32, i32
  }
  func.func @transform_8(%arg0: i32) -> (i32, i32) {
    %c0_i32 = arith.constant 0 : i32
    %c0_i32_0 = arith.constant 0 : i32
    %c0_i32_1 = arith.constant 0 : i32
    return %c0_i32, %c0_i32_0 : i32, i32
  }
  func.func @transform_9(%arg0: i32) -> (i32, i32) {
    %c0_i32 = arith.constant 0 : i32
    %c0_i32_0 = arith.constant 0 : i32
    %c0_i32_1 = arith.constant 0 : i32
    return %c0_i32, %c0_i32_0 : i32, i32
  }
  func.func @transform_11(%arg0: i32) -> (i32, i32) {
    %c0_i32 = arith.constant 0 : i32
    %c0_i32_0 = arith.constant 0 : i32
    %c0_i32_1 = arith.constant 0 : i32
    return %c0_i32, %c0_i32_0 : i32, i32
  }
  func.func @transform_12(%arg0: i32) -> (i32, i32) {
    %c0_i32 = arith.constant 0 : i32
    %c0_i32_0 = arith.constant 0 : i32
    %c0_i32_1 = arith.constant 0 : i32
    return %c0_i32, %c0_i32_0 : i32, i32
  }
}

</mosaic_0001>

<bundles_post_ra>
// kernel: model_forward.1
= control target key start
LH: loop header
LB: loop body
LE: loop exit
PB: predicated region body
PF: predicated region fallthrough
CT: control target
= control target key end

     0   :  { %17 = vsyncpa [#allocation9], 0  ;;  %s7695_s0 = inlined_call_operand.vmem [shape: f32[30,90], index: 0, kind: input, shape index: {}]   ;;  %s7696_s1 = inlined_call_operand.vmem [shape: f32[30,90], index: 1, kind: input, shape index: {}]   ;;  %s7697_s2 = inlined_call_operand.vmem [shape: bf16[5,90,130], index: 2, kind: input, shape index: {}]   ;;  %s7698_s3 = inlined_call_operand.hbm [shape: bf16[3,130,140], index: 3, kind: input, shape index: {}]   ;;  %s7699_s4 = inlined_call_operand.hbm [shape: bf16[3,140,120], index: 4, kind: input, shape index: {}]   ;;  %s7700_s5 = inlined_call_operand.vmem [shape: bf16[3,120,72], index: 5, kind: input, shape index: {}]   ;;  %s7701_s6 = inlined_call_operand.hbm [shape: f32[1,130], index: 6, kind: input, shape index: {}]   ;;  %s7702_s7 = inlined_call_operand.hbm [shape: f32[1,140], index: 7, kind: input, shape index: {}]   ;;  %s7703_s8 = inlined_call_operand.hbm [shape: f32[1,120], index: 8, kind: input, shape index: {}]   ;;  %s7704_s9 = inlined_call_operand.hbm [shape: f32[1,72], index: 9, kind: input, shape index: {}]   ;;  %s7705_s10 = inlined_call_operand.hbm [shape: bf16[9,144,640], index: 10, kind: input, shape index: {}]   ;;  %s7706_s11 = inlined_call_operand.hbm [shape: f32[1,5760], index: 11, kind: input, shape index: {}]   ;;  %s7707_s12 = inlined_call_operand.hbm [shape: f32[2,5760], index: 12, kind: output, shape index: {}]  }
   0x1   :  { %18 = vsyncpa [#allocation12], 0 }
   0x2   :  { %19 = vsyncpa [#allocation15], 0 }
   0x3   :  { %20 = vsyncpa [#allocation18], 0 }
   0x4   :  { %21 = vsyncpa [#allocation10], 0  ;;  %s6398_s21 = smov [#allocation11]   ;;  %s6194_s25 = scalar_lea.hbm %s7699_s4, 3456 }
   0x5   :  { %s45_s22 = sshll.u32 %s6398_s21, 4  ;;  %p6195_p0 = scmp.ne.s32.totalorder %s7699_s4, %s6194_s25  ;;  %s46_s22 = int_to_ptr.vmem [resolvable:$true] %s45_s22 }
   0x6   :  { %p6198_p1 = scmp.lt.u32.totalorder %s6194_s25, %s7699_s4 }
   0x8   :  { %p6200_p2 = pnand %p6198_p1, %p6195_p0 }
   0xa   :  { %6203 = shalt.err (!%p6200_p2)
}
   0xb   :  { %s6204_s30 = scalar_lea.vmem %s46_s22, 3456  ;;  %p6209_p4 = scmp.lt.s32.totalorder %s46_s22, %s46_s22 }
   0xc   :  { %p6205_p3 = scmp.ne.s32.totalorder %s46_s22, %s6204_s30  ;;  %p6210_p5 = scmp.lt.s32.totalorder %s6204_s30, %s6204_s30 }
   0xe   :  { %p6211_p6 = por %p6210_p5, %p6209_p4 }
  0x10   :  { %p6212_p7 = pnand %p6211_p6, %p6205_p3 }
  0x12   :  { %6215 = shalt.err (!%p6212_p7)
}
  0x13   :  { %s6399_s13 = smov 64   ;;  %s6400_s14 = smov 4  }
  0x14   :  { %51 = dma.hbm_to_vmem [thread:$0]  %s7699_s4, 3456, %s46_s22, [#allocation12], %s6399_s13, %s6399_s13, %s6400_s14  }
  0x15   :  { %s6401_s17 = smov [#allocation14]   ;;  %s6402_s19 = smov [#allocation17]  }
  0x16   :  { %s70_s18 = sshll.u32 %s6401_s17, 4  ;;  %s90_s20 = sshll.u32 %s6402_s19, 4  ;;  %s71_s18 = int_to_ptr.vmem [resolvable:$true] %s70_s18  ;;  %s91_s20 = int_to_ptr.vmem [resolvable:$true] %s90_s20 }
  0x17   :  { %s6216_s24 = scalar_lea.hbm %s7702_s7, 32 }
  0x18   :  { %p6217_p8 = scmp.ne.s32.totalorder %s7702_s7, %s6216_s24  ;;  %p6220_p9 = scmp.lt.u32.totalorder %s6216_s24, %s7702_s7 }
  0x1a   :  { %p6222_p10 = pnand %p6220_p9, %p6217_p8 }
  0x1c   :  { %6225 = shalt.err (!%p6222_p10)
}
  0x1d   :  { %s6226_s4 = scalar_lea.vmem %s71_s18, 32  ;;  %p6231_p12 = scmp.lt.s32.totalorder %s71_s18, %s71_s18 }
  0x1e   :  { %p6227_p11 = scmp.ne.s32.totalorder %s71_s18, %s6226_s4  ;;  %p6232_p13 = scmp.lt.s32.totalorder %s6226_s4, %s6226_s4 }
  0x20   :  { %p6233_p0 = por %p6232_p13, %p6231_p12 }
  0x22   :  { %p6234_p1 = pnand %p6233_p0, %p6227_p11 }
  0x24   :  { %6237 = shalt.err (!%p6234_p1)
}
  0x25   :  { %73 = dma.hbm_to_vmem [thread:$0]  %s7702_s7, 32, %s71_s18, [#allocation15]  }
  0x26   :  { %s6238_s16 = scalar_lea.hbm %s7704_s9, 16 }
  0x27   :  { %p6239_p2 = scmp.ne.s32.totalorder %s7704_s9, %s6238_s16  ;;  %p6242_p3 = scmp.lt.u32.totalorder %s6238_s16, %s7704_s9 }
  0x29   :  { %p6244_p4 = pnand %p6242_p3, %p6239_p2 }
  0x2b   :  { %6247 = shalt.err (!%p6244_p4)
}
  0x2c   :  { %s6248_s24 = scalar_lea.vmem %s91_s20, 16  ;;  %s6252_s25 = scalar_lea.vmem %s91_s20, 32 }
  0x2d   :  { %p6249_p5 = scmp.ne.s32.totalorder %s91_s20, %s6248_s24  ;;  %p6253_p6 = scmp.lt.s32.totalorder %s91_s20, %s91_s20 }
  0x2e   :  { %p6254_p7 = scmp.lt.s32.totalorder %s6252_s25, %s6248_s24 }
  0x30   :  { %p6255_p8 = por %p6254_p7, %p6253_p6 }
  0x32   :  { %p6256_p9 = pnand %p6255_p8, %p6249_p5 }
  0x34   :  { %6259 = shalt.err (!%p6256_p9)
}
  0x35   :  { %93 = dma.hbm_to_vmem [thread:$0]  %s7704_s9, 16, %s91_s20, [#allocation18]  }
  0x36   :  { %s6403_s26 = smov [#allocation8]   ;;  %s6260_s22 = scalar_lea.hbm %s7698_s3, 6528 }
  0x37   :  { %s33_s27 = sshll.u32 %s6403_s26, 4  ;;  %p6261_p10 = scmp.ne.s32.totalorder %s7698_s3, %s6260_s22  ;;  %s34_s27 = int_to_ptr.vmem [resolvable:$true] %s33_s27 }
  0x38   :  { %p6264_p11 = scmp.lt.u32.totalorder %s6260_s22, %s7698_s3 }
  0x3a   :  { %p6266_p12 = pnand %p6264_p11, %p6261_p10 }
  0x3c   :  { %6269 = shalt.err (!%p6266_p12)
}
  0x3d   :  { %s6270_s17 = scalar_lea.vmem %s34_s27, 6528  ;;  %p6275_p0 = scmp.lt.s32.totalorder %s34_s27, %s34_s27 }
  0x3e   :  { %p6271_p13 = scmp.ne.s32.totalorder %s34_s27, %s6270_s17  ;;  %p6276_p1 = scmp.lt.s32.totalorder %s6270_s17, %s6270_s17 }
  0x40   :  { %p6277_p2 = por %p6276_p1, %p6275_p0 }
  0x42   :  { %p6278_p3 = pnand %p6277_p2, %p6271_p13 }
  0x44   :  { %6281 = shalt.err (!%p6278_p3)
}
  0x45   :  { %s6404_s9 = smov 128   ;;  %s6405_s20 = smov 8  }
  0x46   :  { %39 = dma.hbm_to_vmem [thread:$0]  %s7698_s3, 6528, %s34_s27, [#allocation9], %s6404_s9, %s6404_s9, %s6405_s20  }
  0x47   :  { %s6406_s23 = smov [#allocation13]   ;;  %s6407_s25 = smov [#allocation16]  }
  0x48   :  { %s60_s24 = sshll.u32 %s6406_s23, 4  ;;  %s80_s7 = sshll.u32 %s6407_s25, 4  ;;  %s61_s24 = int_to_ptr.vmem [resolvable:$true] %s60_s24  ;;  %s81_s7 = int_to_ptr.vmem [resolvable:$true] %s80_s7 }
  0x49   :  { %s6282_s28 = scalar_lea.hbm %s7701_s6, 32 }
  0x4a   :  { %p6283_p4 = scmp.ne.s32.totalorder %s7701_s6, %s6282_s28  ;;  %p6286_p5 = scmp.lt.u32.totalorder %s6282_s28, %s7701_s6 }
  0x4c   :  { %p6288_p6 = pnand %p6286_p5, %p6283_p4 }
  0x4e   :  { %6291 = shalt.err (!%p6288_p6)
}
  0x4f   :  { %s6292_s3 = scalar_lea.vmem %s61_s24, 32  ;;  %p6297_p8 = scmp.lt.s32.totalorder %s61_s24, %s61_s24 }
  0x50   :  { %p6293_p7 = scmp.ne.s32.totalorder %s61_s24, %s6292_s3  ;;  %p6298_p9 = scmp.lt.s32.totalorder %s6292_s3, %s6292_s3 }
  0x52   :  { %p6299_p10 = por %p6298_p9, %p6297_p8 }
  0x54   :  { %p6300_p11 = pnand %p6299_p10, %p6293_p7 }
  0x56   :  { %6303 = shalt.err (!%p6300_p11)
}
  0x57   :  { %63 = dma.hbm_to_vmem [thread:$0]  %s7701_s6, 32, %s61_s24, [#allocation12]  }
  0x58   :  { %s6304_s20 = scalar_lea.hbm %s7703_s8, 16 }
  0x59   :  { %p6305_p12 = scmp.ne.s32.totalorder %s7703_s8, %s6304_s20  ;;  %p6308_p13 = scmp.lt.u32.totalorder %s6304_s20, %s7703_s8 }
  0x5b   :  { %p6310_p0 = pnand %p6308_p13, %p6305_p12 }
  0x5d   :  { %6313 = shalt.err (!%p6310_p0)
}
  0x5e   :  { %s6314_s18 = scalar_lea.vmem %s81_s7, 16  ;;  %s6318_s26 = scalar_lea.vmem %s81_s7, 32 }
  0x5f   :  { %p6315_p1 = scmp.ne.s32.totalorder %s81_s7, %s6314_s18  ;;  %p6319_p2 = scmp.lt.s32.totalorder %s81_s7, %s81_s7 }
  0x60   :  { %p6320_p3 = scmp.lt.s32.totalorder %s6318_s26, %s6314_s18 }
  0x62   :  { %p6321_p4 = por %p6320_p3, %p6319_p2 }
  0x64   :  { %p6322_p5 = pnand %p6321_p4, %p6315_p1 }
  0x66   :  { %6325 = shalt.err (!%p6322_p5)
}
  0x67   :  { %83 = dma.hbm_to_vmem [thread:$0]  %s7703_s8, 16, %s81_s7, [#allocation15]  }
  0x68   :  { %s6408_s28 = smov [#allocation19]   ;;  %s6326_s30 = scalar_lea.hbm %s7706_s11, 720 }
  0x69   :  { %s100_s4 = sshll.u32 %s6408_s28, 4  ;;  %p6327_p6 = scmp.ne.s32.totalorder %s7706_s11, %s6326_s30  ;;  %s101_s4 = int_to_ptr.vmem [resolvable:$true] %s100_s4 }
  0x6a   :  { %p6330_p7 = scmp.lt.u32.totalorder %s6326_s30, %s7706_s11 }
  0x6c   :  { %p6332_p8 = pnand %p6330_p7, %p6327_p6 }
  0x6e   :  { %6335 = shalt.err (!%p6332_p8)
}
  0x6f   :  { %s6336_s17 = scalar_lea.vmem %s101_s4, 720  ;;  %s6340_s8 = scalar_lea.vmem %s101_s4, 736 }
  0x70   :  { %p6337_p9 = scmp.ne.s32.totalorder %s101_s4, %s6336_s17  ;;  %p6341_p10 = scmp.lt.s32.totalorder %s101_s4, %s101_s4 }
  0x71   :  { %p6342_p11 = scmp.lt.s32.totalorder %s6340_s8, %s6336_s17 }
  0x73   :  { %p6343_p12 = por %p6342_p11, %p6341_p10 }
  0x75   :  { %p6344_p13 = pnand %p6343_p12, %p6337_p9 }
  0x77   :  { %6347 = shalt.err (!%p6344_p13)
}
  0x78   :  { %103 = dma.hbm_to_vmem [thread:$0]  %s7706_s11, 720, %s101_s4, [#allocation18]  }
  0x79   :  { %6370 = dma.done.wait [#allocation9], 6528  }
  0x7a   :  { %6371 = vsyncadd [#allocation9], 4294960768 }
  0x7b   :  { %6372 = dma.done.wait [#allocation12], 3488  }
  0x7c   :  { %6373 = vsyncadd [#allocation12], 4294963808 }
  0x7d   :  { %6374 = dma.done.wait [#allocation15], 48  }
  0x7e   :  { %6375 = vsyncadd [#allocation15], 4294967248 }
  0x7f   :  { %6376 = dma.done.wait [#allocation18], 736  }
  0x80   :  { %6377 = vsyncadd [#allocation18], 4294966560  ;;  %s130_s19 = sld [smem:[#allocation0]]   ;;  %s6409_s21 = smov 640   ;;  %v6410_v0 = vmov 0   ;;  %vm559_vm0 = vcmask 1044480  }
  0x81   :  { %142 = sst [smem:[#allocation22]] %s6409_s21  ;;  %598 = vmatprep.mubr.bf16.mxu0 %v6410_v0  ;;  %s6411_s23 = smov 5   ;;  %vm552_vm1 = vcmask 736256   ;;  %vm1221_vm2 = vcmask 15366   ;;  %vm1224_vm3 = vcmask 13316   ;;  %vm1442_vm4 = vcmask 1040384  }
  0x82   :  { %144 = sst [smem:[#allocation22 + $0x1]] %s6409_s21  ;;  %s6412_s11 = smov [#allocation6]   ;;  %vm1227_vm5 = vcmask 9216   ;;  %vm1238_vm6 = vcmask 11266   ;;  %vm1438_vm7 = vcmask 15360   ;;  %vm1813_vm8 = vcmask 91136  }
  0x83   :  { %146 = sst [smem:[#allocation22 + $0x2]] %s6411_s23  ;;  %s138_s25 = sshll.u32 %s6412_s11, 4  ;;  %vm1952_vm9 = vcmask 1045504   ;;  %vm1820_vm10 = vcmask 93186   ;;  %vm1831_vm11 = vcmask 95236   ;;  %vm1842_vm12 = vcmask 97286   ;;  %s139_s25 = int_to_ptr.vmem [resolvable:$true] %s138_s25 }
  0x84   :  { %148 = sst [smem:[#allocation22 + $0x3]] %s6399_s13  ;;  %s6413_s18 = smov 2   ;;  %vm1948_vm13 = vcmask 97280   ;;  %vm2234_vm14 = vcmask 975872   ;;  %vm2327_vm15 = vcmask 1043456  }
  0x85   :  { %150 = sst [smem:[#allocation22 + $0x4]] %s6404_s9  ;;  %s6414_s6 = smov 320  }
  0x86   :  { %152 = sst [smem:[#allocation22 + $0x5]] %s6413_s18  ;;  %s5338_s26 = sshll.u32 %s130_s19, 26 }
  0x87   :  { %154 = sst [smem:[#allocation22 + $0x6]] %s6414_s6  ;;  %s6609_s24 = sadd.s32 134217728, %s5338_s26 }
  0x88   :  { %156 = sst [smem:[#allocation22 + $0x7]] %s6399_s13  ;;  %s6415_s28 = smov [#allocation7]  }
  0x89   :  { %158 = sst [smem:[#allocation22 + $0x8]] %s6400_s14  ;;  %s6416_s4 = smov [#allocation21]  }
  0x8a   :  { %160 = dma.general %s7705_s10, 5760, %s139_s25, %s6415_s28, %s6416_s4, [#allocation22], %s6609_s24, 0  }
  0x8b   :  { %179 = sst [smem:[#allocation24]] %s6409_s21  ;;  %s6417_s30 = smov [#allocation6 + $0x168]  }
  0x8c   :  { %181 = sst [smem:[#allocation24 + $0x1]] %s6409_s21  ;;  %s175_s3 = sshll.u32 %s6417_s30, 4  ;;  %s176_s3 = int_to_ptr.vmem [resolvable:$true] %s175_s3 }
  0x8d   :  { %183 = sst [smem:[#allocation24 + $0x2]] %s6411_s23  ;;  %s161_s16 = scalar_lea.hbm %s7705_s10, 5760 }
  0x8e   :  { %185 = sst [smem:[#allocation24 + $0x3]] %s6399_s13  ;;  %s6418_s17 = smov [#allocation7 + $0x1]  }
  0x8f   :  { %187 = sst [smem:[#allocation24 + $0x4]] %s6404_s9  ;;  %s6419_s8 = smov [#allocation23]  }
  0x90   :  { %189 = sst [smem:[#allocation24 + $0x5]] %s6413_s18  ;;  %s6420_s7 = smov [#allocation6 + $0x2d0]  }
  0x91   :  { %191 = sst [smem:[#allocation24 + $0x6]] %s6414_s6  ;;  %s212_s20 = sshll.u32 %s6420_s7, 4  ;;  %s213_s20 = int_to_ptr.vmem [resolvable:$true] %s212_s20 }
  0x92   :  { %193 = sst [smem:[#allocation24 + $0x7]] %s6399_s13  ;;  %s198_s25 = scalar_lea.hbm %s7705_s10, 11520 }
  0x93   :  { %195 = sst [smem:[#allocation24 + $0x8]] %s6400_s14  ;;  %s6421_s26 = smov [#allocation7 + $0x2]  }
  0x94   :  { %197 = dma.general %s161_s16, 5760, %s176_s3, %s6418_s17, %s6419_s8, [#allocation24], %s6609_s24, 0  }
  0x95   :  { %216 = sst [smem:[#allocation26]] %s6409_s21  ;;  %s6422_s28 = smov [#allocation25]  }
  0x96   :  { %218 = sst [smem:[#allocation26 + $0x1]] %s6409_s21  ;;  %s6423_s4 = smov [#allocation6 + $0x438]  }
  0x97   :  { %220 = sst [smem:[#allocation26 + $0x2]] %s6411_s23  ;;  %s249_s22 = sshll.u32 %s6423_s4, 4  ;;  %s250_s22 = int_to_ptr.vmem [resolvable:$true] %s249_s22 }
  0x98   :  { %222 = sst [smem:[#allocation26 + $0x3]] %s6399_s13  ;;  %s235_s3 = scalar_lea.hbm %s7705_s10, 17280 }
  0x99   :  { %224 = sst [smem:[#allocation26 + $0x4]] %s6404_s9  ;;  %s6424_s27 = smov [#allocation7 + $0x3]  }
  0x9a   :  { %226 = sst [smem:[#allocation26 + $0x5]] %s6413_s18  ;;  %s6425_s15 = smov [#allocation27]  }
  0x9b   :  { %228 = sst [smem:[#allocation26 + $0x6]] %s6414_s6  ;;  %s6426_s16 = smov [#allocation6 + $0x5a0]  }
  0x9c   :  { %230 = sst [smem:[#allocation26 + $0x7]] %s6399_s13  ;;  %s286_s17 = sshll.u32 %s6426_s16, 4  ;;  %s287_s17 = int_to_ptr.vmem [resolvable:$true] %s286_s17 }
  0x9d   :  { %232 = sst [smem:[#allocation26 + $0x8]] %s6400_s14  ;;  %s6427_s19 = smov [#allocation7 + $0x4]  }
  0x9e   :  { %234 = dma.general %s198_s25, 5760, %s213_s20, %s6421_s26, %s6422_s28, [#allocation26], %s6609_s24, 0  }
  0x9f   :  { %253 = sst [smem:[#allocation28]] %s6409_s21  ;;  %s272_s20 = scalar_lea.hbm %s7705_s10, 23040 }
  0xa0   :  { %255 = sst [smem:[#allocation28 + $0x1]] %s6409_s21  ;;  %s6428_s11 = smov [#allocation29]  }
  0xa1   :  { %257 = sst [smem:[#allocation28 + $0x2]] %s6411_s23  ;;  %s6429_s25 = smov [#allocation6 + $0x708]  }
  0xa2   :  { %259 = sst [smem:[#allocation28 + $0x3]] %s6399_s13  ;;  %s323_s26 = sshll.u32 %s6429_s25, 4  ;;  %s324_s26 = int_to_ptr.vmem [resolvable:$true] %s323_s26 }
  0xa3   :  { %261 = sst [smem:[#allocation28 + $0x4]] %s6404_s9  ;;  %s6430_s29 = smov [#allocation7 + $0x5]  }
  0xa4   :  { %263 = sst [smem:[#allocation28 + $0x5]] %s6413_s18  ;;  %s6431_s30 = smov [#allocation31]  }
  0xa5   :  { %265 = sst [smem:[#allocation28 + $0x6]] %s6414_s6  ;;  %s6433_s8 = smov [#allocation7 + $0x6]  }
  0xa6   :  { %267 = sst [smem:[#allocation28 + $0x7]] %s6399_s13  ;;  %s6434_s7 = smov [#allocation33]  }
  0xa7   :  { %269 = sst [smem:[#allocation28 + $0x8]] %s6400_s14  ;;  %s6436_s28 = smov [#allocation7 + $0x7]  }
  0xa8   :  { %271 = dma.general %s235_s3, 5760, %s250_s22, %s6424_s27, %s6425_s15, [#allocation28], %s6609_s24, 0  }
  0xa9   :  { %290 = sst [smem:[#allocation30]] %s6409_s21  ;;  %s309_s22 = scalar_lea.hbm %s7705_s10, 28800 }
  0xaa   :  { %292 = sst [smem:[#allocation30 + $0x1]] %s6409_s21  ;;  %s6432_s3 = smov [#allocation6 + $0x870]  }
  0xab   :  { %294 = sst [smem:[#allocation30 + $0x2]] %s6411_s23  ;;  %s360_s27 = sshll.u32 %s6432_s3, 4  ;;  %s361_s27 = int_to_ptr.vmem [resolvable:$true] %s360_s27 }
  0xac   :  { %296 = sst [smem:[#allocation30 + $0x3]] %s6399_s13  ;;  %s6437_s4 = smov [#allocation35]  }
  0xad   :  { %298 = sst [smem:[#allocation30 + $0x4]] %s6404_s9  ;;  %s6440_s15 = smov [#allocation37]  }
  0xae   :  { %300 = sst [smem:[#allocation30 + $0x5]] %s6413_s18 }
  0xaf   :  { %302 = sst [smem:[#allocation30 + $0x6]] %s6414_s6 }
  0xb0   :  { %304 = sst [smem:[#allocation30 + $0x7]] %s6399_s13 }
  0xb1   :  { %306 = sst [smem:[#allocation30 + $0x8]] %s6400_s14 }
  0xb2   :  { %308 = dma.general %s272_s20, 5760, %s287_s17, %s6427_s19, %s6428_s11, [#allocation30], %s6609_s24, 0  }
  0xb3   :  { %327 = sst [smem:[#allocation32]] %s6409_s21  ;;  %s346_s17 = scalar_lea.hbm %s7705_s10, 34560 }
  0xb4   :  { %329 = sst [smem:[#allocation32 + $0x1]] %s6409_s21  ;;  %s6435_s20 = smov [#allocation6 + $0x9d8]  }
  0xb5   :  { %331 = sst [smem:[#allocation32 + $0x2]] %s6411_s23  ;;  %s397_s19 = sshll.u32 %s6435_s20, 4  ;;  %s398_s19 = int_to_ptr.vmem [resolvable:$true] %s397_s19 }
  0xb6   :  { %333 = sst [smem:[#allocation32 + $0x3]] %s6399_s13 }
  0xb7   :  { %335 = sst [smem:[#allocation32 + $0x4]] %s6404_s9 }
  0xb8   :  { %337 = sst [smem:[#allocation32 + $0x5]] %s6413_s18 }
  0xb9   :  { %339 = sst [smem:[#allocation32 + $0x6]] %s6414_s6 }
  0xba   :  { %341 = sst [smem:[#allocation32 + $0x7]] %s6399_s13 }
  0xbb   :  { %343 = sst [smem:[#allocation32 + $0x8]] %s6400_s14 }
  0xbc   :  { %345 = dma.general %s309_s22, 5760, %s324_s26, %s6430_s29, %s6431_s30, [#allocation32], %s6609_s24, 0  }
  0xbd   :  { %364 = sst [smem:[#allocation34]] %s6409_s21  ;;  %s383_s26 = scalar_lea.hbm %s7705_s10, 40320 }
  0xbe   :  { %366 = sst [smem:[#allocation34 + $0x1]] %s6409_s21  ;;  %s6438_s22 = smov [#allocation6 + $0xb40]  }
  0xbf   :  { %368 = sst [smem:[#allocation34 + $0x2]] %s6411_s23  ;;  %s434_s29 = sshll.u32 %s6438_s22, 4  ;;  %s435_s29 = int_to_ptr.vmem [resolvable:$true] %s434_s29 }
  0xc0   :  { %370 = sst [smem:[#allocation34 + $0x3]] %s6399_s13 }
  0xc1   :  { %372 = sst [smem:[#allocation34 + $0x4]] %s6404_s9 }
  0xc2   :  { %374 = sst [smem:[#allocation34 + $0x5]] %s6413_s18 }
  0xc3   :  { %376 = sst [smem:[#allocation34 + $0x6]] %s6414_s6 }
  0xc4   :  { %378 = sst [smem:[#allocation34 + $0x7]] %s6399_s13 }
  0xc5   :  { %380 = sst [smem:[#allocation34 + $0x8]] %s6400_s14 }
  0xc6   :  { %382 = dma.general %s346_s17, 5760, %s361_s27, %s6433_s8, %s6434_s7, [#allocation34], %s6609_s24, 0  }
  0xc7   :  { %401 = sst [smem:[#allocation36]] %s6409_s21  ;;  %s420_s27 = scalar_lea.hbm %s7705_s10, 46080 }
  0xc8   :  { %403 = sst [smem:[#allocation36 + $0x1]] %s6409_s21 }
  0xc9   :  { %405 = sst [smem:[#allocation36 + $0x2]] %s6411_s23 }
  0xca   :  { %407 = sst [smem:[#allocation36 + $0x3]] %s6399_s13 }
  0xcb   :  { %409 = sst [smem:[#allocation36 + $0x4]] %s6404_s9 }
  0xcc   :  { %411 = sst [smem:[#allocation36 + $0x5]] %s6413_s18 }
  0xcd   :  { %413 = sst [smem:[#allocation36 + $0x6]] %s6414_s6 }
  0xce   :  { %415 = sst [smem:[#allocation36 + $0x7]] %s6399_s13 }
  0xcf   :  { %417 = sst [smem:[#allocation36 + $0x8]] %s6400_s14 }
  0xd0   :  { %419 = dma.general %s383_s26, 5760, %s398_s19, %s6436_s28, %s6437_s4, [#allocation36], %s6609_s24, 0  }
  0xd1   :  { %438 = sst [smem:[#allocation38]] %s6409_s21 }
  0xd2   :  { %440 = sst [smem:[#allocation38 + $0x1]] %s6409_s21  ;;  %s6439_s21 = smov [#allocation7 + $0x8]  }
  0xd3   :  { %442 = sst [smem:[#allocation38 + $0x2]] %s6411_s23 }
  0xd4   :  { %444 = sst [smem:[#allocation38 + $0x3]] %s6399_s13 }
  0xd5   :  { %446 = sst [smem:[#allocation38 + $0x4]] %s6404_s9 }
  0xd6   :  { %448 = sst [smem:[#allocation38 + $0x5]] %s6413_s18 }
  0xd7   :  { %450 = sst [smem:[#allocation38 + $0x6]] %s6414_s6 }
  0xd8   :  { %452 = sst [smem:[#allocation38 + $0x7]] %s6399_s13 }
  0xd9   :  { %454 = sst [smem:[#allocation38 + $0x8]] %s6400_s14 }
  0xda   :  { %456 = dma.general %s420_s27, 5760, %s435_s29, %s6439_s21, %s6440_s15, [#allocation38], %s6609_s24, 0  }
  0xdb   :  { %v5849_v1 = vld [vmem:[%s7697_s2 + $0x64] ss:$8 sps:$4 sm:$0xff]   ;;  %v5851_v2 = vld [vmem:[%s7697_s2 + $0x60] ss:$8 sps:$4 sm:$0xff]   ;;  %v5852_v3 = vld [vmem:[%s7697_s2 + $0x74] ss:$8 sps:$4 sm:$0xff]  }
  0xdc   :  { %566 = vmatprep.subr.bf16.mxu0 %v5849_v1  ;;  %v5854_v4 = vld [vmem:[%s7697_s2 + $0x70] ss:$8 sps:$4 sm:$0xff]   ;;  %v5855_v5 = vld [vmem:[%s7697_s2 + $0x84] ss:$8 sps:$4 sm:$0xff]   ;;  %v5857_v6 = vld [vmem:[%s7697_s2 + $0x80] ss:$8 sps:$4 sm:$0xff]  }
  0xdd   :  { %567 = vmatpush1.bf16.msra.mxu0 %v5851_v2  ;;  %v5858_v7 = vld [vmem:[%s7697_s2 + $0x94] ss:$8 sps:$4 sm:$0xff]   ;;  %v5860_v8 = vld [vmem:[%s7697_s2 + $0x90] ss:$8 sps:$4 sm:$0xff]   ;;  %v5861_v9 = vld [vmem:[%s7697_s2 + $0xa4] ss:$8 sps:$4 sm:$0xff]  }
  0xde   :  { %568 = vmatprep.subr.bf16.mxu0 %v5852_v3  ;;  %v5863_v10 = vld [vmem:[%s7697_s2 + $0xa0] ss:$8 sps:$4 sm:$0xff]   ;;  %v5864_v11 = vld [vmem:[%s7697_s2 + $0xb4] ss:$8 sps:$4 sm:$0x1f]  }
  0xdf   :  { %v5866_v12 = vld [vmem:[%s7697_s2 + $0xb0] ss:$8 sps:$4 sm:$0x1f]   ;;  %v475_v13 = vld [vmem:[%s7696_s1] sm:$0xff]  ;;  %v476_v14 = vld [vmem:[%s7696_s1 + $0x8] sm:$0xff] }
  0xe0   :  { %v561_v15 = vsel %vm559_vm0, %v5866_v12, 0  ;;  %v5869_v16 = vld [vmem:[%s7697_s2 + $0x4] ss:$8 sps:$4 sm:$0xff]   ;;  %v479_v17 = vpack.c.bf16 %v476_v14, %v475_v13  ;;  %v5867_v18 = vld [vmem:[%s7697_s2] ss:$8 sps:$4 sm:$0xff]   ;;  %v477_v21 = vld [vmem:[%s7696_s1 + $0x10] sm:$0xff] }
  0xe1   :  { %569 = vmatpush1.bf16.msra.mxu0 %v5854_v4  ;;  %v5872_v19 = vld [vmem:[%s7697_s2 + $0x14] ss:$8 sps:$4 sm:$0xff]   ;;  %v5870_v20 = vld [vmem:[%s7697_s2 + $0x10] ss:$8 sps:$4 sm:$0xff]   ;;  %v5875_v23 = vld [vmem:[%s7697_s2 + $0x24] ss:$8 sps:$4 sm:$0xff]  }
  0xe2   :  { %570 = vmatprep.subr.bf16.mxu0 %v5855_v5  ;;  %v478_v22 = vld [vmem:[%s7696_s1 + $0x18] sm:$0x3]  ;;  %v5873_v25 = vld [vmem:[%s7697_s2 + $0x20] ss:$8 sps:$4 sm:$0xff]   ;;  %v5878_v26 = vld [vmem:[%s7697_s2 + $0x34] ss:$8 sps:$4 sm:$0xff]  }
  0xe3   :  { %v480_v24 = vpack.c.bf16 %v478_v22, %v477_v21  ;;  %v5876_v27 = vld [vmem:[%s7697_s2 + $0x30] ss:$8 sps:$4 sm:$0xff]   ;;  %v5881_v28 = vld [vmem:[%s7697_s2 + $0x44] ss:$8 sps:$4 sm:$0xff]   ;;  %v5879_v29 = vld [vmem:[%s7697_s2 + $0x40] ss:$8 sps:$4 sm:$0xff]  }
  0xe4   :  { %v5882_v30 = vld [vmem:[%s7697_s2 + $0x54] ss:$8 sps:$4 sm:$0x1f]   ;;  %v5884_v31 = vld [vmem:[%s7697_s2 + $0x50] ss:$8 sps:$4 sm:$0x1f]  }
  0xe5   :  { %571 = vmatpush1.bf16.msra.mxu0 %v5857_v6  ;;  %v457_v32 = vld [vmem:[%s7695_s0] sm:$0xff]  ;;  %v458_v33 = vld [vmem:[%s7695_s0 + $0x8] sm:$0xff]  ;;  %v684_v34 = vsel %vm559_vm0, %v5884_v31, 0  ;;  %v5890_v38 = vld [vmem:[%s7697_s2 + $0xd4] ss:$8 sps:$4 sm:$0xff]  }
  0xe6   :  { %572 = vmatprep.subr.bf16.mxu0 %v5858_v7  ;;  %v5887_v35 = vld [vmem:[%s7697_s2 + $0xc4] ss:$8 sps:$4 sm:$0xff]   ;;  %v5885_v36 = vld [vmem:[%s7697_s2 + $0xc0] ss:$8 sps:$4 sm:$0xff]   ;;  %v461_v37 = vpack.c.bf16 %v458_v33, %v457_v32  ;;  %v5888_v41 = vld [vmem:[%s7697_s2 + $0xd0] ss:$8 sps:$4 sm:$0xff]  }
  0xe7   :  { %v5939_v39 = vld [vmem:[#allocation8 + $0x4] ss:$8 sps:$4 sm:$0xff]   ;;  %v5941_v40 = vld [vmem:[#allocation8] ss:$8 sps:$4 sm:$0xff]   ;;  %v460_v43 = vld [vmem:[%s7695_s0 + $0x18] sm:$0x3] }
  0xe8   :  { %v459_v42 = vld [vmem:[%s7695_s0 + $0x10] sm:$0xff]  ;;  %v5893_v45 = vld [vmem:[%s7697_s2 + $0xe4] ss:$8 sps:$4 sm:$0xff]   ;;  %1449 = vmatprep.subr.bf16.mxu1 %v5939_v39  ;;  %v5891_v47 = vld [vmem:[%s7697_s2 + $0xe0] ss:$8 sps:$4 sm:$0xff]  }
  0xe9   :  { %573 = vmatpush1.bf16.msra.mxu0 %v5860_v8  ;;  %v5942_v44 = vld [vmem:[#allocation8 + $0x14] ss:$8 sps:$4 sm:$0xff]   ;;  %v5944_v46 = vld [vmem:[#allocation8 + $0x10] ss:$8 sps:$4 sm:$0xff]   ;;  %1450 = vmatpush1.bf16.msra.mxu1 %v5941_v40  ;;  %v462_v49 = vpack.c.bf16 %v460_v43, %v459_v42  ;;  %v5899_v51 = vld [vmem:[%s7697_s2 + $0x104] ss:$8 sps:$4 sm:$0xff]  }
  0xea   :  { %574 = vmatprep.subr.bf16.mxu0 %v5861_v9  ;;  %1451 = vmatprep.subr.bf16.mxu1 %v5942_v44  ;;  %v5896_v48 = vld [vmem:[%s7697_s2 + $0xf4] ss:$8 sps:$4 sm:$0xff]   ;;  %v5894_v50 = vld [vmem:[%s7697_s2 + $0xf0] ss:$8 sps:$4 sm:$0xff]   ;;  %v5897_v54 = vld [vmem:[%s7697_s2 + $0x100] ss:$8 sps:$4 sm:$0xff]  }
  0xeb   :  { %v5902_v52 = vld [vmem:[%s7697_s2 + $0x110] ss:$8 sps:$4 sm:$0x1f]   ;;  %v5900_v55 = vld [vmem:[%s7697_s2 + $0x114] ss:$8 sps:$4 sm:$0x1f]  }
  0xec   :  { %v5920_v53 = vld [vmem:[%s7697_s2 + $0x170] ss:$8 sps:$4 sm:$0x1f]   ;;  %v826_v56 = vsel %vm559_vm0, %v5902_v52, 0  ;;  %v742_v58 = vld [vmem:[%s7695_s0 + $0x2] sm:$0xff]  ;;  %v6441_v43 = vmov 0.0  }
  0xed   :  { %575 = vmatpush1.bf16.msra.mxu0 %v5863_v10  ;;  %1452 = vmatpush1.bf16.msra.mxu1 %v5944_v46  ;;  %v976_v57 = vsel %vm559_vm0, %v5920_v53, 0  ;;  %v743_v59 = vld [vmem:[%s7695_s0 + $0xa] sm:$0xff]  ;;  %v5908_v63 = vld [vmem:[%s7697_s2 + $0x134] ss:$8 sps:$4 sm:$0xff]   ;;  %v745_v3 = vld [vmem:[%s7695_s0 + $0x1a] sm:$0x3] }
  0xee   :  { %5380 = vmatprep.subr.msk.bf16.mxu0 %vm559_vm0, %v5864_v11  ;;  %v5905_v60 = vld [vmem:[%s7697_s2 + $0x124] ss:$8 sps:$4 sm:$0xff]   ;;  %v5903_v61 = vld [vmem:[%s7697_s2 + $0x120] ss:$8 sps:$4 sm:$0xff]   ;;  %v746_v62 = vpack.c.bf16 %v743_v59, %v742_v58  ;;  %v5906_v1 = vld [vmem:[%s7697_s2 + $0x130] ss:$8 sps:$4 sm:$0xff]   ;;  %v1194_v58 = vlaneseq }
  0xef   :  { %v744_v2 = vld [vmem:[%s7695_s0 + $0x12] sm:$0xff]  ;;  %v5911_v4 = vld [vmem:[%s7697_s2 + $0x144] ss:$8 sps:$4 sm:$0xff]   ;;  %v5909_v5 = vld [vmem:[%s7697_s2 + $0x140] ss:$8 sps:$4 sm:$0xff]  }
  0xf0   :  { %v5914_v6 = vld [vmem:[%s7697_s2 + $0x154] ss:$8 sps:$4 sm:$0xff]   ;;  %v747_v7 = vpack.c.bf16 %v745_v3, %v744_v2  ;;  %v5912_v8 = vld [vmem:[%s7697_s2 + $0x150] ss:$8 sps:$4 sm:$0xff]   ;;  %v5917_v9 = vld [vmem:[%s7697_s2 + $0x164] ss:$8 sps:$4 sm:$0xff]  }
  0xf1   :  { %577 = vmatpush1.bf16.msra.mxu0 %v561_v15  ;;  %v5915_v10 = vld [vmem:[%s7697_s2 + $0x160] ss:$8 sps:$4 sm:$0xff]   ;;  %v5918_v11 = vld [vmem:[%s7697_s2 + $0x174] ss:$8 sps:$4 sm:$0x1f]   ;;  %v1043_v31 = vld [vmem:[%s7695_s0 + $0xc] sm:$0xff] }
  0xf2   :  { %689 = vmatprep.subr.bf16.mxu0 %v5869_v16  ;;  %v892_v12 = vld [vmem:[%s7696_s1 + $0x2] sm:$0xff]  ;;  %v893_v13 = vld [vmem:[%s7696_s1 + $0xa] sm:$0xff]  ;;  %v5948_v39 = vld [vmem:[#allocation8 + $0x34] ss:$8 sps:$4 sm:$0xff]   ;;  %1222 = vst.msk [vmem:[#allocation2 + $0x18] sm:$0xc0] %vm1221_vm2, %v6441_v43 }
  0xf3   :  { %v5923_v14 = vld [vmem:[%s7697_s2 + $0x184] ss:$8 sps:$4 sm:$0xff]   ;;  %v5921_v15 = vld [vmem:[%s7697_s2 + $0x180] ss:$8 sps:$4 sm:$0xff]   ;;  %v896_v16 = vpack.c.bf16 %v893_v13, %v892_v12  ;;  %v5950_v40 = vld [vmem:[#allocation8 + $0x30] ss:$8 sps:$4 sm:$0xff]  }
  0xf4   :  { %5381 = vmatmul.mubr.msk.bf16.vlgmr.msra.gmra.mrb[0].mxu0 %vm552_vm1, %v479_v17  ;;  %v5926_v17 = vld [vmem:[%s7697_s2 + $0x194] ss:$8 sps:$4 sm:$0xff]   ;;  %v5929_v21 = vld [vmem:[%s7697_s2 + $0x1a4] ss:$8 sps:$4 sm:$0xff]   ;;  %1220 = vst [vmem:[#allocation2 + $0x10] sm:$0xc0] %v6441_v43 }
  0xf5   :  { %690 = vmatpush1.bf16.msra.mxu0 %v5867_v18  ;;  %608 = vmatprep.mubr.bf16.mxu0 %v6410_v0  ;;  %v5924_v18 = vld [vmem:[%s7697_s2 + $0x190] ss:$8 sps:$4 sm:$0xff]   ;;  %v5953_v42 = vld [vmem:[#allocation8 + $0x40] ss:$8 sps:$4 sm:$0xff]   ;;  %1223 = vst [vmem:[#allocation2 + $0x30] sm:$0x30] %v6441_v43 }
  0xf6   :  { %691 = vmatprep.subr.bf16.mxu0 %v5872_v19  ;;  %v894_v19 = vld [vmem:[%s7696_s1 + $0x12] sm:$0xff]  ;;  %1812 = vst [vmem:[#allocation3 + $0x10] sm:$0x3] %v6441_v43  ;;  %1815 = vst [vmem:[#allocation3 + $0x20] sm:$0x3] %v6441_v43  ;;  %v6024_v59 = vld [vmem:[#allocation11 + $0x60] sm:$0xff]  }
  0xf7   :  { %1225 = vst.msk [vmem:[#allocation2 + $0x38] sm:$0x30] %vm1224_vm3, %v6441_v43  ;;  %v5954_v44 = vld [vmem:[#allocation8 + $0x54] ss:$8 sps:$4 sm:$0xff]   ;;  %v5957_v46 = vld [vmem:[#allocation8 + $0x64] ss:$8 sps:$4 sm:$0xff]  }
  0xf8   :  { %1814 = vst.msk [vmem:[#allocation3 + $0x18] sm:$0x3] %vm1813_vm8, %v6441_v43  ;;  %1816 = vst.msk [vmem:[#allocation3 + $0x28] sm:$0x3] %vm1813_vm8, %v6441_v43 }
  0xf9   :  { %692 = vmatpush1.bf16.msra.mxu0 %v5870_v20  ;;  %v895_v20 = vld [vmem:[%s7696_s1 + $0x1a] sm:$0x3]  ;;  %2235 = vst.msk [vmem:[#allocation4 + $0x4] sm:$0x3] %vm2234_vm14, %v6441_v43 }
  0xfa   :  { %693 = vmatprep.subr.bf16.mxu0 %v5875_v23  ;;  %v897_v22 = vpack.c.bf16 %v895_v20, %v894_v19  ;;  %v5927_v23 = vld [vmem:[%s7697_s2 + $0x1a0] ss:$8 sps:$4 sm:$0xff]  }
  0xfc   :  { %5382 = vmatmul.mubr.msk.bf16.gmra.mrb[4].mxu0 %vm552_vm1, %v480_v24  ;;  %v5932_v24 = vld [vmem:[%s7697_s2 + $0x1b4] ss:$8 sps:$4 sm:$0xff]  }
  0xfd   :  { %694 = vmatpush1.bf16.msra.mxu0 %v5873_v25  ;;  %721 = vmatprep.mubr.bf16.mxu0 %v6410_v0  ;;  %v5930_v25 = vld [vmem:[%s7697_s2 + $0x1b0] ss:$8 sps:$4 sm:$0xff]  }
  0xfe   :  { %695 = vmatprep.subr.bf16.mxu0 %v5878_v26  ;;  %v5935_v26 = vld [vmem:[%s7697_s2 + $0x1c4] ss:$8 sps:$4 sm:$0xff]  }
 0x101   :  { %696 = vmatpush1.bf16.msra.mxu0 %v5876_v27  ;;  %v5933_v27 = vld [vmem:[%s7697_s2 + $0x1c0] ss:$8 sps:$4 sm:$0xff]  }
 0x102   :  { %697 = vmatprep.subr.bf16.mxu0 %v5881_v28  ;;  %v5936_v28 = vld [vmem:[%s7697_s2 + $0x1d4] ss:$8 sps:$4 sm:$0x1f]  }
 0x105   :  { %698 = vmatpush1.bf16.msra.mxu0 %v5879_v29  ;;  %v5938_v29 = vld [vmem:[%s7697_s2 + $0x1d0] ss:$8 sps:$4 sm:$0x1f]  }
 0x106   :  { %5395 = vmatprep.subr.msk.bf16.mxu0 %vm559_vm0, %v5882_v30  ;;  %v1042_v30 = vld [vmem:[%s7695_s0 + $0x4] sm:$0xff]  ;;  %v1126_v32 = vsel %vm559_vm0, %v5938_v29, 0 }
 0x107   :  { %v1046_v33 = vpack.c.bf16 %v1043_v31, %v1042_v30 }
 0x109   :  { %700 = vmatpush1.bf16.msra.mxu0 %v684_v34  ;;  %v1044_v34 = vld [vmem:[%s7695_s0 + $0x14] sm:$0xff] }
 0x10a   :  { %831 = vmatprep.subr.bf16.mxu0 %v5887_v35  ;;  %v1045_v35 = vld [vmem:[%s7695_s0 + $0x1c] sm:$0x3] }
 0x10c   :  { %5396 = vmatmul.mubr.msk.bf16.vlgmr.msra.gmra.mrb[0].mxu0 %vm552_vm1, %v461_v37  ;;  %v5945_v37 = vld [vmem:[#allocation8 + $0x24] ss:$8 sps:$4 sm:$0xff]  }
 0x10d   :  { %832 = vmatpush1.bf16.msra.mxu0 %v5885_v36  ;;  %731 = vmatprep.mubr.bf16.mxu0 %v6410_v0  ;;  %v1047_v36 = vpack.c.bf16 %v1045_v35, %v1044_v34 }
 0x10e   :  { %833 = vmatprep.subr.bf16.mxu0 %v5890_v38  ;;  %v5947_v38 = vld [vmem:[#allocation8 + $0x20] ss:$8 sps:$4 sm:$0xff]   ;;  %1453 = vmatprep.subr.bf16.mxu1 %v5945_v37 }
 0x10f   :  { %1454 = vmatpush1.bf16.msra.mxu1 %v5947_v38 }
 0x110   :  { %1455 = vmatprep.subr.bf16.mxu1 %v5948_v39 }
 0x111   :  { %834 = vmatpush1.bf16.msra.mxu0 %v5888_v41  ;;  %v5951_v41 = vld [vmem:[#allocation8 + $0x44] ss:$8 sps:$4 sm:$0xff]  }
 0x112   :  { %835 = vmatprep.subr.bf16.mxu0 %v5893_v45  ;;  %v5956_v45 = vld [vmem:[#allocation8 + $0x50] ss:$8 sps:$4 sm:$0xff]  }
 0x113   :  { %1456 = vmatpush1.bf16.msra.mxu1 %v5950_v40 }
 0x114   :  { %5397 = vmatmul.mubr.msk.bf16.gmra.mrb[4].mxu0 %vm552_vm1, %v462_v49  ;;  %1457 = vmatprep.subr.bf16.mxu1 %v5951_v41  ;;  %v5962_v49 = vld [vmem:[#allocation8 + $0x70] ss:$8 sps:$4 sm:$0xff]   ;;  %v1315_v41 = vld [vmem:[#allocation2 + $0x18] sm:$0xc0] }
 0x115   :  { %836 = vmatpush1.bf16.msra.mxu0 %v5891_v47  ;;  %863 = vmatprep.mubr.bf16.mxu0 %v6410_v0  ;;  %v5959_v47 = vld [vmem:[#allocation8 + $0x60] ss:$8 sps:$4 sm:$0xff]  }
 0x116   :  { %837 = vmatprep.subr.bf16.mxu0 %v5896_v48  ;;  %v5960_v48 = vld [vmem:[#allocation8 + $0x74] ss:$8 sps:$4 sm:$0xff]  }
 0x117   :  { %1458 = vmatpush1.bf16.msra.mxu1 %v5953_v42 }
 0x118   :  { %1459 = vmatprep.subr.bf16.mxu1 %v5954_v44  ;;  %v1314_v44 = vld [vmem:[#allocation2 + $0x10] sm:$0xc0] }
 0x119   :  { %838 = vmatpush1.bf16.msra.mxu0 %v5894_v50  ;;  %v1340_v50 = vld [vmem:[#allocation8 + $0x80] sm:$0x11] }
 0x11a   :  { %839 = vmatprep.subr.bf16.mxu0 %v5899_v51  ;;  %v5496_v51 = vcombine.high %v1340_v50, %v1340_v50  ;;  %v5495_v52 = vcombine.low %v1340_v50, %v1340_v50 }
 0x11b   :  { %1460 = vmatpush1.bf16.msra.mxu1 %v5956_v45 }
 0x11c   :  { %1461 = vmatprep.subr.bf16.mxu1 %v5957_v46  ;;  %v1444_v53 = vsel %vm1442_vm4, %v5495_v52, 0 }
 0x11d   :  { %840 = vmatpush1.bf16.msra.mxu0 %v5897_v54  ;;  %v5967_v54 = vld [vmem:[#allocation8 + $0x8c] ss:$8 sps:$4 sm:$0xff]  }
 0x11e   :  { %5422 = vmatprep.subr.msk.bf16.mxu0 %vm559_vm0, %v5900_v55  ;;  %v6018_v55 = vld [vmem:[#allocation11 + $0x48] sm:$0xff]  }
 0x11f   :  { %1462 = vmatpush1.bf16.msra.mxu1 %v5959_v47 }
 0x120   :  { %1463 = vmatprep.subr.bf16.mxu1 %v5960_v48 }
 0x121   :  { %842 = vmatpush1.bf16.msra.mxu0 %v826_v56  ;;  %v6020_v56 = vld [vmem:[#allocation11 + $0x50] sm:$0xff]  }
 0x122   :  { %981 = vmatprep.subr.bf16.mxu0 %v5905_v60  ;;  %v7004_v60 = vshrl.u32 %v1194_v58, 7 }
 0x123   :  { %1464 = vmatpush1.bf16.msra.mxu1 %v5962_v49 }
 0x124   :  { %5423 = vmatmul.mubr.msk.bf16.vlgmr.msra.gmra.mrb[0].mxu0 %vm552_vm1, %v746_v62  ;;  %5497 = vmatprep.subr.msk.bf16.mxu1 %vm1442_vm4, %v5496_v51  ;;  %v1192_v62 = vld [vmem:[#allocation13] sm:$0x3] }
 0x125   :  { %982 = vmatpush1.bf16.msra.mxu0 %v5903_v61  ;;  %873 = vmatprep.mubr.bf16.mxu0 %v6410_v0  ;;  %v7008_v61 = vsub.s32 0, %v7004_v60 }
 0x126   :  { %983 = vmatprep.subr.bf16.mxu0 %v5908_v63  ;;  %v7011_v63 = vsub.s32 1, %v7004_v60 }
 0x127   :  { %1466 = vmatpush1.bf16.msra.mxu1 %v1444_v53 }
 0x128   :  { %1586 = vmatprep.subr.bf16.mxu1 %v5967_v54  ;;  %v1201_v2 = vrot.slane %v1192_v62, %v7011_v63 }
 0x129   :  { %984 = vmatpush1.bf16.msra.mxu0 %v5906_v1  ;;  %v1197_v1 = vrot.slane %v1192_v62, %v7008_v61  ;;  %v5970_v62 = vld [vmem:[#allocation8 + $0x9c] ss:$8 sps:$4 sm:$0xff]  }
 0x12a   :  { %985 = vmatprep.subr.bf16.mxu0 %v5911_v4 }
 0x12c   :  { %5424 = vmatmul.mubr.msk.bf16.gmra.mrb[4].mxu0 %vm552_vm1, %v747_v7 }
 0x12d   :  { %986 = vmatpush1.bf16.msra.mxu0 %v5909_v5  ;;  %1013 = vmatprep.mubr.bf16.mxu0 %v6410_v0 }
 0x12e   :  { %987 = vmatprep.subr.bf16.mxu0 %v5914_v6 }
 0x131   :  { %988 = vmatpush1.bf16.msra.mxu0 %v5912_v8 }
 0x132   :  { %989 = vmatprep.subr.bf16.mxu0 %v5917_v9 }
 0x135   :  { %990 = vmatpush1.bf16.msra.mxu0 %v5915_v10 }
 0x136   :  { %5449 = vmatprep.subr.msk.bf16.mxu0 %vm559_vm0, %v5918_v11 }
 0x139   :  { %992 = vmatpush1.bf16.msra.mxu0 %v976_v57  ;;  %v6022_v57 = vld [vmem:[#allocation11 + $0x58] sm:$0xff]  }
 0x13a   :  { %1131 = vmatprep.subr.bf16.mxu0 %v5923_v14 }
 0x13c   :  { %5450 = vmatmul.mubr.msk.bf16.vlgmr.msra.gmra.mrb[0].mxu0 %vm552_vm1, %v896_v16 }
 0x13d   :  { %1132 = vmatpush1.bf16.msra.mxu0 %v5921_v15  ;;  %1023 = vmatprep.mubr.bf16.mxu0 %v6410_v0 }
 0x13e   :  { %1133 = vmatprep.subr.bf16.mxu0 %v5926_v17 }
 0x141   :  { %1134 = vmatpush1.bf16.msra.mxu0 %v5924_v18 }
 0x142   :  { %1135 = vmatprep.subr.bf16.mxu0 %v5929_v21 }
 0x144   :  { %5451 = vmatmul.mubr.msk.bf16.gmra.mrb[4].mxu0 %vm552_vm1, %v897_v22 }
 0x145   :  { %1136 = vmatpush1.bf16.msra.mxu0 %v5927_v23  ;;  %1163 = vmatprep.mubr.bf16.mxu0 %v6410_v0 }
 0x146   :  { %1137 = vmatprep.subr.bf16.mxu0 %v5932_v24 }
 0x149   :  { %1138 = vmatpush1.bf16.msra.mxu0 %v5930_v25 }
 0x14a   :  { %1139 = vmatprep.subr.bf16.mxu0 %v5935_v26 }
 0x14d   :  { %1140 = vmatpush1.bf16.msra.mxu0 %v5933_v27 }
 0x14e   :  { %5476 = vmatprep.subr.msk.bf16.mxu0 %vm559_vm0, %v5936_v28 }
 0x151   :  { %1142 = vmatpush1.bf16.msra.mxu0 %v1126_v32 }
 0x152   :  { %2055 = vmatprep.subr.bf16.mxu0 %v6410_v0 }
 0x154   :  { %5477 = vmatmul.mubr.msk.bf16.vlgmr.msra.gmra.mrb[0].mxu0 %vm552_vm1, %v1046_v33 }
 0x155   :  { %1173 = vmatprep.mubr.bf16.mxu0 %v6410_v0  ;;  %2056 = vmatpush1.bf16.msra.mxu0 %v6018_v55 }
 0x156   :  { %2057 = vmatprep.subr.bf16.mxu0 %v6410_v0 }
 0x159   :  { %2058 = vmatpush1.bf16.msra.mxu0 %v6020_v56  ;;  %v5965_v56 = vld [vmem:[#allocation8 + $0x88] ss:$8 sps:$4 sm:$0xff]  }
 0x15a   :  { %2059 = vmatprep.subr.bf16.mxu0 %v6410_v0 }
 0x15c   :  { %5478 = vmatmul.mubr.msk.bf16.gmra.mrb[4].mxu0 %vm552_vm1, %v1047_v36  ;;  %vm2237_vm1 = vcmask 977922  }
 0x15d   :  { %2060 = vmatpush1.bf16.msra.mxu0 %v6022_v57 }
 0x15e   :  { %2061 = vmatprep.subr.bf16.mxu0 %v6410_v0 }
 0x161   :  { %2062 = vmatpush1.bf16.msra.mxu0 %v6024_v59 }
 0x162   :  { %2063 = vmatprep.subr.bf16.mxu0 %v6410_v0 }
 0x227   :  { %v1165_v3 = vpop.f32.mrb[0].mxu0 }
 0x228   :  { %v1204_v4 = vadd.f32 %v1197_v1, %v1165_v3  ;;  %v1167_v5 = vpop.f32.mrb[1].mxu0  ;;  %v5968_v3 = vld [vmem:[#allocation8 + $0x98] ss:$8 sps:$4 sm:$0xff]  }
 0x229   :  { %v1205_v6 = vadd.f32 %v1201_v2, %v1167_v5  ;;  %v1169_v7 = vpop.f32.mrb[2].mxu0  ;;  %v5971_v5 = vld [vmem:[#allocation8 + $0xa8] ss:$8 sps:$4 sm:$0xff]  }
 0x22a   :  { %v1212_v8 = vmax.f32 %v1204_v4, 0.0  ;;  %v1206_v9 = vadd.f32 %v1197_v1, %v1169_v7  ;;  %v1171_v10 = vpop.f32.mrb[3].mxu0  ;;  %v5973_v4 = vld [vmem:[#allocation8 + $0xac] ss:$8 sps:$4 sm:$0xff]   ;;  %v5974_v7 = vld [vmem:[#allocation8 + $0xb8] ss:$8 sps:$4 sm:$0xff]  }
 0x22b   :  { %v1213_v11 = vmax.f32 %v1205_v6, 0.0  ;;  %v1207_v12 = vadd.f32 %v1201_v2, %v1171_v10  ;;  %v5976_v6 = vld [vmem:[#allocation8 + $0xbc] ss:$8 sps:$4 sm:$0xff]  }
 0x22c   :  { %1226 = vst [vmem:[#allocation2] sm:$0x3] %v1212_v8  ;;  %v1231_v13 = vrot.slane %v1212_v8, 2  ;;  %v1240_v14 = vrot.slane %v1212_v8, 4  ;;  %v1214_v15 = vmax.f32 %v1206_v9, 0.0 }
 0x22d   :  { %1228 = vst.msk [vmem:[#allocation2 + $0x8] sm:$0x3] %vm1227_vm5, %v1213_v11  ;;  %v1232_v16 = vrot.slane %v1213_v11, 2  ;;  %v1241_v17 = vrot.slane %v1213_v11, 4  ;;  %v1215_v18 = vmax.f32 %v1207_v12, 0.0 }
 0x22e   :  { %1235 = vst [vmem:[#allocation2 + $0x20] sm:$0x3] %v1231_v13  ;;  %1237 = vst [vmem:[#allocation2] sm:$0xc] %v1231_v13  ;;  %v1248_v19 = vrot.slane %v1214_v15, 4  ;;  %v1254_v20 = vrot.slane %v1214_v15, 6 }
 0x22f   :  { %1244 = vst [vmem:[#allocation2 + $0x20] sm:$0xc] %v1240_v14  ;;  %1262 = vst [vmem:[#allocation2 + $0x20] sm:$0xc0] %v1214_v15  ;;  %v1249_v21 = vrot.slane %v1215_v18, 4  ;;  %v1255_v22 = vrot.slane %v1215_v18, 6 }
 0x230   :  { %1236 = vst.msk [vmem:[#allocation2 + $0x28] sm:$0x3] %vm1227_vm5, %v1232_v16  ;;  %v1175_v23 = vpop.f32.mrb[4].mxu0  ;;  %1252 = vst [vmem:[#allocation2] sm:$0x30] %v1248_v19 }
 0x231   :  { %1239 = vst.msk [vmem:[#allocation2 + $0x8] sm:$0xc] %vm1238_vm6, %v1232_v16  ;;  %1245 = vst.msk [vmem:[#allocation2 + $0x28] sm:$0xc] %vm1238_vm6, %v1241_v17  ;;  %v1208_v24 = vadd.f32 %v1197_v1, %v1175_v23  ;;  %v1177_v25 = vpop.f32.mrb[5].mxu0 }
 0x232   :  { %1263 = vst.msk [vmem:[#allocation2 + $0x28] sm:$0xc0] %vm1221_vm2, %v1215_v18  ;;  %1258 = vst [vmem:[#allocation2 + $0x20] sm:$0x30] %v1254_v20  ;;  %v1209_v26 = vadd.f32 %v1201_v2, %v1177_v25  ;;  %v1179_v27 = vpop.f32.mrb[6].mxu0 }
 0x233   :  { %1260 = vst [vmem:[#allocation2] sm:$0xc0] %v1254_v20  ;;  %1253 = vst.msk [vmem:[#allocation2 + $0x8] sm:$0x30] %vm1224_vm3, %v1249_v21  ;;  %v1216_v28 = vmax.f32 %v1208_v24, 0.0  ;;  %v1210_v29 = vadd.f32 %v1197_v1, %v1179_v27  ;;  %v1181_v30 = vpop.f32.mrb[7].mxu0 }
 0x234   :  { %1259 = vst.msk [vmem:[#allocation2 + $0x28] sm:$0x30] %vm1224_vm3, %v1255_v22  ;;  %v1217_v31 = vmax.f32 %v1209_v26, 0.0  ;;  %v1211_v32 = vadd.f32 %v1201_v2, %v1181_v30  ;;  %v5979_v8 = vld [vmem:[#allocation8 + $0xcc] ss:$8 sps:$4 sm:$0xff]  }
 0x235   :  { %1261 = vst.msk [vmem:[#allocation2 + $0x8] sm:$0xc0] %vm1221_vm2, %v1255_v22  ;;  %1264 = vst [vmem:[#allocation2 + $0x10] sm:$0x3] %v1216_v28  ;;  %v1268_v33 = vrot.slane %v1216_v28, 2  ;;  %v1276_v34 = vrot.slane %v1216_v28, 4 }
 0x236   :  { %v1218_v35 = vmax.f32 %v1210_v29, 0.0  ;;  %1265 = vst.msk [vmem:[#allocation2 + $0x18] sm:$0x3] %vm1227_vm5, %v1217_v31  ;;  %v1269_v36 = vrot.slane %v1217_v31, 2  ;;  %v1277_v37 = vrot.slane %v1217_v31, 4  ;;  %v1219_v38 = vmax.f32 %v1211_v32, 0.0 }
 0x237   :  { %1272 = vst [vmem:[#allocation2 + $0x30] sm:$0x3] %v1268_v33  ;;  %1274 = vst [vmem:[#allocation2 + $0x10] sm:$0xc] %v1268_v33  ;;  %v5977_v9 = vld [vmem:[#allocation8 + $0xc8] ss:$8 sps:$4 sm:$0xff]  }
 0x238   :  { %1280 = vst [vmem:[#allocation2 + $0x30] sm:$0xc] %v1276_v34  ;;  %v1284_v39 = vrot.slane %v1218_v35, 4  ;;  %1273 = vst.msk [vmem:[#allocation2 + $0x38] sm:$0x3] %vm1227_vm5, %v1269_v36  ;;  %v1285_v40 = vrot.slane %v1219_v38, 4 }
 0x239   :  { %1275 = vst.msk [vmem:[#allocation2 + $0x18] sm:$0xc] %vm1238_vm6, %v1269_v36  ;;  %1281 = vst.msk [vmem:[#allocation2 + $0x38] sm:$0xc] %vm1238_vm6, %v1277_v37  ;;  %v7030_v45 = vld [vmem:[#allocation2 + $0x20] sm:$0xff]  ;;  %vm2239_vm2 = vcmask 979972  }
 0x23a   :  { %1288 = vst [vmem:[#allocation2 + $0x10] sm:$0x30] %v1284_v39  ;;  %1289 = vst.msk [vmem:[#allocation2 + $0x18] sm:$0x30] %vm1224_vm3, %v1285_v40  ;;  %v1320_v49 = vpack.c.bf16 %v7030_v45, %v1314_v44  ;;  %v5982_v10 = vld [vmem:[#allocation8 + $0xdc] ss:$8 sps:$4 sm:$0xff]  }
 0x23b   :  { %v7028_v42 = vld [vmem:[#allocation2 + $0x28] sm:$0xff]  ;;  %v5980_v11 = vld [vmem:[#allocation8 + $0xd8] ss:$8 sps:$4 sm:$0xff]   ;;  %v5993_v20 = vld [vmem:[#allocation8 + $0x114] ss:$8 sps:$4 sm:$0xff]   ;;  %vm2241_vm3 = vcmask 982022  }
 0x23c   :  { %v1321_v46 = vpack.c.bf16 %v7028_v42, %v1315_v41  ;;  %v1346_v57 = vrot.slane %v1320_v49, 3  ;;  %v1291_v59 = vld [vmem:[#allocation2 + $0x8] sm:$0xff]  ;;  %v5986_v16 = vld [vmem:[#allocation8 + $0xf8] ss:$8 sps:$4 sm:$0xff]   ;;  %v5999_v29 = vld [vmem:[#allocation8 + $0x134] ss:$8 sps:$4 sm:$0xff]  }
 0x23d   :  { %v5985_v12 = vld [vmem:[#allocation8 + $0xec] ss:$8 sps:$4 sm:$0xff]   ;;  %v5983_v13 = vld [vmem:[#allocation8 + $0xe8] ss:$8 sps:$4 sm:$0xff]   ;;  %v5988_v14 = vld [vmem:[#allocation8 + $0xfc] ss:$8 sps:$4 sm:$0xff]  }
 0x23e   :  { %v1349_v53 = vrot.slane %v1321_v46, 3  ;;  %v1313_v15 = vld [vmem:[#allocation8 + $0x108] sm:$0x11]  ;;  %v1290_v23 = vld [vmem:[#allocation2] sm:$0xff]  ;;  %v5991_v24 = vld [vmem:[#allocation8 + $0x110] ss:$8 sps:$4 sm:$0xff]  }
 0x23f   :  { %v1318_v47 = vld [vmem:[#allocation2 + $0x30] sm:$0xf]  ;;  %v5516_v17 = vcombine.high %v1313_v15, %v1313_v15  ;;  %v5515_v18 = vcombine.low %v1313_v15, %v1313_v15  ;;  %v5994_v28 = vld [vmem:[#allocation8 + $0x120] ss:$8 sps:$4 sm:$0xff]   ;;  %v6005_v33 = vld [vmem:[#allocation8 + $0x154] ss:$8 sps:$4 sm:$0xff]  }
 0x240   :  { %v1319_v48 = vld [vmem:[#allocation2 + $0x38] sm:$0xf]  ;;  %v1322_v50 = vpack.c.bf16 %v1318_v47, %v1318_v47  ;;  %v5996_v26 = vld [vmem:[#allocation8 + $0x124] ss:$8 sps:$4 sm:$0xff]   ;;  %v6000_v32 = vld [vmem:[#allocation8 + $0x140] ss:$8 sps:$4 sm:$0xff]  }
 0x241   :  { %v1323_v51 = vpack.c.bf16 %v1319_v48, %v1319_v48  ;;  %v1293_v55 = vld [vmem:[#allocation2 + $0x18] sm:$0x3f]  ;;  %v1581_v19 = vsel %vm1442_vm4, %v5515_v18, 0  ;;  %v1292_v21 = vld [vmem:[#allocation2 + $0x10] sm:$0x3f]  ;;  %vm2585_vm5 = vcmask 588800  }
 0x242   :  { %v1347_v52 = vrot.slane %v1322_v50, 3  ;;  %v1295_v2 = vpack.c.bf16 %v1293_v55, %v1291_v59  ;;  %v1630_v22 = vld [vmem:[#allocation2 + $0x38] sm:$0x3f]  ;;  %v1294_v25 = vpack.c.bf16 %v1292_v21, %v1290_v23  ;;  %v6002_v31 = vld [vmem:[#allocation8 + $0x144] ss:$8 sps:$4 sm:$0xff]  }
 0x243   :  { %v1350_v54 = vrot.slane %v1323_v51, 3  ;;  %v1632_v27 = vpack.c.bf16 %v1630_v22, %v7028_v42  ;;  %v5997_v30 = vld [vmem:[#allocation8 + $0x130] ss:$8 sps:$4 sm:$0xff]   ;;  %v6008_v35 = vld [vmem:[#allocation8 + $0x164] ss:$8 sps:$4 sm:$0xff]  }
 0x244   :  { %v1348_v1 = vsel %vm559_vm0, %v1346_v57, %v1347_v52  ;;  %v6003_v34 = vld [vmem:[#allocation8 + $0x150] ss:$8 sps:$4 sm:$0xff]   ;;  %v6006_v36 = vld [vmem:[#allocation8 + $0x160] ss:$8 sps:$4 sm:$0xff]   ;;  %v6011_v37 = vld [vmem:[#allocation8 + $0x174] ss:$8 sps:$4 sm:$0xff]  }
 0x245   :  { %v1351_v58 = vsel %vm559_vm0, %v1349_v53, %v1350_v54  ;;  %v6009_v38 = vld [vmem:[#allocation8 + $0x170] ss:$8 sps:$4 sm:$0xff]   ;;  %v6014_v39 = vld [vmem:[#allocation8 + $0x184] ss:$8 sps:$4 sm:$0xff]   ;;  %v6012_v41 = vld [vmem:[#allocation8 + $0x180] ss:$8 sps:$4 sm:$0xff]  }
 0x246   :  { %5498 = vmatprep.mubr.msk.bf16.mxu1 %vm1438_vm7, %v1351_v58  ;;  %v1650_v40 = vld [vmem:[#allocation8 + $0x190] sm:$0x11]  ;;  %v6017_v48 = vld [vmem:[#allocation11] sm:$0xff]   ;;  %v6019_v50 = vld [vmem:[#allocation11 + $0x8] sm:$0xff]   ;;  %vm6442_vm0 = vmmov 0  }
 0x247   :  { %1482 = vmatmul.mubr.bf16.vlgmr.msra.gmra.mrb[0].mxu1 %v1348_v1  ;;  %v5536_v42 = vcombine.high %v1650_v40, %v1650_v40  ;;  %v5535_v44 = vcombine.low %v1650_v40, %v1650_v40  ;;  %v1629_v47 = vld [vmem:[#allocation2 + $0x30] sm:$0x3f]  ;;  %v6025_v53 = vld [vmem:[#allocation11 + $0x20] sm:$0xff]   ;;  %v6027_v54 = vld [vmem:[#allocation11 + $0x28] sm:$0xff]  }
 0x248   :  { %1587 = vmatpush1.bf16.msra.mxu1 %v5965_v56  ;;  %5518 = vmatprep.mubr.msk.bf16.mxu1 %vm1438_vm7, %v1295_v2  ;;  %v1631_v49 = vpack.c.bf16 %v1629_v47, %v7030_v45  ;;  %v6021_v51 = vld [vmem:[#allocation11 + $0x10] sm:$0xff]   ;;  %v6023_v52 = vld [vmem:[#allocation11 + $0x18] sm:$0xff]   ;;  %v6026_v45 = vld [vmem:[#allocation11 + $0x68] sm:$0xff]  }
 0x249   :  { %1588 = vmatprep.subr.bf16.mxu1 %v5970_v62  ;;  %v1740_v46 = vsel %vm1442_vm4, %v5535_v44, 0  ;;  %2064 = vmatpush1.bf16.msra.mxu0 %v6026_v45  ;;  %v6028_v55 = vld [vmem:[#allocation11 + $0x70] sm:$0xff]   ;;  %v6030_v57 = vld [vmem:[#allocation11 + $0x78] sm:$0xff]   ;;  %v6032_v59 = vld [vmem:[#allocation11 + $0x80] sm:$0xff]  }
 0x24a   :  { %2065 = vmatprep.subr.bf16.mxu0 %v6410_v0  ;;  %v6029_v56 = vld [vmem:[#allocation11 + $0x30] sm:$0xff]   ;;  %v6031_v58 = vld [vmem:[#allocation11 + $0x38] sm:$0xff]   ;;  %v6033_v62 = vld [vmem:[#allocation11 + $0x40] sm:$0x3f]  }
 0x24b   :  { %v6034_v1 = vld [vmem:[#allocation11 + $0x88] sm:$0x3f]   ;;  %v1954_v2 = vsel %vm1952_vm9, %v6033_v62, 0  ;;  %v6041_v44 = vld [vmem:[#allocation11 + $0xc0] sm:$0xff]   ;;  %v6043_v47 = vld [vmem:[#allocation11 + $0xd0] sm:$0x3f]  }
 0x24c   :  { %1589 = vmatpush1.bf16.msra.mxu1 %v5968_v3  ;;  %v2053_v3 = vsel %vm1952_vm9, %v6034_v1, 0  ;;  %v6038_v40 = vld [vmem:[#allocation11 + $0xa8] sm:$0xff]  }
 0x24d   :  { %1590 = vmatprep.subr.bf16.mxu1 %v5973_v4  ;;  %2066 = vmatpush1.bf16.msra.mxu0 %v6028_v55  ;;  %v1792_v4 = vld [vmem:[#allocation14] sm:$0x3]  ;;  %v6045_v45 = vld [vmem:[%s7700_s5 + $0x3c] sm:$0xff]   ;;  %v6047_v55 = vld [vmem:[%s7700_s5 + $0x44] sm:$0xff]  }
 0x24e   :  { %2067 = vmatprep.subr.bf16.mxu0 %v6410_v0  ;;  %v6052_v62 = vld [vmem:[%s7700_s5 + $0x20] sm:$0xff]  }
 0x24f   :  { %v6053_v1 = vld [vmem:[%s7700_s5 + $0x5c] sm:$0xff]  }
 0x250   :  { %1591 = vmatpush1.bf16.msra.mxu1 %v5971_v5  ;;  %v1797_v5 = vrot.slane %v1792_v4, %v7008_v61 }
 0x251   :  { %1592 = vmatprep.subr.bf16.mxu1 %v5976_v6  ;;  %2068 = vmatpush1.bf16.msra.mxu0 %v6030_v57  ;;  %v1801_v6 = vrot.slane %v1792_v4, %v7011_v63  ;;  %v6049_v57 = vld [vmem:[%s7700_s5 + $0x4c] sm:$0xff]  }
 0x252   :  { %2069 = vmatprep.subr.bf16.mxu0 %v6410_v0  ;;  %v6056_v4 = vld [vmem:[%s7700_s5 + $0x30] sm:$0xff]  }
 0x254   :  { %1593 = vmatpush1.bf16.msra.mxu1 %v5974_v7 }
 0x255   :  { %1594 = vmatprep.subr.bf16.mxu1 %v5979_v8  ;;  %2070 = vmatpush1.bf16.msra.mxu0 %v6032_v59  ;;  %v6051_v59 = vld [vmem:[%s7700_s5 + $0x54] sm:$0xff]  }
 0x256   :  { %2071 = vmatprep.subr.bf16.mxu0 %v6410_v0 }
 0x258   :  { %1595 = vmatpush1.bf16.msra.mxu1 %v5977_v9 }
 0x259   :  { %1596 = vmatprep.subr.bf16.mxu1 %v5982_v10  ;;  %2072 = vmatpush1.bf16.msra.mxu0 %v2053_v3  ;;  %v6055_v3 = vld [vmem:[%s7700_s5 + $0x64] sm:$0xff]  }
 0x25a   :  { %5700 = vmatprep.subr.bf16.mxu0 %v6441_v43 }
 0x25c   :  { %1597 = vmatpush1.bf16.msra.mxu1 %v5980_v11 }
 0x25d   :  { %1598 = vmatprep.subr.bf16.mxu1 %v5985_v12 }
 0x260   :  { %1599 = vmatpush1.bf16.msra.mxu1 %v5983_v13 }
 0x261   :  { %1600 = vmatprep.subr.bf16.mxu1 %v5988_v14 }
 0x264   :  { %1601 = vmatpush1.bf16.msra.mxu1 %v5986_v16 }
 0x265   :  { %5517 = vmatprep.subr.msk.bf16.mxu1 %vm1442_vm4, %v5516_v17 }
 0x268   :  { %1603 = vmatpush1.bf16.msra.mxu1 %v1581_v19 }
 0x269   :  { %1745 = vmatprep.subr.bf16.mxu1 %v5993_v20 }
 0x26b   :  { %1619 = vmatmul.mubr.bf16.vlgmr.msra.gmra.mrb[0].mxu1 %v1294_v25  ;;  %v2098_v25 = vld [vmem:[#allocation3 + $0x28] sm:$0x3] }
 0x26c   :  { %1746 = vmatpush1.bf16.msra.mxu1 %v5991_v24  ;;  %5538 = vmatprep.mubr.msk.bf16.mxu1 %vm1438_vm7, %v1632_v27 }
 0x26d   :  { %1747 = vmatprep.subr.bf16.mxu1 %v5996_v26 }
 0x270   :  { %1748 = vmatpush1.bf16.msra.mxu1 %v5994_v28 }
 0x271   :  { %1749 = vmatprep.subr.bf16.mxu1 %v5999_v29 }
 0x274   :  { %1750 = vmatpush1.bf16.msra.mxu1 %v5997_v30 }
 0x275   :  { %1751 = vmatprep.subr.bf16.mxu1 %v6002_v31 }
 0x278   :  { %1752 = vmatpush1.bf16.msra.mxu1 %v6000_v32 }
 0x279   :  { %1753 = vmatprep.subr.bf16.mxu1 %v6005_v33  ;;  %v6035_v33 = vld [vmem:[#allocation11 + $0x90] sm:$0xff]  }
 0x27c   :  { %1754 = vmatpush1.bf16.msra.mxu1 %v6003_v34 }
 0x27d   :  { %1755 = vmatprep.subr.bf16.mxu1 %v6008_v35 }
 0x280   :  { %1756 = vmatpush1.bf16.msra.mxu1 %v6006_v36 }
 0x281   :  { %1757 = vmatprep.subr.bf16.mxu1 %v6011_v37 }
 0x284   :  { %1758 = vmatpush1.bf16.msra.mxu1 %v6009_v38  ;;  %v6036_v38 = vld [vmem:[#allocation11 + $0x98] sm:$0xff]  }
 0x285   :  { %1759 = vmatprep.subr.bf16.mxu1 %v6014_v39  ;;  %v6037_v39 = vld [vmem:[#allocation11 + $0xa0] sm:$0xff]  }
 0x288   :  { %1760 = vmatpush1.bf16.msra.mxu1 %v6012_v41  ;;  %v6039_v41 = vld [vmem:[#allocation11 + $0xb0] sm:$0xff]  }
 0x289   :  { %5537 = vmatprep.subr.msk.bf16.mxu1 %vm1442_vm4, %v5536_v42  ;;  %v6040_v42 = vld [vmem:[#allocation11 + $0xb8] sm:$0xff]   ;;  %vm2323_vm4 = vcmask 982016  }
 0x28c   :  { %1762 = vmatpush1.bf16.msra.mxu1 %v1740_v46  ;;  %v6042_v46 = vld [vmem:[#allocation11 + $0xc8] sm:$0xff]  }
 0x28d   :  { %1956 = vmatprep.subr.bf16.mxu1 %v6410_v0 }
 0x28f   :  { %1778 = vmatmul.mubr.bf16.vlgmr.msra.gmra.mrb[0].mxu1 %v1631_v49  ;;  %v2097_v49 = vld [vmem:[#allocation3 + $0x20] sm:$0x3] }
 0x290   :  { %1957 = vmatpush1.bf16.msra.mxu1 %v6017_v48 }
 0x291   :  { %1958 = vmatprep.subr.bf16.mxu1 %v6410_v0 }
 0x294   :  { %1959 = vmatpush1.bf16.msra.mxu1 %v6019_v50  ;;  %v2182_v50 = vsel %vm1952_vm9, %v6043_v47, 0 }
 0x295   :  { %1960 = vmatprep.subr.bf16.mxu1 %v6410_v0 }
 0x298   :  { %1961 = vmatpush1.bf16.msra.mxu1 %v6021_v51 }
 0x299   :  { %1962 = vmatprep.subr.bf16.mxu1 %v6410_v0 }
 0x29c   :  { %1963 = vmatpush1.bf16.msra.mxu1 %v6023_v52 }
 0x29d   :  { %1964 = vmatprep.subr.bf16.mxu1 %v6410_v0 }
 0x2a0   :  { %1965 = vmatpush1.bf16.msra.mxu1 %v6025_v53  ;;  %v6044_v53 = vld [vmem:[%s7700_s5] sm:$0xff]  }
 0x2a1   :  { %1966 = vmatprep.subr.bf16.mxu1 %v6410_v0 }
 0x2a4   :  { %1967 = vmatpush1.bf16.msra.mxu1 %v6027_v54  ;;  %v6046_v54 = vld [vmem:[%s7700_s5 + $0x8] sm:$0xff]  }
 0x2a5   :  { %1968 = vmatprep.subr.bf16.mxu1 %v6410_v0 }
 0x2a8   :  { %1969 = vmatpush1.bf16.msra.mxu1 %v6029_v56  ;;  %v6048_v56 = vld [vmem:[%s7700_s5 + $0x10] sm:$0xff]  }
 0x2a9   :  { %1970 = vmatprep.subr.bf16.mxu1 %v6410_v0 }
 0x2ac   :  { %1971 = vmatpush1.bf16.msra.mxu1 %v6031_v58  ;;  %v6050_v58 = vld [vmem:[%s7700_s5 + $0x18] sm:$0xff]  }
 0x2ad   :  { %1972 = vmatprep.subr.bf16.mxu1 %v6410_v0 }
 0x2b0   :  { %1973 = vmatpush1.bf16.msra.mxu1 %v1954_v2  ;;  %v6054_v2 = vld [vmem:[%s7700_s5 + $0x28] sm:$0xff]  }
 0x2b1   :  { %2184 = vmatprep.subr.bf16.mxu1 %v6410_v0 }
 0x362   :  { %v1779_v7 = vpop.f32.mrb[0].mxu1 }
 0x363   :  { %v1804_v8 = vadd.f32 %v1797_v5, %v1779_v7  ;;  %v1781_v9 = vpop.f32.mrb[1].mxu1  ;;  %v6059_v7 = vld [vmem:[%s7700_s5 + $0x74] ss:$0 sps:$4 sm:$0xff]  }
 0x364   :  { %v1805_v10 = vadd.f32 %v1801_v6, %v1781_v9  ;;  %v1783_v11 = vpop.f32.mrb[2].mxu1  ;;  %v2420_v9 = vsel %vm2327_vm15, %v6059_v7, 0 }
 0x365   :  { %v1808_v12 = vmax.f32 %v1804_v8, 0.0  ;;  %v1806_v13 = vadd.f32 %v1797_v5, %v1783_v11  ;;  %v1785_v14 = vpop.f32.mrb[3].mxu1  ;;  %v6057_v5 = vld [vmem:[%s7700_s5 + $0x6c] sm:$0xff]  }
 0x366   :  { %v1809_v15 = vmax.f32 %v1805_v10, 0.0  ;;  %v1807_v16 = vadd.f32 %v1801_v6, %v1785_v14  ;;  %v6058_v6 = vld [vmem:[%s7700_s5 + $0x38] ss:$0 sps:$4 sm:$0xff]  }
 0x367   :  { %1817 = vst [vmem:[#allocation3] sm:$0x3] %v1808_v12  ;;  %1819 = vst [vmem:[#allocation3 + $0x10] sm:$0xc] %v1808_v12  ;;  %v1824_v17 = vrot.slane %v1808_v12, 2  ;;  %v1810_v18 = vmax.f32 %v1806_v13, 0.0 }
 0x368   :  { %1818 = vst.msk [vmem:[#allocation3 + $0x8] sm:$0x3] %vm1813_vm8, %v1809_v15  ;;  %v1825_v19 = vrot.slane %v1809_v15, 2  ;;  %v1811_v20 = vmax.f32 %v1807_v16, 0.0  ;;  %v2329_v8 = vsel %vm2327_vm15, %v6058_v6, 0 }
 0x369   :  { %1821 = vst.msk [vmem:[#allocation3 + $0x18] sm:$0xc] %vm1820_vm10, %v1809_v15  ;;  %1828 = vst [vmem:[#allocation3] ss:$20 sps:$4 sm:$0x3c] %v1824_v17   ;;  %v1835_v21 = vrot.slane %v1810_v18, 4 }
 0x36a   :  { %v1844_v22 = vrot.slane %v1810_v18, 6  ;;  %1829 = vst.msk [vmem:[#allocation3 + $0x8] sm:$0xc] %vm1820_vm10, %v1825_v19  ;;  %v1836_v23 = vrot.slane %v1811_v20, 4  ;;  %v1845_v24 = vrot.slane %v1811_v20, 6 }
 0x36b   :  { %1832 = vst.msk [vmem:[#allocation3 + $0x18] sm:$0x30] %vm1831_vm11, %v1825_v19  ;;  %1839 = vst [vmem:[#allocation3] sm:$0x30] %v1835_v21  ;;  %v5569_v20 = vld [vmem:[#allocation16] ss:$0 sm:$0xff] }
 0x36c   :  { %1841 = vst [vmem:[#allocation3 + $0x10] sm:$0xc0] %v1835_v21  ;;  %1848 = vst [vmem:[#allocation3] sm:$0xc0] %v1844_v22 }
 0x36d   :  { %1840 = vst.msk [vmem:[#allocation3 + $0x8] sm:$0x30] %vm1831_vm11, %v1836_v23 }
 0x36e   :  { %1843 = vst.msk [vmem:[#allocation3 + $0x18] sm:$0xc0] %vm1842_vm12, %v1836_v23  ;;  %1849 = vst.msk [vmem:[#allocation3 + $0x8] sm:$0xc0] %vm1842_vm12, %v1845_v24 }
 0x373   :  { %v1873_v26 = vld [vmem:[#allocation3 + $0x10] sm:$0xff]  ;;  %v1850_v27 = vld [vmem:[#allocation3] sm:$0xff] }
 0x374   :  { %v1875_v35 = vpack.c.bf16 %v1873_v26, %v1873_v26  ;;  %v1852_v36 = vpack.c.bf16 %v1850_v27, %v1850_v27  ;;  %v2095_v48 = vld [vmem:[#allocation3 + $0x10] sm:$0xfc] }
 0x375   :  { %v1874_v28 = vld [vmem:[#allocation3 + $0x18] sm:$0xff]  ;;  %v1851_v29 = vld [vmem:[#allocation3 + $0x8] sm:$0xff]  ;;  %v2099_v51 = vpack.c.bf16 %v2097_v49, %v2095_v48 }
 0x376   :  { %v2096_v30 = vld [vmem:[#allocation3 + $0x18] sm:$0xfc]  ;;  %v1876_v31 = vpack.c.bf16 %v1874_v28, %v1874_v28  ;;  %v1853_v32 = vpack.c.bf16 %v1851_v29, %v1851_v29 }
 0x377   :  { %v2100_v34 = vpack.c.bf16 %v2098_v25, %v2096_v30  ;;  %v2122_v52 = vrot.slane %v2099_v51, 1  ;;  %v6060_v29 = vld [vmem:[%s7700_s5 + $0x78] sm:$0xff]  }
 0x378   :  { %5548 = vmatprep.mubr.msk.bf16.mxu1 %vm1948_vm13, %v1876_v31  ;;  %5558 = vmatprep.mubr.msk.bf16.mxu0 %vm1948_vm13, %v1853_v32  ;;  %v6061_v32 = vld [vmem:[%s7700_s5 + $0x80] sm:$0xff]  }
 0x379   :  { %v2123_v37 = vrot.slane %v2100_v34, 1  ;;  %1989 = vmatmul.mubr.bf16.vlgmr.msra.gmra.mrb[4].mxu1 %v1875_v35  ;;  %2088 = vmatmul.mubr.bf16.vlgmr.msra.gmra.mrb[8].mxu0 %v1852_v36  ;;  %v6063_v34 = vld [vmem:[%s7700_s5 + $0x90] sm:$0xff]   ;;  %v6064_v35 = vld [vmem:[%s7700_s5 + $0x98] sm:$0xff]   ;;  %v6065_v36 = vld [vmem:[%s7700_s5 + $0xa0] sm:$0xff]  }
 0x37a   :  { %2185 = vmatpush1.bf16.msra.mxu1 %v6035_v33  ;;  %5701 = vmatpush3.bf16.msra.mxu0 %v6044_v53  ;;  %v6062_v33 = vld [vmem:[%s7700_s5 + $0x88] sm:$0xff]  }
 0x37b   :  { %5568 = vmatprep.mubr.msk.bf16.mxu1 %vm1948_vm13, %v2123_v37  ;;  %2186 = vmatprep.subr.bf16.mxu1 %v6410_v0  ;;  %v6066_v37 = vld [vmem:[%s7700_s5 + $0xa8] sm:$0xff]  }
 0x37c   :  { %5702 = vmatprep.subr.bf16.mxu0 %v6441_v43  ;;  %5716 = vmatprep.mubr.msk.bf16.mxu0 %vm6442_vm0, %v6441_v43 }
 0x37e   :  { %2187 = vmatpush1.bf16.msra.mxu1 %v6036_v38  ;;  %5703 = vmatpush3.bf16.msra.mxu0 %v6046_v54  ;;  %v6067_v38 = vld [vmem:[%s7700_s5 + $0xb0] ss:$0 sps:$4 sm:$0xff]   ;;  %s6443_s5 = smov 72  }
 0x37f   :  { %2188 = vmatprep.subr.bf16.mxu1 %v6410_v0  ;;  %5704 = vmatprep.subr.bf16.mxu0 %v6441_v43 }
 0x382   :  { %2189 = vmatpush1.bf16.msra.mxu1 %v6037_v39  ;;  %5705 = vmatpush3.bf16.msra.mxu0 %v6048_v56  ;;  %v2529_v39 = vsel %vm2327_vm15, %v6067_v38, 0 }
 0x383   :  { %2190 = vmatprep.subr.bf16.mxu1 %v6410_v0  ;;  %5706 = vmatprep.subr.bf16.mxu0 %v6441_v43 }
 0x386   :  { %2191 = vmatpush1.bf16.msra.mxu1 %v6038_v40  ;;  %5707 = vmatpush3.bf16.msra.mxu0 %v6050_v58 }
 0x387   :  { %2192 = vmatprep.subr.bf16.mxu1 %v6410_v0  ;;  %5708 = vmatprep.subr.bf16.mxu0 %v6441_v43 }
 0x38a   :  { %2193 = vmatpush1.bf16.msra.mxu1 %v6039_v41  ;;  %5709 = vmatpush3.bf16.msra.mxu0 %v6052_v62 }
 0x38b   :  { %2194 = vmatprep.subr.bf16.mxu1 %v6410_v0  ;;  %5710 = vmatprep.subr.bf16.mxu0 %v6441_v43 }
 0x38e   :  { %2195 = vmatpush1.bf16.msra.mxu1 %v6040_v42  ;;  %5711 = vmatpush3.bf16.msra.mxu0 %v6054_v2 }
 0x38f   :  { %2196 = vmatprep.subr.bf16.mxu1 %v6410_v0  ;;  %5712 = vmatprep.subr.bf16.mxu0 %v6441_v43 }
 0x392   :  { %2197 = vmatpush1.bf16.msra.mxu1 %v6041_v44  ;;  %5713 = vmatpush3.bf16.msra.mxu0 %v6056_v4 }
 0x393   :  { %2198 = vmatprep.subr.bf16.mxu1 %v6410_v0  ;;  %5714 = vmatprep.subr.bf16.mxu0 %v6441_v43 }
 0x396   :  { %2199 = vmatpush1.bf16.msra.mxu1 %v6042_v46  ;;  %5715 = vmatpush3.bf16.msra.mxu0 %v2329_v8 }
 0x397   :  { %2200 = vmatprep.subr.bf16.mxu1 %v6410_v0  ;;  %5740 = vmatprep.subr.bf16.mxu0 %v6441_v43 }
 0x39a   :  { %2201 = vmatpush1.bf16.msra.mxu1 %v2182_v50 }
 0x39b   :  { %5720 = vmatprep.subr.bf16.mxu1 %v6441_v43 }
 0x39d   :  { %2217 = vmatmul.mubr.bf16.vlgmr.msra.gmra.mrb[8].mxu1 %v2122_v52 }
 0x39e   :  { %5721 = vmatpush3.bf16.msra.mxu1 %v6045_v45  ;;  %5736 = vmatprep.mubr.msk.bf16.mxu1 %vm6442_vm0, %v6441_v43  ;;  %v5627_v45 = vld [vmem:[#allocation17] ss:$0 sm:$0xff] }
 0x39f   :  { %5722 = vmatprep.subr.bf16.mxu1 %v6441_v43 }
 0x3a2   :  { %5723 = vmatpush3.bf16.msra.mxu1 %v6047_v55 }
 0x3a3   :  { %5724 = vmatprep.subr.bf16.mxu1 %v6441_v43 }
 0x3a6   :  { %5725 = vmatpush3.bf16.msra.mxu1 %v6049_v57 }
 0x3a7   :  { %5726 = vmatprep.subr.bf16.mxu1 %v6441_v43 }
 0x3aa   :  { %5727 = vmatpush3.bf16.msra.mxu1 %v6051_v59 }
 0x3ab   :  { %5728 = vmatprep.subr.bf16.mxu1 %v6441_v43 }
 0x3ae   :  { %5729 = vmatpush3.bf16.msra.mxu1 %v6053_v1 }
 0x3af   :  { %5730 = vmatprep.subr.bf16.mxu1 %v6441_v43 }
 0x3b2   :  { %5731 = vmatpush3.bf16.msra.mxu1 %v6055_v3 }
 0x3b3   :  { %5732 = vmatprep.subr.bf16.mxu1 %v6441_v43 }
 0x3b6   :  { %5733 = vmatpush3.bf16.msra.mxu1 %v6057_v5 }
 0x3b7   :  { %5734 = vmatprep.subr.bf16.mxu1 %v6441_v43 }
 0x3ba   :  { %5735 = vmatpush3.bf16.msra.mxu1 %v2420_v9 }
 0x44c   :  { %v1990_v10 = vpop.f32.mrb[4].mxu1  ;;  %v2089_v11 = vpop.f32.mrb[8].mxu0 }
 0x44d   :  { %v2090_v12 = vadd.f32 %v2089_v11, %v1990_v10  ;;  %v1992_v13 = vpop.f32.mrb[5].mxu1  ;;  %v2091_v14 = vpop.f32.mrb[9].mxu0 }
 0x44e   :  { %v1993_v15 = vpop.f32.mrb[6].mxu1  ;;  %v2092_v16 = vpop.f32.mrb[10].mxu0 }
 0x44f   :  { %v1994_v17 = vpop.f32.mrb[7].mxu1  ;;  %v2093_v18 = vpop.f32.mrb[11].mxu0 }
 0x470   :  { %v2218_v19 = vpop.f32.mrb[8].mxu1 }
 0x471   :  { %v2224_v21 = vadd.f32 %v2218_v19, %v2090_v12  ;;  %v2220_v22 = vpop.f32.mrb[9].mxu1 }
 0x472   :  { %v2221_v23 = vpop.f32.mrb[10].mxu1 }
 0x473   :  { %v2232_v24 = vadd.f32 %v5569_v20, %v2224_v21  ;;  %v2222_v25 = vpop.f32.mrb[11].mxu1 }
 0x475   :  { %v2233_v26 = vmax.f32 %v2232_v24, 0.0 }
 0x477   :  { %2236 = vst.msk [vmem:[#allocation4] sm:$0x3] %vm2234_vm14, %v2233_v26 }
 0x478   :  { %2238 = vst.msk [vmem:[#allocation4 + $0x4] sm:$0xc] %vm2237_vm1, %v2233_v26 }
 0x479   :  { %2240 = vst.msk [vmem:[#allocation4 - $0x2] sm:$0x30] %vm2239_vm2, %v2233_v26 }
 0x47a   :  { %2242 = vst.msk [vmem:[#allocation4 + $0x2] sm:$0xc0] %vm2241_vm3, %v2233_v26 }
 0x47f   :  { %v2261_v27 = vld [vmem:[#allocation4 + $0x4] sm:$0xf] }
 0x480   :  { %v2243_v28 = vld [vmem:[#allocation4] sm:$0xf]  ;;  %v2262_v30 = vpack.c.bf16 %v2261_v27, %v2261_v27 }
 0x481   :  { %v2244_v31 = vpack.c.bf16 %v2243_v28, %v2243_v28  ;;  %v2462_v40 = vld [vmem:[#allocation4 + $0x6] sm:$0xf] }
 0x482   :  { %5717 = vmatmul.mubr.msk.bf16.vlgmr.msra.gmra.mrb[12].mxu0 %vm2323_vm4, %v2262_v30  ;;  %v2463_v41 = vpack.c.bf16 %v2462_v40, %v2462_v40 }
 0x483   :  { %5737 = vmatmul.mubr.msk.bf16.vlgmr.msra.gmra.mrb[12].mxu1 %vm2323_vm4, %v2244_v31  ;;  %5741 = vmatpush3.bf16.msra.mxu0 %v6060_v29 }
 0x484   :  { %5756 = vmatprep.mubr.msk.bf16.mxu0 %vm6442_vm0, %v6441_v43  ;;  %5742 = vmatprep.subr.bf16.mxu0 %v6441_v43 }
 0x487   :  { %5743 = vmatpush3.bf16.msra.mxu0 %v6061_v32 }
 0x488   :  { %5744 = vmatprep.subr.bf16.mxu0 %v6441_v43 }
 0x48b   :  { %5745 = vmatpush3.bf16.msra.mxu0 %v6062_v33 }
 0x48c   :  { %5746 = vmatprep.subr.bf16.mxu0 %v6441_v43 }
 0x48f   :  { %5747 = vmatpush3.bf16.msra.mxu0 %v6063_v34 }
 0x490   :  { %5748 = vmatprep.subr.bf16.mxu0 %v6441_v43 }
 0x493   :  { %5749 = vmatpush3.bf16.msra.mxu0 %v6064_v35 }
 0x494   :  { %5750 = vmatprep.subr.bf16.mxu0 %v6441_v43 }
 0x497   :  { %5751 = vmatpush3.bf16.msra.mxu0 %v6065_v36 }
 0x498   :  { %5752 = vmatprep.subr.bf16.mxu0 %v6441_v43 }
 0x49b   :  { %5753 = vmatpush3.bf16.msra.mxu0 %v6066_v37 }
 0x49c   :  { %5754 = vmatprep.subr.bf16.mxu0 %v6441_v43 }
 0x49f   :  { %5755 = vmatpush3.bf16.msra.mxu0 %v2529_v39 }
 0x4a2   :  { %5757 = vmatmul.mubr.msk.bf16.vlgmr.msra.gmra.mrb[16].mxu0 %vm2323_vm4, %v2463_v41 }
 0x555   :  { %v2365_v42 = vpop.f32.mrb[12].mxu0 }
 0x556   :  { %v2456_v44 = vpop.f32.mrb[12].mxu1  ;;  %v5718_v47 = vpop.f32.mrb[13].mxu0 }
 0x557   :  { %v2457_v46 = vadd.f32 %v2456_v44, %v2365_v42  ;;  %v5738_v48 = vpop.f32.mrb[13].mxu1  ;;  %v2368_v49 = vpop.f32.mrb[14].mxu0 }
 0x558   :  { %v2459_v50 = vpop.f32.mrb[14].mxu1  ;;  %v5719_v51 = vpop.f32.mrb[15].mxu0 }
 0x559   :  { %v5739_v52 = vpop.f32.mrb[15].mxu1 }
 0x575   :  { %v2565_v53 = vpop.f32.mrb[16].mxu0 }
 0x576   :  { %v2571_v54 = vadd.f32 %v2565_v53, %v2457_v46  ;;  %v5758_v43 = vpop.f32.mrb[17].mxu0 }
 0x577   :  { %v2568_v55 = vpop.f32.mrb[18].mxu0 }
 0x578   :  { %v2579_v56 = vadd.f32 %v5627_v45, %v2571_v54  ;;  %v5759_v57 = vpop.f32.mrb[19].mxu0 }
 0x57a   :  { %v2581_v58 = vrot.slane %v2579_v56, 2 }
 0x57c   :  { %2582 = vrot.lane.b32.xlu0 %v2581_v58, %s6443_s5 }
 0x5ee   :  { %v2583_v59 = vpop.permute.xlu0 %2582 }
 0x5ef   :  { %v2586_v62 = vsel %vm2585_vm5, %v2579_v56, %v2583_v59  ;;  %v7192_v1 = vpack.c.bf16 %v2583_v59, %v2583_v59 }
 0x5f0   :  { %v7194_v2 = vpack.c.bf16 %v2586_v62, %v2586_v62 }
 0x5f1   :  { %6378 = dma.done.wait [#allocation7], 5760 }
 0x5f2   :  { %6379 = vsyncadd [#allocation7], 4294961536  ;;  %vm2639_vm6 = vcmask 130048   ;;  %v2595_v3 = vld [vmem:[#allocation6 + $0x8] sm:$0xff]  ;;  %v2594_v4 = vld [vmem:[#allocation6] sm:$0xff]  ;;  %v7215_v56 = vsub.s32 2, %v7004_v60 }
 0x5f3   :  { %5628 = vmatprep.mubr.msk.bf16.mxu1 %vm2639_vm6, %v7192_v1  ;;  %5629 = vmatprep.mubr.msk.bf16.mxu0 %vm2639_vm6, %v7192_v1  ;;  %v2600_v5 = vld [vmem:[#allocation6 + $0x30] sm:$0xff]  ;;  %v2599_v6 = vld [vmem:[#allocation6 + $0x28] sm:$0xff]  ;;  %v2605_v7 = vld [vmem:[#allocation6 + $0x58] sm:$0xff]  ;;  %v7218_v57 = vsub.s32 3, %v7004_v60  ;;  %vm2796_vm7 = vcmask 1041408  }
 0x5f4   :  { %2643 = vmatprep.subr.bf16.mxu1 %v2595_v3  ;;  %v2597_v8 = vld [vmem:[#allocation6 + $0x18] sm:$0xff]  ;;  %v2596_v9 = vld [vmem:[#allocation6 + $0x10] sm:$0xff]  ;;  %v2602_v11 = vld [vmem:[#allocation6 + $0x40] sm:$0xff]  ;;  %v7223_v3 = vsub.s32 4, %v7004_v60 }
 0x5f5   :  { %2644 = vmatpush1.bf16.msra.mxu1 %v2594_v4  ;;  %v2604_v10 = vld [vmem:[#allocation6 + $0x50] sm:$0xff]  ;;  %2684 = vmatprep.subr.bf16.mxu0 %v2597_v8  ;;  %v2610_v12 = vld [vmem:[#allocation6 + $0x80] sm:$0xff]  ;;  %v2601_v13 = vld [vmem:[#allocation6 + $0x38] sm:$0xff] }
 0x5f6   :  { %2645 = vmatprep.subr.bf16.mxu1 %v2600_v5  ;;  %2685 = vmatpush1.bf16.msra.mxu0 %v2596_v9  ;;  %v2607_v14 = vld [vmem:[#allocation6 + $0x68] sm:$0xff]  ;;  %v2609_v15 = vld [vmem:[#allocation6 + $0x78] sm:$0xff]  ;;  %v2606_v17 = vld [vmem:[#allocation6 + $0x60] sm:$0xff] }
 0x5f7   :  { %2686 = vmatprep.subr.bf16.mxu0 %v2602_v11  ;;  %v2615_v16 = vld [vmem:[#allocation6 + $0xa8] sm:$0xff]  ;;  %v2612_v18 = vld [vmem:[#allocation6 + $0x90] sm:$0xff]  ;;  %v2614_v19 = vld [vmem:[#allocation6 + $0xa0] sm:$0xff] }
 0x5f8   :  { %v2620_v20 = vld [vmem:[#allocation6 + $0xd0] sm:$0xff]  ;;  %v2611_v21 = vld [vmem:[#allocation6 + $0x88] sm:$0xff]  ;;  %v2617_v22 = vld [vmem:[#allocation6 + $0xb8] sm:$0xff] }
 0x5f9   :  { %2646 = vmatpush1.bf16.msra.mxu1 %v2599_v6  ;;  %v2619_v23 = vld [vmem:[#allocation6 + $0xc8] sm:$0xff]  ;;  %v2625_v24 = vld [vmem:[#allocation6 + $0xf8] sm:$0xff]  ;;  %v2616_v25 = vld [vmem:[#allocation6 + $0xb0] sm:$0xff] }
 0x5fa   :  { %2647 = vmatprep.subr.bf16.mxu1 %v2605_v7  ;;  %2687 = vmatpush1.bf16.msra.mxu0 %v2601_v13  ;;  %v2622_v26 = vld [vmem:[#allocation6 + $0xe0] sm:$0xff]  ;;  %v2624_v27 = vld [vmem:[#allocation6 + $0xf0] sm:$0xff]  ;;  %v2621_v29 = vld [vmem:[#allocation6 + $0xd8] sm:$0xff] }
 0x5fb   :  { %2688 = vmatprep.subr.bf16.mxu0 %v2607_v14  ;;  %v2630_v28 = vld [vmem:[#allocation6 + $0x120] sm:$0xff]  ;;  %v2627_v30 = vld [vmem:[#allocation6 + $0x108] sm:$0xff]  ;;  %v2629_v31 = vld [vmem:[#allocation6 + $0x118] sm:$0xff] }
 0x5fc   :  { %v2635_v32 = vld [vmem:[#allocation6 + $0x148] sm:$0xff]  ;;  %v2626_v33 = vld [vmem:[#allocation6 + $0x100] sm:$0xff]  ;;  %v2632_v34 = vld [vmem:[#allocation6 + $0x130] sm:$0xff] }
 0x5fd   :  { %2648 = vmatpush1.bf16.msra.mxu1 %v2604_v10  ;;  %v2634_v35 = vld [vmem:[#allocation6 + $0x140] sm:$0xff]  ;;  %v2631_v36 = vld [vmem:[#allocation6 + $0x128] sm:$0xff]  ;;  %v2637_v37 = vld [vmem:[#allocation6 + $0x158] sm:$0xff] }
 0x5fe   :  { %2649 = vmatprep.subr.bf16.mxu1 %v2610_v12  ;;  %2689 = vmatpush1.bf16.msra.mxu0 %v2606_v17  ;;  %v2598_v38 = vld [vmem:[#allocation6 + $0x20] sm:$0xff]  ;;  %v2636_v39 = vld [vmem:[#allocation6 + $0x150] sm:$0xff]  ;;  %v2603_v40 = vld [vmem:[#allocation6 + $0x48] sm:$0xff] }
 0x5ff   :  { %2690 = vmatprep.subr.bf16.mxu0 %v2612_v18  ;;  %v2608_v41 = vld [vmem:[#allocation6 + $0x70] sm:$0xff]  ;;  %v2613_v42 = vld [vmem:[#allocation6 + $0x98] sm:$0xff]  ;;  %v2618_v44 = vld [vmem:[#allocation6 + $0xc0] sm:$0xff] }
 0x600   :  { %v2623_v46 = vld [vmem:[#allocation6 + $0xe8] sm:$0xff]  ;;  %v2628_v47 = vld [vmem:[#allocation6 + $0x110] sm:$0xff]  ;;  %v2633_v48 = vld [vmem:[#allocation6 + $0x138] sm:$0xff] }
 0x601   :  { %2650 = vmatpush1.bf16.msra.mxu1 %v2609_v15  ;;  %v2638_v49 = vld [vmem:[#allocation6 + $0x160] sm:$0xff] }
 0x602   :  { %2651 = vmatprep.subr.bf16.mxu1 %v2615_v16  ;;  %2691 = vmatpush1.bf16.msra.mxu0 %v2611_v21  ;;  %v2593_v58 = vld [vmem:[#allocation19] sm:$0x1f] }
 0x603   :  { %2692 = vmatprep.subr.bf16.mxu0 %v2617_v22  ;;  %v2777_v59 = vrot.slane %v2593_v58, %v7215_v56  ;;  %v2781_v62 = vrot.slane %v2593_v58, %v7218_v57  ;;  %v2769_v4 = vrot.slane %v2593_v58, %v7008_v61  ;;  %v2773_v5 = vrot.slane %v2593_v58, %v7011_v63 }
 0x604   :  { %v2785_v8 = vrot.slane %v2593_v58, %v7223_v3 }
 0x605   :  { %2652 = vmatpush1.bf16.msra.mxu1 %v2614_v19 }
 0x606   :  { %2653 = vmatprep.subr.bf16.mxu1 %v2620_v20  ;;  %2693 = vmatpush1.bf16.msra.mxu0 %v2616_v25 }
 0x607   :  { %2694 = vmatprep.subr.bf16.mxu0 %v2622_v26 }
 0x609   :  { %2654 = vmatpush1.bf16.msra.mxu1 %v2619_v23 }
 0x60a   :  { %2655 = vmatprep.subr.bf16.mxu1 %v2625_v24  ;;  %2695 = vmatpush1.bf16.msra.mxu0 %v2621_v29 }
 0x60b   :  { %2696 = vmatprep.subr.bf16.mxu0 %v2627_v30 }
 0x60d   :  { %2656 = vmatpush1.bf16.msra.mxu1 %v2624_v27 }
 0x60e   :  { %2657 = vmatprep.subr.bf16.mxu1 %v2630_v28  ;;  %2697 = vmatpush1.bf16.msra.mxu0 %v2626_v33 }
 0x60f   :  { %2698 = vmatprep.subr.bf16.mxu0 %v2632_v34 }
 0x611   :  { %2658 = vmatpush1.bf16.msra.mxu1 %v2629_v31 }
 0x612   :  { %2659 = vmatprep.subr.bf16.mxu1 %v2635_v32  ;;  %2699 = vmatpush1.bf16.msra.mxu0 %v2631_v36  ;;  %v6444_v36 = vmov 1983009808  }
 0x613   :  { %2700 = vmatprep.subr.bf16.mxu0 %v2637_v37  ;;  %v2847_v37 = vunpack.c.l.s4 %v6444_v36 }
 0x615   :  { %2660 = vmatpush1.bf16.msra.mxu1 %v2634_v35 }
 0x616   :  { %2725 = vmatprep.subr.bf16.mxu1 %v6410_v0  ;;  %2701 = vmatpush1.bf16.msra.mxu0 %v2636_v39 }
 0x618   :  { %2676 = vmatmul.mubr.bf16.vlgmr.msra.gmra.mrb[16].mxu1 %v7194_v2 }
 0x619   :  { %2726 = vmatpush1.bf16.msra.mxu1 %v2598_v38  ;;  %5630 = vmatprep.mubr.msk.bf16.mxu1 %vm2639_vm6, %v7192_v1  ;;  %v2848_v38 = vunpack.c.0.s8 %v2847_v37 }
 0x61a   :  { %2727 = vmatprep.subr.bf16.mxu1 %v6410_v0  ;;  %2717 = vmatmul.mubr.bf16.vlgmr.msra.gmra.mrb[20].mxu0 %v7194_v2 }
 0x61d   :  { %2728 = vmatpush1.bf16.msra.mxu1 %v2603_v40  ;;  %v7241_v40 = vsub.s32 %v2848_v38, %v7004_v60 }
 0x61e   :  { %2729 = vmatprep.subr.bf16.mxu1 %v6410_v0 }
 0x621   :  { %2730 = vmatpush1.bf16.msra.mxu1 %v2608_v41 }
 0x622   :  { %2731 = vmatprep.subr.bf16.mxu1 %v6410_v0 }
 0x625   :  { %2732 = vmatpush1.bf16.msra.mxu1 %v2613_v42 }
 0x626   :  { %2733 = vmatprep.subr.bf16.mxu1 %v6410_v0 }
 0x629   :  { %2734 = vmatpush1.bf16.msra.mxu1 %v2618_v44 }
 0x62a   :  { %2735 = vmatprep.subr.bf16.mxu1 %v6410_v0 }
 0x62d   :  { %2736 = vmatpush1.bf16.msra.mxu1 %v2623_v46 }
 0x62e   :  { %2737 = vmatprep.subr.bf16.mxu1 %v6410_v0 }
 0x631   :  { %2738 = vmatpush1.bf16.msra.mxu1 %v2628_v47 }
 0x632   :  { %2739 = vmatprep.subr.bf16.mxu1 %v6410_v0 }
 0x635   :  { %2740 = vmatpush1.bf16.msra.mxu1 %v2633_v48 }
 0x636   :  { %2741 = vmatprep.subr.bf16.mxu1 %v6410_v0 }
 0x639   :  { %2742 = vmatpush1.bf16.msra.mxu1 %v2638_v49 }
 0x63c   :  { %2758 = vmatmul.mubr.bf16.vlgmr.msra.gmra.mrb[20].mxu1 %v7194_v2 }
 0x6eb   :  { %v2677_v50 = vpop.f32.mrb[16].mxu1 }
 0x6ec   :  { %v2679_v51 = vpop.f32.mrb[17].mxu1  ;;  %v2791_v9 = vadd.f32 %v2769_v4, %v2677_v50 }
 0x6ed   :  { %v2681_v52 = vpop.f32.mrb[18].mxu1  ;;  %v2718_v45 = vpop.f32.mrb[20].mxu0  ;;  %v2792_v11 = vadd.f32 %v2773_v5, %v2679_v51 }
 0x6ee   :  { %v2682_v53 = vpop.f32.mrb[19].mxu1  ;;  %v2720_v54 = vpop.f32.mrb[21].mxu0  ;;  %v2793_v6 = vadd.f32 %v2777_v59, %v2718_v45  ;;  %v2797_v17 = vsel %vm2796_vm7, %v2791_v9, -inf }
 0x6ef   :  { %v2722_v43 = vpop.f32.mrb[22].mxu0  ;;  %v2794_v7 = vadd.f32 %v2781_v62, %v2720_v54  ;;  %v2798_v22 = vsel %vm2796_vm7, %v2792_v11, -inf }
 0x6f0   :  { %v2723_v55 = vpop.f32.mrb[23].mxu0  ;;  %v2799_v12 = vsel %vm2796_vm7, %v2793_v6, -inf }
 0x6f1   :  { %v2800_v13 = vsel %vm2796_vm7, %v2794_v7, -inf }
 0x6f2   :  { %v2804_v21 = vmax.f32 %v2799_v12, %v2800_v13 }
 0x70f   :  { %v2759_v10 = vpop.f32.mrb[20].mxu1 }
 0x710   :  { %v2795_v14 = vadd.f32 %v2785_v8, %v2759_v10  ;;  %v2761_v15 = vpop.f32.mrb[21].mxu1 }
 0x711   :  { %v2762_v16 = vpop.f32.mrb[22].mxu1 }
 0x712   :  { %v2801_v18 = vsel %vm2796_vm7, %v2795_v14, -inf  ;;  %v2763_v19 = vpop.f32.mrb[23].mxu1 }
 0x713   :  { %v2802_v20 = vmax.f32 %v2797_v17, %v2801_v18 }
 0x715   :  { %v2803_v23 = vmax.f32 %v2802_v20, %v2798_v22 }
 0x717   :  { %v2805_v24 = vmax.f32 %v2803_v23, %v2804_v21 }
 0x719   :  { %2806 = vmax.xlane.f32.xlu0 %v2805_v24 }
 0x7a6   :  { %v7233_v25 = vpop.xlane.xlu0 %2806 }
 0x7a7   :  { %v2808_v26 = vsub.f32 %v2791_v9, %v7233_v25  ;;  %v2809_v27 = vsub.f32 %v2792_v11, %v7233_v25  ;;  %v2810_v28 = vsub.f32 %v2793_v6, %v7233_v25  ;;  %v2811_v29 = vsub.f32 %v2794_v7, %v7233_v25 }
 0x7a8   :  { %v2812_v30 = vsub.f32 %v2795_v14, %v7233_v25  ;;  %v2823_v4 = vsub.f32 -inf, %v7233_v25 }
 0x7a9   :  { %v2813_v31 = vmul.f32 1.442695, %v2808_v26  ;;  %v2815_v32 = vmul.f32 1.442695, %v2809_v27  ;;  %v2817_v33 = vmul.f32 1.442695, %v2810_v28 }
 0x7aa   :  { %v2819_v34 = vmul.f32 1.442695, %v2811_v29  ;;  %v2821_v35 = vmul.f32 1.442695, %v2812_v30  ;;  %v2824_v5 = vmul.f32 1.442695, %v2823_v4 }
 0x7ab   :  { %6068 = vpow2.f32 %v2813_v31 }
 0x7ac   :  { %6070 = vpow2.f32 %v2815_v32 }
 0x7ad   :  { %6072 = vpow2.f32 %v2817_v33 }
 0x7ae   :  { %6074 = vpow2.f32 %v2819_v34 }
 0x7af   :  { %6076 = vpow2.f32 %v2821_v35 }
 0x7b0   :  { %6078 = vpow2.f32 %v2824_v5 }
 0x7b5   :  { %v6069_v39 = vpop.eup %6068 }
 0x7b6   :  { %v6071_v41 = vpop.eup %6070  ;;  %v2827_v42 = vsel %vm2796_vm7, %v6069_v39, 0.0 }
 0x7b7   :  { %v6073_v44 = vpop.eup %6072  ;;  %v2844_v46 = vcombine.low %v6069_v39, %v6071_v41  ;;  %v2828_v47 = vsel %vm2796_vm7, %v6071_v41, 0.0 }
 0x7b8   :  { %v6075_v48 = vpop.eup %6074  ;;  %v2829_v49 = vadd.f32 %v2828_v47, %v2827_v42  ;;  %v2830_v53 = vsel %vm2796_vm7, %v6073_v44, 0.0 }
 0x7b9   :  { %v6077_v50 = vpop.eup %6076  ;;  %v2845_v51 = vcombine.low %v6073_v44, %v6075_v48  ;;  %v2852_v52 = vrot.slane %v2844_v46, %v7241_v40  ;;  %v2832_v43 = vsel %vm2796_vm7, %v6075_v48, 0.0 }
 0x7ba   :  { %5631 = vst.sshfl [vmem:[#allocation5 + $0x8] sm:$0x3 pattern:$0x76325410] %v6077_v50  ;;  %v2831_v45 = vadd.f32 %v2830_v53, %v2829_v49  ;;  %v2834_v59 = vsel %vm2796_vm7, %v6077_v50, 0.0  ;;  %v6079_v6 = vpop.eup %6078 }
 0x7bb   :  { %v2859_v54 = vrot.slane %v2845_v51, %v7241_v40  ;;  %v2826_v7 = vmul.f32 0.0, %v6079_v6 }
 0x7bc   :  { %v2833_v55 = vadd.f32 %v2832_v43, %v2831_v45 }
 0x7bd   :  { %v2860_v58 = vcombine.low %v2852_v52, %v2859_v54 }
 0x7be   :  { %v2835_v62 = vadd.f32 %v2834_v59, %v2833_v55 }
 0x7bf   :  { %2870 = vst [vmem:[#allocation5] sm:$0xff] %v2860_v58 }
 0x7c0   :  { %2836 = vadd.xlane.f32.xlu0 %v2835_v62 }
 0x84d   :  { %v2837_v8 = vpop.xlane.xlu0 %2836 }
 0x84e   :  { %v7251_v9 = vadd.f32 %v2837_v8, %v2826_v7 }
 0x84f   :  { %6380 = dma.done.wait [#allocation7 + $0x1], 5760 }
 0x850   :  { %6381 = vsyncadd [#allocation7 + $0x1], 4294961536  ;;  %5632 = vmatprep.mubr.msk.bf16.mxu0 %vm2639_vm6, %v7192_v1  ;;  %5633 = vmatprep.mubr.msk.bf16.mxu1 %vm2639_vm6, %v7192_v1  ;;  %v2876_v10 = vld [vmem:[#allocation6 + $0x170] sm:$0xff]  ;;  %v2875_v11 = vld [vmem:[#allocation6 + $0x168] sm:$0xff] }
 0x851   :  { %v2881_v12 = vld [vmem:[#allocation6 + $0x198] sm:$0xff]  ;;  %2920 = vmatprep.subr.bf16.mxu0 %v2876_v10  ;;  %v2880_v13 = vld [vmem:[#allocation6 + $0x190] sm:$0xff]  ;;  %v2886_v14 = vld [vmem:[#allocation6 + $0x1c0] sm:$0xff] }
 0x852   :  { %2921 = vmatpush1.bf16.msra.mxu0 %v2875_v11  ;;  %v2878_v15 = vld [vmem:[#allocation6 + $0x180] sm:$0xff]  ;;  %v2877_v16 = vld [vmem:[#allocation6 + $0x178] sm:$0xff]  ;;  %v2883_v18 = vld [vmem:[#allocation6 + $0x1a8] sm:$0xff] }
 0x853   :  { %2922 = vmatprep.subr.bf16.mxu0 %v2881_v12  ;;  %v2885_v17 = vld [vmem:[#allocation6 + $0x1b8] sm:$0xff]  ;;  %2961 = vmatprep.subr.bf16.mxu1 %v2878_v15  ;;  %v2891_v19 = vld [vmem:[#allocation6 + $0x1e8] sm:$0xff]  ;;  %v2882_v20 = vld [vmem:[#allocation6 + $0x1a0] sm:$0xff] }
 0x854   :  { %2962 = vmatpush1.bf16.msra.mxu1 %v2877_v16  ;;  %v2888_v21 = vld [vmem:[#allocation6 + $0x1d0] sm:$0xff]  ;;  %v2890_v22 = vld [vmem:[#allocation6 + $0x1e0] sm:$0xff]  ;;  %v2887_v24 = vld [vmem:[#allocation6 + $0x1c8] sm:$0xff] }
 0x855   :  { %2963 = vmatprep.subr.bf16.mxu1 %v2883_v18  ;;  %v2896_v23 = vld [vmem:[#allocation6 + $0x210] sm:$0xff]  ;;  %v2893_v26 = vld [vmem:[#allocation6 + $0x1f8] sm:$0xff]  ;;  %v2895_v27 = vld [vmem:[#allocation6 + $0x208] sm:$0xff] }
 0x856   :  { %2923 = vmatpush1.bf16.msra.mxu0 %v2880_v13  ;;  %v2901_v28 = vld [vmem:[#allocation6 + $0x238] sm:$0xff]  ;;  %v2892_v29 = vld [vmem:[#allocation6 + $0x1f0] sm:$0xff]  ;;  %v2898_v30 = vld [vmem:[#allocation6 + $0x220] sm:$0xff] }
 0x857   :  { %2924 = vmatprep.subr.bf16.mxu0 %v2886_v14  ;;  %v2900_v31 = vld [vmem:[#allocation6 + $0x230] sm:$0xff]  ;;  %v2906_v32 = vld [vmem:[#allocation6 + $0x260] sm:$0xff]  ;;  %v2897_v33 = vld [vmem:[#allocation6 + $0x218] sm:$0xff] }
 0x858   :  { %2964 = vmatpush1.bf16.msra.mxu1 %v2882_v20  ;;  %v2903_v34 = vld [vmem:[#allocation6 + $0x248] sm:$0xff]  ;;  %v2905_v35 = vld [vmem:[#allocation6 + $0x258] sm:$0xff]  ;;  %v2902_v37 = vld [vmem:[#allocation6 + $0x240] sm:$0xff] }
 0x859   :  { %2965 = vmatprep.subr.bf16.mxu1 %v2888_v21  ;;  %v2911_v36 = vld [vmem:[#allocation6 + $0x288] sm:$0xff]  ;;  %v2908_v38 = vld [vmem:[#allocation6 + $0x270] sm:$0xff]  ;;  %v2910_v39 = vld [vmem:[#allocation6 + $0x280] sm:$0xff] }
 0x85a   :  { %2925 = vmatpush1.bf16.msra.mxu0 %v2885_v17  ;;  %v2916_v41 = vld [vmem:[#allocation6 + $0x2b0] sm:$0xff]  ;;  %v2907_v42 = vld [vmem:[#allocation6 + $0x268] sm:$0xff]  ;;  %v2913_v44 = vld [vmem:[#allocation6 + $0x298] sm:$0xff] }
 0x85b   :  { %2926 = vmatprep.subr.bf16.mxu0 %v2891_v19  ;;  %v2915_v46 = vld [vmem:[#allocation6 + $0x2a8] sm:$0xff]  ;;  %v2912_v47 = vld [vmem:[#allocation6 + $0x290] sm:$0xff]  ;;  %v2918_v48 = vld [vmem:[#allocation6 + $0x2c0] sm:$0xff] }
 0x85c   :  { %2966 = vmatpush1.bf16.msra.mxu1 %v2887_v24  ;;  %v2879_v49 = vld [vmem:[#allocation6 + $0x188] sm:$0xff]  ;;  %v2917_v50 = vld [vmem:[#allocation6 + $0x2b8] sm:$0xff]  ;;  %v2884_v51 = vld [vmem:[#allocation6 + $0x1b0] sm:$0xff] }
 0x85d   :  { %2967 = vmatprep.subr.bf16.mxu1 %v2893_v26  ;;  %v2889_v52 = vld [vmem:[#allocation6 + $0x1d8] sm:$0xff]  ;;  %v2894_v53 = vld [vmem:[#allocation6 + $0x200] sm:$0xff]  ;;  %v2899_v45 = vld [vmem:[#allocation6 + $0x228] sm:$0xff] }
 0x85e   :  { %2927 = vmatpush1.bf16.msra.mxu0 %v2890_v22  ;;  %v2904_v54 = vld [vmem:[#allocation6 + $0x250] sm:$0xff]  ;;  %v2909_v43 = vld [vmem:[#allocation6 + $0x278] sm:$0xff]  ;;  %v2914_v55 = vld [vmem:[#allocation6 + $0x2a0] sm:$0xff] }
 0x85f   :  { %2928 = vmatprep.subr.bf16.mxu0 %v2896_v23  ;;  %v2919_v58 = vld [vmem:[#allocation6 + $0x2c8] sm:$0xff] }
 0x860   :  { %2968 = vmatpush1.bf16.msra.mxu1 %v2892_v29  ;;  %v2874_v11 = vld [vmem:[#allocation19 + $0x5] sm:$0x1f] }
 0x861   :  { %2969 = vmatprep.subr.bf16.mxu1 %v2898_v30  ;;  %v3054_v12 = vrot.slane %v2874_v11, %v7215_v56  ;;  %v3058_v13 = vrot.slane %v2874_v11, %v7218_v57  ;;  %v3046_v14 = vrot.slane %v2874_v11, %v7008_v61  ;;  %v3050_v15 = vrot.slane %v2874_v11, %v7011_v63 }
 0x862   :  { %2929 = vmatpush1.bf16.msra.mxu0 %v2895_v27  ;;  %v3062_v18 = vrot.slane %v2874_v11, %v7223_v3 }
 0x863   :  { %2930 = vmatprep.subr.bf16.mxu0 %v2901_v28 }
 0x864   :  { %2970 = vmatpush1.bf16.msra.mxu1 %v2897_v33 }
 0x865   :  { %2971 = vmatprep.subr.bf16.mxu1 %v2903_v34 }
 0x866   :  { %2931 = vmatpush1.bf16.msra.mxu0 %v2900_v31 }
 0x867   :  { %2932 = vmatprep.subr.bf16.mxu0 %v2906_v32 }
 0x868   :  { %2972 = vmatpush1.bf16.msra.mxu1 %v2902_v37 }
 0x869   :  { %2973 = vmatprep.subr.bf16.mxu1 %v2908_v38 }
 0x86a   :  { %2933 = vmatpush1.bf16.msra.mxu0 %v2905_v35 }
 0x86b   :  { %2934 = vmatprep.subr.bf16.mxu0 %v2911_v36 }
 0x86c   :  { %2974 = vmatpush1.bf16.msra.mxu1 %v2907_v42 }
 0x86d   :  { %2975 = vmatprep.subr.bf16.mxu1 %v2913_v44 }
 0x86e   :  { %2935 = vmatpush1.bf16.msra.mxu0 %v2910_v39 }
 0x86f   :  { %2936 = vmatprep.subr.bf16.mxu0 %v2916_v41 }
 0x870   :  { %2976 = vmatpush1.bf16.msra.mxu1 %v2912_v47 }
 0x871   :  { %2977 = vmatprep.subr.bf16.mxu1 %v2918_v48 }
 0x872   :  { %2937 = vmatpush1.bf16.msra.mxu0 %v2915_v46 }
 0x873   :  { %3002 = vmatprep.subr.bf16.mxu0 %v6410_v0 }
 0x874   :  { %2978 = vmatpush1.bf16.msra.mxu1 %v2917_v50 }
 0x875   :  { %2953 = vmatmul.mubr.bf16.vlgmr.msra.gmra.mrb[24].mxu0 %v7194_v2 }
 0x876   :  { %3003 = vmatpush1.bf16.msra.mxu0 %v2879_v49  ;;  %5634 = vmatprep.mubr.msk.bf16.mxu0 %vm2639_vm6, %v7192_v1 }
 0x877   :  { %3004 = vmatprep.subr.bf16.mxu0 %v6410_v0  ;;  %2994 = vmatmul.mubr.bf16.vlgmr.msra.gmra.mrb[24].mxu1 %v7194_v2 }
 0x87a   :  { %3005 = vmatpush1.bf16.msra.mxu0 %v2884_v51 }
 0x87b   :  { %3006 = vmatprep.subr.bf16.mxu0 %v6410_v0 }
 0x87e   :  { %3007 = vmatpush1.bf16.msra.mxu0 %v2889_v52 }
 0x87f   :  { %3008 = vmatprep.subr.bf16.mxu0 %v6410_v0 }
 0x882   :  { %3009 = vmatpush1.bf16.msra.mxu0 %v2894_v53 }
 0x883   :  { %3010 = vmatprep.subr.bf16.mxu0 %v6410_v0 }
 0x886   :  { %3011 = vmatpush1.bf16.msra.mxu0 %v2899_v45 }
 0x887   :  { %3012 = vmatprep.subr.bf16.mxu0 %v6410_v0 }
 0x88a   :  { %3013 = vmatpush1.bf16.msra.mxu0 %v2904_v54 }
 0x88b   :  { %3014 = vmatprep.subr.bf16.mxu0 %v6410_v0 }
 0x88e   :  { %3015 = vmatpush1.bf16.msra.mxu0 %v2909_v43 }
 0x88f   :  { %3016 = vmatprep.subr.bf16.mxu0 %v6410_v0 }
 0x892   :  { %3017 = vmatpush1.bf16.msra.mxu0 %v2914_v55 }
 0x893   :  { %3018 = vmatprep.subr.bf16.mxu0 %v6410_v0 }
 0x896   :  { %3019 = vmatpush1.bf16.msra.mxu0 %v2919_v58 }
 0x899   :  { %3035 = vmatmul.mubr.bf16.vlgmr.msra.gmra.mrb[28].mxu0 %v7194_v2 }
 0x948   :  { %v2954_v59 = vpop.f32.mrb[24].mxu0 }
 0x949   :  { %v2956_v62 = vpop.f32.mrb[25].mxu0  ;;  %v3068_v19 = vadd.f32 %v3046_v14, %v2954_v59 }
 0x94a   :  { %v2958_v4 = vpop.f32.mrb[26].mxu0  ;;  %v2995_v6 = vpop.f32.mrb[24].mxu1  ;;  %v3069_v21 = vadd.f32 %v3050_v15, %v2956_v62 }
 0x94b   :  { %v2959_v5 = vpop.f32.mrb[27].mxu0  ;;  %v2997_v7 = vpop.f32.mrb[25].mxu1  ;;  %v3070_v16 = vadd.f32 %v3054_v12, %v2995_v6  ;;  %v3073_v28 = vsel %vm2796_vm7, %v3068_v19, -inf }
 0x94c   :  { %v2999_v8 = vpop.f32.mrb[26].mxu1  ;;  %v3071_v17 = vadd.f32 %v3058_v13, %v2997_v7  ;;  %v3074_v33 = vsel %vm2796_vm7, %v3069_v21, -inf }
 0x94d   :  { %v3000_v10 = vpop.f32.mrb[27].mxu1  ;;  %v3075_v22 = vsel %vm2796_vm7, %v3070_v16, -inf }
 0x94e   :  { %v3076_v23 = vsel %vm2796_vm7, %v3071_v17, -inf }
 0x94f   :  { %v3080_v32 = vmax.f32 %v3075_v22, %v3076_v23 }
 0x96c   :  { %v3036_v20 = vpop.f32.mrb[28].mxu0 }
 0x96d   :  { %v3072_v24 = vadd.f32 %v3062_v18, %v3036_v20  ;;  %v3038_v26 = vpop.f32.mrb[29].mxu0 }
 0x96e   :  { %v3039_v27 = vpop.f32.mrb[30].mxu0 }
 0x96f   :  { %v3077_v29 = vsel %vm2796_vm7, %v3072_v24, -inf  ;;  %v3040_v30 = vpop.f32.mrb[31].mxu0 }
 0x970   :  { %v3078_v31 = vmax.f32 %v3073_v28, %v3077_v29 }
 0x972   :  { %v3079_v34 = vmax.f32 %v3078_v31, %v3074_v33 }
 0x974   :  { %v3081_v35 = vmax.f32 %v3079_v34, %v3080_v32 }
 0x976   :  { %3082 = vmax.xlane.f32.xlu0 %v3081_v35 }
 0xa03   :  { %v3083_v36 = vpop.xlane.xlu0 %3082 }
 0xa04   :  { %v7282_v37 = vmax.f32 %v7233_v25, %v3083_v36 }
 0xa06   :  { %v3085_v38 = vsub.f32 %v3068_v19, %v7282_v37  ;;  %v3086_v39 = vsub.f32 %v3069_v21, %v7282_v37  ;;  %v3087_v41 = vsub.f32 %v3070_v16, %v7282_v37  ;;  %v3088_v42 = vsub.f32 %v3071_v17, %v7282_v37 }
 0xa07   :  { %v3089_v44 = vsub.f32 %v3072_v24, %v7282_v37  ;;  %v3100_v14 = vsub.f32 %v7233_v25, %v7282_v37 }
 0xa08   :  { %v3090_v46 = vmul.f32 1.442695, %v3085_v38  ;;  %v3092_v47 = vmul.f32 1.442695, %v3086_v39  ;;  %v3094_v48 = vmul.f32 1.442695, %v3087_v41 }
 0xa09   :  { %v3096_v49 = vmul.f32 1.442695, %v3088_v42  ;;  %v3098_v50 = vmul.f32 1.442695, %v3089_v44  ;;  %v3101_v15 = vmul.f32 1.442695, %v3100_v14 }
 0xa0a   :  { %6080 = vpow2.f32 %v3090_v46 }
 0xa0b   :  { %6082 = vpow2.f32 %v3092_v47 }
 0xa0c   :  { %6084 = vpow2.f32 %v3094_v48 }
 0xa0d   :  { %6086 = vpow2.f32 %v3096_v49 }
 0xa0e   :  { %6088 = vpow2.f32 %v3098_v50 }
 0xa0f   :  { %6090 = vpow2.f32 %v3101_v15 }
 0xa14   :  { %v6081_v51 = vpop.eup %6080 }
 0xa15   :  { %v6083_v52 = vpop.eup %6082  ;;  %v3104_v53 = vsel %vm2796_vm7, %v6081_v51, 0.0 }
 0xa16   :  { %v6085_v45 = vpop.eup %6084  ;;  %v3105_v54 = vsel %vm2796_vm7, %v6083_v52, 0.0  ;;  %v3121_v43 = vcombine.low %v6081_v51, %v6083_v52 }
 0xa17   :  { %v6087_v55 = vpop.eup %6086  ;;  %v3106_v58 = vadd.f32 %v3105_v54, %v3104_v53  ;;  %v3107_v62 = vsel %vm2796_vm7, %v6085_v45, 0.0 }
 0xa18   :  { %v6089_v59 = vpop.eup %6088  ;;  %v3122_v4 = vcombine.low %v6085_v45, %v6087_v55  ;;  %v3129_v5 = vrot.slane %v3121_v43, %v7241_v40  ;;  %v3109_v7 = vsel %vm2796_vm7, %v6087_v55, 0.0 }
 0xa19   :  { %v3108_v6 = vadd.f32 %v3107_v62, %v3106_v58  ;;  %5635 = vst.sshfl [vmem:[#allocation5 + $0x12] sm:$0x3 pattern:$0x76325410] %v6089_v59  ;;  %v3111_v11 = vsel %vm2796_vm7, %v6089_v59, 0.0  ;;  %v6091_v16 = vpop.eup %6090 }
 0xa1a   :  { %v3136_v8 = vrot.slane %v3122_v4, %v7241_v40  ;;  %v3103_v17 = vmul.f32 %v6091_v16, %v7251_v9 }
 0xa1b   :  { %v3110_v10 = vadd.f32 %v3109_v7, %v3108_v6 }
 0xa1c   :  { %v3137_v12 = vcombine.low %v3129_v5, %v3136_v8 }
 0xa1d   :  { %v3112_v13 = vadd.f32 %v3111_v11, %v3110_v10 }
 0xa1e   :  { %3147 = vst [vmem:[#allocation5 + $0xa] sm:$0xff] %v3137_v12 }
 0xa1f   :  { %3113 = vadd.xlane.f32.xlu0 %v3112_v13 }
 0xaac   :  { %v3114_v18 = vpop.xlane.xlu0 %3113 }
 0xaad   :  { %v7299_v19 = vadd.f32 %v3114_v18, %v3103_v17 }
 0xaae   :  { %6382 = dma.done.wait [#allocation7 + $0x2], 5760 }
 0xaaf   :  { %6383 = vsyncadd [#allocation7 + $0x2], 4294961536  ;;  %5636 = vmatprep.mubr.msk.bf16.mxu1 %vm2639_vm6, %v7192_v1  ;;  %5637 = vmatprep.mubr.msk.bf16.mxu0 %vm2639_vm6, %v7192_v1  ;;  %v3153_v20 = vld [vmem:[#allocation6 + $0x2d8] sm:$0xff]  ;;  %v3152_v21 = vld [vmem:[#allocation6 + $0x2d0] sm:$0xff] }
 0xab0   :  { %v3158_v22 = vld [vmem:[#allocation6 + $0x300] sm:$0xff]  ;;  %3197 = vmatprep.subr.bf16.mxu1 %v3153_v20  ;;  %v3157_v23 = vld [vmem:[#allocation6 + $0x2f8] sm:$0xff]  ;;  %v3163_v24 = vld [vmem:[#allocation6 + $0x328] sm:$0xff] }
 0xab1   :  { %3198 = vmatpush1.bf16.msra.mxu1 %v3152_v21  ;;  %v3155_v9 = vld [vmem:[#allocation6 + $0x2e8] sm:$0xff]  ;;  %v3154_v26 = vld [vmem:[#allocation6 + $0x2e0] sm:$0xff]  ;;  %v3160_v28 = vld [vmem:[#allocation6 + $0x310] sm:$0xff] }
 0xab2   :  { %3199 = vmatprep.subr.bf16.mxu1 %v3158_v22  ;;  %v3162_v27 = vld [vmem:[#allocation6 + $0x320] sm:$0xff]  ;;  %3238 = vmatprep.subr.bf16.mxu0 %v3155_v9  ;;  %v3168_v29 = vld [vmem:[#allocation6 + $0x350] sm:$0xff]  ;;  %v3159_v30 = vld [vmem:[#allocation6 + $0x308] sm:$0xff] }
 0xab3   :  { %3239 = vmatpush1.bf16.msra.mxu0 %v3154_v26  ;;  %v3165_v31 = vld [vmem:[#allocation6 + $0x338] sm:$0xff]  ;;  %v3167_v32 = vld [vmem:[#allocation6 + $0x348] sm:$0xff]  ;;  %v3164_v34 = vld [vmem:[#allocation6 + $0x330] sm:$0xff] }
 0xab4   :  { %3240 = vmatprep.subr.bf16.mxu0 %v3160_v28  ;;  %v3173_v33 = vld [vmem:[#allocation6 + $0x378] sm:$0xff]  ;;  %v3170_v35 = vld [vmem:[#allocation6 + $0x360] sm:$0xff]  ;;  %v3172_v36 = vld [vmem:[#allocation6 + $0x370] sm:$0xff] }
 0xab5   :  { %3200 = vmatpush1.bf16.msra.mxu1 %v3157_v23  ;;  %v3178_v38 = vld [vmem:[#allocation6 + $0x3a0] sm:$0xff]  ;;  %v3169_v39 = vld [vmem:[#allocation6 + $0x358] sm:$0xff]  ;;  %v3175_v41 = vld [vmem:[#allocation6 + $0x388] sm:$0xff] }
 0xab6   :  { %3201 = vmatprep.subr.bf16.mxu1 %v3163_v24  ;;  %v3177_v42 = vld [vmem:[#allocation6 + $0x398] sm:$0xff]  ;;  %v3183_v44 = vld [vmem:[#allocation6 + $0x3c8] sm:$0xff]  ;;  %v3174_v46 = vld [vmem:[#allocation6 + $0x380] sm:$0xff] }
 0xab7   :  { %3241 = vmatpush1.bf16.msra.mxu0 %v3159_v30  ;;  %v3180_v47 = vld [vmem:[#allocation6 + $0x3b0] sm:$0xff]  ;;  %v3182_v48 = vld [vmem:[#allocation6 + $0x3c0] sm:$0xff]  ;;  %v3179_v50 = vld [vmem:[#allocation6 + $0x3a8] sm:$0xff] }
 0xab8   :  { %3242 = vmatprep.subr.bf16.mxu0 %v3165_v31  ;;  %v3188_v49 = vld [vmem:[#allocation6 + $0x3f0] sm:$0xff]  ;;  %v3185_v51 = vld [vmem:[#allocation6 + $0x3d8] sm:$0xff]  ;;  %v3187_v52 = vld [vmem:[#allocation6 + $0x3e8] sm:$0xff] }
 0xab9   :  { %3202 = vmatpush1.bf16.msra.mxu1 %v3162_v27  ;;  %v3193_v53 = vld [vmem:[#allocation6 + $0x418] sm:$0xff]  ;;  %v3184_v45 = vld [vmem:[#allocation6 + $0x3d0] sm:$0xff]  ;;  %v3190_v54 = vld [vmem:[#allocation6 + $0x400] sm:$0xff] }
 0xaba   :  { %3203 = vmatprep.subr.bf16.mxu1 %v3168_v29  ;;  %v3192_v43 = vld [vmem:[#allocation6 + $0x410] sm:$0xff]  ;;  %v3189_v55 = vld [vmem:[#allocation6 + $0x3f8] sm:$0xff]  ;;  %v3195_v58 = vld [vmem:[#allocation6 + $0x428] sm:$0xff] }
 0xabb   :  { %3243 = vmatpush1.bf16.msra.mxu0 %v3164_v34  ;;  %v3156_v59 = vld [vmem:[#allocation6 + $0x2f0] sm:$0xff]  ;;  %v3194_v62 = vld [vmem:[#allocation6 + $0x420] sm:$0xff]  ;;  %v3161_v4 = vld [vmem:[#allocation6 + $0x318] sm:$0xff] }
 0xabc   :  { %3244 = vmatprep.subr.bf16.mxu0 %v3170_v35  ;;  %v3166_v5 = vld [vmem:[#allocation6 + $0x340] sm:$0xff]  ;;  %v3171_v6 = vld [vmem:[#allocation6 + $0x368] sm:$0xff]  ;;  %v3176_v7 = vld [vmem:[#allocation6 + $0x390] sm:$0xff] }
 0xabd   :  { %3204 = vmatpush1.bf16.msra.mxu1 %v3167_v32  ;;  %v3181_v8 = vld [vmem:[#allocation6 + $0x3b8] sm:$0xff]  ;;  %v3186_v10 = vld [vmem:[#allocation6 + $0x3e0] sm:$0xff]  ;;  %v3191_v11 = vld [vmem:[#allocation6 + $0x408] sm:$0xff] }
 0xabe   :  { %3205 = vmatprep.subr.bf16.mxu1 %v3173_v33  ;;  %v3196_v12 = vld [vmem:[#allocation6 + $0x430] sm:$0xff]  ;;  %v3151_v22 = vld [vmem:[#allocation19 + $0xa] sm:$0x1f] }
 0xabf   :  { %3245 = vmatpush1.bf16.msra.mxu0 %v3169_v39  ;;  %v3331_v23 = vrot.slane %v3151_v22, %v7215_v56  ;;  %v3335_v24 = vrot.slane %v3151_v22, %v7218_v57  ;;  %v3323_v9 = vrot.slane %v3151_v22, %v7008_v61  ;;  %v3327_v26 = vrot.slane %v3151_v22, %v7011_v63 }
 0xac0   :  { %3246 = vmatprep.subr.bf16.mxu0 %v3175_v41  ;;  %v3339_v29 = vrot.slane %v3151_v22, %v7223_v3 }
 0xac1   :  { %3206 = vmatpush1.bf16.msra.mxu1 %v3172_v36 }
 0xac2   :  { %3207 = vmatprep.subr.bf16.mxu1 %v3178_v38 }
 0xac3   :  { %3247 = vmatpush1.bf16.msra.mxu0 %v3174_v46 }
 0xac4   :  { %3248 = vmatprep.subr.bf16.mxu0 %v3180_v47 }
 0xac5   :  { %3208 = vmatpush1.bf16.msra.mxu1 %v3177_v42 }
 0xac6   :  { %3209 = vmatprep.subr.bf16.mxu1 %v3183_v44 }
 0xac7   :  { %3249 = vmatpush1.bf16.msra.mxu0 %v3179_v50 }
 0xac8   :  { %3250 = vmatprep.subr.bf16.mxu0 %v3185_v51 }
 0xac9   :  { %3210 = vmatpush1.bf16.msra.mxu1 %v3182_v48 }
 0xaca   :  { %3211 = vmatprep.subr.bf16.mxu1 %v3188_v49 }
 0xacb   :  { %3251 = vmatpush1.bf16.msra.mxu0 %v3184_v45 }
 0xacc   :  { %3252 = vmatprep.subr.bf16.mxu0 %v3190_v54 }
 0xacd   :  { %3212 = vmatpush1.bf16.msra.mxu1 %v3187_v52 }
 0xace   :  { %3213 = vmatprep.subr.bf16.mxu1 %v3193_v53 }
 0xacf   :  { %3253 = vmatpush1.bf16.msra.mxu0 %v3189_v55 }
 0xad0   :  { %3254 = vmatprep.subr.bf16.mxu0 %v3195_v58 }
 0xad1   :  { %3214 = vmatpush1.bf16.msra.mxu1 %v3192_v43 }
 0xad2   :  { %3279 = vmatprep.subr.bf16.mxu1 %v6410_v0 }
 0xad3   :  { %3255 = vmatpush1.bf16.msra.mxu0 %v3194_v62 }
 0xad4   :  { %3230 = vmatmul.mubr.bf16.vlgmr.msra.gmra.mrb[28].mxu1 %v7194_v2 }
 0xad5   :  { %3280 = vmatpush1.bf16.msra.mxu1 %v3156_v59  ;;  %5638 = vmatprep.mubr.msk.bf16.mxu1 %vm2639_vm6, %v7192_v1 }
 0xad6   :  { %3281 = vmatprep.subr.bf16.mxu1 %v6410_v0  ;;  %3271 = vmatmul.mubr.bf16.vlgmr.msra.gmra.mrb[32].mxu0 %v7194_v2 }
 0xad9   :  { %3282 = vmatpush1.bf16.msra.mxu1 %v3161_v4 }
 0xada   :  { %3283 = vmatprep.subr.bf16.mxu1 %v6410_v0 }
 0xadd   :  { %3284 = vmatpush1.bf16.msra.mxu1 %v3166_v5 }
 0xade   :  { %3285 = vmatprep.subr.bf16.mxu1 %v6410_v0 }
 0xae1   :  { %3286 = vmatpush1.bf16.msra.mxu1 %v3171_v6 }
 0xae2   :  { %3287 = vmatprep.subr.bf16.mxu1 %v6410_v0 }
 0xae5   :  { %3288 = vmatpush1.bf16.msra.mxu1 %v3176_v7 }
 0xae6   :  { %3289 = vmatprep.subr.bf16.mxu1 %v6410_v0 }
 0xae9   :  { %3290 = vmatpush1.bf16.msra.mxu1 %v3181_v8 }
 0xaea   :  { %3291 = vmatprep.subr.bf16.mxu1 %v6410_v0 }
 0xaed   :  { %3292 = vmatpush1.bf16.msra.mxu1 %v3186_v10 }
 0xaee   :  { %3293 = vmatprep.subr.bf16.mxu1 %v6410_v0 }
 0xaf1   :  { %3294 = vmatpush1.bf16.msra.mxu1 %v3191_v11 }
 0xaf2   :  { %3295 = vmatprep.subr.bf16.mxu1 %v6410_v0 }
 0xaf5   :  { %3296 = vmatpush1.bf16.msra.mxu1 %v3196_v12 }
 0xaf8   :  { %3312 = vmatmul.mubr.bf16.vlgmr.msra.gmra.mrb[32].mxu1 %v7194_v2 }
 0xba7   :  { %v3231_v13 = vpop.f32.mrb[28].mxu1 }
 0xba8   :  { %v3233_v14 = vpop.f32.mrb[29].mxu1  ;;  %v3345_v30 = vadd.f32 %v3323_v9, %v3231_v13 }
 0xba9   :  { %v3235_v15 = vpop.f32.mrb[30].mxu1  ;;  %v3272_v17 = vpop.f32.mrb[32].mxu0  ;;  %v3346_v32 = vadd.f32 %v3327_v26, %v3233_v14 }
 0xbaa   :  { %v3236_v16 = vpop.f32.mrb[31].mxu1  ;;  %v3274_v18 = vpop.f32.mrb[33].mxu0  ;;  %v3347_v27 = vadd.f32 %v3331_v23, %v3272_v17  ;;  %v3350_v39 = vsel %vm2796_vm7, %v3345_v30, -inf }
 0xbab   :  { %v3276_v20 = vpop.f32.mrb[34].mxu0  ;;  %v3348_v28 = vadd.f32 %v3335_v24, %v3274_v18  ;;  %v3351_v47 = vsel %vm2796_vm7, %v3346_v32, -inf }
 0xbac   :  { %v3277_v21 = vpop.f32.mrb[35].mxu0  ;;  %v3352_v33 = vsel %vm2796_vm7, %v3347_v27, -inf }
 0xbad   :  { %v3353_v34 = vsel %vm2796_vm7, %v3348_v28, -inf }
 0xbae   :  { %v3357_v46 = vmax.f32 %v3352_v33, %v3353_v34 }
 0xbcb   :  { %v3313_v31 = vpop.f32.mrb[32].mxu1 }
 0xbcc   :  { %v3349_v35 = vadd.f32 %v3339_v29, %v3313_v31  ;;  %v3315_v36 = vpop.f32.mrb[33].mxu1 }
 0xbcd   :  { %v3316_v38 = vpop.f32.mrb[34].mxu1 }
 0xbce   :  { %v3354_v41 = vsel %vm2796_vm7, %v3349_v35, -inf  ;;  %v3317_v42 = vpop.f32.mrb[35].mxu1 }
 0xbcf   :  { %v3355_v44 = vmax.f32 %v3350_v39, %v3354_v41 }
 0xbd1   :  { %v3356_v48 = vmax.f32 %v3355_v44, %v3351_v47 }
 0xbd3   :  { %v3358_v49 = vmax.f32 %v3356_v48, %v3357_v46 }
 0xbd5   :  { %3359 = vmax.xlane.f32.xlu0 %v3358_v49 }
 0xc62   :  { %v3360_v50 = vpop.xlane.xlu0 %3359 }
 0xc63   :  { %v7330_v51 = vmax.f32 %v7282_v37, %v3360_v50 }
 0xc65   :  { %v3362_v52 = vsub.f32 %v3345_v30, %v7330_v51  ;;  %v3363_v53 = vsub.f32 %v3346_v32, %v7330_v51  ;;  %v3364_v45 = vsub.f32 %v3347_v27, %v7330_v51  ;;  %v3365_v54 = vsub.f32 %v3348_v28, %v7330_v51 }
 0xc66   :  { %v3366_v43 = vsub.f32 %v3349_v35, %v7330_v51  ;;  %v3377_v26 = vsub.f32 %v7282_v37, %v7330_v51 }
 0xc67   :  { %v3367_v55 = vmul.f32 1.442695, %v3362_v52  ;;  %v3369_v58 = vmul.f32 1.442695, %v3363_v53  ;;  %v3371_v59 = vmul.f32 1.442695, %v3364_v45 }
 0xc68   :  { %v3373_v62 = vmul.f32 1.442695, %v3365_v54  ;;  %v3375_v4 = vmul.f32 1.442695, %v3366_v43  ;;  %v3378_v27 = vmul.f32 1.442695, %v3377_v26 }
 0xc69   :  { %6092 = vpow2.f32 %v3367_v55 }
 0xc6a   :  { %6094 = vpow2.f32 %v3369_v58 }
 0xc6b   :  { %6096 = vpow2.f32 %v3371_v59 }
 0xc6c   :  { %6098 = vpow2.f32 %v3373_v62 }
 0xc6d   :  { %6100 = vpow2.f32 %v3375_v4 }
 0xc6e   :  { %6102 = vpow2.f32 %v3378_v27 }
 0xc73   :  { %v6093_v5 = vpop.eup %6092 }
 0xc74   :  { %v6095_v6 = vpop.eup %6094  ;;  %v3381_v7 = vsel %vm2796_vm7, %v6093_v5, 0.0 }
 0xc75   :  { %v6097_v8 = vpop.eup %6096  ;;  %v3382_v10 = vsel %vm2796_vm7, %v6095_v6, 0.0  ;;  %v3398_v11 = vcombine.low %v6093_v5, %v6095_v6 }
 0xc76   :  { %v6099_v12 = vpop.eup %6098  ;;  %v3383_v13 = vadd.f32 %v3382_v10, %v3381_v7  ;;  %v3384_v15 = vsel %vm2796_vm7, %v6097_v8, 0.0 }
 0xc77   :  { %v6101_v14 = vpop.eup %6100  ;;  %v3399_v16 = vcombine.low %v6097_v8, %v6099_v12  ;;  %v3406_v17 = vrot.slane %v3398_v11, %v7241_v40  ;;  %v3386_v20 = vsel %vm2796_vm7, %v6099_v12, 0.0 }
 0xc78   :  { %v3385_v18 = vadd.f32 %v3384_v15, %v3383_v13  ;;  %5639 = vst.sshfl [vmem:[#allocation5 + $0x1c] sm:$0x3 pattern:$0x76325410] %v6101_v14  ;;  %v3388_v23 = vsel %vm2796_vm7, %v6101_v14, 0.0  ;;  %v6103_v28 = vpop.eup %6102 }
 0xc79   :  { %v3413_v21 = vrot.slane %v3399_v16, %v7241_v40  ;;  %v3380_v29 = vmul.f32 %v6103_v28, %v7299_v19 }
 0xc7a   :  { %v3387_v22 = vadd.f32 %v3386_v20, %v3385_v18 }
 0xc7b   :  { %v3414_v24 = vcombine.low %v3406_v17, %v3413_v21 }
 0xc7c   :  { %v3389_v9 = vadd.f32 %v3388_v23, %v3387_v22 }
 0xc7d   :  { %3424 = vst [vmem:[#allocation5 + $0x14] sm:$0xff] %v3414_v24 }
 0xc7e   :  { %3390 = vadd.xlane.f32.xlu0 %v3389_v9 }
 0xd0b   :  { %v3391_v30 = vpop.xlane.xlu0 %3390 }
 0xd0c   :  { %v7347_v31 = vadd.f32 %v3391_v30, %v3380_v29 }
 0xd0d   :  { %6384 = dma.done.wait [#allocation7 + $0x3], 5760 }
 0xd0e   :  { %6385 = vsyncadd [#allocation7 + $0x3], 4294961536  ;;  %5640 = vmatprep.mubr.msk.bf16.mxu0 %vm2639_vm6, %v7192_v1  ;;  %5641 = vmatprep.mubr.msk.bf16.mxu1 %vm2639_vm6, %v7192_v1  ;;  %v3430_v32 = vld [vmem:[#allocation6 + $0x440] sm:$0xff]  ;;  %v3429_v33 = vld [vmem:[#allocation6 + $0x438] sm:$0xff] }
 0xd0f   :  { %v3435_v34 = vld [vmem:[#allocation6 + $0x468] sm:$0xff]  ;;  %3474 = vmatprep.subr.bf16.mxu0 %v3430_v32  ;;  %v3434_v35 = vld [vmem:[#allocation6 + $0x460] sm:$0xff]  ;;  %v3440_v36 = vld [vmem:[#allocation6 + $0x490] sm:$0xff] }
 0xd10   :  { %3475 = vmatpush1.bf16.msra.mxu0 %v3429_v33  ;;  %v3432_v19 = vld [vmem:[#allocation6 + $0x450] sm:$0xff]  ;;  %v3431_v38 = vld [vmem:[#allocation6 + $0x448] sm:$0xff]  ;;  %v3437_v41 = vld [vmem:[#allocation6 + $0x478] sm:$0xff] }
 0xd11   :  { %3476 = vmatprep.subr.bf16.mxu0 %v3435_v34  ;;  %v3439_v39 = vld [vmem:[#allocation6 + $0x488] sm:$0xff]  ;;  %3515 = vmatprep.subr.bf16.mxu1 %v3432_v19  ;;  %v3445_v42 = vld [vmem:[#allocation6 + $0x4b8] sm:$0xff]  ;;  %v3436_v44 = vld [vmem:[#allocation6 + $0x470] sm:$0xff] }
 0xd12   :  { %3516 = vmatpush1.bf16.msra.mxu1 %v3431_v38  ;;  %v3442_v46 = vld [vmem:[#allocation6 + $0x4a0] sm:$0xff]  ;;  %v3444_v47 = vld [vmem:[#allocation6 + $0x4b0] sm:$0xff]  ;;  %v3441_v49 = vld [vmem:[#allocation6 + $0x498] sm:$0xff] }
 0xd13   :  { %3517 = vmatprep.subr.bf16.mxu1 %v3437_v41  ;;  %v3450_v48 = vld [vmem:[#allocation6 + $0x4e0] sm:$0xff]  ;;  %v3447_v50 = vld [vmem:[#allocation6 + $0x4c8] sm:$0xff]  ;;  %v3449_v52 = vld [vmem:[#allocation6 + $0x4d8] sm:$0xff] }
 0xd14   :  { %3477 = vmatpush1.bf16.msra.mxu0 %v3434_v35  ;;  %v3455_v53 = vld [vmem:[#allocation6 + $0x508] sm:$0xff]  ;;  %v3446_v45 = vld [vmem:[#allocation6 + $0x4c0] sm:$0xff]  ;;  %v3452_v54 = vld [vmem:[#allocation6 + $0x4f0] sm:$0xff] }
 0xd15   :  { %3478 = vmatprep.subr.bf16.mxu0 %v3440_v36  ;;  %v3454_v43 = vld [vmem:[#allocation6 + $0x500] sm:$0xff]  ;;  %v3460_v55 = vld [vmem:[#allocation6 + $0x530] sm:$0xff]  ;;  %v3451_v58 = vld [vmem:[#allocation6 + $0x4e8] sm:$0xff] }
 0xd16   :  { %3518 = vmatpush1.bf16.msra.mxu1 %v3436_v44  ;;  %v3457_v59 = vld [vmem:[#allocation6 + $0x518] sm:$0xff]  ;;  %v3459_v62 = vld [vmem:[#allocation6 + $0x528] sm:$0xff]  ;;  %v3456_v5 = vld [vmem:[#allocation6 + $0x510] sm:$0xff] }
 0xd17   :  { %3519 = vmatprep.subr.bf16.mxu1 %v3442_v46  ;;  %v3465_v4 = vld [vmem:[#allocation6 + $0x558] sm:$0xff]  ;;  %v3462_v6 = vld [vmem:[#allocation6 + $0x540] sm:$0xff]  ;;  %v3464_v7 = vld [vmem:[#allocation6 + $0x550] sm:$0xff] }
 0xd18   :  { %3479 = vmatpush1.bf16.msra.mxu0 %v3439_v39  ;;  %v3470_v8 = vld [vmem:[#allocation6 + $0x580] sm:$0xff]  ;;  %v3461_v10 = vld [vmem:[#allocation6 + $0x538] sm:$0xff]  ;;  %v3467_v11 = vld [vmem:[#allocation6 + $0x568] sm:$0xff] }
 0xd19   :  { %3480 = vmatprep.subr.bf16.mxu0 %v3445_v42  ;;  %v3469_v12 = vld [vmem:[#allocation6 + $0x578] sm:$0xff]  ;;  %v3466_v13 = vld [vmem:[#allocation6 + $0x560] sm:$0xff]  ;;  %v3472_v14 = vld [vmem:[#allocation6 + $0x590] sm:$0xff] }
 0xd1a   :  { %3520 = vmatpush1.bf16.msra.mxu1 %v3441_v49  ;;  %v3433_v15 = vld [vmem:[#allocation6 + $0x458] sm:$0xff]  ;;  %v3471_v16 = vld [vmem:[#allocation6 + $0x588] sm:$0xff]  ;;  %v3438_v17 = vld [vmem:[#allocation6 + $0x480] sm:$0xff] }
 0xd1b   :  { %3521 = vmatprep.subr.bf16.mxu1 %v3447_v50  ;;  %v3443_v18 = vld [vmem:[#allocation6 + $0x4a8] sm:$0xff]  ;;  %v3448_v20 = vld [vmem:[#allocation6 + $0x4d0] sm:$0xff]  ;;  %v3453_v21 = vld [vmem:[#allocation6 + $0x4f8] sm:$0xff] }
 0xd1c   :  { %3481 = vmatpush1.bf16.msra.mxu0 %v3444_v47  ;;  %v3458_v22 = vld [vmem:[#allocation6 + $0x520] sm:$0xff]  ;;  %v3463_v23 = vld [vmem:[#allocation6 + $0x548] sm:$0xff]  ;;  %v3468_v24 = vld [vmem:[#allocation6 + $0x570] sm:$0xff] }
 0xd1d   :  { %3482 = vmatprep.subr.bf16.mxu0 %v3450_v48  ;;  %v3473_v9 = vld [vmem:[#allocation6 + $0x598] sm:$0xff]  ;;  %v3428_v35 = vld [vmem:[#allocation19 + $0xf] sm:$0x1f] }
 0xd1e   :  { %3522 = vmatpush1.bf16.msra.mxu1 %v3446_v45  ;;  %v3608_v36 = vrot.slane %v3428_v35, %v7215_v56  ;;  %v3612_v19 = vrot.slane %v3428_v35, %v7218_v57  ;;  %v3600_v38 = vrot.slane %v3428_v35, %v7008_v61  ;;  %v3604_v39 = vrot.slane %v3428_v35, %v7011_v63 }
 0xd1f   :  { %3523 = vmatprep.subr.bf16.mxu1 %v3452_v54  ;;  %v3616_v44 = vrot.slane %v3428_v35, %v7223_v3 }
 0xd20   :  { %3483 = vmatpush1.bf16.msra.mxu0 %v3449_v52 }
 0xd21   :  { %3484 = vmatprep.subr.bf16.mxu0 %v3455_v53 }
 0xd22   :  { %3524 = vmatpush1.bf16.msra.mxu1 %v3451_v58 }
 0xd23   :  { %3525 = vmatprep.subr.bf16.mxu1 %v3457_v59 }
 0xd24   :  { %3485 = vmatpush1.bf16.msra.mxu0 %v3454_v43 }
 0xd25   :  { %3486 = vmatprep.subr.bf16.mxu0 %v3460_v55 }
 0xd26   :  { %3526 = vmatpush1.bf16.msra.mxu1 %v3456_v5 }
 0xd27   :  { %3527 = vmatprep.subr.bf16.mxu1 %v3462_v6 }
 0xd28   :  { %3487 = vmatpush1.bf16.msra.mxu0 %v3459_v62 }
 0xd29   :  { %3488 = vmatprep.subr.bf16.mxu0 %v3465_v4 }
 0xd2a   :  { %3528 = vmatpush1.bf16.msra.mxu1 %v3461_v10 }
 0xd2b   :  { %3529 = vmatprep.subr.bf16.mxu1 %v3467_v11 }
 0xd2c   :  { %3489 = vmatpush1.bf16.msra.mxu0 %v3464_v7 }
 0xd2d   :  { %3490 = vmatprep.subr.bf16.mxu0 %v3470_v8 }
 0xd2e   :  { %3530 = vmatpush1.bf16.msra.mxu1 %v3466_v13 }
 0xd2f   :  { %3531 = vmatprep.subr.bf16.mxu1 %v3472_v14 }
 0xd30   :  { %3491 = vmatpush1.bf16.msra.mxu0 %v3469_v12 }
 0xd31   :  { %3556 = vmatprep.subr.bf16.mxu0 %v6410_v0 }
 0xd32   :  { %3532 = vmatpush1.bf16.msra.mxu1 %v3471_v16 }
 0xd33   :  { %3507 = vmatmul.mubr.bf16.vlgmr.msra.gmra.mrb[36].mxu0 %v7194_v2 }
 0xd34   :  { %3557 = vmatpush1.bf16.msra.mxu0 %v3433_v15  ;;  %5642 = vmatprep.mubr.msk.bf16.mxu0 %vm2639_vm6, %v7192_v1 }
 0xd35   :  { %3558 = vmatprep.subr.bf16.mxu0 %v6410_v0  ;;  %3548 = vmatmul.mubr.bf16.vlgmr.msra.gmra.mrb[36].mxu1 %v7194_v2 }
 0xd38   :  { %3559 = vmatpush1.bf16.msra.mxu0 %v3438_v17 }
 0xd39   :  { %3560 = vmatprep.subr.bf16.mxu0 %v6410_v0 }
 0xd3c   :  { %3561 = vmatpush1.bf16.msra.mxu0 %v3443_v18 }
 0xd3d   :  { %3562 = vmatprep.subr.bf16.mxu0 %v6410_v0 }
 0xd40   :  { %3563 = vmatpush1.bf16.msra.mxu0 %v3448_v20 }
 0xd41   :  { %3564 = vmatprep.subr.bf16.mxu0 %v6410_v0 }
 0xd44   :  { %3565 = vmatpush1.bf16.msra.mxu0 %v3453_v21 }
 0xd45   :  { %3566 = vmatprep.subr.bf16.mxu0 %v6410_v0 }
 0xd48   :  { %3567 = vmatpush1.bf16.msra.mxu0 %v3458_v22 }
 0xd49   :  { %3568 = vmatprep.subr.bf16.mxu0 %v6410_v0 }
 0xd4c   :  { %3569 = vmatpush1.bf16.msra.mxu0 %v3463_v23 }
 0xd4d   :  { %3570 = vmatprep.subr.bf16.mxu0 %v6410_v0 }
 0xd50   :  { %3571 = vmatpush1.bf16.msra.mxu0 %v3468_v24 }
 0xd51   :  { %3572 = vmatprep.subr.bf16.mxu0 %v6410_v0 }
 0xd54   :  { %3573 = vmatpush1.bf16.msra.mxu0 %v3473_v9 }
 0xd57   :  { %3589 = vmatmul.mubr.bf16.vlgmr.msra.gmra.mrb[40].mxu0 %v7194_v2 }
 0xe06   :  { %v3508_v26 = vpop.f32.mrb[36].mxu0 }
 0xe07   :  { %v3510_v27 = vpop.f32.mrb[37].mxu0  ;;  %v3622_v46 = vadd.f32 %v3600_v38, %v3508_v26 }
 0xe08   :  { %v3512_v28 = vpop.f32.mrb[38].mxu0  ;;  %v3549_v30 = vpop.f32.mrb[36].mxu1  ;;  %v3623_v48 = vadd.f32 %v3604_v39, %v3510_v27 }
 0xe09   :  { %v3513_v29 = vpop.f32.mrb[39].mxu0  ;;  %v3551_v32 = vpop.f32.mrb[37].mxu1  ;;  %v3624_v41 = vadd.f32 %v3608_v36, %v3549_v30  ;;  %v3627_v54 = vsel %vm2796_vm7, %v3622_v46, -inf }
 0xe0a   :  { %v3553_v33 = vpop.f32.mrb[38].mxu1  ;;  %v3625_v42 = vadd.f32 %v3612_v19, %v3551_v32  ;;  %v3628_v62 = vsel %vm2796_vm7, %v3623_v48, -inf }
 0xe0b   :  { %v3554_v34 = vpop.f32.mrb[39].mxu1  ;;  %v3629_v49 = vsel %vm2796_vm7, %v3624_v41, -inf }
 0xe0c   :  { %v3630_v50 = vsel %vm2796_vm7, %v3625_v42, -inf }
 0xe0d   :  { %v3634_v59 = vmax.f32 %v3629_v49, %v3630_v50 }
 0xe2a   :  { %v3590_v47 = vpop.f32.mrb[40].mxu0 }
 0xe2b   :  { %v3626_v52 = vadd.f32 %v3616_v44, %v3590_v47  ;;  %v3592_v53 = vpop.f32.mrb[41].mxu0 }
 0xe2c   :  { %v3593_v45 = vpop.f32.mrb[42].mxu0 }
 0xe2d   :  { %v3631_v43 = vsel %vm2796_vm7, %v3626_v52, -inf  ;;  %v3594_v55 = vpop.f32.mrb[43].mxu0 }
 0xe2e   :  { %v3632_v58 = vmax.f32 %v3627_v54, %v3631_v43 }
 0xe30   :  { %v3633_v4 = vmax.f32 %v3632_v58, %v3628_v62 }
 0xe32   :  { %v3635_v5 = vmax.f32 %v3633_v4, %v3634_v59 }
 0xe34   :  { %3636 = vmax.xlane.f32.xlu0 %v3635_v5 }
 0xec1   :  { %v3637_v6 = vpop.xlane.xlu0 %3636 }
 0xec2   :  { %v7378_v7 = vmax.f32 %v7330_v51, %v3637_v6 }
 0xec4   :  { %v3639_v8 = vsub.f32 %v3622_v46, %v7378_v7  ;;  %v3640_v10 = vsub.f32 %v3623_v48, %v7378_v7  ;;  %v3641_v11 = vsub.f32 %v3624_v41, %v7378_v7  ;;  %v3642_v12 = vsub.f32 %v3625_v42, %v7378_v7 }
 0xec5   :  { %v3643_v13 = vsub.f32 %v3626_v52, %v7378_v7  ;;  %v3654_v41 = vsub.f32 %v7330_v51, %v7378_v7 }
 0xec6   :  { %v3644_v14 = vmul.f32 1.442695, %v3639_v8  ;;  %v3646_v15 = vmul.f32 1.442695, %v3640_v10  ;;  %v3648_v16 = vmul.f32 1.442695, %v3641_v11 }
 0xec7   :  { %v3650_v17 = vmul.f32 1.442695, %v3642_v12  ;;  %v3652_v18 = vmul.f32 1.442695, %v3643_v13  ;;  %v3655_v42 = vmul.f32 1.442695, %v3654_v41 }
 0xec8   :  { %6104 = vpow2.f32 %v3644_v14 }
 0xec9   :  { %6106 = vpow2.f32 %v3646_v15 }
 0xeca   :  { %6108 = vpow2.f32 %v3648_v16 }
 0xecb   :  { %6110 = vpow2.f32 %v3650_v17 }
 0xecc   :  { %6112 = vpow2.f32 %v3652_v18 }
 0xecd   :  { %6114 = vpow2.f32 %v3655_v42 }
 0xed2   :  { %v6105_v20 = vpop.eup %6104 }
 0xed3   :  { %v6107_v21 = vpop.eup %6106  ;;  %v3658_v22 = vsel %vm2796_vm7, %v6105_v20, 0.0 }
 0xed4   :  { %v6109_v23 = vpop.eup %6108  ;;  %v3659_v24 = vsel %vm2796_vm7, %v6107_v21, 0.0  ;;  %v3675_v9 = vcombine.low %v6105_v20, %v6107_v21 }
 0xed5   :  { %v6111_v26 = vpop.eup %6110  ;;  %v3660_v27 = vadd.f32 %v3659_v24, %v3658_v22  ;;  %v3661_v29 = vsel %vm2796_vm7, %v6109_v23, 0.0 }
 0xed6   :  { %v6113_v28 = vpop.eup %6112  ;;  %v3676_v30 = vcombine.low %v6109_v23, %v6111_v26  ;;  %v3683_v32 = vrot.slane %v3675_v9, %v7241_v40  ;;  %v3663_v34 = vsel %vm2796_vm7, %v6111_v26, 0.0 }
 0xed7   :  { %v3662_v33 = vadd.f32 %v3661_v29, %v3660_v27  ;;  %5643 = vst.sshfl [vmem:[#allocation5 + $0x26] sm:$0x3 pattern:$0x76325410] %v6113_v28  ;;  %v3665_v19 = vsel %vm2796_vm7, %v6113_v28, 0.0  ;;  %v6115_v44 = vpop.eup %6114 }
 0xed8   :  { %v3690_v35 = vrot.slane %v3676_v30, %v7241_v40  ;;  %v3657_v46 = vmul.f32 %v6115_v44, %v7347_v31 }
 0xed9   :  { %v3664_v36 = vadd.f32 %v3663_v34, %v3662_v33 }
 0xeda   :  { %v3691_v38 = vcombine.low %v3683_v32, %v3690_v35 }
 0xedb   :  { %v3666_v39 = vadd.f32 %v3665_v19, %v3664_v36 }
 0xedc   :  { %3701 = vst [vmem:[#allocation5 + $0x1e] sm:$0xff] %v3691_v38 }
 0xedd   :  { %3667 = vadd.xlane.f32.xlu0 %v3666_v39 }
 0xf6a   :  { %v3668_v47 = vpop.xlane.xlu0 %3667 }
 0xf6b   :  { %v7395_v48 = vadd.f32 %v3668_v47, %v3657_v46 }
 0xf6c   :  { %6386 = dma.done.wait [#allocation7 + $0x4], 5760 }
 0xf6d   :  { %6387 = vsyncadd [#allocation7 + $0x4], 4294961536  ;;  %5644 = vmatprep.mubr.msk.bf16.mxu1 %vm2639_vm6, %v7192_v1  ;;  %5645 = vmatprep.mubr.msk.bf16.mxu0 %vm2639_vm6, %v7192_v1  ;;  %v3707_v49 = vld [vmem:[#allocation6 + $0x5a8] sm:$0xff]  ;;  %v3706_v50 = vld [vmem:[#allocation6 + $0x5a0] sm:$0xff] }
 0xf6e   :  { %v3712_v52 = vld [vmem:[#allocation6 + $0x5d0] sm:$0xff]  ;;  %3751 = vmatprep.subr.bf16.mxu1 %v3707_v49  ;;  %v3711_v53 = vld [vmem:[#allocation6 + $0x5c8] sm:$0xff]  ;;  %v3717_v45 = vld [vmem:[#allocation6 + $0x5f8] sm:$0xff] }
 0xf6f   :  { %3752 = vmatpush1.bf16.msra.mxu1 %v3706_v50  ;;  %v3709_v31 = vld [vmem:[#allocation6 + $0x5b8] sm:$0xff]  ;;  %v3708_v54 = vld [vmem:[#allocation6 + $0x5b0] sm:$0xff]  ;;  %v3714_v55 = vld [vmem:[#allocation6 + $0x5e0] sm:$0xff] }
 0xf70   :  { %3753 = vmatprep.subr.bf16.mxu1 %v3712_v52  ;;  %v3716_v43 = vld [vmem:[#allocation6 + $0x5f0] sm:$0xff]  ;;  %3792 = vmatprep.subr.bf16.mxu0 %v3709_v31  ;;  %v3722_v58 = vld [vmem:[#allocation6 + $0x620] sm:$0xff]  ;;  %v3713_v59 = vld [vmem:[#allocation6 + $0x5d8] sm:$0xff] }
 0xf71   :  { %3793 = vmatpush1.bf16.msra.mxu0 %v3708_v54  ;;  %v3719_v62 = vld [vmem:[#allocation6 + $0x608] sm:$0xff]  ;;  %v3721_v4 = vld [vmem:[#allocation6 + $0x618] sm:$0xff]  ;;  %v3718_v6 = vld [vmem:[#allocation6 + $0x600] sm:$0xff] }
 0xf72   :  { %3794 = vmatprep.subr.bf16.mxu0 %v3714_v55  ;;  %v3727_v5 = vld [vmem:[#allocation6 + $0x648] sm:$0xff]  ;;  %v3724_v8 = vld [vmem:[#allocation6 + $0x630] sm:$0xff]  ;;  %v3726_v10 = vld [vmem:[#allocation6 + $0x640] sm:$0xff] }
 0xf73   :  { %3754 = vmatpush1.bf16.msra.mxu1 %v3711_v53  ;;  %v3732_v11 = vld [vmem:[#allocation6 + $0x670] sm:$0xff]  ;;  %v3723_v12 = vld [vmem:[#allocation6 + $0x628] sm:$0xff]  ;;  %v3729_v13 = vld [vmem:[#allocation6 + $0x658] sm:$0xff] }
 0xf74   :  { %3755 = vmatprep.subr.bf16.mxu1 %v3717_v45  ;;  %v3731_v14 = vld [vmem:[#allocation6 + $0x668] sm:$0xff]  ;;  %v3737_v15 = vld [vmem:[#allocation6 + $0x698] sm:$0xff]  ;;  %v3728_v16 = vld [vmem:[#allocation6 + $0x650] sm:$0xff] }
 0xf75   :  { %3795 = vmatpush1.bf16.msra.mxu0 %v3713_v59  ;;  %v3734_v17 = vld [vmem:[#allocation6 + $0x680] sm:$0xff]  ;;  %v3736_v18 = vld [vmem:[#allocation6 + $0x690] sm:$0xff]  ;;  %v3733_v21 = vld [vmem:[#allocation6 + $0x678] sm:$0xff] }
 0xf76   :  { %3796 = vmatprep.subr.bf16.mxu0 %v3719_v62  ;;  %v3742_v20 = vld [vmem:[#allocation6 + $0x6c0] sm:$0xff]  ;;  %v3739_v22 = vld [vmem:[#allocation6 + $0x6a8] sm:$0xff]  ;;  %v3741_v23 = vld [vmem:[#allocation6 + $0x6b8] sm:$0xff] }
 0xf77   :  { %3756 = vmatpush1.bf16.msra.mxu1 %v3716_v43  ;;  %v3747_v24 = vld [vmem:[#allocation6 + $0x6e8] sm:$0xff]  ;;  %v3738_v9 = vld [vmem:[#allocation6 + $0x6a0] sm:$0xff]  ;;  %v3744_v26 = vld [vmem:[#allocation6 + $0x6d0] sm:$0xff] }
 0xf78   :  { %3757 = vmatprep.subr.bf16.mxu1 %v3722_v58  ;;  %v3746_v27 = vld [vmem:[#allocation6 + $0x6e0] sm:$0xff]  ;;  %v3743_v28 = vld [vmem:[#allocation6 + $0x6c8] sm:$0xff]  ;;  %v3749_v29 = vld [vmem:[#allocation6 + $0x6f8] sm:$0xff] }
 0xf79   :  { %3797 = vmatpush1.bf16.msra.mxu0 %v3718_v6  ;;  %v3710_v30 = vld [vmem:[#allocation6 + $0x5c0] sm:$0xff]  ;;  %v3748_v32 = vld [vmem:[#allocation6 + $0x6f0] sm:$0xff]  ;;  %v3715_v33 = vld [vmem:[#allocation6 + $0x5e8] sm:$0xff] }
 0xf7a   :  { %3798 = vmatprep.subr.bf16.mxu0 %v3724_v8  ;;  %v3720_v34 = vld [vmem:[#allocation6 + $0x610] sm:$0xff]  ;;  %v3725_v35 = vld [vmem:[#allocation6 + $0x638] sm:$0xff]  ;;  %v3730_v36 = vld [vmem:[#allocation6 + $0x660] sm:$0xff] }
 0xf7b   :  { %3758 = vmatpush1.bf16.msra.mxu1 %v3721_v4  ;;  %v3735_v19 = vld [vmem:[#allocation6 + $0x688] sm:$0xff]  ;;  %v3740_v38 = vld [vmem:[#allocation6 + $0x6b0] sm:$0xff]  ;;  %v3745_v39 = vld [vmem:[#allocation6 + $0x6d8] sm:$0xff] }
 0xf7c   :  { %3759 = vmatprep.subr.bf16.mxu1 %v3727_v5  ;;  %v3750_v41 = vld [vmem:[#allocation6 + $0x700] sm:$0xff]  ;;  %v3705_v45 = vld [vmem:[#allocation19 + $0x14] sm:$0x1f] }
 0xf7d   :  { %3799 = vmatpush1.bf16.msra.mxu0 %v3723_v12  ;;  %v3885_v31 = vrot.slane %v3705_v45, %v7215_v56  ;;  %v3889_v54 = vrot.slane %v3705_v45, %v7218_v57  ;;  %v3877_v43 = vrot.slane %v3705_v45, %v7008_v61  ;;  %v3881_v55 = vrot.slane %v3705_v45, %v7011_v63 }
 0xf7e   :  { %3800 = vmatprep.subr.bf16.mxu0 %v3729_v13  ;;  %v3893_v62 = vrot.slane %v3705_v45, %v7223_v3 }
 0xf7f   :  { %3760 = vmatpush1.bf16.msra.mxu1 %v3726_v10 }
 0xf80   :  { %3761 = vmatprep.subr.bf16.mxu1 %v3732_v11 }
 0xf81   :  { %3801 = vmatpush1.bf16.msra.mxu0 %v3728_v16 }
 0xf82   :  { %3802 = vmatprep.subr.bf16.mxu0 %v3734_v17 }
 0xf83   :  { %3762 = vmatpush1.bf16.msra.mxu1 %v3731_v14 }
 0xf84   :  { %3763 = vmatprep.subr.bf16.mxu1 %v3737_v15 }
 0xf85   :  { %3803 = vmatpush1.bf16.msra.mxu0 %v3733_v21 }
 0xf86   :  { %3804 = vmatprep.subr.bf16.mxu0 %v3739_v22 }
 0xf87   :  { %3764 = vmatpush1.bf16.msra.mxu1 %v3736_v18 }
 0xf88   :  { %3765 = vmatprep.subr.bf16.mxu1 %v3742_v20 }
 0xf89   :  { %3805 = vmatpush1.bf16.msra.mxu0 %v3738_v9 }
 0xf8a   :  { %3806 = vmatprep.subr.bf16.mxu0 %v3744_v26 }
 0xf8b   :  { %3766 = vmatpush1.bf16.msra.mxu1 %v3741_v23 }
 0xf8c   :  { %3767 = vmatprep.subr.bf16.mxu1 %v3747_v24 }
 0xf8d   :  { %3807 = vmatpush1.bf16.msra.mxu0 %v3743_v28 }
 0xf8e   :  { %3808 = vmatprep.subr.bf16.mxu0 %v3749_v29 }
 0xf8f   :  { %3768 = vmatpush1.bf16.msra.mxu1 %v3746_v27 }
 0xf90   :  { %3833 = vmatprep.subr.bf16.mxu1 %v6410_v0 }
 0xf91   :  { %3809 = vmatpush1.bf16.msra.mxu0 %v3748_v32 }
 0xf92   :  { %3784 = vmatmul.mubr.bf16.vlgmr.msra.gmra.mrb[40].mxu1 %v7194_v2 }
 0xf93   :  { %3834 = vmatpush1.bf16.msra.mxu1 %v3710_v30  ;;  %5646 = vmatprep.mubr.msk.bf16.mxu1 %vm2639_vm6, %v7192_v1 }
 0xf94   :  { %3835 = vmatprep.subr.bf16.mxu1 %v6410_v0  ;;  %3825 = vmatmul.mubr.bf16.vlgmr.msra.gmra.mrb[44].mxu0 %v7194_v2 }
 0xf97   :  { %3836 = vmatpush1.bf16.msra.mxu1 %v3715_v33 }
 0xf98   :  { %3837 = vmatprep.subr.bf16.mxu1 %v6410_v0 }
 0xf9b   :  { %3838 = vmatpush1.bf16.msra.mxu1 %v3720_v34 }
 0xf9c   :  { %3839 = vmatprep.subr.bf16.mxu1 %v6410_v0 }
 0xf9f   :  { %3840 = vmatpush1.bf16.msra.mxu1 %v3725_v35 }
 0xfa0   :  { %3841 = vmatprep.subr.bf16.mxu1 %v6410_v0 }
 0xfa3   :  { %3842 = vmatpush1.bf16.msra.mxu1 %v3730_v36 }
 0xfa4   :  { %3843 = vmatprep.subr.bf16.mxu1 %v6410_v0 }
 0xfa7   :  { %3844 = vmatpush1.bf16.msra.mxu1 %v3735_v19 }
 0xfa8   :  { %3845 = vmatprep.subr.bf16.mxu1 %v6410_v0 }
 0xfab   :  { %3846 = vmatpush1.bf16.msra.mxu1 %v3740_v38 }
 0xfac   :  { %3847 = vmatprep.subr.bf16.mxu1 %v6410_v0 }
 0xfaf   :  { %3848 = vmatpush1.bf16.msra.mxu1 %v3745_v39 }
 0xfb0   :  { %3849 = vmatprep.subr.bf16.mxu1 %v6410_v0 }
 0xfb3   :  { %3850 = vmatpush1.bf16.msra.mxu1 %v3750_v41 }
 0xfb6   :  { %3866 = vmatmul.mubr.bf16.vlgmr.msra.gmra.mrb[44].mxu1 %v7194_v2 }
0x1065   :  { %v3785_v42 = vpop.f32.mrb[40].mxu1 }
0x1066   :  { %v3787_v44 = vpop.f32.mrb[41].mxu1  ;;  %v3899_v4 = vadd.f32 %v3877_v43, %v3785_v42 }
0x1067   :  { %v3789_v46 = vpop.f32.mrb[42].mxu1  ;;  %v3826_v49 = vpop.f32.mrb[44].mxu0  ;;  %v3900_v6 = vadd.f32 %v3881_v55, %v3787_v44 }
0x1068   :  { %v3790_v47 = vpop.f32.mrb[43].mxu1  ;;  %v3828_v50 = vpop.f32.mrb[45].mxu0  ;;  %v3901_v58 = vadd.f32 %v3885_v31, %v3826_v49  ;;  %v3904_v14 = vsel %vm2796_vm7, %v3899_v4, -inf }
0x1069   :  { %v3830_v52 = vpop.f32.mrb[46].mxu0  ;;  %v3902_v59 = vadd.f32 %v3889_v54, %v3828_v50  ;;  %v3905_v20 = vsel %vm2796_vm7, %v3900_v6, -inf }
0x106a   :  { %v3831_v53 = vpop.f32.mrb[47].mxu0  ;;  %v3906_v8 = vsel %vm2796_vm7, %v3901_v58, -inf }
0x106b   :  { %v3907_v10 = vsel %vm2796_vm7, %v3902_v59, -inf }
0x106c   :  { %v3911_v18 = vmax.f32 %v3906_v8, %v3907_v10 }
0x1089   :  { %v3867_v5 = vpop.f32.mrb[44].mxu1 }
0x108a   :  { %v3903_v11 = vadd.f32 %v3893_v62, %v3867_v5  ;;  %v3869_v12 = vpop.f32.mrb[45].mxu1 }
0x108b   :  { %v3870_v13 = vpop.f32.mrb[46].mxu1 }
0x108c   :  { %v3908_v15 = vsel %vm2796_vm7, %v3903_v11, -inf  ;;  %v3871_v16 = vpop.f32.mrb[47].mxu1 }
0x108d   :  { %v3909_v17 = vmax.f32 %v3904_v14, %v3908_v15 }
0x108f   :  { %v3910_v21 = vmax.f32 %v3909_v17, %v3905_v20 }
0x1091   :  { %v3912_v22 = vmax.f32 %v3910_v21, %v3911_v18 }
0x1093   :  { %3913 = vmax.xlane.f32.xlu0 %v3912_v22 }
0x1120   :  { %v3914_v23 = vpop.xlane.xlu0 %3913 }
0x1121   :  { %v7426_v24 = vmax.f32 %v7378_v7, %v3914_v23 }
0x1123   :  { %v3916_v9 = vsub.f32 %v3899_v4, %v7426_v24  ;;  %v3917_v26 = vsub.f32 %v3900_v6, %v7426_v24  ;;  %v3918_v27 = vsub.f32 %v3901_v58, %v7426_v24  ;;  %v3919_v28 = vsub.f32 %v3902_v59, %v7426_v24 }
0x1124   :  { %v3920_v29 = vsub.f32 %v3903_v11, %v7426_v24  ;;  %v3931_v59 = vsub.f32 %v7378_v7, %v7426_v24 }
0x1125   :  { %v3921_v30 = vmul.f32 1.442695, %v3916_v9  ;;  %v3923_v32 = vmul.f32 1.442695, %v3917_v26  ;;  %v3925_v33 = vmul.f32 1.442695, %v3918_v27 }
0x1126   :  { %v3927_v34 = vmul.f32 1.442695, %v3919_v28  ;;  %v3929_v35 = vmul.f32 1.442695, %v3920_v29  ;;  %v3932_v62 = vmul.f32 1.442695, %v3931_v59 }
0x1127   :  { %6116 = vpow2.f32 %v3921_v30 }
0x1128   :  { %6118 = vpow2.f32 %v3923_v32 }
0x1129   :  { %6120 = vpow2.f32 %v3925_v33 }
0x112a   :  { %6122 = vpow2.f32 %v3927_v34 }
0x112b   :  { %6124 = vpow2.f32 %v3929_v35 }
0x112c   :  { %6126 = vpow2.f32 %v3932_v62 }
0x1131   :  { %v6117_v36 = vpop.eup %6116 }
0x1132   :  { %v6119_v19 = vpop.eup %6118  ;;  %v3935_v38 = vsel %vm2796_vm7, %v6117_v36, 0.0 }
0x1133   :  { %v6121_v39 = vpop.eup %6120  ;;  %v3936_v41 = vsel %vm2796_vm7, %v6119_v19, 0.0  ;;  %v3952_v42 = vcombine.low %v6117_v36, %v6119_v19 }
0x1134   :  { %v6123_v44 = vpop.eup %6122  ;;  %v3937_v46 = vadd.f32 %v3936_v41, %v3935_v38  ;;  %v3938_v49 = vsel %vm2796_vm7, %v6121_v39, 0.0 }
0x1135   :  { %v6125_v47 = vpop.eup %6124  ;;  %v3953_v50 = vcombine.low %v6121_v39, %v6123_v44  ;;  %v3960_v52 = vrot.slane %v3952_v42, %v7241_v40  ;;  %v3940_v45 = vsel %vm2796_vm7, %v6123_v44, 0.0 }
0x1136   :  { %v3939_v53 = vadd.f32 %v3938_v49, %v3937_v46  ;;  %5647 = vst.sshfl [vmem:[#allocation5 + $0x30] sm:$0x3 pattern:$0x76325410] %v6125_v47  ;;  %v3942_v43 = vsel %vm2796_vm7, %v6125_v47, 0.0  ;;  %v6127_v4 = vpop.eup %6126 }
0x1137   :  { %v3967_v31 = vrot.slane %v3953_v50, %v7241_v40  ;;  %v3934_v5 = vmul.f32 %v6127_v4, %v7395_v48 }
0x1138   :  { %v3941_v54 = vadd.f32 %v3940_v45, %v3939_v53 }
0x1139   :  { %v3968_v55 = vcombine.low %v3960_v52, %v3967_v31 }
0x113a   :  { %v3943_v58 = vadd.f32 %v3942_v43, %v3941_v54 }
0x113b   :  { %3978 = vst [vmem:[#allocation5 + $0x28] sm:$0xff] %v3968_v55 }
0x113c   :  { %3944 = vadd.xlane.f32.xlu0 %v3943_v58 }
0x11c9   :  { %v3945_v6 = vpop.xlane.xlu0 %3944 }
0x11ca   :  { %v7443_v8 = vadd.f32 %v3945_v6, %v3934_v5 }
0x11cb   :  { %6388 = dma.done.wait [#allocation7 + $0x5], 5760 }
0x11cc   :  { %6389 = vsyncadd [#allocation7 + $0x5], 4294961536  ;;  %5648 = vmatprep.mubr.msk.bf16.mxu0 %vm2639_vm6, %v7192_v1  ;;  %5649 = vmatprep.mubr.msk.bf16.mxu1 %vm2639_vm6, %v7192_v1  ;;  %v3984_v10 = vld [vmem:[#allocation6 + $0x710] sm:$0xff]  ;;  %v3983_v11 = vld [vmem:[#allocation6 + $0x708] sm:$0xff] }
0x11cd   :  { %v3989_v12 = vld [vmem:[#allocation6 + $0x738] sm:$0xff]  ;;  %4028 = vmatprep.subr.bf16.mxu0 %v3984_v10  ;;  %v3988_v13 = vld [vmem:[#allocation6 + $0x730] sm:$0xff]  ;;  %v3994_v14 = vld [vmem:[#allocation6 + $0x760] sm:$0xff] }
0x11ce   :  { %4029 = vmatpush1.bf16.msra.mxu0 %v3983_v11  ;;  %v3986_v48 = vld [vmem:[#allocation6 + $0x720] sm:$0xff]  ;;  %v3985_v15 = vld [vmem:[#allocation6 + $0x718] sm:$0xff]  ;;  %v3991_v17 = vld [vmem:[#allocation6 + $0x748] sm:$0xff] }
0x11cf   :  { %4030 = vmatprep.subr.bf16.mxu0 %v3989_v12  ;;  %v3993_v16 = vld [vmem:[#allocation6 + $0x758] sm:$0xff]  ;;  %4069 = vmatprep.subr.bf16.mxu1 %v3986_v48  ;;  %v3999_v18 = vld [vmem:[#allocation6 + $0x788] sm:$0xff]  ;;  %v3990_v20 = vld [vmem:[#allocation6 + $0x740] sm:$0xff] }
0x11d0   :  { %4070 = vmatpush1.bf16.msra.mxu1 %v3985_v15  ;;  %v3996_v21 = vld [vmem:[#allocation6 + $0x770] sm:$0xff]  ;;  %v3998_v22 = vld [vmem:[#allocation6 + $0x780] sm:$0xff]  ;;  %v3995_v9 = vld [vmem:[#allocation6 + $0x768] sm:$0xff] }
0x11d1   :  { %4071 = vmatprep.subr.bf16.mxu1 %v3991_v17  ;;  %v4004_v23 = vld [vmem:[#allocation6 + $0x7b0] sm:$0xff]  ;;  %v4001_v26 = vld [vmem:[#allocation6 + $0x798] sm:$0xff]  ;;  %v4003_v27 = vld [vmem:[#allocation6 + $0x7a8] sm:$0xff] }
0x11d2   :  { %4031 = vmatpush1.bf16.msra.mxu0 %v3988_v13  ;;  %v4009_v28 = vld [vmem:[#allocation6 + $0x7d8] sm:$0xff]  ;;  %v4000_v29 = vld [vmem:[#allocation6 + $0x790] sm:$0xff]  ;;  %v4006_v30 = vld [vmem:[#allocation6 + $0x7c0] sm:$0xff] }
0x11d3   :  { %4032 = vmatprep.subr.bf16.mxu0 %v3994_v14  ;;  %v4008_v32 = vld [vmem:[#allocation6 + $0x7d0] sm:$0xff]  ;;  %v4014_v33 = vld [vmem:[#allocation6 + $0x800] sm:$0xff]  ;;  %v4005_v34 = vld [vmem:[#allocation6 + $0x7b8] sm:$0xff] }
0x11d4   :  { %4072 = vmatpush1.bf16.msra.mxu1 %v3990_v20  ;;  %v4011_v35 = vld [vmem:[#allocation6 + $0x7e8] sm:$0xff]  ;;  %v4013_v36 = vld [vmem:[#allocation6 + $0x7f8] sm:$0xff]  ;;  %v4010_v38 = vld [vmem:[#allocation6 + $0x7e0] sm:$0xff] }
0x11d5   :  { %4073 = vmatprep.subr.bf16.mxu1 %v3996_v21  ;;  %v4019_v19 = vld [vmem:[#allocation6 + $0x828] sm:$0xff]  ;;  %v4016_v39 = vld [vmem:[#allocation6 + $0x810] sm:$0xff]  ;;  %v4018_v41 = vld [vmem:[#allocation6 + $0x820] sm:$0xff] }
0x11d6   :  { %4033 = vmatpush1.bf16.msra.mxu0 %v3993_v16  ;;  %v4024_v42 = vld [vmem:[#allocation6 + $0x850] sm:$0xff]  ;;  %v4015_v44 = vld [vmem:[#allocation6 + $0x808] sm:$0xff]  ;;  %v4021_v46 = vld [vmem:[#allocation6 + $0x838] sm:$0xff] }
0x11d7   :  { %4034 = vmatprep.subr.bf16.mxu0 %v3999_v18  ;;  %v4023_v47 = vld [vmem:[#allocation6 + $0x848] sm:$0xff]  ;;  %v4020_v49 = vld [vmem:[#allocation6 + $0x830] sm:$0xff]  ;;  %v4026_v50 = vld [vmem:[#allocation6 + $0x860] sm:$0xff] }
0x11d8   :  { %4074 = vmatpush1.bf16.msra.mxu1 %v3995_v9  ;;  %v3987_v52 = vld [vmem:[#allocation6 + $0x728] sm:$0xff]  ;;  %v4025_v53 = vld [vmem:[#allocation6 + $0x858] sm:$0xff]  ;;  %v3992_v45 = vld [vmem:[#allocation6 + $0x750] sm:$0xff] }
0x11d9   :  { %4075 = vmatprep.subr.bf16.mxu1 %v4001_v26  ;;  %v3997_v31 = vld [vmem:[#allocation6 + $0x778] sm:$0xff]  ;;  %v4002_v54 = vld [vmem:[#allocation6 + $0x7a0] sm:$0xff]  ;;  %v4007_v43 = vld [vmem:[#allocation6 + $0x7c8] sm:$0xff] }
0x11da   :  { %4035 = vmatpush1.bf16.msra.mxu0 %v3998_v22  ;;  %v4012_v55 = vld [vmem:[#allocation6 + $0x7f0] sm:$0xff]  ;;  %v4017_v58 = vld [vmem:[#allocation6 + $0x818] sm:$0xff]  ;;  %v4022_v59 = vld [vmem:[#allocation6 + $0x840] sm:$0xff] }
0x11db   :  { %4036 = vmatprep.subr.bf16.mxu0 %v4004_v23  ;;  %v4027_v62 = vld [vmem:[#allocation6 + $0x868] sm:$0xff]  ;;  %v3982_v48 = vld [vmem:[#allocation19 + $0x19] sm:$0x1f] }
0x11dc   :  { %4076 = vmatpush1.bf16.msra.mxu1 %v4000_v29  ;;  %v4162_v15 = vrot.slane %v3982_v48, %v7215_v56  ;;  %v4166_v16 = vrot.slane %v3982_v48, %v7218_v57  ;;  %v4154_v17 = vrot.slane %v3982_v48, %v7008_v61  ;;  %v4158_v18 = vrot.slane %v3982_v48, %v7011_v63 }
0x11dd   :  { %4077 = vmatprep.subr.bf16.mxu1 %v4006_v30  ;;  %v4170_v22 = vrot.slane %v3982_v48, %v7223_v3 }
0x11de   :  { %4037 = vmatpush1.bf16.msra.mxu0 %v4003_v27 }
0x11df   :  { %4038 = vmatprep.subr.bf16.mxu0 %v4009_v28 }
0x11e0   :  { %4078 = vmatpush1.bf16.msra.mxu1 %v4005_v34 }
0x11e1   :  { %4079 = vmatprep.subr.bf16.mxu1 %v4011_v35 }
0x11e2   :  { %4039 = vmatpush1.bf16.msra.mxu0 %v4008_v32 }
0x11e3   :  { %4040 = vmatprep.subr.bf16.mxu0 %v4014_v33 }
0x11e4   :  { %4080 = vmatpush1.bf16.msra.mxu1 %v4010_v38 }
0x11e5   :  { %4081 = vmatprep.subr.bf16.mxu1 %v4016_v39 }
0x11e6   :  { %4041 = vmatpush1.bf16.msra.mxu0 %v4013_v36 }
0x11e7   :  { %4042 = vmatprep.subr.bf16.mxu0 %v4019_v19 }
0x11e8   :  { %4082 = vmatpush1.bf16.msra.mxu1 %v4015_v44 }
0x11e9   :  { %4083 = vmatprep.subr.bf16.mxu1 %v4021_v46 }
0x11ea   :  { %4043 = vmatpush1.bf16.msra.mxu0 %v4018_v41 }
0x11eb   :  { %4044 = vmatprep.subr.bf16.mxu0 %v4024_v42 }
0x11ec   :  { %4084 = vmatpush1.bf16.msra.mxu1 %v4020_v49 }
0x11ed   :  { %4085 = vmatprep.subr.bf16.mxu1 %v4026_v50 }
0x11ee   :  { %4045 = vmatpush1.bf16.msra.mxu0 %v4023_v47 }
0x11ef   :  { %4110 = vmatprep.subr.bf16.mxu0 %v6410_v0 }
0x11f0   :  { %4086 = vmatpush1.bf16.msra.mxu1 %v4025_v53 }
0x11f1   :  { %4061 = vmatmul.mubr.bf16.vlgmr.msra.gmra.mrb[48].mxu0 %v7194_v2 }
0x11f2   :  { %4111 = vmatpush1.bf16.msra.mxu0 %v3987_v52  ;;  %5650 = vmatprep.mubr.msk.bf16.mxu0 %vm2639_vm6, %v7192_v1 }
0x11f3   :  { %4112 = vmatprep.subr.bf16.mxu0 %v6410_v0  ;;  %4102 = vmatmul.mubr.bf16.vlgmr.msra.gmra.mrb[48].mxu1 %v7194_v2 }
0x11f6   :  { %4113 = vmatpush1.bf16.msra.mxu0 %v3992_v45 }
0x11f7   :  { %4114 = vmatprep.subr.bf16.mxu0 %v6410_v0 }
0x11fa   :  { %4115 = vmatpush1.bf16.msra.mxu0 %v3997_v31 }
0x11fb   :  { %4116 = vmatprep.subr.bf16.mxu0 %v6410_v0 }
0x11fe   :  { %4117 = vmatpush1.bf16.msra.mxu0 %v4002_v54 }
0x11ff   :  { %4118 = vmatprep.subr.bf16.mxu0 %v6410_v0 }
0x1202   :  { %4119 = vmatpush1.bf16.msra.mxu0 %v4007_v43 }
0x1203   :  { %4120 = vmatprep.subr.bf16.mxu0 %v6410_v0 }
0x1206   :  { %4121 = vmatpush1.bf16.msra.mxu0 %v4012_v55 }
0x1207   :  { %4122 = vmatprep.subr.bf16.mxu0 %v6410_v0 }
0x120a   :  { %4123 = vmatpush1.bf16.msra.mxu0 %v4017_v58 }
0x120b   :  { %4124 = vmatprep.subr.bf16.mxu0 %v6410_v0 }
0x120e   :  { %4125 = vmatpush1.bf16.msra.mxu0 %v4022_v59 }
0x120f   :  { %4126 = vmatprep.subr.bf16.mxu0 %v6410_v0 }
0x1212   :  { %4127 = vmatpush1.bf16.msra.mxu0 %v4027_v62 }
0x1215   :  { %4143 = vmatmul.mubr.bf16.vlgmr.msra.gmra.mrb[52].mxu0 %v7194_v2 }
0x12c4   :  { %v4062_v4 = vpop.f32.mrb[48].mxu0 }
0x12c5   :  { %v4064_v5 = vpop.f32.mrb[49].mxu0  ;;  %v4176_v23 = vadd.f32 %v4154_v17, %v4062_v4 }
0x12c6   :  { %v4066_v6 = vpop.f32.mrb[50].mxu0  ;;  %v4103_v11 = vpop.f32.mrb[48].mxu1  ;;  %v4177_v26 = vadd.f32 %v4158_v18, %v4064_v5 }
0x12c7   :  { %v4067_v10 = vpop.f32.mrb[51].mxu0  ;;  %v4105_v12 = vpop.f32.mrb[49].mxu1  ;;  %v4178_v20 = vadd.f32 %v4162_v15, %v4103_v11  ;;  %v4181_v33 = vsel %vm2796_vm7, %v4176_v23, -inf }
0x12c8   :  { %v4107_v13 = vpop.f32.mrb[50].mxu1  ;;  %v4179_v21 = vadd.f32 %v4166_v16, %v4105_v12  ;;  %v4182_v38 = vsel %vm2796_vm7, %v4177_v26, -inf }
0x12c9   :  { %v4108_v14 = vpop.f32.mrb[51].mxu1  ;;  %v4183_v27 = vsel %vm2796_vm7, %v4178_v20, -inf }
0x12ca   :  { %v4184_v28 = vsel %vm2796_vm7, %v4179_v21, -inf }
0x12cb   :  { %v4188_v19 = vmax.f32 %v4183_v27, %v4184_v28 }
0x12e8   :  { %v4144_v9 = vpop.f32.mrb[52].mxu0 }
0x12e9   :  { %v4180_v29 = vadd.f32 %v4170_v22, %v4144_v9  ;;  %v4146_v30 = vpop.f32.mrb[53].mxu0 }
0x12ea   :  { %v4147_v32 = vpop.f32.mrb[54].mxu0 }
0x12eb   :  { %v4185_v34 = vsel %vm2796_vm7, %v4180_v29, -inf  ;;  %v4148_v35 = vpop.f32.mrb[55].mxu0 }
0x12ec   :  { %v4186_v36 = vmax.f32 %v4181_v33, %v4185_v34 }
0x12ee   :  { %v4187_v39 = vmax.f32 %v4186_v36, %v4182_v38 }
0x12f0   :  { %v4189_v41 = vmax.f32 %v4187_v39, %v4188_v19 }
0x12f2   :  { %4190 = vmax.xlane.f32.xlu0 %v4189_v41 }
0x137f   :  { %v4191_v42 = vpop.xlane.xlu0 %4190 }
0x1380   :  { %v7474_v44 = vmax.f32 %v7426_v24, %v4191_v42 }
0x1382   :  { %v4193_v46 = vsub.f32 %v4176_v23, %v7474_v44  ;;  %v4194_v47 = vsub.f32 %v4177_v26, %v7474_v44  ;;  %v4195_v49 = vsub.f32 %v4178_v20, %v7474_v44  ;;  %v4196_v50 = vsub.f32 %v4179_v21, %v7474_v44 }
0x1383   :  { %v4197_v52 = vsub.f32 %v4180_v29, %v7474_v44  ;;  %v4208_v22 = vsub.f32 %v7426_v24, %v7474_v44 }
0x1384   :  { %v4198_v53 = vmul.f32 1.442695, %v4193_v46  ;;  %v4200_v45 = vmul.f32 1.442695, %v4194_v47  ;;  %v4202_v31 = vmul.f32 1.442695, %v4195_v49 }
0x1385   :  { %v4204_v54 = vmul.f32 1.442695, %v4196_v50  ;;  %v4206_v43 = vmul.f32 1.442695, %v4197_v52  ;;  %v4209_v23 = vmul.f32 1.442695, %v4208_v22 }
0x1386   :  { %6128 = vpow2.f32 %v4198_v53 }
0x1387   :  { %6130 = vpow2.f32 %v4200_v45 }
0x1388   :  { %6132 = vpow2.f32 %v4202_v31 }
0x1389   :  { %6134 = vpow2.f32 %v4204_v54 }
0x138a   :  { %6136 = vpow2.f32 %v4206_v43 }
0x138b   :  { %6138 = vpow2.f32 %v4209_v23 }
0x1390   :  { %v6129_v55 = vpop.eup %6128 }
0x1391   :  { %v6131_v58 = vpop.eup %6130  ;;  %v4212_v59 = vsel %vm2796_vm7, %v6129_v55, 0.0 }
0x1392   :  { %v6133_v62 = vpop.eup %6132  ;;  %v4213_v4 = vsel %vm2796_vm7, %v6131_v58, 0.0  ;;  %v4229_v5 = vcombine.low %v6129_v55, %v6131_v58 }
0x1393   :  { %v6135_v6 = vpop.eup %6134  ;;  %v4214_v10 = vadd.f32 %v4213_v4, %v4212_v59  ;;  %v4215_v12 = vsel %vm2796_vm7, %v6133_v62, 0.0 }
0x1394   :  { %v6137_v11 = vpop.eup %6136  ;;  %v4230_v13 = vcombine.low %v6133_v62, %v6135_v6  ;;  %v4237_v14 = vrot.slane %v4229_v5, %v7241_v40  ;;  %v4217_v15 = vsel %vm2796_vm7, %v6135_v6, 0.0 }
0x1395   :  { %v4216_v48 = vadd.f32 %v4215_v12, %v4214_v10  ;;  %5651 = vst.sshfl [vmem:[#allocation5 + $0x3a] sm:$0x3 pattern:$0x76325410] %v6137_v11  ;;  %v4219_v18 = vsel %vm2796_vm7, %v6137_v11, 0.0  ;;  %v6139_v9 = vpop.eup %6138 }
0x1396   :  { %v4244_v16 = vrot.slane %v4230_v13, %v7241_v40  ;;  %v4211_v26 = vmul.f32 %v6139_v9, %v7443_v8 }
0x1397   :  { %v4218_v17 = vadd.f32 %v4217_v15, %v4216_v48 }
0x1398   :  { %v4245_v20 = vcombine.low %v4237_v14, %v4244_v16 }
0x1399   :  { %v4220_v21 = vadd.f32 %v4219_v18, %v4218_v17 }
0x139a   :  { %4255 = vst [vmem:[#allocation5 + $0x32] sm:$0xff] %v4245_v20 }
0x139b   :  { %4221 = vadd.xlane.f32.xlu0 %v4220_v21 }
0x1428   :  { %v4222_v27 = vpop.xlane.xlu0 %4221 }
0x1429   :  { %v7491_v28 = vadd.f32 %v4222_v27, %v4211_v26 }
0x142a   :  { %6390 = dma.done.wait [#allocation7 + $0x6], 5760 }
0x142b   :  { %6391 = vsyncadd [#allocation7 + $0x6], 4294961536  ;;  %5652 = vmatprep.mubr.msk.bf16.mxu1 %vm2639_vm6, %v7192_v1  ;;  %5653 = vmatprep.mubr.msk.bf16.mxu0 %vm2639_vm6, %v7192_v1  ;;  %v4261_v29 = vld [vmem:[#allocation6 + $0x878] sm:$0xff]  ;;  %v4260_v30 = vld [vmem:[#allocation6 + $0x870] sm:$0xff] }
0x142c   :  { %v4266_v32 = vld [vmem:[#allocation6 + $0x8a0] sm:$0xff]  ;;  %4305 = vmatprep.subr.bf16.mxu1 %v4261_v29  ;;  %v4265_v33 = vld [vmem:[#allocation6 + $0x898] sm:$0xff]  ;;  %v4271_v34 = vld [vmem:[#allocation6 + $0x8c8] sm:$0xff] }
0x142d   :  { %4306 = vmatpush1.bf16.msra.mxu1 %v4260_v30  ;;  %v4263_v8 = vld [vmem:[#allocation6 + $0x888] sm:$0xff]  ;;  %v4262_v35 = vld [vmem:[#allocation6 + $0x880] sm:$0xff]  ;;  %v4268_v19 = vld [vmem:[#allocation6 + $0x8b0] sm:$0xff] }
0x142e   :  { %4307 = vmatprep.subr.bf16.mxu1 %v4266_v32  ;;  %v4270_v36 = vld [vmem:[#allocation6 + $0x8c0] sm:$0xff]  ;;  %4346 = vmatprep.subr.bf16.mxu0 %v4263_v8  ;;  %v4276_v38 = vld [vmem:[#allocation6 + $0x8f0] sm:$0xff]  ;;  %v4267_v39 = vld [vmem:[#allocation6 + $0x8a8] sm:$0xff] }
0x142f   :  { %4347 = vmatpush1.bf16.msra.mxu0 %v4262_v35  ;;  %v4273_v41 = vld [vmem:[#allocation6 + $0x8d8] sm:$0xff]  ;;  %v4275_v42 = vld [vmem:[#allocation6 + $0x8e8] sm:$0xff]  ;;  %v4272_v47 = vld [vmem:[#allocation6 + $0x8d0] sm:$0xff] }
0x1430   :  { %4348 = vmatprep.subr.bf16.mxu0 %v4268_v19  ;;  %v4281_v46 = vld [vmem:[#allocation6 + $0x918] sm:$0xff]  ;;  %v4278_v49 = vld [vmem:[#allocation6 + $0x900] sm:$0xff]  ;;  %v4280_v50 = vld [vmem:[#allocation6 + $0x910] sm:$0xff] }
0x1431   :  { %4308 = vmatpush1.bf16.msra.mxu1 %v4265_v33  ;;  %v4286_v52 = vld [vmem:[#allocation6 + $0x940] sm:$0xff]  ;;  %v4277_v53 = vld [vmem:[#allocation6 + $0x8f8] sm:$0xff]  ;;  %v4283_v45 = vld [vmem:[#allocation6 + $0x928] sm:$0xff] }
0x1432   :  { %4309 = vmatprep.subr.bf16.mxu1 %v4271_v34  ;;  %v4285_v31 = vld [vmem:[#allocation6 + $0x938] sm:$0xff]  ;;  %v4291_v54 = vld [vmem:[#allocation6 + $0x968] sm:$0xff]  ;;  %v4282_v43 = vld [vmem:[#allocation6 + $0x920] sm:$0xff] }
0x1433   :  { %4349 = vmatpush1.bf16.msra.mxu0 %v4267_v39  ;;  %v4288_v55 = vld [vmem:[#allocation6 + $0x950] sm:$0xff]  ;;  %v4290_v58 = vld [vmem:[#allocation6 + $0x960] sm:$0xff]  ;;  %v4287_v62 = vld [vmem:[#allocation6 + $0x948] sm:$0xff] }
0x1434   :  { %4350 = vmatprep.subr.bf16.mxu0 %v4273_v41  ;;  %v4296_v59 = vld [vmem:[#allocation6 + $0x990] sm:$0xff]  ;;  %v4293_v4 = vld [vmem:[#allocation6 + $0x978] sm:$0xff]  ;;  %v4295_v5 = vld [vmem:[#allocation6 + $0x988] sm:$0xff] }
0x1435   :  { %4310 = vmatpush1.bf16.msra.mxu1 %v4270_v36  ;;  %v4301_v6 = vld [vmem:[#allocation6 + $0x9b8] sm:$0xff]  ;;  %v4292_v10 = vld [vmem:[#allocation6 + $0x970] sm:$0xff]  ;;  %v4298_v11 = vld [vmem:[#allocation6 + $0x9a0] sm:$0xff] }
0x1436   :  { %4311 = vmatprep.subr.bf16.mxu1 %v4276_v38  ;;  %v4300_v12 = vld [vmem:[#allocation6 + $0x9b0] sm:$0xff]  ;;  %v4297_v13 = vld [vmem:[#allocation6 + $0x998] sm:$0xff]  ;;  %v4303_v14 = vld [vmem:[#allocation6 + $0x9c8] sm:$0xff] }
0x1437   :  { %4351 = vmatpush1.bf16.msra.mxu0 %v4272_v47  ;;  %v4264_v48 = vld [vmem:[#allocation6 + $0x890] sm:$0xff]  ;;  %v4302_v15 = vld [vmem:[#allocation6 + $0x9c0] sm:$0xff]  ;;  %v4269_v16 = vld [vmem:[#allocation6 + $0x8b8] sm:$0xff] }
0x1438   :  { %4352 = vmatprep.subr.bf16.mxu0 %v4278_v49  ;;  %v4274_v17 = vld [vmem:[#allocation6 + $0x8e0] sm:$0xff]  ;;  %v4279_v18 = vld [vmem:[#allocation6 + $0x908] sm:$0xff]  ;;  %v4284_v20 = vld [vmem:[#allocation6 + $0x930] sm:$0xff] }
0x1439   :  { %4312 = vmatpush1.bf16.msra.mxu1 %v4275_v42  ;;  %v4289_v21 = vld [vmem:[#allocation6 + $0x958] sm:$0xff]  ;;  %v4294_v22 = vld [vmem:[#allocation6 + $0x980] sm:$0xff]  ;;  %v4299_v23 = vld [vmem:[#allocation6 + $0x9a8] sm:$0xff] }
0x143a   :  { %4313 = vmatprep.subr.bf16.mxu1 %v4281_v46  ;;  %v4304_v9 = vld [vmem:[#allocation6 + $0x9d0] sm:$0xff]  ;;  %v4259_v35 = vld [vmem:[#allocation19 + $0x1e] sm:$0x1f] }
0x143b   :  { %4353 = vmatpush1.bf16.msra.mxu0 %v4277_v53  ;;  %v4439_v36 = vrot.slane %v4259_v35, %v7215_v56  ;;  %v4443_v19 = vrot.slane %v4259_v35, %v7218_v57  ;;  %v4431_v38 = vrot.slane %v4259_v35, %v7008_v61  ;;  %v4435_v39 = vrot.slane %v4259_v35, %v7011_v63 }
0x143c   :  { %4354 = vmatprep.subr.bf16.mxu0 %v4283_v45  ;;  %v4447_v46 = vrot.slane %v4259_v35, %v7223_v3 }
0x143d   :  { %4314 = vmatpush1.bf16.msra.mxu1 %v4280_v50 }
0x143e   :  { %4315 = vmatprep.subr.bf16.mxu1 %v4286_v52 }
0x143f   :  { %4355 = vmatpush1.bf16.msra.mxu0 %v4282_v43 }
0x1440   :  { %4356 = vmatprep.subr.bf16.mxu0 %v4288_v55 }
0x1441   :  { %4316 = vmatpush1.bf16.msra.mxu1 %v4285_v31 }
0x1442   :  { %4317 = vmatprep.subr.bf16.mxu1 %v4291_v54 }
0x1443   :  { %4357 = vmatpush1.bf16.msra.mxu0 %v4287_v62 }
0x1444   :  { %4358 = vmatprep.subr.bf16.mxu0 %v4293_v4 }
0x1445   :  { %4318 = vmatpush1.bf16.msra.mxu1 %v4290_v58 }
0x1446   :  { %4319 = vmatprep.subr.bf16.mxu1 %v4296_v59 }
0x1447   :  { %4359 = vmatpush1.bf16.msra.mxu0 %v4292_v10 }
0x1448   :  { %4360 = vmatprep.subr.bf16.mxu0 %v4298_v11 }
0x1449   :  { %4320 = vmatpush1.bf16.msra.mxu1 %v4295_v5 }
0x144a   :  { %4321 = vmatprep.subr.bf16.mxu1 %v4301_v6 }
0x144b   :  { %4361 = vmatpush1.bf16.msra.mxu0 %v4297_v13 }
0x144c   :  { %4362 = vmatprep.subr.bf16.mxu0 %v4303_v14 }
0x144d   :  { %4322 = vmatpush1.bf16.msra.mxu1 %v4300_v12 }
0x144e   :  { %4387 = vmatprep.subr.bf16.mxu1 %v6410_v0 }
0x144f   :  { %4363 = vmatpush1.bf16.msra.mxu0 %v4302_v15 }
0x1450   :  { %4338 = vmatmul.mubr.bf16.vlgmr.msra.gmra.mrb[52].mxu1 %v7194_v2 }
0x1451   :  { %4388 = vmatpush1.bf16.msra.mxu1 %v4264_v48  ;;  %5654 = vmatprep.mubr.msk.bf16.mxu1 %vm2639_vm6, %v7192_v1 }
0x1452   :  { %4389 = vmatprep.subr.bf16.mxu1 %v6410_v0  ;;  %4379 = vmatmul.mubr.bf16.vlgmr.msra.gmra.mrb[56].mxu0 %v7194_v2 }
0x1455   :  { %4390 = vmatpush1.bf16.msra.mxu1 %v4269_v16 }
0x1456   :  { %4391 = vmatprep.subr.bf16.mxu1 %v6410_v0 }
0x1459   :  { %4392 = vmatpush1.bf16.msra.mxu1 %v4274_v17 }
0x145a   :  { %4393 = vmatprep.subr.bf16.mxu1 %v6410_v0 }
0x145d   :  { %4394 = vmatpush1.bf16.msra.mxu1 %v4279_v18 }
0x145e   :  { %4395 = vmatprep.subr.bf16.mxu1 %v6410_v0 }
0x1461   :  { %4396 = vmatpush1.bf16.msra.mxu1 %v4284_v20 }
0x1462   :  { %4397 = vmatprep.subr.bf16.mxu1 %v6410_v0 }
0x1465   :  { %4398 = vmatpush1.bf16.msra.mxu1 %v4289_v21 }
0x1466   :  { %4399 = vmatprep.subr.bf16.mxu1 %v6410_v0 }
0x1469   :  { %4400 = vmatpush1.bf16.msra.mxu1 %v4294_v22 }
0x146a   :  { %4401 = vmatprep.subr.bf16.mxu1 %v6410_v0 }
0x146d   :  { %4402 = vmatpush1.bf16.msra.mxu1 %v4299_v23 }
0x146e   :  { %4403 = vmatprep.subr.bf16.mxu1 %v6410_v0 }
0x1471   :  { %4404 = vmatpush1.bf16.msra.mxu1 %v4304_v9 }
0x1474   :  { %4420 = vmatmul.mubr.bf16.vlgmr.msra.gmra.mrb[56].mxu1 %v7194_v2 }
0x1523   :  { %v4339_v26 = vpop.f32.mrb[52].mxu1 }
0x1524   :  { %v4341_v27 = vpop.f32.mrb[53].mxu1  ;;  %v4453_v47 = vadd.f32 %v4431_v38, %v4339_v26 }
0x1525   :  { %v4343_v29 = vpop.f32.mrb[54].mxu1  ;;  %v4380_v32 = vpop.f32.mrb[56].mxu0  ;;  %v4454_v50 = vadd.f32 %v4435_v39, %v4341_v27 }
0x1526   :  { %v4344_v30 = vpop.f32.mrb[55].mxu1  ;;  %v4382_v33 = vpop.f32.mrb[57].mxu0  ;;  %v4455_v41 = vadd.f32 %v4439_v36, %v4380_v32  ;;  %v4458_v43 = vsel %vm2796_vm7, %v4453_v47, -inf }
0x1527   :  { %v4384_v34 = vpop.f32.mrb[58].mxu0  ;;  %v4456_v42 = vadd.f32 %v4443_v19, %v4382_v33  ;;  %v4459_v4 = vsel %vm2796_vm7, %v4454_v50, -inf }
0x1528   :  { %v4385_v8 = vpop.f32.mrb[59].mxu0  ;;  %v4460_v52 = vsel %vm2796_vm7, %v4455_v41, -inf }
0x1529   :  { %v4461_v53 = vsel %vm2796_vm7, %v4456_v42, -inf }
0x152a   :  { %v4465_v62 = vmax.f32 %v4460_v52, %v4461_v53 }
0x1547   :  { %v4421_v49 = vpop.f32.mrb[56].mxu1 }
0x1548   :  { %v4457_v45 = vadd.f32 %v4447_v46, %v4421_v49  ;;  %v4423_v31 = vpop.f32.mrb[57].mxu1 }
0x1549   :  { %v4424_v54 = vpop.f32.mrb[58].mxu1 }
0x154a   :  { %v4462_v55 = vsel %vm2796_vm7, %v4457_v45, -inf  ;;  %v4425_v58 = vpop.f32.mrb[59].mxu1 }
0x154b   :  { %v4463_v59 = vmax.f32 %v4458_v43, %v4462_v55 }
0x154d   :  { %v4464_v5 = vmax.f32 %v4463_v59, %v4459_v4 }
0x154f   :  { %v4466_v6 = vmax.f32 %v4464_v5, %v4465_v62 }
0x1551   :  { %4467 = vmax.xlane.f32.xlu0 %v4466_v6 }
0x15de   :  { %v4468_v10 = vpop.xlane.xlu0 %4467 }
0x15df   :  { %v7522_v11 = vmax.f32 %v7474_v44, %v4468_v10 }
0x15e1   :  { %v4470_v12 = vsub.f32 %v4453_v47, %v7522_v11  ;;  %v4471_v13 = vsub.f32 %v4454_v50, %v7522_v11  ;;  %v4472_v14 = vsub.f32 %v4455_v41, %v7522_v11  ;;  %v4473_v48 = vsub.f32 %v4456_v42, %v7522_v11 }
0x15e2   :  { %v4474_v15 = vsub.f32 %v4457_v45, %v7522_v11  ;;  %v4485_v47 = vsub.f32 %v7474_v44, %v7522_v11 }
0x15e3   :  { %v4475_v16 = vmul.f32 1.442695, %v4470_v12  ;;  %v4477_v17 = vmul.f32 1.442695, %v4471_v13  ;;  %v4479_v18 = vmul.f32 1.442695, %v4472_v14 }
0x15e4   :  { %v4481_v20 = vmul.f32 1.442695, %v4473_v48  ;;  %v4483_v21 = vmul.f32 1.442695, %v4474_v15  ;;  %v4486_v49 = vmul.f32 1.442695, %v4485_v47 }
0x15e5   :  { %6140 = vpow2.f32 %v4475_v16 }
0x15e6   :  { %6142 = vpow2.f32 %v4477_v17 }
0x15e7   :  { %6144 = vpow2.f32 %v4479_v18 }
0x15e8   :  { %6146 = vpow2.f32 %v4481_v20 }
0x15e9   :  { %6148 = vpow2.f32 %v4483_v21 }
0x15ea   :  { %6150 = vpow2.f32 %v4486_v49 }
0x15ef   :  { %v6141_v22 = vpop.eup %6140 }
0x15f0   :  { %v6143_v23 = vpop.eup %6142  ;;  %v4489_v9 = vsel %vm2796_vm7, %v6141_v22, 0.0 }
0x15f1   :  { %v6145_v26 = vpop.eup %6144  ;;  %v4490_v27 = vsel %vm2796_vm7, %v6143_v23, 0.0  ;;  %v4506_v29 = vcombine.low %v6141_v22, %v6143_v23 }
0x15f2   :  { %v6147_v30 = vpop.eup %6146  ;;  %v4491_v32 = vadd.f32 %v4490_v27, %v4489_v9  ;;  %v4492_v34 = vsel %vm2796_vm7, %v6145_v26, 0.0 }
0x15f3   :  { %v6149_v33 = vpop.eup %6148  ;;  %v4507_v8 = vcombine.low %v6145_v26, %v6147_v30  ;;  %v4514_v35 = vrot.slane %v4506_v29, %v7241_v40  ;;  %v4494_v19 = vsel %vm2796_vm7, %v6147_v30, 0.0 }
0x15f4   :  { %v4493_v36 = vadd.f32 %v4492_v34, %v4491_v32  ;;  %5655 = vst.sshfl [vmem:[#allocation5 + $0x44] sm:$0x3 pattern:$0x76325410] %v6149_v33  ;;  %v4496_v41 = vsel %vm2796_vm7, %v6149_v33, 0.0  ;;  %v6151_v50 = vpop.eup %6150 }
0x15f5   :  { %v4521_v38 = vrot.slane %v4507_v8, %v7241_v40  ;;  %v4488_v52 = vmul.f32 %v6151_v50, %v7491_v28 }
0x15f6   :  { %v4495_v39 = vadd.f32 %v4494_v19, %v4493_v36 }
0x15f7   :  { %v4522_v42 = vcombine.low %v4514_v35, %v4521_v38 }
0x15f8   :  { %v4497_v46 = vadd.f32 %v4496_v41, %v4495_v39 }
0x15f9   :  { %4532 = vst [vmem:[#allocation5 + $0x3c] sm:$0xff] %v4522_v42 }
0x15fa   :  { %4498 = vadd.xlane.f32.xlu0 %v4497_v46 }
0x1687   :  { %v4499_v53 = vpop.xlane.xlu0 %4498 }
0x1688   :  { %v7539_v45 = vadd.f32 %v4499_v53, %v4488_v52 }
0x1689   :  { %6392 = dma.done.wait [#allocation7 + $0x7], 5760 }
0x168a   :  { %6393 = vsyncadd [#allocation7 + $0x7], 4294961536  ;;  %5656 = vmatprep.mubr.msk.bf16.mxu0 %vm2639_vm6, %v7192_v1  ;;  %5657 = vmatprep.mubr.msk.bf16.mxu1 %vm2639_vm6, %v7192_v1  ;;  %v4538_v31 = vld [vmem:[#allocation6 + $0x9e0] sm:$0xff]  ;;  %v4537_v54 = vld [vmem:[#allocation6 + $0x9d8] sm:$0xff] }
0x168b   :  { %v4543_v43 = vld [vmem:[#allocation6 + $0xa08] sm:$0xff]  ;;  %4582 = vmatprep.subr.bf16.mxu0 %v4538_v31  ;;  %v4542_v55 = vld [vmem:[#allocation6 + $0xa00] sm:$0xff]  ;;  %v4548_v58 = vld [vmem:[#allocation6 + $0xa30] sm:$0xff] }
0x168c   :  { %4583 = vmatpush1.bf16.msra.mxu0 %v4537_v54  ;;  %v4540_v28 = vld [vmem:[#allocation6 + $0x9f0] sm:$0xff]  ;;  %v4539_v59 = vld [vmem:[#allocation6 + $0x9e8] sm:$0xff]  ;;  %v4545_v4 = vld [vmem:[#allocation6 + $0xa18] sm:$0xff] }
0x168d   :  { %4584 = vmatprep.subr.bf16.mxu0 %v4543_v43  ;;  %v4547_v62 = vld [vmem:[#allocation6 + $0xa28] sm:$0xff]  ;;  %4623 = vmatprep.subr.bf16.mxu1 %v4540_v28  ;;  %v4553_v5 = vld [vmem:[#allocation6 + $0xa58] sm:$0xff]  ;;  %v4544_v6 = vld [vmem:[#allocation6 + $0xa10] sm:$0xff] }
0x168e   :  { %4624 = vmatpush1.bf16.msra.mxu1 %v4539_v59  ;;  %v4550_v10 = vld [vmem:[#allocation6 + $0xa40] sm:$0xff]  ;;  %v4552_v12 = vld [vmem:[#allocation6 + $0xa50] sm:$0xff]  ;;  %v4549_v14 = vld [vmem:[#allocation6 + $0xa38] sm:$0xff] }
0x168f   :  { %4625 = vmatprep.subr.bf16.mxu1 %v4545_v4  ;;  %v4558_v13 = vld [vmem:[#allocation6 + $0xa80] sm:$0xff]  ;;  %v4555_v48 = vld [vmem:[#allocation6 + $0xa68] sm:$0xff]  ;;  %v4557_v15 = vld [vmem:[#allocation6 + $0xa78] sm:$0xff] }
0x1690   :  { %4585 = vmatpush1.bf16.msra.mxu0 %v4542_v55  ;;  %v4563_v16 = vld [vmem:[#allocation6 + $0xaa8] sm:$0xff]  ;;  %v4554_v17 = vld [vmem:[#allocation6 + $0xa60] sm:$0xff]  ;;  %v4560_v18 = vld [vmem:[#allocation6 + $0xa90] sm:$0xff] }
0x1691   :  { %4586 = vmatprep.subr.bf16.mxu0 %v4548_v58  ;;  %v4562_v20 = vld [vmem:[#allocation6 + $0xaa0] sm:$0xff]  ;;  %v4568_v21 = vld [vmem:[#allocation6 + $0xad0] sm:$0xff]  ;;  %v4559_v22 = vld [vmem:[#allocation6 + $0xa88] sm:$0xff] }
0x1692   :  { %4626 = vmatpush1.bf16.msra.mxu1 %v4544_v6  ;;  %v4565_v23 = vld [vmem:[#allocation6 + $0xab8] sm:$0xff]  ;;  %v4567_v9 = vld [vmem:[#allocation6 + $0xac8] sm:$0xff]  ;;  %v4564_v27 = vld [vmem:[#allocation6 + $0xab0] sm:$0xff] }
0x1693   :  { %4627 = vmatprep.subr.bf16.mxu1 %v4550_v10  ;;  %v4573_v26 = vld [vmem:[#allocation6 + $0xaf8] sm:$0xff]  ;;  %v4570_v29 = vld [vmem:[#allocation6 + $0xae0] sm:$0xff]  ;;  %v4572_v30 = vld [vmem:[#allocation6 + $0xaf0] sm:$0xff] }
0x1694   :  { %4587 = vmatpush1.bf16.msra.mxu0 %v4547_v62  ;;  %v4578_v32 = vld [vmem:[#allocation6 + $0xb20] sm:$0xff]  ;;  %v4569_v33 = vld [vmem:[#allocation6 + $0xad8] sm:$0xff]  ;;  %v4575_v34 = vld [vmem:[#allocation6 + $0xb08] sm:$0xff] }
0x1695   :  { %4588 = vmatprep.subr.bf16.mxu0 %v4553_v5  ;;  %v4577_v8 = vld [vmem:[#allocation6 + $0xb18] sm:$0xff]  ;;  %v4574_v35 = vld [vmem:[#allocation6 + $0xb00] sm:$0xff]  ;;  %v4580_v36 = vld [vmem:[#allocation6 + $0xb30] sm:$0xff] }
0x1696   :  { %4628 = vmatpush1.bf16.msra.mxu1 %v4549_v14  ;;  %v4541_v19 = vld [vmem:[#allocation6 + $0x9f8] sm:$0xff]  ;;  %v4579_v38 = vld [vmem:[#allocation6 + $0xb28] sm:$0xff]  ;;  %v4546_v39 = vld [vmem:[#allocation6 + $0xa20] sm:$0xff] }
0x1697   :  { %4629 = vmatprep.subr.bf16.mxu1 %v4555_v48  ;;  %v4551_v41 = vld [vmem:[#allocation6 + $0xa48] sm:$0xff]  ;;  %v4556_v42 = vld [vmem:[#allocation6 + $0xa70] sm:$0xff]  ;;  %v4561_v46 = vld [vmem:[#allocation6 + $0xa98] sm:$0xff] }
0x1698   :  { %4589 = vmatpush1.bf16.msra.mxu0 %v4552_v12  ;;  %v4566_v47 = vld [vmem:[#allocation6 + $0xac0] sm:$0xff]  ;;  %v4571_v49 = vld [vmem:[#allocation6 + $0xae8] sm:$0xff]  ;;  %v4576_v50 = vld [vmem:[#allocation6 + $0xb10] sm:$0xff] }
0x1699   :  { %4590 = vmatprep.subr.bf16.mxu0 %v4558_v13  ;;  %v4581_v52 = vld [vmem:[#allocation6 + $0xb38] sm:$0xff]  ;;  %v4536_v62 = vld [vmem:[#allocation19 + $0x23] sm:$0x1f] }
0x169a   :  { %4630 = vmatpush1.bf16.msra.mxu1 %v4554_v17  ;;  %v4716_v4 = vrot.slane %v4536_v62, %v7215_v56  ;;  %v4720_v5 = vrot.slane %v4536_v62, %v7218_v57  ;;  %v4708_v6 = vrot.slane %v4536_v62, %v7008_v61  ;;  %v4712_v10 = vrot.slane %v4536_v62, %v7011_v63 }
0x169b   :  { %4631 = vmatprep.subr.bf16.mxu1 %v4560_v18  ;;  %v4724_v14 = vrot.slane %v4536_v62, %v7223_v3 }
0x169c   :  { %4591 = vmatpush1.bf16.msra.mxu0 %v4557_v15 }
0x169d   :  { %4592 = vmatprep.subr.bf16.mxu0 %v4563_v16 }
0x169e   :  { %4632 = vmatpush1.bf16.msra.mxu1 %v4559_v22 }
0x169f   :  { %4633 = vmatprep.subr.bf16.mxu1 %v4565_v23 }
0x16a0   :  { %4593 = vmatpush1.bf16.msra.mxu0 %v4562_v20 }
0x16a1   :  { %4594 = vmatprep.subr.bf16.mxu0 %v4568_v21 }
0x16a2   :  { %4634 = vmatpush1.bf16.msra.mxu1 %v4564_v27 }
0x16a3   :  { %4635 = vmatprep.subr.bf16.mxu1 %v4570_v29 }
0x16a4   :  { %4595 = vmatpush1.bf16.msra.mxu0 %v4567_v9 }
0x16a5   :  { %4596 = vmatprep.subr.bf16.mxu0 %v4573_v26 }
0x16a6   :  { %4636 = vmatpush1.bf16.msra.mxu1 %v4569_v33 }
0x16a7   :  { %4637 = vmatprep.subr.bf16.mxu1 %v4575_v34 }
0x16a8   :  { %4597 = vmatpush1.bf16.msra.mxu0 %v4572_v30 }
0x16a9   :  { %4598 = vmatprep.subr.bf16.mxu0 %v4578_v32 }
0x16aa   :  { %4638 = vmatpush1.bf16.msra.mxu1 %v4574_v35 }
0x16ab   :  { %4639 = vmatprep.subr.bf16.mxu1 %v4580_v36 }
0x16ac   :  { %4599 = vmatpush1.bf16.msra.mxu0 %v4577_v8 }
0x16ad   :  { %4664 = vmatprep.subr.bf16.mxu0 %v6410_v0 }
0x16ae   :  { %4640 = vmatpush1.bf16.msra.mxu1 %v4579_v38 }
0x16af   :  { %4615 = vmatmul.mubr.bf16.vlgmr.msra.gmra.mrb[60].mxu0 %v7194_v2 }
0x16b0   :  { %4665 = vmatpush1.bf16.msra.mxu0 %v4541_v19  ;;  %5658 = vmatprep.mubr.msk.bf16.mxu0 %vm2639_vm6, %v7192_v1 }
0x16b1   :  { %4666 = vmatprep.subr.bf16.mxu0 %v6410_v0  ;;  %4656 = vmatmul.mubr.bf16.vlgmr.msra.gmra.mrb[60].mxu1 %v7194_v2 }
0x16b4   :  { %4667 = vmatpush1.bf16.msra.mxu0 %v4546_v39 }
0x16b5   :  { %4668 = vmatprep.subr.bf16.mxu0 %v6410_v0 }
0x16b8   :  { %4669 = vmatpush1.bf16.msra.mxu0 %v4551_v41 }
0x16b9   :  { %4670 = vmatprep.subr.bf16.mxu0 %v6410_v0 }
0x16bc   :  { %4671 = vmatpush1.bf16.msra.mxu0 %v4556_v42 }
0x16bd   :  { %4672 = vmatprep.subr.bf16.mxu0 %v6410_v0 }
0x16c0   :  { %4673 = vmatpush1.bf16.msra.mxu0 %v4561_v46 }
0x16c1   :  { %4674 = vmatprep.subr.bf16.mxu0 %v6410_v0 }
0x16c4   :  { %4675 = vmatpush1.bf16.msra.mxu0 %v4566_v47 }
0x16c5   :  { %4676 = vmatprep.subr.bf16.mxu0 %v6410_v0 }
0x16c8   :  { %4677 = vmatpush1.bf16.msra.mxu0 %v4571_v49 }
0x16c9   :  { %4678 = vmatprep.subr.bf16.mxu0 %v6410_v0 }
0x16cc   :  { %4679 = vmatpush1.bf16.msra.mxu0 %v4576_v50 }
0x16cd   :  { %4680 = vmatprep.subr.bf16.mxu0 %v6410_v0 }
0x16d0   :  { %4681 = vmatpush1.bf16.msra.mxu0 %v4581_v52 }
0x16d3   :  { %4697 = vmatmul.mubr.bf16.vlgmr.msra.gmra.mrb[64].mxu0 %v7194_v2 }
0x1782   :  { %v4616_v53 = vpop.f32.mrb[60].mxu0 }
0x1783   :  { %v4618_v31 = vpop.f32.mrb[61].mxu0  ;;  %v4730_v48 = vadd.f32 %v4708_v6, %v4616_v53 }
0x1784   :  { %v4620_v54 = vpop.f32.mrb[62].mxu0  ;;  %v4657_v55 = vpop.f32.mrb[60].mxu1  ;;  %v4731_v16 = vadd.f32 %v4712_v10, %v4618_v31 }
0x1785   :  { %v4621_v43 = vpop.f32.mrb[63].mxu0  ;;  %v4659_v58 = vpop.f32.mrb[61].mxu1  ;;  %v4732_v12 = vadd.f32 %v4716_v4, %v4657_v55  ;;  %v4735_v23 = vsel %vm2796_vm7, %v4730_v48, -inf }
0x1786   :  { %v4661_v28 = vpop.f32.mrb[62].mxu1  ;;  %v4733_v13 = vadd.f32 %v4720_v5, %v4659_v58  ;;  %v4736_v30 = vsel %vm2796_vm7, %v4731_v16, -inf }
0x1787   :  { %v4662_v59 = vpop.f32.mrb[63].mxu1  ;;  %v4737_v17 = vsel %vm2796_vm7, %v4732_v12, -inf }
0x1788   :  { %v4738_v18 = vsel %vm2796_vm7, %v4733_v13, -inf }
0x1789   :  { %v4742_v29 = vmax.f32 %v4737_v17, %v4738_v18 }
0x17a6   :  { %v4698_v15 = vpop.f32.mrb[64].mxu0 }
0x17a7   :  { %v4734_v20 = vadd.f32 %v4724_v14, %v4698_v15  ;;  %v4700_v21 = vpop.f32.mrb[65].mxu0 }
0x17a8   :  { %v4701_v22 = vpop.f32.mrb[66].mxu0 }
0x17a9   :  { %v4739_v9 = vsel %vm2796_vm7, %v4734_v20, -inf  ;;  %v4702_v26 = vpop.f32.mrb[67].mxu0 }
0x17aa   :  { %v4740_v27 = vmax.f32 %v4735_v23, %v4739_v9 }
0x17ac   :  { %v4741_v32 = vmax.f32 %v4740_v27, %v4736_v30 }
0x17ae   :  { %v4743_v33 = vmax.f32 %v4741_v32, %v4742_v29 }
0x17b0   :  { %4744 = vmax.xlane.f32.xlu0 %v4743_v33 }
0x183d   :  { %v4745_v34 = vpop.xlane.xlu0 %4744 }
0x183e   :  { %v7570_v8 = vmax.f32 %v7522_v11, %v4745_v34 }
0x1840   :  { %v4747_v35 = vsub.f32 %v4730_v48, %v7570_v8  ;;  %v4748_v36 = vsub.f32 %v4731_v16, %v7570_v8  ;;  %v4749_v19 = vsub.f32 %v4732_v12, %v7570_v8  ;;  %v4750_v38 = vsub.f32 %v4733_v13, %v7570_v8 }
0x1841   :  { %v4751_v39 = vsub.f32 %v4734_v20, %v7570_v8  ;;  %v4762_v15 = vsub.f32 %v7522_v11, %v7570_v8 }
0x1842   :  { %v4752_v41 = vmul.f32 1.442695, %v4747_v35  ;;  %v4754_v42 = vmul.f32 1.442695, %v4748_v36  ;;  %v4756_v46 = vmul.f32 1.442695, %v4749_v19 }
0x1843   :  { %v4758_v47 = vmul.f32 1.442695, %v4750_v38  ;;  %v4760_v49 = vmul.f32 1.442695, %v4751_v39  ;;  %v4763_v16 = vmul.f32 1.442695, %v4762_v15 }
0x1844   :  { %6152 = vpow2.f32 %v4752_v41 }
0x1845   :  { %6154 = vpow2.f32 %v4754_v42 }
0x1846   :  { %6156 = vpow2.f32 %v4756_v46 }
0x1847   :  { %6158 = vpow2.f32 %v4758_v47 }
0x1848   :  { %6160 = vpow2.f32 %v4760_v49 }
0x1849   :  { %6162 = vpow2.f32 %v4763_v16 }
0x184e   :  { %v6153_v50 = vpop.eup %6152 }
0x184f   :  { %v6155_v52 = vpop.eup %6154  ;;  %v4766_v53 = vsel %vm2796_vm7, %v6153_v50, 0.0 }
0x1850   :  { %v6157_v31 = vpop.eup %6156  ;;  %v4767_v54 = vsel %vm2796_vm7, %v6155_v52, 0.0  ;;  %v4783_v43 = vcombine.low %v6153_v50, %v6155_v52 }
0x1851   :  { %v6159_v55 = vpop.eup %6158  ;;  %v4768_v58 = vadd.f32 %v4767_v54, %v4766_v53  ;;  %v4769_v59 = vsel %vm2796_vm7, %v6157_v31, 0.0 }
0x1852   :  { %v6161_v28 = vpop.eup %6160  ;;  %v4784_v62 = vcombine.low %v6157_v31, %v6159_v55  ;;  %v4791_v4 = vrot.slane %v4783_v43, %v7241_v40  ;;  %v4771_v6 = vsel %vm2796_vm7, %v6159_v55, 0.0 }
0x1853   :  { %v4770_v5 = vadd.f32 %v4769_v59, %v4768_v58  ;;  %5659 = vst.sshfl [vmem:[#allocation5 + $0x4e] sm:$0x3 pattern:$0x76325410] %v6161_v28  ;;  %v4773_v13 = vsel %vm2796_vm7, %v6161_v28, 0.0  ;;  %v6163_v17 = vpop.eup %6162 }
0x1854   :  { %v4798_v10 = vrot.slane %v4784_v62, %v7241_v40  ;;  %v4765_v18 = vmul.f32 %v6163_v17, %v7539_v45 }
0x1855   :  { %v4772_v12 = vadd.f32 %v4771_v6, %v4770_v5 }
0x1856   :  { %v4799_v14 = vcombine.low %v4791_v4, %v4798_v10 }
0x1857   :  { %v4774_v48 = vadd.f32 %v4773_v13, %v4772_v12 }
0x1858   :  { %4809 = vst [vmem:[#allocation5 + $0x46] sm:$0xff] %v4799_v14 }
0x1859   :  { %4775 = vadd.xlane.f32.xlu0 %v4774_v48 }
0x18e6   :  { %v4776_v20 = vpop.xlane.xlu0 %4775 }
0x18e7   :  { %v7587_v21 = vadd.f32 %v4776_v20, %v4765_v18 }
0x18e8   :  { %6394 = dma.done.wait [#allocation7 + $0x8], 5760 }
0x18e9   :  { %6395 = vsyncadd [#allocation7 + $0x8], 4294961536  ;;  %5660 = vmatprep.mubr.msk.bf16.mxu1 %vm2639_vm6, %v7192_v1  ;;  %5661 = vmatprep.mubr.msk.bf16.mxu0 %vm2639_vm6, %v7192_v1  ;;  %v4815_v22 = vld [vmem:[#allocation6 + $0xb48] sm:$0xff]  ;;  %v4814_v23 = vld [vmem:[#allocation6 + $0xb40] sm:$0xff]  ;;  %s6446_s22 = smov [#allocation20]  }
0x18ea   :  { %v4820_v9 = vld [vmem:[#allocation6 + $0xb70] sm:$0xff]  ;;  %4859 = vmatprep.subr.bf16.mxu1 %v4815_v22  ;;  %v4819_v26 = vld [vmem:[#allocation6 + $0xb68] sm:$0xff]  ;;  %v4825_v27 = vld [vmem:[#allocation6 + $0xb98] sm:$0xff]  ;;  %s5264_s29 = sshll.u32 %s6446_s22, 4  ;;  %s5265_s29 = int_to_ptr.vmem [resolvable:$true] %s5264_s29 }
0x18eb   :  { %4860 = vmatpush1.bf16.msra.mxu1 %v4814_v23  ;;  %v4817_v45 = vld [vmem:[#allocation6 + $0xb58] sm:$0xff]  ;;  %v4816_v29 = vld [vmem:[#allocation6 + $0xb50] sm:$0xff]  ;;  %v4822_v32 = vld [vmem:[#allocation6 + $0xb80] sm:$0xff]  ;;  %s6348_s30 = scalar_lea.vmem %s5265_s29, 1440  ;;  %p6353_p1 = scmp.lt.s32.totalorder %s5265_s29, %s5265_s29 }
0x18ec   :  { %4861 = vmatprep.subr.bf16.mxu1 %v4820_v9  ;;  %v4824_v30 = vld [vmem:[#allocation6 + $0xb90] sm:$0xff]  ;;  %4900 = vmatprep.subr.bf16.mxu0 %v4817_v45  ;;  %v4830_v33 = vld [vmem:[#allocation6 + $0xbc0] sm:$0xff]  ;;  %v4821_v34 = vld [vmem:[#allocation6 + $0xb78] sm:$0xff]  ;;  %p6349_p0 = scmp.ne.s32.totalorder %s5265_s29, %s6348_s30  ;;  %p6354_p2 = scmp.lt.s32.totalorder %s6348_s30, %s6348_s30 }
0x18ed   :  { %4901 = vmatpush1.bf16.msra.mxu0 %v4816_v29  ;;  %v4827_v35 = vld [vmem:[#allocation6 + $0xba8] sm:$0xff]  ;;  %v4829_v36 = vld [vmem:[#allocation6 + $0xbb8] sm:$0xff]  ;;  %v4826_v38 = vld [vmem:[#allocation6 + $0xba0] sm:$0xff] }
0x18ee   :  { %4902 = vmatprep.subr.bf16.mxu0 %v4822_v32  ;;  %v4835_v19 = vld [vmem:[#allocation6 + $0xbe8] sm:$0xff]  ;;  %v4832_v39 = vld [vmem:[#allocation6 + $0xbd0] sm:$0xff]  ;;  %v4834_v41 = vld [vmem:[#allocation6 + $0xbe0] sm:$0xff]  ;;  %p6355_p3 = por %p6354_p2, %p6353_p1 }
0x18ef   :  { %4862 = vmatpush1.bf16.msra.mxu1 %v4819_v26  ;;  %v4840_v42 = vld [vmem:[#allocation6 + $0xc10] sm:$0xff]  ;;  %v4831_v46 = vld [vmem:[#allocation6 + $0xbc8] sm:$0xff]  ;;  %v4837_v47 = vld [vmem:[#allocation6 + $0xbf8] sm:$0xff] }
0x18f0   :  { %4863 = vmatprep.subr.bf16.mxu1 %v4825_v27  ;;  %v4839_v49 = vld [vmem:[#allocation6 + $0xc08] sm:$0xff]  ;;  %v4845_v50 = vld [vmem:[#allocation6 + $0xc38] sm:$0xff]  ;;  %v4836_v52 = vld [vmem:[#allocation6 + $0xbf0] sm:$0xff]  ;;  %p6356_p4 = pnand %p6355_p3, %p6349_p0 }
0x18f1   :  { %4903 = vmatpush1.bf16.msra.mxu0 %v4821_v34  ;;  %v4842_v53 = vld [vmem:[#allocation6 + $0xc20] sm:$0xff]  ;;  %v4844_v31 = vld [vmem:[#allocation6 + $0xc30] sm:$0xff]  ;;  %v4841_v43 = vld [vmem:[#allocation6 + $0xc18] sm:$0xff] }
0x18f2   :  { %4904 = vmatprep.subr.bf16.mxu0 %v4827_v35  ;;  %v4850_v54 = vld [vmem:[#allocation6 + $0xc60] sm:$0xff]  ;;  %v4847_v55 = vld [vmem:[#allocation6 + $0xc48] sm:$0xff]  ;;  %v4849_v58 = vld [vmem:[#allocation6 + $0xc58] sm:$0xff] }
0x18f3   :  { %4864 = vmatpush1.bf16.msra.mxu1 %v4824_v30  ;;  %v4855_v28 = vld [vmem:[#allocation6 + $0xc88] sm:$0xff]  ;;  %v4846_v59 = vld [vmem:[#allocation6 + $0xc40] sm:$0xff]  ;;  %v4852_v62 = vld [vmem:[#allocation6 + $0xc70] sm:$0xff] }
0x18f4   :  { %4865 = vmatprep.subr.bf16.mxu1 %v4830_v33  ;;  %v4854_v4 = vld [vmem:[#allocation6 + $0xc80] sm:$0xff]  ;;  %v4851_v5 = vld [vmem:[#allocation6 + $0xc68] sm:$0xff]  ;;  %v4857_v6 = vld [vmem:[#allocation6 + $0xc98] sm:$0xff] }
0x18f5   :  { %4905 = vmatpush1.bf16.msra.mxu0 %v4826_v38  ;;  %v4818_v10 = vld [vmem:[#allocation6 + $0xb60] sm:$0xff]  ;;  %v4856_v12 = vld [vmem:[#allocation6 + $0xc90] sm:$0xff]  ;;  %v4823_v13 = vld [vmem:[#allocation6 + $0xb88] sm:$0xff] }
0x18f6   :  { %4906 = vmatprep.subr.bf16.mxu0 %v4832_v39  ;;  %v4828_v14 = vld [vmem:[#allocation6 + $0xbb0] sm:$0xff]  ;;  %v4833_v48 = vld [vmem:[#allocation6 + $0xbd8] sm:$0xff]  ;;  %v4838_v15 = vld [vmem:[#allocation6 + $0xc00] sm:$0xff] }
0x18f7   :  { %4866 = vmatpush1.bf16.msra.mxu1 %v4829_v36  ;;  %v4848_v16 = vld [vmem:[#allocation6 + $0xc50] sm:$0xff]  ;;  %v4853_v17 = vld [vmem:[#allocation6 + $0xc78] sm:$0xff]  ;;  %v4858_v18 = vld [vmem:[#allocation6 + $0xca0] sm:$0xff] }
0x18f8   :  { %4867 = vmatprep.subr.bf16.mxu1 %v4835_v19  ;;  %v4813_v30 = vld [vmem:[#allocation19 + $0x28] sm:$0x1f] }
0x18f9   :  { %4907 = vmatpush1.bf16.msra.mxu0 %v4831_v46  ;;  %v4993_v32 = vrot.slane %v4813_v30, %v7215_v56  ;;  %v4997_v33 = vrot.slane %v4813_v30, %v7218_v57  ;;  %v4985_v34 = vrot.slane %v4813_v30, %v7008_v61 }
0x18fa   :  { %4908 = vmatprep.subr.bf16.mxu0 %v4837_v47 }
0x18fb   :  { %4868 = vmatpush1.bf16.msra.mxu1 %v4834_v41 }
0x18fc   :  { %4869 = vmatprep.subr.bf16.mxu1 %v4840_v42 }
0x18fd   :  { %4909 = vmatpush1.bf16.msra.mxu0 %v4836_v52 }
0x18fe   :  { %4910 = vmatprep.subr.bf16.mxu0 %v4842_v53 }
0x18ff   :  { %4870 = vmatpush1.bf16.msra.mxu1 %v4839_v49 }
0x1900   :  { %4871 = vmatprep.subr.bf16.mxu1 %v4845_v50 }
0x1901   :  { %4911 = vmatpush1.bf16.msra.mxu0 %v4841_v43 }
0x1902   :  { %4912 = vmatprep.subr.bf16.mxu0 %v4847_v55 }
0x1903   :  { %4872 = vmatpush1.bf16.msra.mxu1 %v4844_v31 }
0x1904   :  { %4873 = vmatprep.subr.bf16.mxu1 %v4850_v54 }
0x1905   :  { %4913 = vmatpush1.bf16.msra.mxu0 %v4846_v59 }
0x1906   :  { %4914 = vmatprep.subr.bf16.mxu0 %v4852_v62 }
0x1907   :  { %4874 = vmatpush1.bf16.msra.mxu1 %v4849_v58 }
0x1908   :  { %4875 = vmatprep.subr.bf16.mxu1 %v4855_v28 }
0x1909   :  { %4915 = vmatpush1.bf16.msra.mxu0 %v4851_v5 }
0x190a   :  { %4916 = vmatprep.subr.bf16.mxu0 %v4857_v6 }
0x190b   :  { %4876 = vmatpush1.bf16.msra.mxu1 %v4854_v4 }
0x190c   :  { %4941 = vmatprep.subr.bf16.mxu1 %v6410_v0 }
0x190d   :  { %4917 = vmatpush1.bf16.msra.mxu0 %v4856_v12 }
0x190e   :  { %4892 = vmatmul.mubr.bf16.vlgmr.msra.gmra.mrb[64].mxu1 %v7194_v2 }
0x190f   :  { %4942 = vmatpush1.bf16.msra.mxu1 %v4818_v10  ;;  %5662 = vmatprep.mubr.msk.bf16.mxu1 %vm2639_vm6, %v7192_v1  ;;  %v4843_v1 = vld [vmem:[#allocation6 + $0xc28] sm:$0xff] }
0x1910   :  { %4943 = vmatprep.subr.bf16.mxu1 %v6410_v0  ;;  %4933 = vmatmul.mubr.bf16.vlgmr.msra.gmra.mrb[68].mxu0 %v7194_v2 }
0x1913   :  { %4944 = vmatpush1.bf16.msra.mxu1 %v4823_v13 }
0x1914   :  { %4945 = vmatprep.subr.bf16.mxu1 %v6410_v0 }
0x1917   :  { %4946 = vmatpush1.bf16.msra.mxu1 %v4828_v14 }
0x1918   :  { %4947 = vmatprep.subr.bf16.mxu1 %v6410_v0 }
0x191b   :  { %4948 = vmatpush1.bf16.msra.mxu1 %v4833_v48 }
0x191c   :  { %4949 = vmatprep.subr.bf16.mxu1 %v6410_v0 }
0x191f   :  { %4950 = vmatpush1.bf16.msra.mxu1 %v4838_v15 }
0x1920   :  { %4951 = vmatprep.subr.bf16.mxu1 %v6410_v0 }
0x1923   :  { %4952 = vmatpush1.bf16.msra.mxu1 %v4843_v1 }
0x1924   :  { %4953 = vmatprep.subr.bf16.mxu1 %v6410_v0 }
0x1927   :  { %4954 = vmatpush1.bf16.msra.mxu1 %v4848_v16 }
0x1928   :  { %4955 = vmatprep.subr.bf16.mxu1 %v6410_v0 }
0x192b   :  { %4956 = vmatpush1.bf16.msra.mxu1 %v4853_v17 }
0x192c   :  { %4957 = vmatprep.subr.bf16.mxu1 %v6410_v0  ;;  %v4989_v0 = vrot.slane %v4813_v30, %v7011_v63 }
0x192f   :  { %4958 = vmatpush1.bf16.msra.mxu1 %v4858_v18 }
0x1932   :  { %4974 = vmatmul.mubr.bf16.vlgmr.msra.gmra.mrb[68].mxu1 %v7194_v2  ;;  %v5001_v2 = vrot.slane %v4813_v30, %v7223_v3 }
0x19e1   :  { %v4893_v20 = vpop.f32.mrb[64].mxu1 }
0x19e2   :  { %v4895_v22 = vpop.f32.mrb[65].mxu1  ;;  %v5007_v19 = vadd.f32 %v4985_v34, %v4893_v20 }
0x19e3   :  { %v4897_v23 = vpop.f32.mrb[66].mxu1  ;;  %v4934_v26 = vpop.f32.mrb[68].mxu0  ;;  %v5008_v39 = vadd.f32 %v4989_v0, %v4895_v22 }
0x19e4   :  { %v4898_v9 = vpop.f32.mrb[67].mxu1  ;;  %v4936_v27 = vpop.f32.mrb[69].mxu0  ;;  %v5009_v35 = vadd.f32 %v4993_v32, %v4934_v26  ;;  %v5012_v57 = vsel %vm2796_vm7, %v5007_v19, -inf }
0x19e5   :  { %v4938_v45 = vpop.f32.mrb[70].mxu0  ;;  %v5010_v36 = vadd.f32 %v4997_v33, %v4936_v27  ;;  %v5013_v52 = vsel %vm2796_vm7, %v5008_v39, -inf }
0x19e6   :  { %v4939_v29 = vpop.f32.mrb[71].mxu0  ;;  %v5014_v41 = vsel %vm2796_vm7, %v5009_v35, -inf }
0x19e7   :  { %v5015_v42 = vsel %vm2796_vm7, %v5010_v36, -inf }
0x19e8   :  { %v5019_v50 = vmax.f32 %v5014_v41, %v5015_v42 }
0x1a05   :  { %v4975_v38 = vpop.f32.mrb[68].mxu1 }
0x1a06   :  { %v5011_v46 = vadd.f32 %v5001_v2, %v4975_v38  ;;  %v4977_v47 = vpop.f32.mrb[69].mxu1 }
0x1a07   :  { %v4978_v56 = vpop.f32.mrb[70].mxu1 }
0x1a08   :  { %v5016_v61 = vsel %vm2796_vm7, %v5011_v46, -inf  ;;  %v4979_v49 = vpop.f32.mrb[71].mxu1  ;;  %v6445_v56 = vmov 269488144  }
0x1a09   :  { %v5017_v63 = vmax.f32 %v5012_v57, %v5016_v61 }
0x1a0b   :  { %v5018_v3 = vmax.f32 %v5017_v63, %v5013_v52 }
0x1a0d   :  { %v5020_v53 = vmax.f32 %v5018_v3, %v5019_v50 }
0x1a0f   :  { %5021 = vmax.xlane.f32.xlu0 %v5020_v53 }
0x1a9c   :  { %v5022_v31 = vpop.xlane.xlu0 %5021 }
0x1a9d   :  { %v7618_v54 = vmax.f32 %v7570_v8, %v5022_v31 }
0x1a9f   :  { %v5024_v43 = vsub.f32 %v5007_v19, %v7618_v54  ;;  %v5025_v55 = vsub.f32 %v5008_v39, %v7618_v54  ;;  %v5026_v58 = vsub.f32 %v5009_v35, %v7618_v54  ;;  %v5027_v28 = vsub.f32 %v5010_v36, %v7618_v54 }
0x1aa0   :  { %v5028_v59 = vsub.f32 %v5011_v46, %v7618_v54  ;;  %v5039_v33 = vsub.f32 %v7570_v8, %v7618_v54  ;;  %v5090_v0 = vsub.f32 %v7233_v25, %v7618_v54  ;;  %v5128_v35 = vsub.f32 %v7330_v51, %v7618_v54 }
0x1aa1   :  { %v5029_v62 = vmul.f32 1.442695, %v5024_v43  ;;  %v5031_v4 = vmul.f32 1.442695, %v5025_v55  ;;  %v5033_v5 = vmul.f32 1.442695, %v5026_v58  ;;  %v5147_v36 = vsub.f32 %v7378_v7, %v7618_v54 }
0x1aa2   :  { %v5035_v6 = vmul.f32 1.442695, %v5027_v28  ;;  %v5037_v10 = vmul.f32 1.442695, %v5028_v59  ;;  %v5040_v34 = vmul.f32 1.442695, %v5039_v33  ;;  %v5166_v19 = vsub.f32 %v7426_v24, %v7618_v54 }
0x1aa3   :  { %6164 = vpow2.f32 %v5029_v62  ;;  %v5091_v2 = vmul.f32 1.442695, %v5090_v0  ;;  %v5185_v8 = vsub.f32 %v7474_v44, %v7618_v54  ;;  %v5129_v39 = vmul.f32 1.442695, %v5128_v35  ;;  %v5224_v43 = vld [vmem:[#allocation5 + $0x46] sm:$0xff] }
0x1aa4   :  { %6166 = vpow2.f32 %v5031_v4  ;;  %v5148_v25 = vmul.f32 1.442695, %v5147_v36  ;;  %v5167_v42 = vmul.f32 1.442695, %v5166_v19  ;;  %v5239_v44 = vsub.f32 %v7618_v54, %v7618_v54  ;;  %v5225_v55 = vld [vmem:[#allocation5 + $0x4e] sm:$0x3] }
0x1aa5   :  { %6168 = vpow2.f32 %v5033_v5  ;;  %v5186_v51 = vmul.f32 1.442695, %v5185_v8  ;;  %v5094_v59 = vld [vmem:[#allocation5] sm:$0xff]  ;;  %v5095_v62 = vld [vmem:[#allocation5 + $0x8] sm:$0x3] }
0x1aa6   :  { %6170 = vpow2.f32 %v5035_v6  ;;  %v5240_v61 = vmul.f32 1.442695, %v5239_v44  ;;  %v5113_v6 = vld [vmem:[#allocation5 + $0xa] sm:$0xff]  ;;  %v5208_v19 = vld [vmem:[#allocation5 + $0x3c] sm:$0xff] }
0x1aa7   :  { %6172 = vpow2.f32 %v5037_v10  ;;  %v5114_v10 = vld [vmem:[#allocation5 + $0x12] sm:$0x3] }
0x1aa8   :  { %6174 = vpow2.f32 %v5040_v34 }
0x1aa9   :  { %6176 = vpow2.f32 %v5091_v2  ;;  %v5190_v2 = vld [vmem:[#allocation5 + $0x3a] sm:$0x3] }
0x1aad   :  { %v6165_v12 = vpop.eup %6164 }
0x1aae   :  { %v6167_v13 = vpop.eup %6166  ;;  %v5043_v14 = vsel %vm2796_vm7, %v6165_v12, 0.0 }
0x1aaf   :  { %v6169_v48 = vpop.eup %6168  ;;  %v5044_v15 = vsel %vm2796_vm7, %v6167_v13, 0.0  ;;  %v5060_v1 = vcombine.low %v6165_v12, %v6167_v13  ;;  %v5132_v12 = vld [vmem:[#allocation5 + $0x14] sm:$0xff] }
0x1ab0   :  { %v6171_v16 = vpop.eup %6170  ;;  %v5045_v17 = vadd.f32 %v5044_v15, %v5043_v14  ;;  %v5046_v20 = vsel %vm2796_vm7, %v6169_v48, 0.0 }
0x1ab1   :  { %v6173_v18 = vpop.eup %6172  ;;  %v5061_v22 = vcombine.low %v6169_v48, %v6171_v16  ;;  %v7629_v23 = vrot.slane %v5060_v1, %v7241_v40  ;;  %v5048_v26 = vsel %vm2796_vm7, %v6171_v16, 0.0 }
0x1ab2   :  { %v5047_v9 = vadd.f32 %v5046_v20, %v5045_v17  ;;  %5663 = vst.sshfl [vmem:[#allocation5 + $0x58] sm:$0x3 pattern:$0x76325410] %v6173_v18  ;;  %v5050_v29 = vsel %vm2796_vm7, %v6173_v18, 0.0  ;;  %v6175_v41 = vpop.eup %6174  ;;  %v5151_v20 = vld [vmem:[#allocation5 + $0x1e] sm:$0xff] }
0x1ab3   :  { %v7633_v27 = vrot.slane %v5061_v22, %v7241_v40  ;;  %v5109_v40 = vsub.f32 %v7282_v37, %v7618_v54  ;;  %v5204_v37 = vsub.f32 %v7522_v11, %v7618_v54  ;;  %v5042_v7 = vmul.f32 %v6175_v41, %v7587_v21  ;;  %v6177_v57 = vpop.eup %6176  ;;  %v5133_v17 = vld [vmem:[#allocation5 + $0x1c] sm:$0x3]  ;;  %v5152_v22 = vld [vmem:[#allocation5 + $0x26] sm:$0x3] }
0x1ab4   :  { %v5049_v45 = vadd.f32 %v5048_v26, %v5047_v9  ;;  %v5098_v11 = vunpack.c.l.s4 %v6445_v56  ;;  %v5170_v26 = vld [vmem:[#allocation5 + $0x28] sm:$0xff] }
0x1ab5   :  { %v5076_v30 = vcombine.low %v7629_v23, %v7633_v27  ;;  %v5110_v38 = vmul.f32 1.442695, %v5109_v40  ;;  %v5205_v46 = vmul.f32 1.442695, %v5204_v37 }
0x1ab6   :  { %v5051_v32 = vadd.f32 %v5050_v29, %v5049_v45  ;;  %v5099_v63 = vunpack.c.0.s8 %v5098_v11  ;;  %v5171_v45 = vld [vmem:[#allocation5 + $0x30] sm:$0x3] }
0x1ab7   :  { %6178 = vpow2.f32 %v5110_v38  ;;  %v5209_v38 = vld [vmem:[#allocation5 + $0x44] sm:$0x3] }
0x1ab8   :  { %5052 = vadd.xlane.f32.xlu0 %v5051_v32  ;;  %6180 = vpow2.f32 %v5129_v39  ;;  %v7658_v53 = vsub.s32 %v5099_v63, %v7004_v60  ;;  %v5189_v32 = vld [vmem:[#allocation5 + $0x32] sm:$0xff] }
0x1ab9   :  { %6182 = vpow2.f32 %v5148_v25 }
0x1aba   :  { %6184 = vpow2.f32 %v5167_v42 }
0x1abb   :  { %6186 = vpow2.f32 %v5186_v51 }
0x1ac1   :  { %v6179_v49 = vpop.eup %6178 }
0x1ac2   :  { %v6181_v50 = vpop.eup %6180 }
0x1ac3   :  { %v6183_v52 = vpop.eup %6182 }
0x1ac4   :  { %v6185_v21 = vpop.eup %6184 }
0x1ac5   :  { %v6187_v3 = vpop.eup %6186 }
0x1b45   :  { %v5053_v24 = vpop.xlane.xlu0 %5052 }
0x1b46   :  { %v5054_v47 = vadd.f32 %v5053_v24, %v5042_v7 }
0x1b48   :  { %6188 = vrcp.f32 %v5054_v47 }
0x1b49   :  { %6190 = vpow2.f32 %v5205_v46 }
0x1b4a   :  { %6192 = vpow2.f32 %v5240_v61  ;;  %v5244_v61 = vld [vmem:[#allocation5 + $0x58] sm:$0x3] }
0x1b52   :  { %v7660_v31 = vpop.eup %6188 }
0x1b53   :  { %v6191_v54 = vpop.eup %6190  ;;  %v5223_v58 = vmul.f32 %v7660_v31, %v6175_v41  ;;  %v5093_v28 = vmul.f32 %v7660_v31, %v6177_v57  ;;  %v5112_v4 = vmul.f32 %v7660_v31, %v6179_v49  ;;  %v5131_v5 = vmul.f32 %v7660_v31, %v6181_v50 }
0x1b54   :  { %v5150_v60 = vmul.f32 %v7660_v31, %v6183_v52  ;;  %v5169_v13 = vmul.f32 %v7660_v31, %v6185_v21  ;;  %v5188_v14 = vmul.f32 %v7660_v31, %v6187_v3  ;;  %v5207_v48 = vmul.f32 %v6191_v54, %v7660_v31  ;;  %v6193_v46 = vpop.eup %6192 }
0x1b55   :  { %v5233_v15 = vrot.slane %v5223_v58, %v7658_v53  ;;  %v5103_v1 = vrot.slane %v5093_v28, %v7658_v53  ;;  %v5122_v16 = vrot.slane %v5112_v4, %v7658_v53  ;;  %v5141_v18 = vrot.slane %v5131_v5, %v7658_v53 }
0x1b56   :  { %v5160_v9 = vrot.slane %v5150_v60, %v7658_v53  ;;  %v5179_v29 = vrot.slane %v5169_v13, %v7658_v53  ;;  %v5198_v33 = vrot.slane %v5188_v14, %v7658_v53  ;;  %v5217_v34 = vrot.slane %v5207_v48, %v7658_v53 }
0x1b57   :  { %v5235_v0 = vmul.f32 %v5233_v15, %v5224_v43  ;;  %v5236_v40 = vmul.f32 %v5233_v15, %v5225_v55  ;;  %v5105_v35 = vmul.f32 %v5103_v1, %v5094_v59  ;;  %v5106_v36 = vmul.f32 %v5103_v1, %v5095_v62 }
0x1b58   :  { %v5124_v8 = vmul.f32 %v5122_v16, %v5113_v6  ;;  %v5125_v39 = vmul.f32 %v5122_v16, %v5114_v10  ;;  %v5143_v41 = vmul.f32 %v5141_v18, %v5132_v12  ;;  %v5144_v25 = vmul.f32 %v5141_v18, %v5133_v17 }
0x1b59   :  { %5237 = vst [vmem:[#allocation20 + $0x46] sm:$0xff] %v5235_v0  ;;  %5238 = vst [vmem:[#allocation20 + $0x4e] sm:$0x3] %v5236_v40  ;;  %v5162_v37 = vmul.f32 %v5160_v9, %v5151_v20  ;;  %v5163_v42 = vmul.f32 %v5160_v9, %v5152_v22  ;;  %v5181_v51 = vmul.f32 %v5179_v29, %v5170_v26 }
0x1b5a   :  { %5107 = vst [vmem:[#allocation20] sm:$0xff] %v5105_v35  ;;  %5108 = vst [vmem:[#allocation20 + $0x8] sm:$0x3] %v5106_v36  ;;  %v5182_v7 = vmul.f32 %v5179_v29, %v5171_v45  ;;  %v5200_v24 = vmul.f32 %v5198_v33, %v5189_v32  ;;  %v5201_v47 = vmul.f32 %v5198_v33, %v5190_v2 }
0x1b5b   :  { %5126 = vst [vmem:[#allocation20 + $0xa] sm:$0xff] %v5124_v8  ;;  %5127 = vst [vmem:[#allocation20 + $0x12] sm:$0x3] %v5125_v39  ;;  %v5219_v44 = vmul.f32 %v5217_v34, %v5208_v19  ;;  %v5220_v56 = vmul.f32 %v5217_v34, %v5209_v38  ;;  %v5242_v11 = vmul.f32 %v6193_v46, %v7660_v31 }
0x1b5c   :  { %5145 = vst [vmem:[#allocation20 + $0x14] sm:$0xff] %v5143_v41  ;;  %5146 = vst [vmem:[#allocation20 + $0x1c] sm:$0x3] %v5144_v25 }
0x1b5d   :  { %5164 = vst [vmem:[#allocation20 + $0x1e] sm:$0xff] %v5162_v37  ;;  %5165 = vst [vmem:[#allocation20 + $0x26] sm:$0x3] %v5163_v42  ;;  %v5252_v57 = vrot.slane %v5242_v11, %v7658_v53 }
0x1b5e   :  { %5183 = vst [vmem:[#allocation20 + $0x28] sm:$0xff] %v5181_v51  ;;  %5184 = vst [vmem:[#allocation20 + $0x30] sm:$0x3] %v5182_v7 }
0x1b5f   :  { %5202 = vst [vmem:[#allocation20 + $0x32] sm:$0xff] %v5200_v24  ;;  %5203 = vst [vmem:[#allocation20 + $0x3a] sm:$0x3] %v5201_v47  ;;  %v5254_v49 = vmul.f32 %v5252_v57, %v5076_v30  ;;  %v5255_v63 = vmul.f32 %v5252_v57, %v5244_v61 }
0x1b60   :  { %5221 = vst [vmem:[#allocation20 + $0x3c] sm:$0xff] %v5219_v44  ;;  %5222 = vst [vmem:[#allocation20 + $0x44] sm:$0x3] %v5220_v56 }
0x1b61   :  { %5256 = vst [vmem:[#allocation20 + $0x50] sm:$0xff] %v5254_v49  ;;  %5257 = vst [vmem:[#allocation20 + $0x58] sm:$0x3] %v5255_v63 }
0x1b62   :  { %6359 = shalt.err (!%p6356_p4)
}
0x1b63   :  { %s6360_s21 = scalar_lea.hbm %s7707_s12, 1440 }
0x1b64   :  { %p6361_p5 = scmp.ne.s32.totalorder %s7707_s12, %s6360_s21  ;;  %p6364_p6 = scmp.lt.u32.totalorder %s6360_s21, %s7707_s12 }
0x1b66   :  { %p6366_p7 = pnand %p6364_p6, %p6361_p5 }
0x1b68   :  { %6369 = shalt.err (!%p6366_p7)
}
0x1b69   :  { %5267 = dma.vmem_to_hbm [thread:$0]  %s5265_s29, 1440, %s7707_s12, [#allocation10]  }
0x1b6a   :  { %6396 = dma.done.wait [#allocation10], 1440  }
0x1b6b   :  { %6397 = vsyncadd [#allocation10], 4294965856 }
0x1b6c   :  { %5271 = vsyncpa [#allocation9], 1 }
0x1b6d   :  { %5272 = vsyncpa [#allocation12], 1 }
0x1b6e   :  { %5273 = vsyncpa [#allocation15], 1 }
0x1b6f   :  { %5274 = vsyncpa [#allocation18], 1 }
0x1b70   :  { %5275 = vsyncpa [#allocation10], 1 }
0x1b71   :  { %5276 = vsyncmov [#allocation7] }
0x1b74   :  { %s5277_s10 = vpop.sfrf %5276 }
0x1b75   :  { %p5664_p8 = scmp.ne.s32.totalorder %s5277_s10, 0 }
0x1b77   :  { %5281 = shalt.err (%p5664_p8)  }
0x1b78   :  { %5283 = vsyncmov [#allocation7 + $0x1] }
0x1b7b   :  { %s5284_s9 = vpop.sfrf %5283 }
0x1b7c   :  { %p5665_p9 = scmp.ne.s32.totalorder %s5284_s9, 0 }
0x1b7e   :  { %5288 = shalt.err (%p5665_p9)  }
0x1b7f   :  { %5290 = vsyncmov [#allocation7 + $0x2] }
0x1b82   :  { %s5291_s18 = vpop.sfrf %5290 }
0x1b83   :  { %p5666_p10 = scmp.ne.s32.totalorder %s5291_s18, 0 }
0x1b85   :  { %5295 = shalt.err (%p5666_p10)  }
0x1b86   :  { %5297 = vsyncmov [#allocation7 + $0x3] }
0x1b89   :  { %s5298_s12 = vpop.sfrf %5297 }
0x1b8a   :  { %p5667_p11 = scmp.ne.s32.totalorder %s5298_s12, 0 }
0x1b8c   :  { %5302 = shalt.err (%p5667_p11)  }
0x1b8d   :  { %5304 = vsyncmov [#allocation7 + $0x4] }
0x1b90   :  { %s5305_s13 = vpop.sfrf %5304 }
0x1b91   :  { %p5668_p12 = scmp.ne.s32.totalorder %s5305_s13, 0 }
0x1b93   :  { %5309 = shalt.err (%p5668_p12)  }
0x1b94   :  { %5311 = vsyncmov [#allocation7 + $0x5] }
0x1b97   :  { %s5312_s6 = vpop.sfrf %5311 }
0x1b98   :  { %p5669_p13 = scmp.ne.s32.totalorder %s5312_s6, 0 }
0x1b9a   :  { %5316 = shalt.err (%p5669_p13)  }
0x1b9b   :  { %5318 = vsyncmov [#allocation7 + $0x6] }
0x1b9e   :  { %s5319_s14 = vpop.sfrf %5318 }
0x1b9f   :  { %p5670_p0 = scmp.ne.s32.totalorder %s5319_s14, 0 }
0x1ba1   :  { %5323 = shalt.err (%p5670_p0)  }
0x1ba2   :  { %5325 = vsyncmov [#allocation7 + $0x7] }
0x1ba5   :  { %s5326_s24 = vpop.sfrf %5325 }
0x1ba6   :  { %p5671_p1 = scmp.ne.s32.totalorder %s5326_s24, 0 }
0x1ba8   :  { %5330 = shalt.err (%p5671_p1)  }
0x1ba9   :  { %5332 = vsyncmov [#allocation7 + $0x8] }
0x1bac   :  { %s5333_s8 = vpop.sfrf %5332 }
0x1bad   :  { %p5672_p2 = scmp.ne.s32.totalorder %s5333_s8, 0 }
0x1baf   :  { %5337 = shalt.err (%p5672_p2)  }

</bundles_post_ra>
